<compile_context>
chip_gen: v6e
topology: v6e:2x2x1
jax: 0.10.0
libtpu: 0.0.40
codegen_flags: <defaults>
</compile_context>

<pallas_src>
import functools

import jax
import jax.numpy as jnp
from jax import lax
from jax.experimental import pallas as pl
from jax.experimental.pallas import tpu as pltpu


def _odelstm_kernel(
    xw_ref,      # (T, B, 4H) f32   precomputed x @ W_ih + (b_ih + b_hh)
    delta_ref,   # (T, B, H)  f32   precomputed ts / 3, broadcast over H
    whh_ref,     # (H, 4H)    bf16  LSTM hidden->gates (pre-transposed)
    fw_ref,      # (2H, H)    bf16  [f1w ; f2w] stacked along rows
    fb_ref,      # (2, H)     f32   [f1b ; f2b] stacked along rows
    h_out_ref,   # (T, B, H)  f32   post-ODE hidden state for every step
    *,
    hidden_size,
    seq_len,
    batch,
):
    H, T, B = hidden_size, seq_len, batch
    bf16 = jnp.bfloat16

    # Loop-invariant weights: read/slice once, keep live across the recurrence.
    whh = whh_ref[...]                 # (H, 4H) bf16
    f1w = fw_ref[0 * H:1 * H, :]       # (H, H)  bf16
    f2w = fw_ref[1 * H:2 * H, :]       # (H, H)  bf16
    f1b = fb_ref[0:1, :]               # (1, H)  f32
    f2b = fb_ref[1:2, :]               # (1, H)  f32

    def f_node(y):
        z = jnp.tanh(
            jnp.dot(y.astype(bf16), f1w, preferred_element_type=jnp.float32)
            + f1b)
        return (jnp.dot(z.astype(bf16), f2w, preferred_element_type=jnp.float32)
                + f2b)

    def step(t, carry):
        h, c = carry

        # ---- nn.LSTMCell (input projection already hoisted out) ----
        gates = xw_ref[t] + jnp.dot(
            h.astype(bf16), whh, preferred_element_type=jnp.float32)
        sig = jax.nn.sigmoid(gates)    # one EUP pass over the whole (B, 4H)
        th = jnp.tanh(gates)           # one EUP pass over the whole (B, 4H)
        i_g = sig[:, 0 * H:1 * H]
        f_g = sig[:, 1 * H:2 * H]
        g_g = th[:, 2 * H:3 * H]
        o_g = sig[:, 3 * H:4 * H]
        new_c = f_g * c + i_g * g_g
        y = o_g * jnp.tanh(new_c)

        # ---- 3 fixed RK4 steps of the neural ODE, dt = ts / 3 ----
        delta = delta_ref[t]                      # (B, H), pre-broadcast
        half_delta = 0.5 * delta
        sixth_delta = delta * (1.0 / 6.0)
        for _ in range(3):                        # 3 unfolds
            k1 = f_node(y)
            k2 = f_node(y + k1 * half_delta)
            k3 = f_node(y + k2 * half_delta)
            k4 = f_node(y + k3 * delta)
            y = y + sixth_delta * ((k1 + k4) + 2.0 * (k2 + k3))

        # Readout (fc_inner + head) is done outside the kernel; store h_t.
        h_out_ref[t] = y
        return (y, new_c)

    h0 = jnp.zeros((B, H), jnp.float32)
    c0 = jnp.zeros((B, H), jnp.float32)
    lax.fori_loop(0, T, step, (h0, c0),
                  unroll=True if T <= 16 else 4)


def _default_core_splits(batch):
    """Split the batch across 2 TensorCores only on v7x-class devices."""
    try:
        kind = jax.devices()[0].device_kind.lower()
    except Exception:
        return 1
    if "v7" in kind and batch % 2 == 0:
        return 2
    return 1


def person_activity_forward(x, ts, params, *, num_core_splits=None):
    """x: [B, T, F] float32; ts: [B, T] float32  ->  logits [B, T, C]."""
    B, T, F = x.shape
    H = params["whh"].shape[0]
    C = params["outw"].shape[1]

    S = _default_core_splits(B) if num_core_splits is None else num_core_splits
    assert B % S == 0, (B, S)
    Bb = B // S

    # 1) Hoist the input projection: one dense f32 matmul, not T tiny ones.
    xw = jnp.einsum("btf,fg->btg", x, params["wih"]) + params["b"]   # [B,T,4H]
    # Reorganize to [S, T, Bb, *] so the (optional) core-split axis leads and
    # the block's last-two dims equal the full array dims.
    xw_s = xw.reshape(S, Bb, T, 4 * H).transpose(0, 2, 1, 3)          # [S,T,Bb,4H]
    delta = jnp.broadcast_to(
        (ts * (1.0 / 3.0)).reshape(S, Bb, T, 1).transpose(0, 2, 1, 3),
        (S, T, Bb, H))                                                # [S,T,Bb,H]

    # 2) Pack loop-invariant weights; recurrent matmul weights go bf16 once.
    whh_bf = params["whh"].astype(jnp.bfloat16)                       # (H, 4H)
    fw_bf = jnp.concatenate([params["f1w"], params["f2w"]],
                            axis=0).astype(jnp.bfloat16)              # (2H, H)
    fb = jnp.concatenate([params["f1b"], params["f2b"]], axis=0)      # (2, H)

    kernel = functools.partial(
        _odelstm_kernel, hidden_size=H, seq_len=T, batch=Bb)

    h_seq = pl.pallas_call(
        kernel,
        out_shape=jax.ShapeDtypeStruct((S, T, Bb, H), jnp.float32),
        grid_spec=pltpu.PrefetchScalarGridSpec(
            num_scalar_prefetch=0,
            grid=(S,),                 # 1 step (or 2-way batch split on v7x)
            in_specs=[
                pl.BlockSpec((None, T, Bb, 4 * H), lambda i: (i, 0, 0, 0)),
                pl.BlockSpec((None, T, Bb, H), lambda i: (i, 0, 0, 0)),
                pl.BlockSpec((H, 4 * H), lambda i: (0, 0)),
                pl.BlockSpec((2 * H, H), lambda i: (0, 0)),
                pl.BlockSpec((2, H), lambda i: (0, 0)),
            ],
            out_specs=pl.BlockSpec((None, T, Bb, H), lambda i: (i, 0, 0, 0)),
        ),
        compiler_params=pltpu.CompilerParams(
            dimension_semantics=("parallel",),
        ),
    )(xw_s, delta, whh_bf, fw_bf, fb)

    # [S, T, Bb, H] -> [B, T, H]
    h_bth = h_seq.transpose(0, 2, 1, 3).reshape(B, T, H)

    # 3) Fused ODELSTM fc_inner + classification head, one f32 matmul (off the
    #    recurrence, outside the kernel).
    wout = params["fcw"] @ params["outw"]                      # (H, C)
    bout = params["fcb"] @ params["outw"] + params["outb"]     # (1, C)
    return jnp.einsum("bth,hc->btc", h_bth, wout) + bout


def reference_forward(x, ts, params, *, recurrent_matmul_dtype=jnp.float32):
    """Pure-JAX reference mirroring the PyTorch module.

    recurrent_matmul_dtype=jnp.bfloat16 mirrors the kernel's mixed-precision
    MXU path (bf16 operands, f32 accumulation) for a tight comparison.
    """
    B, T, F = x.shape
    H = params["whh"].shape[0]
    md = recurrent_matmul_dtype

    def mm(a, b):
        return jnp.dot(a.astype(md), b.astype(md),
                       preferred_element_type=jnp.float32)

    h = jnp.zeros((B, H), jnp.float32)
    c = jnp.zeros((B, H), jnp.float32)

    def f_node(y):
        z = jnp.tanh(mm(y, params["f1w"]) + params["f1b"])
        return mm(z, params["f2w"]) + params["f2b"]

    outs = []
    for t in range(T):
        xt = x[:, t]
        dt = ts[:, t][:, None]
        gates = xt @ params["wih"] + mm(h, params["whh"]) + params["b"]
        i_g = jax.nn.sigmoid(gates[:, 0 * H:1 * H])
        f_g = jax.nn.sigmoid(gates[:, 1 * H:2 * H])
        g_g = jnp.tanh(gates[:, 2 * H:3 * H])
        o_g = jax.nn.sigmoid(gates[:, 3 * H:4 * H])
        c = f_g * c + i_g * g_g
        y = o_g * jnp.tanh(c)
        delta = dt / 3.0
        for _ in range(3):
            k1 = f_node(y)
            k2 = f_node(y + k1 * delta * 0.5)
            k3 = f_node(y + k2 * delta * 0.5)
            k4 = f_node(y + k3 * delta)
            y = y + delta * (k1 + 2 * k2 + 2 * k3 + k4) / 6.0
        h = y
        outs.append((h @ params["fcw"] + params["fcb"]) @ params["outw"]
                    + params["outb"])
    return jnp.stack(outs, axis=1)


def init_params(key, input_size, hidden_size, num_classes):
    H, F, C = hidden_size, input_size, num_classes
    ks = jax.random.split(key, 13)
    s = 0.2
    p = {
        # LSTMCell (weights stored pre-transposed for x @ W layout)
        "wih": s * jax.random.normal(ks[0], (F, 4 * H), jnp.float32),
        "whh": s * jax.random.normal(ks[1], (H, 4 * H), jnp.float32),
        "b":   s * jax.random.normal(ks[2], (1, 4 * H), jnp.float32),
        # f_node: Linear -> Tanh -> Linear
        "f1w": s * jax.random.normal(ks[3], (H, H), jnp.float32),
        "f1b": s * jax.random.normal(ks[4], (1, H), jnp.float32),
        "f2w": s * jax.random.normal(ks[5], (H, H), jnp.float32),
        "f2b": s * jax.random.normal(ks[6], (1, H), jnp.float32),
        # ODELSTM internal fc (H -> out_feature == H)
        "fcw": s * jax.random.normal(ks[7], (H, H), jnp.float32),
        "fcb": s * jax.random.normal(ks[8], (1, H), jnp.float32),
        # model head fc (H -> num_classes)
        "outw": s * jax.random.normal(ks[9], (H, C), jnp.float32),
        "outb": s * jax.random.normal(ks[10], (1, C), jnp.float32),
    }
    return p


if __name__ == "__main__":
    B, T, INPUT_SIZE, HIDDEN, NUM_CLASSES = 2, 8, 4, 32, 8

    key = jax.random.PRNGKey(0)
    k_x, k_t, k_p = jax.random.split(key, 3)
    x = jax.random.normal(k_x, (B, T, INPUT_SIZE), jnp.float32)
    ts = jax.random.uniform(k_t, (B, T), jnp.float32, minval=0.05, maxval=1.0)
    params = init_params(k_p, INPUT_SIZE, HIDDEN, NUM_CLASSES)

    out = person_activity_forward(x, ts, params)
    out = jax.block_until_ready(out)
    assert out.shape == (B, T, NUM_CLASSES), out.shape

    # Tight check against a reference with the same mixed-precision matmul
    # path (verifies the kernel's math exactly), plus a looser check against
    # the pure-f32 reference (verifies bf16 MXU operands did not hurt
    # accuracy materially; error compounds over T x 3 RK4 steps).
    ref_mixed = reference_forward(x, ts, params,
                                  recurrent_matmul_dtype=jnp.bfloat16)
    ref_f32 = reference_forward(x, ts, params,
                                recurrent_matmul_dtype=jnp.float32)
    err_mixed = float(jnp.max(jnp.abs(out - ref_mixed)))
    err_f32 = float(jnp.max(jnp.abs(out - ref_f32)))
    assert err_mixed < 2e-2, f"kernel vs mixed-precision reference: {err_mixed}"
    assert err_f32 < 2e-1, f"kernel vs f32 reference: {err_f32}"

    print("KERNEL_OK")
</pallas_src>

<mosaic_0001>
module attributes {stable_mosaic.version = 11 : i64} {
  func.func @_odelstm_kernel(%arg0: i32, %arg1: memref<1x8x2x128xf32, #tpu.memory_space<vmem>>, %arg2: memref<1x8x2x32xf32, #tpu.memory_space<vmem>>, %arg3: memref<32x128xbf16, #tpu.memory_space<vmem>>, %arg4: memref<64x32xbf16, #tpu.memory_space<vmem>>, %arg5: memref<2x32xf32, #tpu.memory_space<vmem>>, %arg6: memref<1x8x2x32xf32, #tpu.memory_space<vmem>>) attributes {dimension_semantics = [#tpu.dimension_semantics<parallel>], iteration_bounds = array<i64: 1>, scalar_prefetch = 0 : i64, scratch_operands = 0 : i64, tpu.core_type = #tpu.core_type<tc>, window_params = [{transform_indices = @transform_0, window_bounds = array<i64: 1, 8, 2, 128>}, {transform_indices = @transform_1, window_bounds = array<i64: 1, 8, 2, 32>}, {pipeline_mode = #tpu.pipeline_mode<synchronous>, transform_indices = @transform_2, window_bounds = array<i64: 32, 128>}, {pipeline_mode = #tpu.pipeline_mode<synchronous>, transform_indices = @transform_3, window_bounds = array<i64: 64, 32>}, {pipeline_mode = #tpu.pipeline_mode<synchronous>, transform_indices = @transform_4, window_bounds = array<i64: 2, 32>}, {transform_indices = @transform_5, window_bounds = array<i64: 1, 8, 2, 32>}]} {
    %c0 = arith.constant 0 : index
    %c0_0 = arith.constant 0 : index
    %0 = vector.load %arg3[%c0, %c0_0] : memref<32x128xbf16, #tpu.memory_space<vmem>>, vector<32x128xbf16>
    %c0_1 = arith.constant 0 : index
    %c0_2 = arith.constant 0 : index
    %1 = vector.load %arg4[%c0_1, %c0_2] : memref<64x32xbf16, #tpu.memory_space<vmem>>, vector<32x32xbf16>
    %c32 = arith.constant 32 : index
    %c0_3 = arith.constant 0 : index
    %2 = vector.load %arg4[%c32, %c0_3] : memref<64x32xbf16, #tpu.memory_space<vmem>>, vector<32x32xbf16>
    %c0_4 = arith.constant 0 : index
    %c0_5 = arith.constant 0 : index
    %3 = vector.load %arg5[%c0_4, %c0_5] : memref<2x32xf32, #tpu.memory_space<vmem>>, vector<1x32xf32>
    %c1 = arith.constant 1 : index
    %c0_6 = arith.constant 0 : index
    %4 = vector.load %arg5[%c1, %c0_6] : memref<2x32xf32, #tpu.memory_space<vmem>>, vector<1x32xf32>
    %cst = arith.constant 0.000000e+00 : f32
    %5 = vector.broadcast %cst : f32 to vector<2x32xf32>
    %cst_7 = arith.constant 0.000000e+00 : f32
    %6 = vector.broadcast %cst_7 : f32 to vector<2x32xf32>
    %c0_i32 = arith.constant 0 : i32
    %c0_8 = arith.constant 0 : index
    %7 = arith.index_cast %c0_i32 : i32 to index
    %c0_9 = arith.constant 0 : index
    %c0_10 = arith.constant 0 : index
    %8 = vector.load %arg1[%c0_8, %7, %c0_9, %c0_10] : memref<1x8x2x128xf32, #tpu.memory_space<vmem>>, vector<1x1x2x128xf32>
    %9 = vector.shape_cast %8 : vector<1x1x2x128xf32> to vector<2x128xf32>
    %10 = arith.truncf %5 : vector<2x32xf32> to vector<2x32xbf16>
    %cst_11 = arith.constant dense<0.000000e+00> : vector<2x128xf32>
    %11 = tpu.matmul %10, %0, %cst_11 {dimension_numbers = #tpu.dot_dimension_numbers<[1], [0], [0], [1], [0, 0, 1, 1], [], []>} : vector<2x32xbf16>, vector<32x128xbf16>, vector<2x128xf32> -> vector<2x128xf32>
    %12 = arith.addf %9, %11 : vector<2x128xf32>
    %13 = arith.negf %12 : vector<2x128xf32>
    %14 = math.exp %13 : vector<2x128xf32>
    %cst_12 = arith.constant 1.000000e+00 : f32
    %15 = vector.broadcast %cst_12 : f32 to vector<2x128xf32>
    %16 = arith.addf %15, %14 : vector<2x128xf32>
    %17 = arith.divf %15, %16 : vector<2x128xf32>
    %18 = math.tanh %12 : vector<2x128xf32>
    %19 = vector.extract_strided_slice %17 {offsets = [0, 0], sizes = [2, 32], strides = [1, 1]} : vector<2x128xf32> to vector<2x32xf32>
    %20 = vector.extract_strided_slice %17 {offsets = [0, 32], sizes = [2, 32], strides = [1, 1]} : vector<2x128xf32> to vector<2x32xf32>
    %21 = vector.extract_strided_slice %18 {offsets = [0, 64], sizes = [2, 32], strides = [1, 1]} : vector<2x128xf32> to vector<2x32xf32>
    %22 = vector.extract_strided_slice %17 {offsets = [0, 96], sizes = [2, 32], strides = [1, 1]} : vector<2x128xf32> to vector<2x32xf32>
    %23 = arith.mulf %20, %6 : vector<2x32xf32>
    %24 = arith.mulf %19, %21 : vector<2x32xf32>
    %25 = arith.addf %23, %24 : vector<2x32xf32>
    %26 = math.tanh %25 : vector<2x32xf32>
    %27 = arith.mulf %22, %26 : vector<2x32xf32>
    %c0_13 = arith.constant 0 : index
    %28 = arith.index_cast %c0_i32 : i32 to index
    %c0_14 = arith.constant 0 : index
    %c0_15 = arith.constant 0 : index
    %29 = vector.load %arg2[%c0_13, %28, %c0_14, %c0_15] : memref<1x8x2x32xf32, #tpu.memory_space<vmem>>, vector<1x1x2x32xf32>
    %30 = vector.shape_cast %29 : vector<1x1x2x32xf32> to vector<2x32xf32>
    %cst_16 = arith.constant 5.000000e-01 : f32
    %31 = vector.broadcast %cst_16 : f32 to vector<2x32xf32>
    %32 = arith.mulf %31, %30 : vector<2x32xf32>
    %cst_17 = arith.constant 0.166666672 : f32
    %33 = vector.broadcast %cst_17 : f32 to vector<2x32xf32>
    %34 = arith.mulf %30, %33 : vector<2x32xf32>
    %35 = arith.truncf %27 : vector<2x32xf32> to vector<2x32xbf16>
    %cst_18 = arith.constant dense<0.000000e+00> : vector<2x32xf32>
    %36 = tpu.matmul %35, %1, %cst_18 {dimension_numbers = #tpu.dot_dimension_numbers<[1], [0], [0], [1], [0, 0, 1, 1], [], []>} : vector<2x32xbf16>, vector<32x32xbf16>, vector<2x32xf32> -> vector<2x32xf32>
    %37 = vector.broadcast %3 : vector<1x32xf32> to vector<2x32xf32>
    %38 = arith.addf %36, %37 : vector<2x32xf32>
    %39 = math.tanh %38 : vector<2x32xf32>
    %40 = arith.truncf %39 : vector<2x32xf32> to vector<2x32xbf16>
    %cst_19 = arith.constant dense<0.000000e+00> : vector<2x32xf32>
    %41 = tpu.matmul %40, %2, %cst_19 {dimension_numbers = #tpu.dot_dimension_numbers<[1], [0], [0], [1], [0, 0, 1, 1], [], []>} : vector<2x32xbf16>, vector<32x32xbf16>, vector<2x32xf32> -> vector<2x32xf32>
    %42 = vector.broadcast %4 : vector<1x32xf32> to vector<2x32xf32>
    %43 = arith.addf %41, %42 : vector<2x32xf32>
    %44 = arith.mulf %43, %32 : vector<2x32xf32>
    %45 = arith.addf %27, %44 : vector<2x32xf32>
    %46 = arith.truncf %45 : vector<2x32xf32> to vector<2x32xbf16>
    %cst_20 = arith.constant dense<0.000000e+00> : vector<2x32xf32>
    %47 = tpu.matmul %46, %1, %cst_20 {dimension_numbers = #tpu.dot_dimension_numbers<[1], [0], [0], [1], [0, 0, 1, 1], [], []>} : vector<2x32xbf16>, vector<32x32xbf16>, vector<2x32xf32> -> vector<2x32xf32>
    %48 = vector.broadcast %3 : vector<1x32xf32> to vector<2x32xf32>
    %49 = arith.addf %47, %48 : vector<2x32xf32>
    %50 = math.tanh %49 : vector<2x32xf32>
    %51 = arith.truncf %50 : vector<2x32xf32> to vector<2x32xbf16>
    %cst_21 = arith.constant dense<0.000000e+00> : vector<2x32xf32>
    %52 = tpu.matmul %51, %2, %cst_21 {dimension_numbers = #tpu.dot_dimension_numbers<[1], [0], [0], [1], [0, 0, 1, 1], [], []>} : vector<2x32xbf16>, vector<32x32xbf16>, vector<2x32xf32> -> vector<2x32xf32>
    %53 = vector.broadcast %4 : vector<1x32xf32> to vector<2x32xf32>
    %54 = arith.addf %52, %53 : vector<2x32xf32>
    %55 = arith.mulf %54, %32 : vector<2x32xf32>
    %56 = arith.addf %27, %55 : vector<2x32xf32>
    %57 = arith.truncf %56 : vector<2x32xf32> to vector<2x32xbf16>
    %cst_22 = arith.constant dense<0.000000e+00> : vector<2x32xf32>
    %58 = tpu.matmul %57, %1, %cst_22 {dimension_numbers = #tpu.dot_dimension_numbers<[1], [0], [0], [1], [0, 0, 1, 1], [], []>} : vector<2x32xbf16>, vector<32x32xbf16>, vector<2x32xf32> -> vector<2x32xf32>
    %59 = vector.broadcast %3 : vector<1x32xf32> to vector<2x32xf32>
    %60 = arith.addf %58, %59 : vector<2x32xf32>
    %61 = math.tanh %60 : vector<2x32xf32>
    %62 = arith.truncf %61 : vector<2x32xf32> to vector<2x32xbf16>
    %cst_23 = arith.constant dense<0.000000e+00> : vector<2x32xf32>
    %63 = tpu.matmul %62, %2, %cst_23 {dimension_numbers = #tpu.dot_dimension_numbers<[1], [0], [0], [1], [0, 0, 1, 1], [], []>} : vector<2x32xbf16>, vector<32x32xbf16>, vector<2x32xf32> -> vector<2x32xf32>
    %64 = vector.broadcast %4 : vector<1x32xf32> to vector<2x32xf32>
    %65 = arith.addf %63, %64 : vector<2x32xf32>
    %66 = arith.mulf %65, %30 : vector<2x32xf32>
    %67 = arith.addf %27, %66 : vector<2x32xf32>
    %68 = arith.truncf %67 : vector<2x32xf32> to vector<2x32xbf16>
    %cst_24 = arith.constant dense<0.000000e+00> : vector<2x32xf32>
    %69 = tpu.matmul %68, %1, %cst_24 {dimension_numbers = #tpu.dot_dimension_numbers<[1], [0], [0], [1], [0, 0, 1, 1], [], []>} : vector<2x32xbf16>, vector<32x32xbf16>, vector<2x32xf32> -> vector<2x32xf32>
    %70 = vector.broadcast %3 : vector<1x32xf32> to vector<2x32xf32>
    %71 = arith.addf %69, %70 : vector<2x32xf32>
    %72 = math.tanh %71 : vector<2x32xf32>
    %73 = arith.truncf %72 : vector<2x32xf32> to vector<2x32xbf16>
    %cst_25 = arith.constant dense<0.000000e+00> : vector<2x32xf32>
    %74 = tpu.matmul %73, %2, %cst_25 {dimension_numbers = #tpu.dot_dimension_numbers<[1], [0], [0], [1], [0, 0, 1, 1], [], []>} : vector<2x32xbf16>, vector<32x32xbf16>, vector<2x32xf32> -> vector<2x32xf32>
    %75 = vector.broadcast %4 : vector<1x32xf32> to vector<2x32xf32>
    %76 = arith.addf %74, %75 : vector<2x32xf32>
    %77 = arith.addf %43, %76 : vector<2x32xf32>
    %78 = arith.addf %54, %65 : vector<2x32xf32>
    %cst_26 = arith.constant 2.000000e+00 : f32
    %79 = vector.broadcast %cst_26 : f32 to vector<2x32xf32>
    %80 = arith.mulf %79, %78 : vector<2x32xf32>
    %81 = arith.addf %77, %80 : vector<2x32xf32>
    %82 = arith.mulf %34, %81 : vector<2x32xf32>
    %83 = arith.addf %27, %82 : vector<2x32xf32>
    %84 = arith.truncf %83 : vector<2x32xf32> to vector<2x32xbf16>
    %cst_27 = arith.constant dense<0.000000e+00> : vector<2x32xf32>
    %85 = tpu.matmul %84, %1, %cst_27 {dimension_numbers = #tpu.dot_dimension_numbers<[1], [0], [0], [1], [0, 0, 1, 1], [], []>} : vector<2x32xbf16>, vector<32x32xbf16>, vector<2x32xf32> -> vector<2x32xf32>
    %86 = vector.broadcast %3 : vector<1x32xf32> to vector<2x32xf32>
    %87 = arith.addf %85, %86 : vector<2x32xf32>
    %88 = math.tanh %87 : vector<2x32xf32>
    %89 = arith.truncf %88 : vector<2x32xf32> to vector<2x32xbf16>
    %cst_28 = arith.constant dense<0.000000e+00> : vector<2x32xf32>
    %90 = tpu.matmul %89, %2, %cst_28 {dimension_numbers = #tpu.dot_dimension_numbers<[1], [0], [0], [1], [0, 0, 1, 1], [], []>} : vector<2x32xbf16>, vector<32x32xbf16>, vector<2x32xf32> -> vector<2x32xf32>
    %91 = vector.broadcast %4 : vector<1x32xf32> to vector<2x32xf32>
    %92 = arith.addf %90, %91 : vector<2x32xf32>
    %93 = arith.mulf %92, %32 : vector<2x32xf32>
    %94 = arith.addf %83, %93 : vector<2x32xf32>
    %95 = arith.truncf %94 : vector<2x32xf32> to vector<2x32xbf16>
    %cst_29 = arith.constant dense<0.000000e+00> : vector<2x32xf32>
    %96 = tpu.matmul %95, %1, %cst_29 {dimension_numbers = #tpu.dot_dimension_numbers<[1], [0], [0], [1], [0, 0, 1, 1], [], []>} : vector<2x32xbf16>, vector<32x32xbf16>, vector<2x32xf32> -> vector<2x32xf32>
    %97 = vector.broadcast %3 : vector<1x32xf32> to vector<2x32xf32>
    %98 = arith.addf %96, %97 : vector<2x32xf32>
    %99 = math.tanh %98 : vector<2x32xf32>
    %100 = arith.truncf %99 : vector<2x32xf32> to vector<2x32xbf16>
    %cst_30 = arith.constant dense<0.000000e+00> : vector<2x32xf32>
    %101 = tpu.matmul %100, %2, %cst_30 {dimension_numbers = #tpu.dot_dimension_numbers<[1], [0], [0], [1], [0, 0, 1, 1], [], []>} : vector<2x32xbf16>, vector<32x32xbf16>, vector<2x32xf32> -> vector<2x32xf32>
    %102 = vector.broadcast %4 : vector<1x32xf32> to vector<2x32xf32>
    %103 = arith.addf %101, %102 : vector<2x32xf32>
    %104 = arith.mulf %103, %32 : vector<2x32xf32>
    %105 = arith.addf %83, %104 : vector<2x32xf32>
    %106 = arith.truncf %105 : vector<2x32xf32> to vector<2x32xbf16>
    %cst_31 = arith.constant dense<0.000000e+00> : vector<2x32xf32>
    %107 = tpu.matmul %106, %1, %cst_31 {dimension_numbers = #tpu.dot_dimension_numbers<[1], [0], [0], [1], [0, 0, 1, 1], [], []>} : vector<2x32xbf16>, vector<32x32xbf16>, vector<2x32xf32> -> vector<2x32xf32>
    %108 = vector.broadcast %3 : vector<1x32xf32> to vector<2x32xf32>
    %109 = arith.addf %107, %108 : vector<2x32xf32>
    %110 = math.tanh %109 : vector<2x32xf32>
    %111 = arith.truncf %110 : vector<2x32xf32> to vector<2x32xbf16>
    %cst_32 = arith.constant dense<0.000000e+00> : vector<2x32xf32>
    %112 = tpu.matmul %111, %2, %cst_32 {dimension_numbers = #tpu.dot_dimension_numbers<[1], [0], [0], [1], [0, 0, 1, 1], [], []>} : vector<2x32xbf16>, vector<32x32xbf16>, vector<2x32xf32> -> vector<2x32xf32>
    %113 = vector.broadcast %4 : vector<1x32xf32> to vector<2x32xf32>
    %114 = arith.addf %112, %113 : vector<2x32xf32>
    %115 = arith.mulf %114, %30 : vector<2x32xf32>
    %116 = arith.addf %83, %115 : vector<2x32xf32>
    %117 = arith.truncf %116 : vector<2x32xf32> to vector<2x32xbf16>
    %cst_33 = arith.constant dense<0.000000e+00> : vector<2x32xf32>
    %118 = tpu.matmul %117, %1, %cst_33 {dimension_numbers = #tpu.dot_dimension_numbers<[1], [0], [0], [1], [0, 0, 1, 1], [], []>} : vector<2x32xbf16>, vector<32x32xbf16>, vector<2x32xf32> -> vector<2x32xf32>
    %119 = vector.broadcast %3 : vector<1x32xf32> to vector<2x32xf32>
    %120 = arith.addf %118, %119 : vector<2x32xf32>
    %121 = math.tanh %120 : vector<2x32xf32>
    %122 = arith.truncf %121 : vector<2x32xf32> to vector<2x32xbf16>
    %cst_34 = arith.constant dense<0.000000e+00> : vector<2x32xf32>
    %123 = tpu.matmul %122, %2, %cst_34 {dimension_numbers = #tpu.dot_dimension_numbers<[1], [0], [0], [1], [0, 0, 1, 1], [], []>} : vector<2x32xbf16>, vector<32x32xbf16>, vector<2x32xf32> -> vector<2x32xf32>
    %124 = vector.broadcast %4 : vector<1x32xf32> to vector<2x32xf32>
    %125 = arith.addf %123, %124 : vector<2x32xf32>
    %126 = arith.addf %92, %125 : vector<2x32xf32>
    %127 = arith.addf %103, %114 : vector<2x32xf32>
    %cst_35 = arith.constant 2.000000e+00 : f32
    %128 = vector.broadcast %cst_35 : f32 to vector<2x32xf32>
    %129 = arith.mulf %128, %127 : vector<2x32xf32>
    %130 = arith.addf %126, %129 : vector<2x32xf32>
    %131 = arith.mulf %34, %130 : vector<2x32xf32>
    %132 = arith.addf %83, %131 : vector<2x32xf32>
    %133 = arith.truncf %132 : vector<2x32xf32> to vector<2x32xbf16>
    %cst_36 = arith.constant dense<0.000000e+00> : vector<2x32xf32>
    %134 = tpu.matmul %133, %1, %cst_36 {dimension_numbers = #tpu.dot_dimension_numbers<[1], [0], [0], [1], [0, 0, 1, 1], [], []>} : vector<2x32xbf16>, vector<32x32xbf16>, vector<2x32xf32> -> vector<2x32xf32>
    %135 = vector.broadcast %3 : vector<1x32xf32> to vector<2x32xf32>
    %136 = arith.addf %134, %135 : vector<2x32xf32>
    %137 = math.tanh %136 : vector<2x32xf32>
    %138 = arith.truncf %137 : vector<2x32xf32> to vector<2x32xbf16>
    %cst_37 = arith.constant dense<0.000000e+00> : vector<2x32xf32>
    %139 = tpu.matmul %138, %2, %cst_37 {dimension_numbers = #tpu.dot_dimension_numbers<[1], [0], [0], [1], [0, 0, 1, 1], [], []>} : vector<2x32xbf16>, vector<32x32xbf16>, vector<2x32xf32> -> vector<2x32xf32>
    %140 = vector.broadcast %4 : vector<1x32xf32> to vector<2x32xf32>
    %141 = arith.addf %139, %140 : vector<2x32xf32>
    %142 = arith.mulf %141, %32 : vector<2x32xf32>
    %143 = arith.addf %132, %142 : vector<2x32xf32>
    %144 = arith.truncf %143 : vector<2x32xf32> to vector<2x32xbf16>
    %cst_38 = arith.constant dense<0.000000e+00> : vector<2x32xf32>
    %145 = tpu.matmul %144, %1, %cst_38 {dimension_numbers = #tpu.dot_dimension_numbers<[1], [0], [0], [1], [0, 0, 1, 1], [], []>} : vector<2x32xbf16>, vector<32x32xbf16>, vector<2x32xf32> -> vector<2x32xf32>
    %146 = vector.broadcast %3 : vector<1x32xf32> to vector<2x32xf32>
    %147 = arith.addf %145, %146 : vector<2x32xf32>
    %148 = math.tanh %147 : vector<2x32xf32>
    %149 = arith.truncf %148 : vector<2x32xf32> to vector<2x32xbf16>
    %cst_39 = arith.constant dense<0.000000e+00> : vector<2x32xf32>
    %150 = tpu.matmul %149, %2, %cst_39 {dimension_numbers = #tpu.dot_dimension_numbers<[1], [0], [0], [1], [0, 0, 1, 1], [], []>} : vector<2x32xbf16>, vector<32x32xbf16>, vector<2x32xf32> -> vector<2x32xf32>
    %151 = vector.broadcast %4 : vector<1x32xf32> to vector<2x32xf32>
    %152 = arith.addf %150, %151 : vector<2x32xf32>
    %153 = arith.mulf %152, %32 : vector<2x32xf32>
    %154 = arith.addf %132, %153 : vector<2x32xf32>
    %155 = arith.truncf %154 : vector<2x32xf32> to vector<2x32xbf16>
    %cst_40 = arith.constant dense<0.000000e+00> : vector<2x32xf32>
    %156 = tpu.matmul %155, %1, %cst_40 {dimension_numbers = #tpu.dot_dimension_numbers<[1], [0], [0], [1], [0, 0, 1, 1], [], []>} : vector<2x32xbf16>, vector<32x32xbf16>, vector<2x32xf32> -> vector<2x32xf32>
    %157 = vector.broadcast %3 : vector<1x32xf32> to vector<2x32xf32>
    %158 = arith.addf %156, %157 : vector<2x32xf32>
    %159 = math.tanh %158 : vector<2x32xf32>
    %160 = arith.truncf %159 : vector<2x32xf32> to vector<2x32xbf16>
    %cst_41 = arith.constant dense<0.000000e+00> : vector<2x32xf32>
    %161 = tpu.matmul %160, %2, %cst_41 {dimension_numbers = #tpu.dot_dimension_numbers<[1], [0], [0], [1], [0, 0, 1, 1], [], []>} : vector<2x32xbf16>, vector<32x32xbf16>, vector<2x32xf32> -> vector<2x32xf32>
    %162 = vector.broadcast %4 : vector<1x32xf32> to vector<2x32xf32>
    %163 = arith.addf %161, %162 : vector<2x32xf32>
    %164 = arith.mulf %163, %30 : vector<2x32xf32>
    %165 = arith.addf %132, %164 : vector<2x32xf32>
    %166 = arith.truncf %165 : vector<2x32xf32> to vector<2x32xbf16>
    %cst_42 = arith.constant dense<0.000000e+00> : vector<2x32xf32>
    %167 = tpu.matmul %166, %1, %cst_42 {dimension_numbers = #tpu.dot_dimension_numbers<[1], [0], [0], [1], [0, 0, 1, 1], [], []>} : vector<2x32xbf16>, vector<32x32xbf16>, vector<2x32xf32> -> vector<2x32xf32>
    %168 = vector.broadcast %3 : vector<1x32xf32> to vector<2x32xf32>
    %169 = arith.addf %167, %168 : vector<2x32xf32>
    %170 = math.tanh %169 : vector<2x32xf32>
    %171 = arith.truncf %170 : vector<2x32xf32> to vector<2x32xbf16>
    %cst_43 = arith.constant dense<0.000000e+00> : vector<2x32xf32>
    %172 = tpu.matmul %171, %2, %cst_43 {dimension_numbers = #tpu.dot_dimension_numbers<[1], [0], [0], [1], [0, 0, 1, 1], [], []>} : vector<2x32xbf16>, vector<32x32xbf16>, vector<2x32xf32> -> vector<2x32xf32>
    %173 = vector.broadcast %4 : vector<1x32xf32> to vector<2x32xf32>
    %174 = arith.addf %172, %173 : vector<2x32xf32>
    %175 = arith.addf %141, %174 : vector<2x32xf32>
    %176 = arith.addf %152, %163 : vector<2x32xf32>
    %cst_44 = arith.constant 2.000000e+00 : f32
    %177 = vector.broadcast %cst_44 : f32 to vector<2x32xf32>
    %178 = arith.mulf %177, %176 : vector<2x32xf32>
    %179 = arith.addf %175, %178 : vector<2x32xf32>
    %180 = arith.mulf %34, %179 : vector<2x32xf32>
    %181 = arith.addf %132, %180 : vector<2x32xf32>
    %c0_45 = arith.constant 0 : index
    %182 = arith.index_cast %c0_i32 : i32 to index
    %c0_46 = arith.constant 0 : index
    %c0_47 = arith.constant 0 : index
    %183 = vector.load %arg6[%c0_45, %182, %c0_46, %c0_47] : memref<1x8x2x32xf32, #tpu.memory_space<vmem>>, vector<1x1x2x32xf32>
    %184 = vector.shape_cast %183 : vector<1x1x2x32xf32> to vector<2x32xf32>
    %185 = vector.shape_cast %181 : vector<2x32xf32> to vector<1x1x2x32xf32>
    tpu.vector_store %arg6[%c0_45, %182, %c0_46, %c0_47], %185 {strides = array<i32>} : memref<1x8x2x32xf32, #tpu.memory_space<vmem>>, vector<1x1x2x32xf32>,
    %c1_i32 = arith.constant 1 : i32
    %c0_48 = arith.constant 0 : index
    %186 = arith.index_cast %c1_i32 : i32 to index
    %c0_49 = arith.constant 0 : index
    %c0_50 = arith.constant 0 : index
    %187 = vector.load %arg1[%c0_48, %186, %c0_49, %c0_50] : memref<1x8x2x128xf32, #tpu.memory_space<vmem>>, vector<1x1x2x128xf32>
    %188 = vector.shape_cast %187 : vector<1x1x2x128xf32> to vector<2x128xf32>
    %189 = arith.truncf %181 : vector<2x32xf32> to vector<2x32xbf16>
    %cst_51 = arith.constant dense<0.000000e+00> : vector<2x128xf32>
    %190 = tpu.matmul %189, %0, %cst_51 {dimension_numbers = #tpu.dot_dimension_numbers<[1], [0], [0], [1], [0, 0, 1, 1], [], []>} : vector<2x32xbf16>, vector<32x128xbf16>, vector<2x128xf32> -> vector<2x128xf32>
    %191 = arith.addf %188, %190 : vector<2x128xf32>
    %192 = arith.negf %191 : vector<2x128xf32>
    %193 = math.exp %192 : vector<2x128xf32>
    %cst_52 = arith.constant 1.000000e+00 : f32
    %194 = vector.broadcast %cst_52 : f32 to vector<2x128xf32>
    %195 = arith.addf %194, %193 : vector<2x128xf32>
    %196 = arith.divf %194, %195 : vector<2x128xf32>
    %197 = math.tanh %191 : vector<2x128xf32>
    %198 = vector.extract_strided_slice %196 {offsets = [0, 0], sizes = [2, 32], strides = [1, 1]} : vector<2x128xf32> to vector<2x32xf32>
    %199 = vector.extract_strided_slice %196 {offsets = [0, 32], sizes = [2, 32], strides = [1, 1]} : vector<2x128xf32> to vector<2x32xf32>
    %200 = vector.extract_strided_slice %197 {offsets = [0, 64], sizes = [2, 32], strides = [1, 1]} : vector<2x128xf32> to vector<2x32xf32>
    %201 = vector.extract_strided_slice %196 {offsets = [0, 96], sizes = [2, 32], strides = [1, 1]} : vector<2x128xf32> to vector<2x32xf32>
    %202 = arith.mulf %199, %25 : vector<2x32xf32>
    %203 = arith.mulf %198, %200 : vector<2x32xf32>
    %204 = arith.addf %202, %203 : vector<2x32xf32>
    %205 = math.tanh %204 : vector<2x32xf32>
    %206 = arith.mulf %201, %205 : vector<2x32xf32>
    %c0_53 = arith.constant 0 : index
    %207 = arith.index_cast %c1_i32 : i32 to index
    %c0_54 = arith.constant 0 : index
    %c0_55 = arith.constant 0 : index
    %208 = vector.load %arg2[%c0_53, %207, %c0_54, %c0_55] : memref<1x8x2x32xf32, #tpu.memory_space<vmem>>, vector<1x1x2x32xf32>
    %209 = vector.shape_cast %208 : vector<1x1x2x32xf32> to vector<2x32xf32>
    %cst_56 = arith.constant 5.000000e-01 : f32
    %210 = vector.broadcast %cst_56 : f32 to vector<2x32xf32>
    %211 = arith.mulf %210, %209 : vector<2x32xf32>
    %cst_57 = arith.constant 0.166666672 : f32
    %212 = vector.broadcast %cst_57 : f32 to vector<2x32xf32>
    %213 = arith.mulf %209, %212 : vector<2x32xf32>
    %214 = arith.truncf %206 : vector<2x32xf32> to vector<2x32xbf16>
    %cst_58 = arith.constant dense<0.000000e+00> : vector<2x32xf32>
    %215 = tpu.matmul %214, %1, %cst_58 {dimension_numbers = #tpu.dot_dimension_numbers<[1], [0], [0], [1], [0, 0, 1, 1], [], []>} : vector<2x32xbf16>, vector<32x32xbf16>, vector<2x32xf32> -> vector<2x32xf32>
    %216 = vector.broadcast %3 : vector<1x32xf32> to vector<2x32xf32>
    %217 = arith.addf %215, %216 : vector<2x32xf32>
    %218 = math.tanh %217 : vector<2x32xf32>
    %219 = arith.truncf %218 : vector<2x32xf32> to vector<2x32xbf16>
    %cst_59 = arith.constant dense<0.000000e+00> : vector<2x32xf32>
    %220 = tpu.matmul %219, %2, %cst_59 {dimension_numbers = #tpu.dot_dimension_numbers<[1], [0], [0], [1], [0, 0, 1, 1], [], []>} : vector<2x32xbf16>, vector<32x32xbf16>, vector<2x32xf32> -> vector<2x32xf32>
    %221 = vector.broadcast %4 : vector<1x32xf32> to vector<2x32xf32>
    %222 = arith.addf %220, %221 : vector<2x32xf32>
    %223 = arith.mulf %222, %211 : vector<2x32xf32>
    %224 = arith.addf %206, %223 : vector<2x32xf32>
    %225 = arith.truncf %224 : vector<2x32xf32> to vector<2x32xbf16>
    %cst_60 = arith.constant dense<0.000000e+00> : vector<2x32xf32>
    %226 = tpu.matmul %225, %1, %cst_60 {dimension_numbers = #tpu.dot_dimension_numbers<[1], [0], [0], [1], [0, 0, 1, 1], [], []>} : vector<2x32xbf16>, vector<32x32xbf16>, vector<2x32xf32> -> vector<2x32xf32>
    %227 = vector.broadcast %3 : vector<1x32xf32> to vector<2x32xf32>
    %228 = arith.addf %226, %227 : vector<2x32xf32>
    %229 = math.tanh %228 : vector<2x32xf32>
    %230 = arith.truncf %229 : vector<2x32xf32> to vector<2x32xbf16>
    %cst_61 = arith.constant dense<0.000000e+00> : vector<2x32xf32>
    %231 = tpu.matmul %230, %2, %cst_61 {dimension_numbers = #tpu.dot_dimension_numbers<[1], [0], [0], [1], [0, 0, 1, 1], [], []>} : vector<2x32xbf16>, vector<32x32xbf16>, vector<2x32xf32> -> vector<2x32xf32>
    %232 = vector.broadcast %4 : vector<1x32xf32> to vector<2x32xf32>
    %233 = arith.addf %231, %232 : vector<2x32xf32>
    %234 = arith.mulf %233, %211 : vector<2x32xf32>
    %235 = arith.addf %206, %234 : vector<2x32xf32>
    %236 = arith.truncf %235 : vector<2x32xf32> to vector<2x32xbf16>
    %cst_62 = arith.constant dense<0.000000e+00> : vector<2x32xf32>
    %237 = tpu.matmul %236, %1, %cst_62 {dimension_numbers = #tpu.dot_dimension_numbers<[1], [0], [0], [1], [0, 0, 1, 1], [], []>} : vector<2x32xbf16>, vector<32x32xbf16>, vector<2x32xf32> -> vector<2x32xf32>
    %238 = vector.broadcast %3 : vector<1x32xf32> to vector<2x32xf32>
    %239 = arith.addf %237, %238 : vector<2x32xf32>
    %240 = math.tanh %239 : vector<2x32xf32>
    %241 = arith.truncf %240 : vector<2x32xf32> to vector<2x32xbf16>
    %cst_63 = arith.constant dense<0.000000e+00> : vector<2x32xf32>
    %242 = tpu.matmul %241, %2, %cst_63 {dimension_numbers = #tpu.dot_dimension_numbers<[1], [0], [0], [1], [0, 0, 1, 1], [], []>} : vector<2x32xbf16>, vector<32x32xbf16>, vector<2x32xf32> -> vector<2x32xf32>
    %243 = vector.broadcast %4 : vector<1x32xf32> to vector<2x32xf32>
    %244 = arith.addf %242, %243 : vector<2x32xf32>
    %245 = arith.mulf %244, %209 : vector<2x32xf32>
    %246 = arith.addf %206, %245 : vector<2x32xf32>
    %247 = arith.truncf %246 : vector<2x32xf32> to vector<2x32xbf16>
    %cst_64 = arith.constant dense<0.000000e+00> : vector<2x32xf32>
    %248 = tpu.matmul %247, %1, %cst_64 {dimension_numbers = #tpu.dot_dimension_numbers<[1], [0], [0], [1], [0, 0, 1, 1], [], []>} : vector<2x32xbf16>, vector<32x32xbf16>, vector<2x32xf32> -> vector<2x32xf32>
    %249 = vector.broadcast %3 : vector<1x32xf32> to vector<2x32xf32>
    %250 = arith.addf %248, %249 : vector<2x32xf32>
    %251 = math.tanh %250 : vector<2x32xf32>
    %252 = arith.truncf %251 : vector<2x32xf32> to vector<2x32xbf16>
    %cst_65 = arith.constant dense<0.000000e+00> : vector<2x32xf32>
    %253 = tpu.matmul %252, %2, %cst_65 {dimension_numbers = #tpu.dot_dimension_numbers<[1], [0], [0], [1], [0, 0, 1, 1], [], []>} : vector<2x32xbf16>, vector<32x32xbf16>, vector<2x32xf32> -> vector<2x32xf32>
    %254 = vector.broadcast %4 : vector<1x32xf32> to vector<2x32xf32>
    %255 = arith.addf %253, %254 : vector<2x32xf32>
    %256 = arith.addf %222, %255 : vector<2x32xf32>
    %257 = arith.addf %233, %244 : vector<2x32xf32>
    %cst_66 = arith.constant 2.000000e+00 : f32
    %258 = vector.broadcast %cst_66 : f32 to vector<2x32xf32>
    %259 = arith.mulf %258, %257 : vector<2x32xf32>
    %260 = arith.addf %256, %259 : vector<2x32xf32>
    %261 = arith.mulf %213, %260 : vector<2x32xf32>
    %262 = arith.addf %206, %261 : vector<2x32xf32>
    %263 = arith.truncf %262 : vector<2x32xf32> to vector<2x32xbf16>
    %cst_67 = arith.constant dense<0.000000e+00> : vector<2x32xf32>
    %264 = tpu.matmul %263, %1, %cst_67 {dimension_numbers = #tpu.dot_dimension_numbers<[1], [0], [0], [1], [0, 0, 1, 1], [], []>} : vector<2x32xbf16>, vector<32x32xbf16>, vector<2x32xf32> -> vector<2x32xf32>
    %265 = vector.broadcast %3 : vector<1x32xf32> to vector<2x32xf32>
    %266 = arith.addf %264, %265 : vector<2x32xf32>
    %267 = math.tanh %266 : vector<2x32xf32>
    %268 = arith.truncf %267 : vector<2x32xf32> to vector<2x32xbf16>
    %cst_68 = arith.constant dense<0.000000e+00> : vector<2x32xf32>
    %269 = tpu.matmul %268, %2, %cst_68 {dimension_numbers = #tpu.dot_dimension_numbers<[1], [0], [0], [1], [0, 0, 1, 1], [], []>} : vector<2x32xbf16>, vector<32x32xbf16>, vector<2x32xf32> -> vector<2x32xf32>
    %270 = vector.broadcast %4 : vector<1x32xf32> to vector<2x32xf32>
    %271 = arith.addf %269, %270 : vector<2x32xf32>
    %272 = arith.mulf %271, %211 : vector<2x32xf32>
    %273 = arith.addf %262, %272 : vector<2x32xf32>
    %274 = arith.truncf %273 : vector<2x32xf32> to vector<2x32xbf16>
    %cst_69 = arith.constant dense<0.000000e+00> : vector<2x32xf32>
    %275 = tpu.matmul %274, %1, %cst_69 {dimension_numbers = #tpu.dot_dimension_numbers<[1], [0], [0], [1], [0, 0, 1, 1], [], []>} : vector<2x32xbf16>, vector<32x32xbf16>, vector<2x32xf32> -> vector<2x32xf32>
    %276 = vector.broadcast %3 : vector<1x32xf32> to vector<2x32xf32>
    %277 = arith.addf %275, %276 : vector<2x32xf32>
    %278 = math.tanh %277 : vector<2x32xf32>
    %279 = arith.truncf %278 : vector<2x32xf32> to vector<2x32xbf16>
    %cst_70 = arith.constant dense<0.000000e+00> : vector<2x32xf32>
    %280 = tpu.matmul %279, %2, %cst_70 {dimension_numbers = #tpu.dot_dimension_numbers<[1], [0], [0], [1], [0, 0, 1, 1], [], []>} : vector<2x32xbf16>, vector<32x32xbf16>, vector<2x32xf32> -> vector<2x32xf32>
    %281 = vector.broadcast %4 : vector<1x32xf32> to vector<2x32xf32>
    %282 = arith.addf %280, %281 : vector<2x32xf32>
    %283 = arith.mulf %282, %211 : vector<2x32xf32>
    %284 = arith.addf %262, %283 : vector<2x32xf32>
    %285 = arith.truncf %284 : vector<2x32xf32> to vector<2x32xbf16>
    %cst_71 = arith.constant dense<0.000000e+00> : vector<2x32xf32>
    %286 = tpu.matmul %285, %1, %cst_71 {dimension_numbers = #tpu.dot_dimension_numbers<[1], [0], [0], [1], [0, 0, 1, 1], [], []>} : vector<2x32xbf16>, vector<32x32xbf16>, vector<2x32xf32> -> vector<2x32xf32>
    %287 = vector.broadcast %3 : vector<1x32xf32> to vector<2x32xf32>
    %288 = arith.addf %286, %287 : vector<2x32xf32>
    %289 = math.tanh %288 : vector<2x32xf32>
    %290 = arith.truncf %289 : vector<2x32xf32> to vector<2x32xbf16>
    %cst_72 = arith.constant dense<0.000000e+00> : vector<2x32xf32>
    %291 = tpu.matmul %290, %2, %cst_72 {dimension_numbers = #tpu.dot_dimension_numbers<[1], [0], [0], [1], [0, 0, 1, 1], [], []>} : vector<2x32xbf16>, vector<32x32xbf16>, vector<2x32xf32> -> vector<2x32xf32>
    %292 = vector.broadcast %4 : vector<1x32xf32> to vector<2x32xf32>
    %293 = arith.addf %291, %292 : vector<2x32xf32>
    %294 = arith.mulf %293, %209 : vector<2x32xf32>
    %295 = arith.addf %262, %294 : vector<2x32xf32>
    %296 = arith.truncf %295 : vector<2x32xf32> to vector<2x32xbf16>
    %cst_73 = arith.constant dense<0.000000e+00> : vector<2x32xf32>
    %297 = tpu.matmul %296, %1, %cst_73 {dimension_numbers = #tpu.dot_dimension_numbers<[1], [0], [0], [1], [0, 0, 1, 1], [], []>} : vector<2x32xbf16>, vector<32x32xbf16>, vector<2x32xf32> -> vector<2x32xf32>
    %298 = vector.broadcast %3 : vector<1x32xf32> to vector<2x32xf32>
    %299 = arith.addf %297, %298 : vector<2x32xf32>
    %300 = math.tanh %299 : vector<2x32xf32>
    %301 = arith.truncf %300 : vector<2x32xf32> to vector<2x32xbf16>
    %cst_74 = arith.constant dense<0.000000e+00> : vector<2x32xf32>
    %302 = tpu.matmul %301, %2, %cst_74 {dimension_numbers = #tpu.dot_dimension_numbers<[1], [0], [0], [1], [0, 0, 1, 1], [], []>} : vector<2x32xbf16>, vector<32x32xbf16>, vector<2x32xf32> -> vector<2x32xf32>
    %303 = vector.broadcast %4 : vector<1x32xf32> to vector<2x32xf32>
    %304 = arith.addf %302, %303 : vector<2x32xf32>
    %305 = arith.addf %271, %304 : vector<2x32xf32>
    %306 = arith.addf %282, %293 : vector<2x32xf32>
    %cst_75 = arith.constant 2.000000e+00 : f32
    %307 = vector.broadcast %cst_75 : f32 to vector<2x32xf32>
    %308 = arith.mulf %307, %306 : vector<2x32xf32>
    %309 = arith.addf %305, %308 : vector<2x32xf32>
    %310 = arith.mulf %213, %309 : vector<2x32xf32>
    %311 = arith.addf %262, %310 : vector<2x32xf32>
    %312 = arith.truncf %311 : vector<2x32xf32> to vector<2x32xbf16>
    %cst_76 = arith.constant dense<0.000000e+00> : vector<2x32xf32>
    %313 = tpu.matmul %312, %1, %cst_76 {dimension_numbers = #tpu.dot_dimension_numbers<[1], [0], [0], [1], [0, 0, 1, 1], [], []>} : vector<2x32xbf16>, vector<32x32xbf16>, vector<2x32xf32> -> vector<2x32xf32>
    %314 = vector.broadcast %3 : vector<1x32xf32> to vector<2x32xf32>
    %315 = arith.addf %313, %314 : vector<2x32xf32>
    %316 = math.tanh %315 : vector<2x32xf32>
    %317 = arith.truncf %316 : vector<2x32xf32> to vector<2x32xbf16>
    %cst_77 = arith.constant dense<0.000000e+00> : vector<2x32xf32>
    %318 = tpu.matmul %317, %2, %cst_77 {dimension_numbers = #tpu.dot_dimension_numbers<[1], [0], [0], [1], [0, 0, 1, 1], [], []>} : vector<2x32xbf16>, vector<32x32xbf16>, vector<2x32xf32> -> vector<2x32xf32>
    %319 = vector.broadcast %4 : vector<1x32xf32> to vector<2x32xf32>
    %320 = arith.addf %318, %319 : vector<2x32xf32>
    %321 = arith.mulf %320, %211 : vector<2x32xf32>
    %322 = arith.addf %311, %321 : vector<2x32xf32>
    %323 = arith.truncf %322 : vector<2x32xf32> to vector<2x32xbf16>
    %cst_78 = arith.constant dense<0.000000e+00> : vector<2x32xf32>
    %324 = tpu.matmul %323, %1, %cst_78 {dimension_numbers = #tpu.dot_dimension_numbers<[1], [0], [0], [1], [0, 0, 1, 1], [], []>} : vector<2x32xbf16>, vector<32x32xbf16>, vector<2x32xf32> -> vector<2x32xf32>
    %325 = vector.broadcast %3 : vector<1x32xf32> to vector<2x32xf32>
    %326 = arith.addf %324, %325 : vector<2x32xf32>
    %327 = math.tanh %326 : vector<2x32xf32>
    %328 = arith.truncf %327 : vector<2x32xf32> to vector<2x32xbf16>
    %cst_79 = arith.constant dense<0.000000e+00> : vector<2x32xf32>
    %329 = tpu.matmul %328, %2, %cst_79 {dimension_numbers = #tpu.dot_dimension_numbers<[1], [0], [0], [1], [0, 0, 1, 1], [], []>} : vector<2x32xbf16>, vector<32x32xbf16>, vector<2x32xf32> -> vector<2x32xf32>
    %330 = vector.broadcast %4 : vector<1x32xf32> to vector<2x32xf32>
    %331 = arith.addf %329, %330 : vector<2x32xf32>
    %332 = arith.mulf %331, %211 : vector<2x32xf32>
    %333 = arith.addf %311, %332 : vector<2x32xf32>
    %334 = arith.truncf %333 : vector<2x32xf32> to vector<2x32xbf16>
    %cst_80 = arith.constant dense<0.000000e+00> : vector<2x32xf32>
    %335 = tpu.matmul %334, %1, %cst_80 {dimension_numbers = #tpu.dot_dimension_numbers<[1], [0], [0], [1], [0, 0, 1, 1], [], []>} : vector<2x32xbf16>, vector<32x32xbf16>, vector<2x32xf32> -> vector<2x32xf32>
    %336 = vector.broadcast %3 : vector<1x32xf32> to vector<2x32xf32>
    %337 = arith.addf %335, %336 : vector<2x32xf32>
    %338 = math.tanh %337 : vector<2x32xf32>
    %339 = arith.truncf %338 : vector<2x32xf32> to vector<2x32xbf16>
    %cst_81 = arith.constant dense<0.000000e+00> : vector<2x32xf32>
    %340 = tpu.matmul %339, %2, %cst_81 {dimension_numbers = #tpu.dot_dimension_numbers<[1], [0], [0], [1], [0, 0, 1, 1], [], []>} : vector<2x32xbf16>, vector<32x32xbf16>, vector<2x32xf32> -> vector<2x32xf32>
    %341 = vector.broadcast %4 : vector<1x32xf32> to vector<2x32xf32>
    %342 = arith.addf %340, %341 : vector<2x32xf32>
    %343 = arith.mulf %342, %209 : vector<2x32xf32>
    %344 = arith.addf %311, %343 : vector<2x32xf32>
    %345 = arith.truncf %344 : vector<2x32xf32> to vector<2x32xbf16>
    %cst_82 = arith.constant dense<0.000000e+00> : vector<2x32xf32>
    %346 = tpu.matmul %345, %1, %cst_82 {dimension_numbers = #tpu.dot_dimension_numbers<[1], [0], [0], [1], [0, 0, 1, 1], [], []>} : vector<2x32xbf16>, vector<32x32xbf16>, vector<2x32xf32> -> vector<2x32xf32>
    %347 = vector.broadcast %3 : vector<1x32xf32> to vector<2x32xf32>
    %348 = arith.addf %346, %347 : vector<2x32xf32>
    %349 = math.tanh %348 : vector<2x32xf32>
    %350 = arith.truncf %349 : vector<2x32xf32> to vector<2x32xbf16>
    %cst_83 = arith.constant dense<0.000000e+00> : vector<2x32xf32>
    %351 = tpu.matmul %350, %2, %cst_83 {dimension_numbers = #tpu.dot_dimension_numbers<[1], [0], [0], [1], [0, 0, 1, 1], [], []>} : vector<2x32xbf16>, vector<32x32xbf16>, vector<2x32xf32> -> vector<2x32xf32>
    %352 = vector.broadcast %4 : vector<1x32xf32> to vector<2x32xf32>
    %353 = arith.addf %351, %352 : vector<2x32xf32>
    %354 = arith.addf %320, %353 : vector<2x32xf32>
    %355 = arith.addf %331, %342 : vector<2x32xf32>
    %cst_84 = arith.constant 2.000000e+00 : f32
    %356 = vector.broadcast %cst_84 : f32 to vector<2x32xf32>
    %357 = arith.mulf %356, %355 : vector<2x32xf32>
    %358 = arith.addf %354, %357 : vector<2x32xf32>
    %359 = arith.mulf %213, %358 : vector<2x32xf32>
    %360 = arith.addf %311, %359 : vector<2x32xf32>
    %c0_85 = arith.constant 0 : index
    %361 = arith.index_cast %c1_i32 : i32 to index
    %c0_86 = arith.constant 0 : index
    %c0_87 = arith.constant 0 : index
    %362 = vector.load %arg6[%c0_85, %361, %c0_86, %c0_87] : memref<1x8x2x32xf32, #tpu.memory_space<vmem>>, vector<1x1x2x32xf32>
    %363 = vector.shape_cast %362 : vector<1x1x2x32xf32> to vector<2x32xf32>
    %364 = vector.shape_cast %360 : vector<2x32xf32> to vector<1x1x2x32xf32>
    tpu.vector_store %arg6[%c0_85, %361, %c0_86, %c0_87], %364 {strides = array<i32>} : memref<1x8x2x32xf32, #tpu.memory_space<vmem>>, vector<1x1x2x32xf32>,
    %c2_i32 = arith.constant 2 : i32
    %c0_88 = arith.constant 0 : index
    %365 = arith.index_cast %c2_i32 : i32 to index
    %c0_89 = arith.constant 0 : index
    %c0_90 = arith.constant 0 : index
    %366 = vector.load %arg1[%c0_88, %365, %c0_89, %c0_90] : memref<1x8x2x128xf32, #tpu.memory_space<vmem>>, vector<1x1x2x128xf32>
    %367 = vector.shape_cast %366 : vector<1x1x2x128xf32> to vector<2x128xf32>
    %368 = arith.truncf %360 : vector<2x32xf32> to vector<2x32xbf16>
    %cst_91 = arith.constant dense<0.000000e+00> : vector<2x128xf32>
    %369 = tpu.matmul %368, %0, %cst_91 {dimension_numbers = #tpu.dot_dimension_numbers<[1], [0], [0], [1], [0, 0, 1, 1], [], []>} : vector<2x32xbf16>, vector<32x128xbf16>, vector<2x128xf32> -> vector<2x128xf32>
    %370 = arith.addf %367, %369 : vector<2x128xf32>
    %371 = arith.negf %370 : vector<2x128xf32>
    %372 = math.exp %371 : vector<2x128xf32>
    %cst_92 = arith.constant 1.000000e+00 : f32
    %373 = vector.broadcast %cst_92 : f32 to vector<2x128xf32>
    %374 = arith.addf %373, %372 : vector<2x128xf32>
    %375 = arith.divf %373, %374 : vector<2x128xf32>
    %376 = math.tanh %370 : vector<2x128xf32>
    %377 = vector.extract_strided_slice %375 {offsets = [0, 0], sizes = [2, 32], strides = [1, 1]} : vector<2x128xf32> to vector<2x32xf32>
    %378 = vector.extract_strided_slice %375 {offsets = [0, 32], sizes = [2, 32], strides = [1, 1]} : vector<2x128xf32> to vector<2x32xf32>
    %379 = vector.extract_strided_slice %376 {offsets = [0, 64], sizes = [2, 32], strides = [1, 1]} : vector<2x128xf32> to vector<2x32xf32>
    %380 = vector.extract_strided_slice %375 {offsets = [0, 96], sizes = [2, 32], strides = [1, 1]} : vector<2x128xf32> to vector<2x32xf32>
    %381 = arith.mulf %378, %204 : vector<2x32xf32>
    %382 = arith.mulf %377, %379 : vector<2x32xf32>
    %383 = arith.addf %381, %382 : vector<2x32xf32>
    %384 = math.tanh %383 : vector<2x32xf32>
    %385 = arith.mulf %380, %384 : vector<2x32xf32>
    %c0_93 = arith.constant 0 : index
    %386 = arith.index_cast %c2_i32 : i32 to index
    %c0_94 = arith.constant 0 : index
    %c0_95 = arith.constant 0 : index
    %387 = vector.load %arg2[%c0_93, %386, %c0_94, %c0_95] : memref<1x8x2x32xf32, #tpu.memory_space<vmem>>, vector<1x1x2x32xf32>
    %388 = vector.shape_cast %387 : vector<1x1x2x32xf32> to vector<2x32xf32>
    %cst_96 = arith.constant 5.000000e-01 : f32
    %389 = vector.broadcast %cst_96 : f32 to vector<2x32xf32>
    %390 = arith.mulf %389, %388 : vector<2x32xf32>
    %cst_97 = arith.constant 0.166666672 : f32
    %391 = vector.broadcast %cst_97 : f32 to vector<2x32xf32>
    %392 = arith.mulf %388, %391 : vector<2x32xf32>
    %393 = arith.truncf %385 : vector<2x32xf32> to vector<2x32xbf16>
    %cst_98 = arith.constant dense<0.000000e+00> : vector<2x32xf32>
    %394 = tpu.matmul %393, %1, %cst_98 {dimension_numbers = #tpu.dot_dimension_numbers<[1], [0], [0], [1], [0, 0, 1, 1], [], []>} : vector<2x32xbf16>, vector<32x32xbf16>, vector<2x32xf32> -> vector<2x32xf32>
    %395 = vector.broadcast %3 : vector<1x32xf32> to vector<2x32xf32>
    %396 = arith.addf %394, %395 : vector<2x32xf32>
    %397 = math.tanh %396 : vector<2x32xf32>
    %398 = arith.truncf %397 : vector<2x32xf32> to vector<2x32xbf16>
    %cst_99 = arith.constant dense<0.000000e+00> : vector<2x32xf32>
    %399 = tpu.matmul %398, %2, %cst_99 {dimension_numbers = #tpu.dot_dimension_numbers<[1], [0], [0], [1], [0, 0, 1, 1], [], []>} : vector<2x32xbf16>, vector<32x32xbf16>, vector<2x32xf32> -> vector<2x32xf32>
    %400 = vector.broadcast %4 : vector<1x32xf32> to vector<2x32xf32>
    %401 = arith.addf %399, %400 : vector<2x32xf32>
    %402 = arith.mulf %401, %390 : vector<2x32xf32>
    %403 = arith.addf %385, %402 : vector<2x32xf32>
    %404 = arith.truncf %403 : vector<2x32xf32> to vector<2x32xbf16>
    %cst_100 = arith.constant dense<0.000000e+00> : vector<2x32xf32>
    %405 = tpu.matmul %404, %1, %cst_100 {dimension_numbers = #tpu.dot_dimension_numbers<[1], [0], [0], [1], [0, 0, 1, 1], [], []>} : vector<2x32xbf16>, vector<32x32xbf16>, vector<2x32xf32> -> vector<2x32xf32>
    %406 = vector.broadcast %3 : vector<1x32xf32> to vector<2x32xf32>
    %407 = arith.addf %405, %406 : vector<2x32xf32>
    %408 = math.tanh %407 : vector<2x32xf32>
    %409 = arith.truncf %408 : vector<2x32xf32> to vector<2x32xbf16>
    %cst_101 = arith.constant dense<0.000000e+00> : vector<2x32xf32>
    %410 = tpu.matmul %409, %2, %cst_101 {dimension_numbers = #tpu.dot_dimension_numbers<[1], [0], [0], [1], [0, 0, 1, 1], [], []>} : vector<2x32xbf16>, vector<32x32xbf16>, vector<2x32xf32> -> vector<2x32xf32>
    %411 = vector.broadcast %4 : vector<1x32xf32> to vector<2x32xf32>
    %412 = arith.addf %410, %411 : vector<2x32xf32>
    %413 = arith.mulf %412, %390 : vector<2x32xf32>
    %414 = arith.addf %385, %413 : vector<2x32xf32>
    %415 = arith.truncf %414 : vector<2x32xf32> to vector<2x32xbf16>
    %cst_102 = arith.constant dense<0.000000e+00> : vector<2x32xf32>
    %416 = tpu.matmul %415, %1, %cst_102 {dimension_numbers = #tpu.dot_dimension_numbers<[1], [0], [0], [1], [0, 0, 1, 1], [], []>} : vector<2x32xbf16>, vector<32x32xbf16>, vector<2x32xf32> -> vector<2x32xf32>
    %417 = vector.broadcast %3 : vector<1x32xf32> to vector<2x32xf32>
    %418 = arith.addf %416, %417 : vector<2x32xf32>
    %419 = math.tanh %418 : vector<2x32xf32>
    %420 = arith.truncf %419 : vector<2x32xf32> to vector<2x32xbf16>
    %cst_103 = arith.constant dense<0.000000e+00> : vector<2x32xf32>
    %421 = tpu.matmul %420, %2, %cst_103 {dimension_numbers = #tpu.dot_dimension_numbers<[1], [0], [0], [1], [0, 0, 1, 1], [], []>} : vector<2x32xbf16>, vector<32x32xbf16>, vector<2x32xf32> -> vector<2x32xf32>
    %422 = vector.broadcast %4 : vector<1x32xf32> to vector<2x32xf32>
    %423 = arith.addf %421, %422 : vector<2x32xf32>
    %424 = arith.mulf %423, %388 : vector<2x32xf32>
    %425 = arith.addf %385, %424 : vector<2x32xf32>
    %426 = arith.truncf %425 : vector<2x32xf32> to vector<2x32xbf16>
    %cst_104 = arith.constant dense<0.000000e+00> : vector<2x32xf32>
    %427 = tpu.matmul %426, %1, %cst_104 {dimension_numbers = #tpu.dot_dimension_numbers<[1], [0], [0], [1], [0, 0, 1, 1], [], []>} : vector<2x32xbf16>, vector<32x32xbf16>, vector<2x32xf32> -> vector<2x32xf32>
    %428 = vector.broadcast %3 : vector<1x32xf32> to vector<2x32xf32>
    %429 = arith.addf %427, %428 : vector<2x32xf32>
    %430 = math.tanh %429 : vector<2x32xf32>
    %431 = arith.truncf %430 : vector<2x32xf32> to vector<2x32xbf16>
    %cst_105 = arith.constant dense<0.000000e+00> : vector<2x32xf32>
    %432 = tpu.matmul %431, %2, %cst_105 {dimension_numbers = #tpu.dot_dimension_numbers<[1], [0], [0], [1], [0, 0, 1, 1], [], []>} : vector<2x32xbf16>, vector<32x32xbf16>, vector<2x32xf32> -> vector<2x32xf32>
    %433 = vector.broadcast %4 : vector<1x32xf32> to vector<2x32xf32>
    %434 = arith.addf %432, %433 : vector<2x32xf32>
    %435 = arith.addf %401, %434 : vector<2x32xf32>
    %436 = arith.addf %412, %423 : vector<2x32xf32>
    %cst_106 = arith.constant 2.000000e+00 : f32
    %437 = vector.broadcast %cst_106 : f32 to vector<2x32xf32>
    %438 = arith.mulf %437, %436 : vector<2x32xf32>
    %439 = arith.addf %435, %438 : vector<2x32xf32>
    %440 = arith.mulf %392, %439 : vector<2x32xf32>
    %441 = arith.addf %385, %440 : vector<2x32xf32>
    %442 = arith.truncf %441 : vector<2x32xf32> to vector<2x32xbf16>
    %cst_107 = arith.constant dense<0.000000e+00> : vector<2x32xf32>
    %443 = tpu.matmul %442, %1, %cst_107 {dimension_numbers = #tpu.dot_dimension_numbers<[1], [0], [0], [1], [0, 0, 1, 1], [], []>} : vector<2x32xbf16>, vector<32x32xbf16>, vector<2x32xf32> -> vector<2x32xf32>
    %444 = vector.broadcast %3 : vector<1x32xf32> to vector<2x32xf32>
    %445 = arith.addf %443, %444 : vector<2x32xf32>
    %446 = math.tanh %445 : vector<2x32xf32>
    %447 = arith.truncf %446 : vector<2x32xf32> to vector<2x32xbf16>
    %cst_108 = arith.constant dense<0.000000e+00> : vector<2x32xf32>
    %448 = tpu.matmul %447, %2, %cst_108 {dimension_numbers = #tpu.dot_dimension_numbers<[1], [0], [0], [1], [0, 0, 1, 1], [], []>} : vector<2x32xbf16>, vector<32x32xbf16>, vector<2x32xf32> -> vector<2x32xf32>
    %449 = vector.broadcast %4 : vector<1x32xf32> to vector<2x32xf32>
    %450 = arith.addf %448, %449 : vector<2x32xf32>
    %451 = arith.mulf %450, %390 : vector<2x32xf32>
    %452 = arith.addf %441, %451 : vector<2x32xf32>
    %453 = arith.truncf %452 : vector<2x32xf32> to vector<2x32xbf16>
    %cst_109 = arith.constant dense<0.000000e+00> : vector<2x32xf32>
    %454 = tpu.matmul %453, %1, %cst_109 {dimension_numbers = #tpu.dot_dimension_numbers<[1], [0], [0], [1], [0, 0, 1, 1], [], []>} : vector<2x32xbf16>, vector<32x32xbf16>, vector<2x32xf32> -> vector<2x32xf32>
    %455 = vector.broadcast %3 : vector<1x32xf32> to vector<2x32xf32>
    %456 = arith.addf %454, %455 : vector<2x32xf32>
    %457 = math.tanh %456 : vector<2x32xf32>
    %458 = arith.truncf %457 : vector<2x32xf32> to vector<2x32xbf16>
    %cst_110 = arith.constant dense<0.000000e+00> : vector<2x32xf32>
    %459 = tpu.matmul %458, %2, %cst_110 {dimension_numbers = #tpu.dot_dimension_numbers<[1], [0], [0], [1], [0, 0, 1, 1], [], []>} : vector<2x32xbf16>, vector<32x32xbf16>, vector<2x32xf32> -> vector<2x32xf32>
    %460 = vector.broadcast %4 : vector<1x32xf32> to vector<2x32xf32>
    %461 = arith.addf %459, %460 : vector<2x32xf32>
    %462 = arith.mulf %461, %390 : vector<2x32xf32>
    %463 = arith.addf %441, %462 : vector<2x32xf32>
    %464 = arith.truncf %463 : vector<2x32xf32> to vector<2x32xbf16>
    %cst_111 = arith.constant dense<0.000000e+00> : vector<2x32xf32>
    %465 = tpu.matmul %464, %1, %cst_111 {dimension_numbers = #tpu.dot_dimension_numbers<[1], [0], [0], [1], [0, 0, 1, 1], [], []>} : vector<2x32xbf16>, vector<32x32xbf16>, vector<2x32xf32> -> vector<2x32xf32>
    %466 = vector.broadcast %3 : vector<1x32xf32> to vector<2x32xf32>
    %467 = arith.addf %465, %466 : vector<2x32xf32>
    %468 = math.tanh %467 : vector<2x32xf32>
    %469 = arith.truncf %468 : vector<2x32xf32> to vector<2x32xbf16>
    %cst_112 = arith.constant dense<0.000000e+00> : vector<2x32xf32>
    %470 = tpu.matmul %469, %2, %cst_112 {dimension_numbers = #tpu.dot_dimension_numbers<[1], [0], [0], [1], [0, 0, 1, 1], [], []>} : vector<2x32xbf16>, vector<32x32xbf16>, vector<2x32xf32> -> vector<2x32xf32>
    %471 = vector.broadcast %4 : vector<1x32xf32> to vector<2x32xf32>
    %472 = arith.addf %470, %471 : vector<2x32xf32>
    %473 = arith.mulf %472, %388 : vector<2x32xf32>
    %474 = arith.addf %441, %473 : vector<2x32xf32>
    %475 = arith.truncf %474 : vector<2x32xf32> to vector<2x32xbf16>
    %cst_113 = arith.constant dense<0.000000e+00> : vector<2x32xf32>
    %476 = tpu.matmul %475, %1, %cst_113 {dimension_numbers = #tpu.dot_dimension_numbers<[1], [0], [0], [1], [0, 0, 1, 1], [], []>} : vector<2x32xbf16>, vector<32x32xbf16>, vector<2x32xf32> -> vector<2x32xf32>
    %477 = vector.broadcast %3 : vector<1x32xf32> to vector<2x32xf32>
    %478 = arith.addf %476, %477 : vector<2x32xf32>
    %479 = math.tanh %478 : vector<2x32xf32>
    %480 = arith.truncf %479 : vector<2x32xf32> to vector<2x32xbf16>
    %cst_114 = arith.constant dense<0.000000e+00> : vector<2x32xf32>
    %481 = tpu.matmul %480, %2, %cst_114 {dimension_numbers = #tpu.dot_dimension_numbers<[1], [0], [0], [1], [0, 0, 1, 1], [], []>} : vector<2x32xbf16>, vector<32x32xbf16>, vector<2x32xf32> -> vector<2x32xf32>
    %482 = vector.broadcast %4 : vector<1x32xf32> to vector<2x32xf32>
    %483 = arith.addf %481, %482 : vector<2x32xf32>
    %484 = arith.addf %450, %483 : vector<2x32xf32>
    %485 = arith.addf %461, %472 : vector<2x32xf32>
    %cst_115 = arith.constant 2.000000e+00 : f32
    %486 = vector.broadcast %cst_115 : f32 to vector<2x32xf32>
    %487 = arith.mulf %486, %485 : vector<2x32xf32>
    %488 = arith.addf %484, %487 : vector<2x32xf32>
    %489 = arith.mulf %392, %488 : vector<2x32xf32>
    %490 = arith.addf %441, %489 : vector<2x32xf32>
    %491 = arith.truncf %490 : vector<2x32xf32> to vector<2x32xbf16>
    %cst_116 = arith.constant dense<0.000000e+00> : vector<2x32xf32>
    %492 = tpu.matmul %491, %1, %cst_116 {dimension_numbers = #tpu.dot_dimension_numbers<[1], [0], [0], [1], [0, 0, 1, 1], [], []>} : vector<2x32xbf16>, vector<32x32xbf16>, vector<2x32xf32> -> vector<2x32xf32>
    %493 = vector.broadcast %3 : vector<1x32xf32> to vector<2x32xf32>
    %494 = arith.addf %492, %493 : vector<2x32xf32>
    %495 = math.tanh %494 : vector<2x32xf32>
    %496 = arith.truncf %495 : vector<2x32xf32> to vector<2x32xbf16>
    %cst_117 = arith.constant dense<0.000000e+00> : vector<2x32xf32>
    %497 = tpu.matmul %496, %2, %cst_117 {dimension_numbers = #tpu.dot_dimension_numbers<[1], [0], [0], [1], [0, 0, 1, 1], [], []>} : vector<2x32xbf16>, vector<32x32xbf16>, vector<2x32xf32> -> vector<2x32xf32>
    %498 = vector.broadcast %4 : vector<1x32xf32> to vector<2x32xf32>
    %499 = arith.addf %497, %498 : vector<2x32xf32>
    %500 = arith.mulf %499, %390 : vector<2x32xf32>
    %501 = arith.addf %490, %500 : vector<2x32xf32>
    %502 = arith.truncf %501 : vector<2x32xf32> to vector<2x32xbf16>
    %cst_118 = arith.constant dense<0.000000e+00> : vector<2x32xf32>
    %503 = tpu.matmul %502, %1, %cst_118 {dimension_numbers = #tpu.dot_dimension_numbers<[1], [0], [0], [1], [0, 0, 1, 1], [], []>} : vector<2x32xbf16>, vector<32x32xbf16>, vector<2x32xf32> -> vector<2x32xf32>
    %504 = vector.broadcast %3 : vector<1x32xf32> to vector<2x32xf32>
    %505 = arith.addf %503, %504 : vector<2x32xf32>
    %506 = math.tanh %505 : vector<2x32xf32>
    %507 = arith.truncf %506 : vector<2x32xf32> to vector<2x32xbf16>
    %cst_119 = arith.constant dense<0.000000e+00> : vector<2x32xf32>
    %508 = tpu.matmul %507, %2, %cst_119 {dimension_numbers = #tpu.dot_dimension_numbers<[1], [0], [0], [1], [0, 0, 1, 1], [], []>} : vector<2x32xbf16>, vector<32x32xbf16>, vector<2x32xf32> -> vector<2x32xf32>
    %509 = vector.broadcast %4 : vector<1x32xf32> to vector<2x32xf32>
    %510 = arith.addf %508, %509 : vector<2x32xf32>
    %511 = arith.mulf %510, %390 : vector<2x32xf32>
    %512 = arith.addf %490, %511 : vector<2x32xf32>
    %513 = arith.truncf %512 : vector<2x32xf32> to vector<2x32xbf16>
    %cst_120 = arith.constant dense<0.000000e+00> : vector<2x32xf32>
    %514 = tpu.matmul %513, %1, %cst_120 {dimension_numbers = #tpu.dot_dimension_numbers<[1], [0], [0], [1], [0, 0, 1, 1], [], []>} : vector<2x32xbf16>, vector<32x32xbf16>, vector<2x32xf32> -> vector<2x32xf32>
    %515 = vector.broadcast %3 : vector<1x32xf32> to vector<2x32xf32>
    %516 = arith.addf %514, %515 : vector<2x32xf32>
    %517 = math.tanh %516 : vector<2x32xf32>
    %518 = arith.truncf %517 : vector<2x32xf32> to vector<2x32xbf16>
    %cst_121 = arith.constant dense<0.000000e+00> : vector<2x32xf32>
    %519 = tpu.matmul %518, %2, %cst_121 {dimension_numbers = #tpu.dot_dimension_numbers<[1], [0], [0], [1], [0, 0, 1, 1], [], []>} : vector<2x32xbf16>, vector<32x32xbf16>, vector<2x32xf32> -> vector<2x32xf32>
    %520 = vector.broadcast %4 : vector<1x32xf32> to vector<2x32xf32>
    %521 = arith.addf %519, %520 : vector<2x32xf32>
    %522 = arith.mulf %521, %388 : vector<2x32xf32>
    %523 = arith.addf %490, %522 : vector<2x32xf32>
    %524 = arith.truncf %523 : vector<2x32xf32> to vector<2x32xbf16>
    %cst_122 = arith.constant dense<0.000000e+00> : vector<2x32xf32>
    %525 = tpu.matmul %524, %1, %cst_122 {dimension_numbers = #tpu.dot_dimension_numbers<[1], [0], [0], [1], [0, 0, 1, 1], [], []>} : vector<2x32xbf16>, vector<32x32xbf16>, vector<2x32xf32> -> vector<2x32xf32>
    %526 = vector.broadcast %3 : vector<1x32xf32> to vector<2x32xf32>
    %527 = arith.addf %525, %526 : vector<2x32xf32>
    %528 = math.tanh %527 : vector<2x32xf32>
    %529 = arith.truncf %528 : vector<2x32xf32> to vector<2x32xbf16>
    %cst_123 = arith.constant dense<0.000000e+00> : vector<2x32xf32>
    %530 = tpu.matmul %529, %2, %cst_123 {dimension_numbers = #tpu.dot_dimension_numbers<[1], [0], [0], [1], [0, 0, 1, 1], [], []>} : vector<2x32xbf16>, vector<32x32xbf16>, vector<2x32xf32> -> vector<2x32xf32>
    %531 = vector.broadcast %4 : vector<1x32xf32> to vector<2x32xf32>
    %532 = arith.addf %530, %531 : vector<2x32xf32>
    %533 = arith.addf %499, %532 : vector<2x32xf32>
    %534 = arith.addf %510, %521 : vector<2x32xf32>
    %cst_124 = arith.constant 2.000000e+00 : f32
    %535 = vector.broadcast %cst_124 : f32 to vector<2x32xf32>
    %536 = arith.mulf %535, %534 : vector<2x32xf32>
    %537 = arith.addf %533, %536 : vector<2x32xf32>
    %538 = arith.mulf %392, %537 : vector<2x32xf32>
    %539 = arith.addf %490, %538 : vector<2x32xf32>
    %c0_125 = arith.constant 0 : index
    %540 = arith.index_cast %c2_i32 : i32 to index
    %c0_126 = arith.constant 0 : index
    %c0_127 = arith.constant 0 : index
    %541 = vector.load %arg6[%c0_125, %540, %c0_126, %c0_127] : memref<1x8x2x32xf32, #tpu.memory_space<vmem>>, vector<1x1x2x32xf32>
    %542 = vector.shape_cast %541 : vector<1x1x2x32xf32> to vector<2x32xf32>
    %543 = vector.shape_cast %539 : vector<2x32xf32> to vector<1x1x2x32xf32>
    tpu.vector_store %arg6[%c0_125, %540, %c0_126, %c0_127], %543 {strides = array<i32>} : memref<1x8x2x32xf32, #tpu.memory_space<vmem>>, vector<1x1x2x32xf32>,
    %c3_i32 = arith.constant 3 : i32
    %c0_128 = arith.constant 0 : index
    %544 = arith.index_cast %c3_i32 : i32 to index
    %c0_129 = arith.constant 0 : index
    %c0_130 = arith.constant 0 : index
    %545 = vector.load %arg1[%c0_128, %544, %c0_129, %c0_130] : memref<1x8x2x128xf32, #tpu.memory_space<vmem>>, vector<1x1x2x128xf32>
    %546 = vector.shape_cast %545 : vector<1x1x2x128xf32> to vector<2x128xf32>
    %547 = arith.truncf %539 : vector<2x32xf32> to vector<2x32xbf16>
    %cst_131 = arith.constant dense<0.000000e+00> : vector<2x128xf32>
    %548 = tpu.matmul %547, %0, %cst_131 {dimension_numbers = #tpu.dot_dimension_numbers<[1], [0], [0], [1], [0, 0, 1, 1], [], []>} : vector<2x32xbf16>, vector<32x128xbf16>, vector<2x128xf32> -> vector<2x128xf32>
    %549 = arith.addf %546, %548 : vector<2x128xf32>
    %550 = arith.negf %549 : vector<2x128xf32>
    %551 = math.exp %550 : vector<2x128xf32>
    %cst_132 = arith.constant 1.000000e+00 : f32
    %552 = vector.broadcast %cst_132 : f32 to vector<2x128xf32>
    %553 = arith.addf %552, %551 : vector<2x128xf32>
    %554 = arith.divf %552, %553 : vector<2x128xf32>
    %555 = math.tanh %549 : vector<2x128xf32>
    %556 = vector.extract_strided_slice %554 {offsets = [0, 0], sizes = [2, 32], strides = [1, 1]} : vector<2x128xf32> to vector<2x32xf32>
    %557 = vector.extract_strided_slice %554 {offsets = [0, 32], sizes = [2, 32], strides = [1, 1]} : vector<2x128xf32> to vector<2x32xf32>
    %558 = vector.extract_strided_slice %555 {offsets = [0, 64], sizes = [2, 32], strides = [1, 1]} : vector<2x128xf32> to vector<2x32xf32>
    %559 = vector.extract_strided_slice %554 {offsets = [0, 96], sizes = [2, 32], strides = [1, 1]} : vector<2x128xf32> to vector<2x32xf32>
    %560 = arith.mulf %557, %383 : vector<2x32xf32>
    %561 = arith.mulf %556, %558 : vector<2x32xf32>
    %562 = arith.addf %560, %561 : vector<2x32xf32>
    %563 = math.tanh %562 : vector<2x32xf32>
    %564 = arith.mulf %559, %563 : vector<2x32xf32>
    %c0_133 = arith.constant 0 : index
    %565 = arith.index_cast %c3_i32 : i32 to index
    %c0_134 = arith.constant 0 : index
    %c0_135 = arith.constant 0 : index
    %566 = vector.load %arg2[%c0_133, %565, %c0_134, %c0_135] : memref<1x8x2x32xf32, #tpu.memory_space<vmem>>, vector<1x1x2x32xf32>
    %567 = vector.shape_cast %566 : vector<1x1x2x32xf32> to vector<2x32xf32>
    %cst_136 = arith.constant 5.000000e-01 : f32
    %568 = vector.broadcast %cst_136 : f32 to vector<2x32xf32>
    %569 = arith.mulf %568, %567 : vector<2x32xf32>
    %cst_137 = arith.constant 0.166666672 : f32
    %570 = vector.broadcast %cst_137 : f32 to vector<2x32xf32>
    %571 = arith.mulf %567, %570 : vector<2x32xf32>
    %572 = arith.truncf %564 : vector<2x32xf32> to vector<2x32xbf16>
    %cst_138 = arith.constant dense<0.000000e+00> : vector<2x32xf32>
    %573 = tpu.matmul %572, %1, %cst_138 {dimension_numbers = #tpu.dot_dimension_numbers<[1], [0], [0], [1], [0, 0, 1, 1], [], []>} : vector<2x32xbf16>, vector<32x32xbf16>, vector<2x32xf32> -> vector<2x32xf32>
    %574 = vector.broadcast %3 : vector<1x32xf32> to vector<2x32xf32>
    %575 = arith.addf %573, %574 : vector<2x32xf32>
    %576 = math.tanh %575 : vector<2x32xf32>
    %577 = arith.truncf %576 : vector<2x32xf32> to vector<2x32xbf16>
    %cst_139 = arith.constant dense<0.000000e+00> : vector<2x32xf32>
    %578 = tpu.matmul %577, %2, %cst_139 {dimension_numbers = #tpu.dot_dimension_numbers<[1], [0], [0], [1], [0, 0, 1, 1], [], []>} : vector<2x32xbf16>, vector<32x32xbf16>, vector<2x32xf32> -> vector<2x32xf32>
    %579 = vector.broadcast %4 : vector<1x32xf32> to vector<2x32xf32>
    %580 = arith.addf %578, %579 : vector<2x32xf32>
    %581 = arith.mulf %580, %569 : vector<2x32xf32>
    %582 = arith.addf %564, %581 : vector<2x32xf32>
    %583 = arith.truncf %582 : vector<2x32xf32> to vector<2x32xbf16>
    %cst_140 = arith.constant dense<0.000000e+00> : vector<2x32xf32>
    %584 = tpu.matmul %583, %1, %cst_140 {dimension_numbers = #tpu.dot_dimension_numbers<[1], [0], [0], [1], [0, 0, 1, 1], [], []>} : vector<2x32xbf16>, vector<32x32xbf16>, vector<2x32xf32> -> vector<2x32xf32>
    %585 = vector.broadcast %3 : vector<1x32xf32> to vector<2x32xf32>
    %586 = arith.addf %584, %585 : vector<2x32xf32>
    %587 = math.tanh %586 : vector<2x32xf32>
    %588 = arith.truncf %587 : vector<2x32xf32> to vector<2x32xbf16>
    %cst_141 = arith.constant dense<0.000000e+00> : vector<2x32xf32>
    %589 = tpu.matmul %588, %2, %cst_141 {dimension_numbers = #tpu.dot_dimension_numbers<[1], [0], [0], [1], [0, 0, 1, 1], [], []>} : vector<2x32xbf16>, vector<32x32xbf16>, vector<2x32xf32> -> vector<2x32xf32>
    %590 = vector.broadcast %4 : vector<1x32xf32> to vector<2x32xf32>
    %591 = arith.addf %589, %590 : vector<2x32xf32>
    %592 = arith.mulf %591, %569 : vector<2x32xf32>
    %593 = arith.addf %564, %592 : vector<2x32xf32>
    %594 = arith.truncf %593 : vector<2x32xf32> to vector<2x32xbf16>
    %cst_142 = arith.constant dense<0.000000e+00> : vector<2x32xf32>
    %595 = tpu.matmul %594, %1, %cst_142 {dimension_numbers = #tpu.dot_dimension_numbers<[1], [0], [0], [1], [0, 0, 1, 1], [], []>} : vector<2x32xbf16>, vector<32x32xbf16>, vector<2x32xf32> -> vector<2x32xf32>
    %596 = vector.broadcast %3 : vector<1x32xf32> to vector<2x32xf32>
    %597 = arith.addf %595, %596 : vector<2x32xf32>
    %598 = math.tanh %597 : vector<2x32xf32>
    %599 = arith.truncf %598 : vector<2x32xf32> to vector<2x32xbf16>
    %cst_143 = arith.constant dense<0.000000e+00> : vector<2x32xf32>
    %600 = tpu.matmul %599, %2, %cst_143 {dimension_numbers = #tpu.dot_dimension_numbers<[1], [0], [0], [1], [0, 0, 1, 1], [], []>} : vector<2x32xbf16>, vector<32x32xbf16>, vector<2x32xf32> -> vector<2x32xf32>
    %601 = vector.broadcast %4 : vector<1x32xf32> to vector<2x32xf32>
    %602 = arith.addf %600, %601 : vector<2x32xf32>
    %603 = arith.mulf %602, %567 : vector<2x32xf32>
    %604 = arith.addf %564, %603 : vector<2x32xf32>
    %605 = arith.truncf %604 : vector<2x32xf32> to vector<2x32xbf16>
    %cst_144 = arith.constant dense<0.000000e+00> : vector<2x32xf32>
    %606 = tpu.matmul %605, %1, %cst_144 {dimension_numbers = #tpu.dot_dimension_numbers<[1], [0], [0], [1], [0, 0, 1, 1], [], []>} : vector<2x32xbf16>, vector<32x32xbf16>, vector<2x32xf32> -> vector<2x32xf32>
    %607 = vector.broadcast %3 : vector<1x32xf32> to vector<2x32xf32>
    %608 = arith.addf %606, %607 : vector<2x32xf32>
    %609 = math.tanh %608 : vector<2x32xf32>
    %610 = arith.truncf %609 : vector<2x32xf32> to vector<2x32xbf16>
    %cst_145 = arith.constant dense<0.000000e+00> : vector<2x32xf32>
    %611 = tpu.matmul %610, %2, %cst_145 {dimension_numbers = #tpu.dot_dimension_numbers<[1], [0], [0], [1], [0, 0, 1, 1], [], []>} : vector<2x32xbf16>, vector<32x32xbf16>, vector<2x32xf32> -> vector<2x32xf32>
    %612 = vector.broadcast %4 : vector<1x32xf32> to vector<2x32xf32>
    %613 = arith.addf %611, %612 : vector<2x32xf32>
    %614 = arith.addf %580, %613 : vector<2x32xf32>
    %615 = arith.addf %591, %602 : vector<2x32xf32>
    %cst_146 = arith.constant 2.000000e+00 : f32
    %616 = vector.broadcast %cst_146 : f32 to vector<2x32xf32>
    %617 = arith.mulf %616, %615 : vector<2x32xf32>
    %618 = arith.addf %614, %617 : vector<2x32xf32>
    %619 = arith.mulf %571, %618 : vector<2x32xf32>
    %620 = arith.addf %564, %619 : vector<2x32xf32>
    %621 = arith.truncf %620 : vector<2x32xf32> to vector<2x32xbf16>
    %cst_147 = arith.constant dense<0.000000e+00> : vector<2x32xf32>
    %622 = tpu.matmul %621, %1, %cst_147 {dimension_numbers = #tpu.dot_dimension_numbers<[1], [0], [0], [1], [0, 0, 1, 1], [], []>} : vector<2x32xbf16>, vector<32x32xbf16>, vector<2x32xf32> -> vector<2x32xf32>
    %623 = vector.broadcast %3 : vector<1x32xf32> to vector<2x32xf32>
    %624 = arith.addf %622, %623 : vector<2x32xf32>
    %625 = math.tanh %624 : vector<2x32xf32>
    %626 = arith.truncf %625 : vector<2x32xf32> to vector<2x32xbf16>
    %cst_148 = arith.constant dense<0.000000e+00> : vector<2x32xf32>
    %627 = tpu.matmul %626, %2, %cst_148 {dimension_numbers = #tpu.dot_dimension_numbers<[1], [0], [0], [1], [0, 0, 1, 1], [], []>} : vector<2x32xbf16>, vector<32x32xbf16>, vector<2x32xf32> -> vector<2x32xf32>
    %628 = vector.broadcast %4 : vector<1x32xf32> to vector<2x32xf32>
    %629 = arith.addf %627, %628 : vector<2x32xf32>
    %630 = arith.mulf %629, %569 : vector<2x32xf32>
    %631 = arith.addf %620, %630 : vector<2x32xf32>
    %632 = arith.truncf %631 : vector<2x32xf32> to vector<2x32xbf16>
    %cst_149 = arith.constant dense<0.000000e+00> : vector<2x32xf32>
    %633 = tpu.matmul %632, %1, %cst_149 {dimension_numbers = #tpu.dot_dimension_numbers<[1], [0], [0], [1], [0, 0, 1, 1], [], []>} : vector<2x32xbf16>, vector<32x32xbf16>, vector<2x32xf32> -> vector<2x32xf32>
    %634 = vector.broadcast %3 : vector<1x32xf32> to vector<2x32xf32>
    %635 = arith.addf %633, %634 : vector<2x32xf32>
    %636 = math.tanh %635 : vector<2x32xf32>
    %637 = arith.truncf %636 : vector<2x32xf32> to vector<2x32xbf16>
    %cst_150 = arith.constant dense<0.000000e+00> : vector<2x32xf32>
    %638 = tpu.matmul %637, %2, %cst_150 {dimension_numbers = #tpu.dot_dimension_numbers<[1], [0], [0], [1], [0, 0, 1, 1], [], []>} : vector<2x32xbf16>, vector<32x32xbf16>, vector<2x32xf32> -> vector<2x32xf32>
    %639 = vector.broadcast %4 : vector<1x32xf32> to vector<2x32xf32>
    %640 = arith.addf %638, %639 : vector<2x32xf32>
    %641 = arith.mulf %640, %569 : vector<2x32xf32>
    %642 = arith.addf %620, %641 : vector<2x32xf32>
    %643 = arith.truncf %642 : vector<2x32xf32> to vector<2x32xbf16>
    %cst_151 = arith.constant dense<0.000000e+00> : vector<2x32xf32>
    %644 = tpu.matmul %643, %1, %cst_151 {dimension_numbers = #tpu.dot_dimension_numbers<[1], [0], [0], [1], [0, 0, 1, 1], [], []>} : vector<2x32xbf16>, vector<32x32xbf16>, vector<2x32xf32> -> vector<2x32xf32>
    %645 = vector.broadcast %3 : vector<1x32xf32> to vector<2x32xf32>
    %646 = arith.addf %644, %645 : vector<2x32xf32>
    %647 = math.tanh %646 : vector<2x32xf32>
    %648 = arith.truncf %647 : vector<2x32xf32> to vector<2x32xbf16>
    %cst_152 = arith.constant dense<0.000000e+00> : vector<2x32xf32>
    %649 = tpu.matmul %648, %2, %cst_152 {dimension_numbers = #tpu.dot_dimension_numbers<[1], [0], [0], [1], [0, 0, 1, 1], [], []>} : vector<2x32xbf16>, vector<32x32xbf16>, vector<2x32xf32> -> vector<2x32xf32>
    %650 = vector.broadcast %4 : vector<1x32xf32> to vector<2x32xf32>
    %651 = arith.addf %649, %650 : vector<2x32xf32>
    %652 = arith.mulf %651, %567 : vector<2x32xf32>
    %653 = arith.addf %620, %652 : vector<2x32xf32>
    %654 = arith.truncf %653 : vector<2x32xf32> to vector<2x32xbf16>
    %cst_153 = arith.constant dense<0.000000e+00> : vector<2x32xf32>
    %655 = tpu.matmul %654, %1, %cst_153 {dimension_numbers = #tpu.dot_dimension_numbers<[1], [0], [0], [1], [0, 0, 1, 1], [], []>} : vector<2x32xbf16>, vector<32x32xbf16>, vector<2x32xf32> -> vector<2x32xf32>
    %656 = vector.broadcast %3 : vector<1x32xf32> to vector<2x32xf32>
    %657 = arith.addf %655, %656 : vector<2x32xf32>
    %658 = math.tanh %657 : vector<2x32xf32>
    %659 = arith.truncf %658 : vector<2x32xf32> to vector<2x32xbf16>
    %cst_154 = arith.constant dense<0.000000e+00> : vector<2x32xf32>
    %660 = tpu.matmul %659, %2, %cst_154 {dimension_numbers = #tpu.dot_dimension_numbers<[1], [0], [0], [1], [0, 0, 1, 1], [], []>} : vector<2x32xbf16>, vector<32x32xbf16>, vector<2x32xf32> -> vector<2x32xf32>
    %661 = vector.broadcast %4 : vector<1x32xf32> to vector<2x32xf32>
    %662 = arith.addf %660, %661 : vector<2x32xf32>
    %663 = arith.addf %629, %662 : vector<2x32xf32>
    %664 = arith.addf %640, %651 : vector<2x32xf32>
    %cst_155 = arith.constant 2.000000e+00 : f32
    %665 = vector.broadcast %cst_155 : f32 to vector<2x32xf32>
    %666 = arith.mulf %665, %664 : vector<2x32xf32>
    %667 = arith.addf %663, %666 : vector<2x32xf32>
    %668 = arith.mulf %571, %667 : vector<2x32xf32>
    %669 = arith.addf %620, %668 : vector<2x32xf32>
    %670 = arith.truncf %669 : vector<2x32xf32> to vector<2x32xbf16>
    %cst_156 = arith.constant dense<0.000000e+00> : vector<2x32xf32>
    %671 = tpu.matmul %670, %1, %cst_156 {dimension_numbers = #tpu.dot_dimension_numbers<[1], [0], [0], [1], [0, 0, 1, 1], [], []>} : vector<2x32xbf16>, vector<32x32xbf16>, vector<2x32xf32> -> vector<2x32xf32>
    %672 = vector.broadcast %3 : vector<1x32xf32> to vector<2x32xf32>
    %673 = arith.addf %671, %672 : vector<2x32xf32>
    %674 = math.tanh %673 : vector<2x32xf32>
    %675 = arith.truncf %674 : vector<2x32xf32> to vector<2x32xbf16>
    %cst_157 = arith.constant dense<0.000000e+00> : vector<2x32xf32>
    %676 = tpu.matmul %675, %2, %cst_157 {dimension_numbers = #tpu.dot_dimension_numbers<[1], [0], [0], [1], [0, 0, 1, 1], [], []>} : vector<2x32xbf16>, vector<32x32xbf16>, vector<2x32xf32> -> vector<2x32xf32>
    %677 = vector.broadcast %4 : vector<1x32xf32> to vector<2x32xf32>
    %678 = arith.addf %676, %677 : vector<2x32xf32>
    %679 = arith.mulf %678, %569 : vector<2x32xf32>
    %680 = arith.addf %669, %679 : vector<2x32xf32>
    %681 = arith.truncf %680 : vector<2x32xf32> to vector<2x32xbf16>
    %cst_158 = arith.constant dense<0.000000e+00> : vector<2x32xf32>
    %682 = tpu.matmul %681, %1, %cst_158 {dimension_numbers = #tpu.dot_dimension_numbers<[1], [0], [0], [1], [0, 0, 1, 1], [], []>} : vector<2x32xbf16>, vector<32x32xbf16>, vector<2x32xf32> -> vector<2x32xf32>
    %683 = vector.broadcast %3 : vector<1x32xf32> to vector<2x32xf32>
    %684 = arith.addf %682, %683 : vector<2x32xf32>
    %685 = math.tanh %684 : vector<2x32xf32>
    %686 = arith.truncf %685 : vector<2x32xf32> to vector<2x32xbf16>
    %cst_159 = arith.constant dense<0.000000e+00> : vector<2x32xf32>
    %687 = tpu.matmul %686, %2, %cst_159 {dimension_numbers = #tpu.dot_dimension_numbers<[1], [0], [0], [1], [0, 0, 1, 1], [], []>} : vector<2x32xbf16>, vector<32x32xbf16>, vector<2x32xf32> -> vector<2x32xf32>
    %688 = vector.broadcast %4 : vector<1x32xf32> to vector<2x32xf32>
    %689 = arith.addf %687, %688 : vector<2x32xf32>
    %690 = arith.mulf %689, %569 : vector<2x32xf32>
    %691 = arith.addf %669, %690 : vector<2x32xf32>
    %692 = arith.truncf %691 : vector<2x32xf32> to vector<2x32xbf16>
    %cst_160 = arith.constant dense<0.000000e+00> : vector<2x32xf32>
    %693 = tpu.matmul %692, %1, %cst_160 {dimension_numbers = #tpu.dot_dimension_numbers<[1], [0], [0], [1], [0, 0, 1, 1], [], []>} : vector<2x32xbf16>, vector<32x32xbf16>, vector<2x32xf32> -> vector<2x32xf32>
    %694 = vector.broadcast %3 : vector<1x32xf32> to vector<2x32xf32>
    %695 = arith.addf %693, %694 : vector<2x32xf32>
    %696 = math.tanh %695 : vector<2x32xf32>
    %697 = arith.truncf %696 : vector<2x32xf32> to vector<2x32xbf16>
    %cst_161 = arith.constant dense<0.000000e+00> : vector<2x32xf32>
    %698 = tpu.matmul %697, %2, %cst_161 {dimension_numbers = #tpu.dot_dimension_numbers<[1], [0], [0], [1], [0, 0, 1, 1], [], []>} : vector<2x32xbf16>, vector<32x32xbf16>, vector<2x32xf32> -> vector<2x32xf32>
    %699 = vector.broadcast %4 : vector<1x32xf32> to vector<2x32xf32>
    %700 = arith.addf %698, %699 : vector<2x32xf32>
    %701 = arith.mulf %700, %567 : vector<2x32xf32>
    %702 = arith.addf %669, %701 : vector<2x32xf32>
    %703 = arith.truncf %702 : vector<2x32xf32> to vector<2x32xbf16>
    %cst_162 = arith.constant dense<0.000000e+00> : vector<2x32xf32>
    %704 = tpu.matmul %703, %1, %cst_162 {dimension_numbers = #tpu.dot_dimension_numbers<[1], [0], [0], [1], [0, 0, 1, 1], [], []>} : vector<2x32xbf16>, vector<32x32xbf16>, vector<2x32xf32> -> vector<2x32xf32>
    %705 = vector.broadcast %3 : vector<1x32xf32> to vector<2x32xf32>
    %706 = arith.addf %704, %705 : vector<2x32xf32>
    %707 = math.tanh %706 : vector<2x32xf32>
    %708 = arith.truncf %707 : vector<2x32xf32> to vector<2x32xbf16>
    %cst_163 = arith.constant dense<0.000000e+00> : vector<2x32xf32>
    %709 = tpu.matmul %708, %2, %cst_163 {dimension_numbers = #tpu.dot_dimension_numbers<[1], [0], [0], [1], [0, 0, 1, 1], [], []>} : vector<2x32xbf16>, vector<32x32xbf16>, vector<2x32xf32> -> vector<2x32xf32>
    %710 = vector.broadcast %4 : vector<1x32xf32> to vector<2x32xf32>
    %711 = arith.addf %709, %710 : vector<2x32xf32>
    %712 = arith.addf %678, %711 : vector<2x32xf32>
    %713 = arith.addf %689, %700 : vector<2x32xf32>
    %cst_164 = arith.constant 2.000000e+00 : f32
    %714 = vector.broadcast %cst_164 : f32 to vector<2x32xf32>
    %715 = arith.mulf %714, %713 : vector<2x32xf32>
    %716 = arith.addf %712, %715 : vector<2x32xf32>
    %717 = arith.mulf %571, %716 : vector<2x32xf32>
    %718 = arith.addf %669, %717 : vector<2x32xf32>
    %c0_165 = arith.constant 0 : index
    %719 = arith.index_cast %c3_i32 : i32 to index
    %c0_166 = arith.constant 0 : index
    %c0_167 = arith.constant 0 : index
    %720 = vector.load %arg6[%c0_165, %719, %c0_166, %c0_167] : memref<1x8x2x32xf32, #tpu.memory_space<vmem>>, vector<1x1x2x32xf32>
    %721 = vector.shape_cast %720 : vector<1x1x2x32xf32> to vector<2x32xf32>
    %722 = vector.shape_cast %718 : vector<2x32xf32> to vector<1x1x2x32xf32>
    tpu.vector_store %arg6[%c0_165, %719, %c0_166, %c0_167], %722 {strides = array<i32>} : memref<1x8x2x32xf32, #tpu.memory_space<vmem>>, vector<1x1x2x32xf32>,
    %c4_i32 = arith.constant 4 : i32
    %c0_168 = arith.constant 0 : index
    %723 = arith.index_cast %c4_i32 : i32 to index
    %c0_169 = arith.constant 0 : index
    %c0_170 = arith.constant 0 : index
    %724 = vector.load %arg1[%c0_168, %723, %c0_169, %c0_170] : memref<1x8x2x128xf32, #tpu.memory_space<vmem>>, vector<1x1x2x128xf32>
    %725 = vector.shape_cast %724 : vector<1x1x2x128xf32> to vector<2x128xf32>
    %726 = arith.truncf %718 : vector<2x32xf32> to vector<2x32xbf16>
    %cst_171 = arith.constant dense<0.000000e+00> : vector<2x128xf32>
    %727 = tpu.matmul %726, %0, %cst_171 {dimension_numbers = #tpu.dot_dimension_numbers<[1], [0], [0], [1], [0, 0, 1, 1], [], []>} : vector<2x32xbf16>, vector<32x128xbf16>, vector<2x128xf32> -> vector<2x128xf32>
    %728 = arith.addf %725, %727 : vector<2x128xf32>
    %729 = arith.negf %728 : vector<2x128xf32>
    %730 = math.exp %729 : vector<2x128xf32>
    %cst_172 = arith.constant 1.000000e+00 : f32
    %731 = vector.broadcast %cst_172 : f32 to vector<2x128xf32>
    %732 = arith.addf %731, %730 : vector<2x128xf32>
    %733 = arith.divf %731, %732 : vector<2x128xf32>
    %734 = math.tanh %728 : vector<2x128xf32>
    %735 = vector.extract_strided_slice %733 {offsets = [0, 0], sizes = [2, 32], strides = [1, 1]} : vector<2x128xf32> to vector<2x32xf32>
    %736 = vector.extract_strided_slice %733 {offsets = [0, 32], sizes = [2, 32], strides = [1, 1]} : vector<2x128xf32> to vector<2x32xf32>
    %737 = vector.extract_strided_slice %734 {offsets = [0, 64], sizes = [2, 32], strides = [1, 1]} : vector<2x128xf32> to vector<2x32xf32>
    %738 = vector.extract_strided_slice %733 {offsets = [0, 96], sizes = [2, 32], strides = [1, 1]} : vector<2x128xf32> to vector<2x32xf32>
    %739 = arith.mulf %736, %562 : vector<2x32xf32>
    %740 = arith.mulf %735, %737 : vector<2x32xf32>
    %741 = arith.addf %739, %740 : vector<2x32xf32>
    %742 = math.tanh %741 : vector<2x32xf32>
    %743 = arith.mulf %738, %742 : vector<2x32xf32>
    %c0_173 = arith.constant 0 : index
    %744 = arith.index_cast %c4_i32 : i32 to index
    %c0_174 = arith.constant 0 : index
    %c0_175 = arith.constant 0 : index
    %745 = vector.load %arg2[%c0_173, %744, %c0_174, %c0_175] : memref<1x8x2x32xf32, #tpu.memory_space<vmem>>, vector<1x1x2x32xf32>
    %746 = vector.shape_cast %745 : vector<1x1x2x32xf32> to vector<2x32xf32>
    %cst_176 = arith.constant 5.000000e-01 : f32
    %747 = vector.broadcast %cst_176 : f32 to vector<2x32xf32>
    %748 = arith.mulf %747, %746 : vector<2x32xf32>
    %cst_177 = arith.constant 0.166666672 : f32
    %749 = vector.broadcast %cst_177 : f32 to vector<2x32xf32>
    %750 = arith.mulf %746, %749 : vector<2x32xf32>
    %751 = arith.truncf %743 : vector<2x32xf32> to vector<2x32xbf16>
    %cst_178 = arith.constant dense<0.000000e+00> : vector<2x32xf32>
    %752 = tpu.matmul %751, %1, %cst_178 {dimension_numbers = #tpu.dot_dimension_numbers<[1], [0], [0], [1], [0, 0, 1, 1], [], []>} : vector<2x32xbf16>, vector<32x32xbf16>, vector<2x32xf32> -> vector<2x32xf32>
    %753 = vector.broadcast %3 : vector<1x32xf32> to vector<2x32xf32>
    %754 = arith.addf %752, %753 : vector<2x32xf32>
    %755 = math.tanh %754 : vector<2x32xf32>
    %756 = arith.truncf %755 : vector<2x32xf32> to vector<2x32xbf16>
    %cst_179 = arith.constant dense<0.000000e+00> : vector<2x32xf32>
    %757 = tpu.matmul %756, %2, %cst_179 {dimension_numbers = #tpu.dot_dimension_numbers<[1], [0], [0], [1], [0, 0, 1, 1], [], []>} : vector<2x32xbf16>, vector<32x32xbf16>, vector<2x32xf32> -> vector<2x32xf32>
    %758 = vector.broadcast %4 : vector<1x32xf32> to vector<2x32xf32>
    %759 = arith.addf %757, %758 : vector<2x32xf32>
    %760 = arith.mulf %759, %748 : vector<2x32xf32>
    %761 = arith.addf %743, %760 : vector<2x32xf32>
    %762 = arith.truncf %761 : vector<2x32xf32> to vector<2x32xbf16>
    %cst_180 = arith.constant dense<0.000000e+00> : vector<2x32xf32>
    %763 = tpu.matmul %762, %1, %cst_180 {dimension_numbers = #tpu.dot_dimension_numbers<[1], [0], [0], [1], [0, 0, 1, 1], [], []>} : vector<2x32xbf16>, vector<32x32xbf16>, vector<2x32xf32> -> vector<2x32xf32>
    %764 = vector.broadcast %3 : vector<1x32xf32> to vector<2x32xf32>
    %765 = arith.addf %763, %764 : vector<2x32xf32>
    %766 = math.tanh %765 : vector<2x32xf32>
    %767 = arith.truncf %766 : vector<2x32xf32> to vector<2x32xbf16>
    %cst_181 = arith.constant dense<0.000000e+00> : vector<2x32xf32>
    %768 = tpu.matmul %767, %2, %cst_181 {dimension_numbers = #tpu.dot_dimension_numbers<[1], [0], [0], [1], [0, 0, 1, 1], [], []>} : vector<2x32xbf16>, vector<32x32xbf16>, vector<2x32xf32> -> vector<2x32xf32>
    %769 = vector.broadcast %4 : vector<1x32xf32> to vector<2x32xf32>
    %770 = arith.addf %768, %769 : vector<2x32xf32>
    %771 = arith.mulf %770, %748 : vector<2x32xf32>
    %772 = arith.addf %743, %771 : vector<2x32xf32>
    %773 = arith.truncf %772 : vector<2x32xf32> to vector<2x32xbf16>
    %cst_182 = arith.constant dense<0.000000e+00> : vector<2x32xf32>
    %774 = tpu.matmul %773, %1, %cst_182 {dimension_numbers = #tpu.dot_dimension_numbers<[1], [0], [0], [1], [0, 0, 1, 1], [], []>} : vector<2x32xbf16>, vector<32x32xbf16>, vector<2x32xf32> -> vector<2x32xf32>
    %775 = vector.broadcast %3 : vector<1x32xf32> to vector<2x32xf32>
    %776 = arith.addf %774, %775 : vector<2x32xf32>
    %777 = math.tanh %776 : vector<2x32xf32>
    %778 = arith.truncf %777 : vector<2x32xf32> to vector<2x32xbf16>
    %cst_183 = arith.constant dense<0.000000e+00> : vector<2x32xf32>
    %779 = tpu.matmul %778, %2, %cst_183 {dimension_numbers = #tpu.dot_dimension_numbers<[1], [0], [0], [1], [0, 0, 1, 1], [], []>} : vector<2x32xbf16>, vector<32x32xbf16>, vector<2x32xf32> -> vector<2x32xf32>
    %780 = vector.broadcast %4 : vector<1x32xf32> to vector<2x32xf32>
    %781 = arith.addf %779, %780 : vector<2x32xf32>
    %782 = arith.mulf %781, %746 : vector<2x32xf32>
    %783 = arith.addf %743, %782 : vector<2x32xf32>
    %784 = arith.truncf %783 : vector<2x32xf32> to vector<2x32xbf16>
    %cst_184 = arith.constant dense<0.000000e+00> : vector<2x32xf32>
    %785 = tpu.matmul %784, %1, %cst_184 {dimension_numbers = #tpu.dot_dimension_numbers<[1], [0], [0], [1], [0, 0, 1, 1], [], []>} : vector<2x32xbf16>, vector<32x32xbf16>, vector<2x32xf32> -> vector<2x32xf32>
    %786 = vector.broadcast %3 : vector<1x32xf32> to vector<2x32xf32>
    %787 = arith.addf %785, %786 : vector<2x32xf32>
    %788 = math.tanh %787 : vector<2x32xf32>
    %789 = arith.truncf %788 : vector<2x32xf32> to vector<2x32xbf16>
    %cst_185 = arith.constant dense<0.000000e+00> : vector<2x32xf32>
    %790 = tpu.matmul %789, %2, %cst_185 {dimension_numbers = #tpu.dot_dimension_numbers<[1], [0], [0], [1], [0, 0, 1, 1], [], []>} : vector<2x32xbf16>, vector<32x32xbf16>, vector<2x32xf32> -> vector<2x32xf32>
    %791 = vector.broadcast %4 : vector<1x32xf32> to vector<2x32xf32>
    %792 = arith.addf %790, %791 : vector<2x32xf32>
    %793 = arith.addf %759, %792 : vector<2x32xf32>
    %794 = arith.addf %770, %781 : vector<2x32xf32>
    %cst_186 = arith.constant 2.000000e+00 : f32
    %795 = vector.broadcast %cst_186 : f32 to vector<2x32xf32>
    %796 = arith.mulf %795, %794 : vector<2x32xf32>
    %797 = arith.addf %793, %796 : vector<2x32xf32>
    %798 = arith.mulf %750, %797 : vector<2x32xf32>
    %799 = arith.addf %743, %798 : vector<2x32xf32>
    %800 = arith.truncf %799 : vector<2x32xf32> to vector<2x32xbf16>
    %cst_187 = arith.constant dense<0.000000e+00> : vector<2x32xf32>
    %801 = tpu.matmul %800, %1, %cst_187 {dimension_numbers = #tpu.dot_dimension_numbers<[1], [0], [0], [1], [0, 0, 1, 1], [], []>} : vector<2x32xbf16>, vector<32x32xbf16>, vector<2x32xf32> -> vector<2x32xf32>
    %802 = vector.broadcast %3 : vector<1x32xf32> to vector<2x32xf32>
    %803 = arith.addf %801, %802 : vector<2x32xf32>
    %804 = math.tanh %803 : vector<2x32xf32>
    %805 = arith.truncf %804 : vector<2x32xf32> to vector<2x32xbf16>
    %cst_188 = arith.constant dense<0.000000e+00> : vector<2x32xf32>
    %806 = tpu.matmul %805, %2, %cst_188 {dimension_numbers = #tpu.dot_dimension_numbers<[1], [0], [0], [1], [0, 0, 1, 1], [], []>} : vector<2x32xbf16>, vector<32x32xbf16>, vector<2x32xf32> -> vector<2x32xf32>
    %807 = vector.broadcast %4 : vector<1x32xf32> to vector<2x32xf32>
    %808 = arith.addf %806, %807 : vector<2x32xf32>
    %809 = arith.mulf %808, %748 : vector<2x32xf32>
    %810 = arith.addf %799, %809 : vector<2x32xf32>
    %811 = arith.truncf %810 : vector<2x32xf32> to vector<2x32xbf16>
    %cst_189 = arith.constant dense<0.000000e+00> : vector<2x32xf32>
    %812 = tpu.matmul %811, %1, %cst_189 {dimension_numbers = #tpu.dot_dimension_numbers<[1], [0], [0], [1], [0, 0, 1, 1], [], []>} : vector<2x32xbf16>, vector<32x32xbf16>, vector<2x32xf32> -> vector<2x32xf32>
    %813 = vector.broadcast %3 : vector<1x32xf32> to vector<2x32xf32>
    %814 = arith.addf %812, %813 : vector<2x32xf32>
    %815 = math.tanh %814 : vector<2x32xf32>
    %816 = arith.truncf %815 : vector<2x32xf32> to vector<2x32xbf16>
    %cst_190 = arith.constant dense<0.000000e+00> : vector<2x32xf32>
    %817 = tpu.matmul %816, %2, %cst_190 {dimension_numbers = #tpu.dot_dimension_numbers<[1], [0], [0], [1], [0, 0, 1, 1], [], []>} : vector<2x32xbf16>, vector<32x32xbf16>, vector<2x32xf32> -> vector<2x32xf32>
    %818 = vector.broadcast %4 : vector<1x32xf32> to vector<2x32xf32>
    %819 = arith.addf %817, %818 : vector<2x32xf32>
    %820 = arith.mulf %819, %748 : vector<2x32xf32>
    %821 = arith.addf %799, %820 : vector<2x32xf32>
    %822 = arith.truncf %821 : vector<2x32xf32> to vector<2x32xbf16>
    %cst_191 = arith.constant dense<0.000000e+00> : vector<2x32xf32>
    %823 = tpu.matmul %822, %1, %cst_191 {dimension_numbers = #tpu.dot_dimension_numbers<[1], [0], [0], [1], [0, 0, 1, 1], [], []>} : vector<2x32xbf16>, vector<32x32xbf16>, vector<2x32xf32> -> vector<2x32xf32>
    %824 = vector.broadcast %3 : vector<1x32xf32> to vector<2x32xf32>
    %825 = arith.addf %823, %824 : vector<2x32xf32>
    %826 = math.tanh %825 : vector<2x32xf32>
    %827 = arith.truncf %826 : vector<2x32xf32> to vector<2x32xbf16>
    %cst_192 = arith.constant dense<0.000000e+00> : vector<2x32xf32>
    %828 = tpu.matmul %827, %2, %cst_192 {dimension_numbers = #tpu.dot_dimension_numbers<[1], [0], [0], [1], [0, 0, 1, 1], [], []>} : vector<2x32xbf16>, vector<32x32xbf16>, vector<2x32xf32> -> vector<2x32xf32>
    %829 = vector.broadcast %4 : vector<1x32xf32> to vector<2x32xf32>
    %830 = arith.addf %828, %829 : vector<2x32xf32>
    %831 = arith.mulf %830, %746 : vector<2x32xf32>
    %832 = arith.addf %799, %831 : vector<2x32xf32>
    %833 = arith.truncf %832 : vector<2x32xf32> to vector<2x32xbf16>
    %cst_193 = arith.constant dense<0.000000e+00> : vector<2x32xf32>
    %834 = tpu.matmul %833, %1, %cst_193 {dimension_numbers = #tpu.dot_dimension_numbers<[1], [0], [0], [1], [0, 0, 1, 1], [], []>} : vector<2x32xbf16>, vector<32x32xbf16>, vector<2x32xf32> -> vector<2x32xf32>
    %835 = vector.broadcast %3 : vector<1x32xf32> to vector<2x32xf32>
    %836 = arith.addf %834, %835 : vector<2x32xf32>
    %837 = math.tanh %836 : vector<2x32xf32>
    %838 = arith.truncf %837 : vector<2x32xf32> to vector<2x32xbf16>
    %cst_194 = arith.constant dense<0.000000e+00> : vector<2x32xf32>
    %839 = tpu.matmul %838, %2, %cst_194 {dimension_numbers = #tpu.dot_dimension_numbers<[1], [0], [0], [1], [0, 0, 1, 1], [], []>} : vector<2x32xbf16>, vector<32x32xbf16>, vector<2x32xf32> -> vector<2x32xf32>
    %840 = vector.broadcast %4 : vector<1x32xf32> to vector<2x32xf32>
    %841 = arith.addf %839, %840 : vector<2x32xf32>
    %842 = arith.addf %808, %841 : vector<2x32xf32>
    %843 = arith.addf %819, %830 : vector<2x32xf32>
    %cst_195 = arith.constant 2.000000e+00 : f32
    %844 = vector.broadcast %cst_195 : f32 to vector<2x32xf32>
    %845 = arith.mulf %844, %843 : vector<2x32xf32>
    %846 = arith.addf %842, %845 : vector<2x32xf32>
    %847 = arith.mulf %750, %846 : vector<2x32xf32>
    %848 = arith.addf %799, %847 : vector<2x32xf32>
    %849 = arith.truncf %848 : vector<2x32xf32> to vector<2x32xbf16>
    %cst_196 = arith.constant dense<0.000000e+00> : vector<2x32xf32>
    %850 = tpu.matmul %849, %1, %cst_196 {dimension_numbers = #tpu.dot_dimension_numbers<[1], [0], [0], [1], [0, 0, 1, 1], [], []>} : vector<2x32xbf16>, vector<32x32xbf16>, vector<2x32xf32> -> vector<2x32xf32>
    %851 = vector.broadcast %3 : vector<1x32xf32> to vector<2x32xf32>
    %852 = arith.addf %850, %851 : vector<2x32xf32>
    %853 = math.tanh %852 : vector<2x32xf32>
    %854 = arith.truncf %853 : vector<2x32xf32> to vector<2x32xbf16>
    %cst_197 = arith.constant dense<0.000000e+00> : vector<2x32xf32>
    %855 = tpu.matmul %854, %2, %cst_197 {dimension_numbers = #tpu.dot_dimension_numbers<[1], [0], [0], [1], [0, 0, 1, 1], [], []>} : vector<2x32xbf16>, vector<32x32xbf16>, vector<2x32xf32> -> vector<2x32xf32>
    %856 = vector.broadcast %4 : vector<1x32xf32> to vector<2x32xf32>
    %857 = arith.addf %855, %856 : vector<2x32xf32>
    %858 = arith.mulf %857, %748 : vector<2x32xf32>
    %859 = arith.addf %848, %858 : vector<2x32xf32>
    %860 = arith.truncf %859 : vector<2x32xf32> to vector<2x32xbf16>
    %cst_198 = arith.constant dense<0.000000e+00> : vector<2x32xf32>
    %861 = tpu.matmul %860, %1, %cst_198 {dimension_numbers = #tpu.dot_dimension_numbers<[1], [0], [0], [1], [0, 0, 1, 1], [], []>} : vector<2x32xbf16>, vector<32x32xbf16>, vector<2x32xf32> -> vector<2x32xf32>
    %862 = vector.broadcast %3 : vector<1x32xf32> to vector<2x32xf32>
    %863 = arith.addf %861, %862 : vector<2x32xf32>
    %864 = math.tanh %863 : vector<2x32xf32>
    %865 = arith.truncf %864 : vector<2x32xf32> to vector<2x32xbf16>
    %cst_199 = arith.constant dense<0.000000e+00> : vector<2x32xf32>
    %866 = tpu.matmul %865, %2, %cst_199 {dimension_numbers = #tpu.dot_dimension_numbers<[1], [0], [0], [1], [0, 0, 1, 1], [], []>} : vector<2x32xbf16>, vector<32x32xbf16>, vector<2x32xf32> -> vector<2x32xf32>
    %867 = vector.broadcast %4 : vector<1x32xf32> to vector<2x32xf32>
    %868 = arith.addf %866, %867 : vector<2x32xf32>
    %869 = arith.mulf %868, %748 : vector<2x32xf32>
    %870 = arith.addf %848, %869 : vector<2x32xf32>
    %871 = arith.truncf %870 : vector<2x32xf32> to vector<2x32xbf16>
    %cst_200 = arith.constant dense<0.000000e+00> : vector<2x32xf32>
    %872 = tpu.matmul %871, %1, %cst_200 {dimension_numbers = #tpu.dot_dimension_numbers<[1], [0], [0], [1], [0, 0, 1, 1], [], []>} : vector<2x32xbf16>, vector<32x32xbf16>, vector<2x32xf32> -> vector<2x32xf32>
    %873 = vector.broadcast %3 : vector<1x32xf32> to vector<2x32xf32>
    %874 = arith.addf %872, %873 : vector<2x32xf32>
    %875 = math.tanh %874 : vector<2x32xf32>
    %876 = arith.truncf %875 : vector<2x32xf32> to vector<2x32xbf16>
    %cst_201 = arith.constant dense<0.000000e+00> : vector<2x32xf32>
    %877 = tpu.matmul %876, %2, %cst_201 {dimension_numbers = #tpu.dot_dimension_numbers<[1], [0], [0], [1], [0, 0, 1, 1], [], []>} : vector<2x32xbf16>, vector<32x32xbf16>, vector<2x32xf32> -> vector<2x32xf32>
    %878 = vector.broadcast %4 : vector<1x32xf32> to vector<2x32xf32>
    %879 = arith.addf %877, %878 : vector<2x32xf32>
    %880 = arith.mulf %879, %746 : vector<2x32xf32>
    %881 = arith.addf %848, %880 : vector<2x32xf32>
    %882 = arith.truncf %881 : vector<2x32xf32> to vector<2x32xbf16>
    %cst_202 = arith.constant dense<0.000000e+00> : vector<2x32xf32>
    %883 = tpu.matmul %882, %1, %cst_202 {dimension_numbers = #tpu.dot_dimension_numbers<[1], [0], [0], [1], [0, 0, 1, 1], [], []>} : vector<2x32xbf16>, vector<32x32xbf16>, vector<2x32xf32> -> vector<2x32xf32>
    %884 = vector.broadcast %3 : vector<1x32xf32> to vector<2x32xf32>
    %885 = arith.addf %883, %884 : vector<2x32xf32>
    %886 = math.tanh %885 : vector<2x32xf32>
    %887 = arith.truncf %886 : vector<2x32xf32> to vector<2x32xbf16>
    %cst_203 = arith.constant dense<0.000000e+00> : vector<2x32xf32>
    %888 = tpu.matmul %887, %2, %cst_203 {dimension_numbers = #tpu.dot_dimension_numbers<[1], [0], [0], [1], [0, 0, 1, 1], [], []>} : vector<2x32xbf16>, vector<32x32xbf16>, vector<2x32xf32> -> vector<2x32xf32>
    %889 = vector.broadcast %4 : vector<1x32xf32> to vector<2x32xf32>
    %890 = arith.addf %888, %889 : vector<2x32xf32>
    %891 = arith.addf %857, %890 : vector<2x32xf32>
    %892 = arith.addf %868, %879 : vector<2x32xf32>
    %cst_204 = arith.constant 2.000000e+00 : f32
    %893 = vector.broadcast %cst_204 : f32 to vector<2x32xf32>
    %894 = arith.mulf %893, %892 : vector<2x32xf32>
    %895 = arith.addf %891, %894 : vector<2x32xf32>
    %896 = arith.mulf %750, %895 : vector<2x32xf32>
    %897 = arith.addf %848, %896 : vector<2x32xf32>
    %c0_205 = arith.constant 0 : index
    %898 = arith.index_cast %c4_i32 : i32 to index
    %c0_206 = arith.constant 0 : index
    %c0_207 = arith.constant 0 : index
    %899 = vector.load %arg6[%c0_205, %898, %c0_206, %c0_207] : memref<1x8x2x32xf32, #tpu.memory_space<vmem>>, vector<1x1x2x32xf32>
    %900 = vector.shape_cast %899 : vector<1x1x2x32xf32> to vector<2x32xf32>
    %901 = vector.shape_cast %897 : vector<2x32xf32> to vector<1x1x2x32xf32>
    tpu.vector_store %arg6[%c0_205, %898, %c0_206, %c0_207], %901 {strides = array<i32>} : memref<1x8x2x32xf32, #tpu.memory_space<vmem>>, vector<1x1x2x32xf32>,
    %c5_i32 = arith.constant 5 : i32
    %c0_208 = arith.constant 0 : index
    %902 = arith.index_cast %c5_i32 : i32 to index
    %c0_209 = arith.constant 0 : index
    %c0_210 = arith.constant 0 : index
    %903 = vector.load %arg1[%c0_208, %902, %c0_209, %c0_210] : memref<1x8x2x128xf32, #tpu.memory_space<vmem>>, vector<1x1x2x128xf32>
    %904 = vector.shape_cast %903 : vector<1x1x2x128xf32> to vector<2x128xf32>
    %905 = arith.truncf %897 : vector<2x32xf32> to vector<2x32xbf16>
    %cst_211 = arith.constant dense<0.000000e+00> : vector<2x128xf32>
    %906 = tpu.matmul %905, %0, %cst_211 {dimension_numbers = #tpu.dot_dimension_numbers<[1], [0], [0], [1], [0, 0, 1, 1], [], []>} : vector<2x32xbf16>, vector<32x128xbf16>, vector<2x128xf32> -> vector<2x128xf32>
    %907 = arith.addf %904, %906 : vector<2x128xf32>
    %908 = arith.negf %907 : vector<2x128xf32>
    %909 = math.exp %908 : vector<2x128xf32>
    %cst_212 = arith.constant 1.000000e+00 : f32
    %910 = vector.broadcast %cst_212 : f32 to vector<2x128xf32>
    %911 = arith.addf %910, %909 : vector<2x128xf32>
    %912 = arith.divf %910, %911 : vector<2x128xf32>
    %913 = math.tanh %907 : vector<2x128xf32>
    %914 = vector.extract_strided_slice %912 {offsets = [0, 0], sizes = [2, 32], strides = [1, 1]} : vector<2x128xf32> to vector<2x32xf32>
    %915 = vector.extract_strided_slice %912 {offsets = [0, 32], sizes = [2, 32], strides = [1, 1]} : vector<2x128xf32> to vector<2x32xf32>
    %916 = vector.extract_strided_slice %913 {offsets = [0, 64], sizes = [2, 32], strides = [1, 1]} : vector<2x128xf32> to vector<2x32xf32>
    %917 = vector.extract_strided_slice %912 {offsets = [0, 96], sizes = [2, 32], strides = [1, 1]} : vector<2x128xf32> to vector<2x32xf32>
    %918 = arith.mulf %915, %741 : vector<2x32xf32>
    %919 = arith.mulf %914, %916 : vector<2x32xf32>
    %920 = arith.addf %918, %919 : vector<2x32xf32>
    %921 = math.tanh %920 : vector<2x32xf32>
    %922 = arith.mulf %917, %921 : vector<2x32xf32>
    %c0_213 = arith.constant 0 : index
    %923 = arith.index_cast %c5_i32 : i32 to index
    %c0_214 = arith.constant 0 : index
    %c0_215 = arith.constant 0 : index
    %924 = vector.load %arg2[%c0_213, %923, %c0_214, %c0_215] : memref<1x8x2x32xf32, #tpu.memory_space<vmem>>, vector<1x1x2x32xf32>
    %925 = vector.shape_cast %924 : vector<1x1x2x32xf32> to vector<2x32xf32>
    %cst_216 = arith.constant 5.000000e-01 : f32
    %926 = vector.broadcast %cst_216 : f32 to vector<2x32xf32>
    %927 = arith.mulf %926, %925 : vector<2x32xf32>
    %cst_217 = arith.constant 0.166666672 : f32
    %928 = vector.broadcast %cst_217 : f32 to vector<2x32xf32>
    %929 = arith.mulf %925, %928 : vector<2x32xf32>
    %930 = arith.truncf %922 : vector<2x32xf32> to vector<2x32xbf16>
    %cst_218 = arith.constant dense<0.000000e+00> : vector<2x32xf32>
    %931 = tpu.matmul %930, %1, %cst_218 {dimension_numbers = #tpu.dot_dimension_numbers<[1], [0], [0], [1], [0, 0, 1, 1], [], []>} : vector<2x32xbf16>, vector<32x32xbf16>, vector<2x32xf32> -> vector<2x32xf32>
    %932 = vector.broadcast %3 : vector<1x32xf32> to vector<2x32xf32>
    %933 = arith.addf %931, %932 : vector<2x32xf32>
    %934 = math.tanh %933 : vector<2x32xf32>
    %935 = arith.truncf %934 : vector<2x32xf32> to vector<2x32xbf16>
    %cst_219 = arith.constant dense<0.000000e+00> : vector<2x32xf32>
    %936 = tpu.matmul %935, %2, %cst_219 {dimension_numbers = #tpu.dot_dimension_numbers<[1], [0], [0], [1], [0, 0, 1, 1], [], []>} : vector<2x32xbf16>, vector<32x32xbf16>, vector<2x32xf32> -> vector<2x32xf32>
    %937 = vector.broadcast %4 : vector<1x32xf32> to vector<2x32xf32>
    %938 = arith.addf %936, %937 : vector<2x32xf32>
    %939 = arith.mulf %938, %927 : vector<2x32xf32>
    %940 = arith.addf %922, %939 : vector<2x32xf32>
    %941 = arith.truncf %940 : vector<2x32xf32> to vector<2x32xbf16>
    %cst_220 = arith.constant dense<0.000000e+00> : vector<2x32xf32>
    %942 = tpu.matmul %941, %1, %cst_220 {dimension_numbers = #tpu.dot_dimension_numbers<[1], [0], [0], [1], [0, 0, 1, 1], [], []>} : vector<2x32xbf16>, vector<32x32xbf16>, vector<2x32xf32> -> vector<2x32xf32>
    %943 = vector.broadcast %3 : vector<1x32xf32> to vector<2x32xf32>
    %944 = arith.addf %942, %943 : vector<2x32xf32>
    %945 = math.tanh %944 : vector<2x32xf32>
    %946 = arith.truncf %945 : vector<2x32xf32> to vector<2x32xbf16>
    %cst_221 = arith.constant dense<0.000000e+00> : vector<2x32xf32>
    %947 = tpu.matmul %946, %2, %cst_221 {dimension_numbers = #tpu.dot_dimension_numbers<[1], [0], [0], [1], [0, 0, 1, 1], [], []>} : vector<2x32xbf16>, vector<32x32xbf16>, vector<2x32xf32> -> vector<2x32xf32>
    %948 = vector.broadcast %4 : vector<1x32xf32> to vector<2x32xf32>
    %949 = arith.addf %947, %948 : vector<2x32xf32>
    %950 = arith.mulf %949, %927 : vector<2x32xf32>
    %951 = arith.addf %922, %950 : vector<2x32xf32>
    %952 = arith.truncf %951 : vector<2x32xf32> to vector<2x32xbf16>
    %cst_222 = arith.constant dense<0.000000e+00> : vector<2x32xf32>
    %953 = tpu.matmul %952, %1, %cst_222 {dimension_numbers = #tpu.dot_dimension_numbers<[1], [0], [0], [1], [0, 0, 1, 1], [], []>} : vector<2x32xbf16>, vector<32x32xbf16>, vector<2x32xf32> -> vector<2x32xf32>
    %954 = vector.broadcast %3 : vector<1x32xf32> to vector<2x32xf32>
    %955 = arith.addf %953, %954 : vector<2x32xf32>
    %956 = math.tanh %955 : vector<2x32xf32>
    %957 = arith.truncf %956 : vector<2x32xf32> to vector<2x32xbf16>
    %cst_223 = arith.constant dense<0.000000e+00> : vector<2x32xf32>
    %958 = tpu.matmul %957, %2, %cst_223 {dimension_numbers = #tpu.dot_dimension_numbers<[1], [0], [0], [1], [0, 0, 1, 1], [], []>} : vector<2x32xbf16>, vector<32x32xbf16>, vector<2x32xf32> -> vector<2x32xf32>
    %959 = vector.broadcast %4 : vector<1x32xf32> to vector<2x32xf32>
    %960 = arith.addf %958, %959 : vector<2x32xf32>
    %961 = arith.mulf %960, %925 : vector<2x32xf32>
    %962 = arith.addf %922, %961 : vector<2x32xf32>
    %963 = arith.truncf %962 : vector<2x32xf32> to vector<2x32xbf16>
    %cst_224 = arith.constant dense<0.000000e+00> : vector<2x32xf32>
    %964 = tpu.matmul %963, %1, %cst_224 {dimension_numbers = #tpu.dot_dimension_numbers<[1], [0], [0], [1], [0, 0, 1, 1], [], []>} : vector<2x32xbf16>, vector<32x32xbf16>, vector<2x32xf32> -> vector<2x32xf32>
    %965 = vector.broadcast %3 : vector<1x32xf32> to vector<2x32xf32>
    %966 = arith.addf %964, %965 : vector<2x32xf32>
    %967 = math.tanh %966 : vector<2x32xf32>
    %968 = arith.truncf %967 : vector<2x32xf32> to vector<2x32xbf16>
    %cst_225 = arith.constant dense<0.000000e+00> : vector<2x32xf32>
    %969 = tpu.matmul %968, %2, %cst_225 {dimension_numbers = #tpu.dot_dimension_numbers<[1], [0], [0], [1], [0, 0, 1, 1], [], []>} : vector<2x32xbf16>, vector<32x32xbf16>, vector<2x32xf32> -> vector<2x32xf32>
    %970 = vector.broadcast %4 : vector<1x32xf32> to vector<2x32xf32>
    %971 = arith.addf %969, %970 : vector<2x32xf32>
    %972 = arith.addf %938, %971 : vector<2x32xf32>
    %973 = arith.addf %949, %960 : vector<2x32xf32>
    %cst_226 = arith.constant 2.000000e+00 : f32
    %974 = vector.broadcast %cst_226 : f32 to vector<2x32xf32>
    %975 = arith.mulf %974, %973 : vector<2x32xf32>
    %976 = arith.addf %972, %975 : vector<2x32xf32>
    %977 = arith.mulf %929, %976 : vector<2x32xf32>
    %978 = arith.addf %922, %977 : vector<2x32xf32>
    %979 = arith.truncf %978 : vector<2x32xf32> to vector<2x32xbf16>
    %cst_227 = arith.constant dense<0.000000e+00> : vector<2x32xf32>
    %980 = tpu.matmul %979, %1, %cst_227 {dimension_numbers = #tpu.dot_dimension_numbers<[1], [0], [0], [1], [0, 0, 1, 1], [], []>} : vector<2x32xbf16>, vector<32x32xbf16>, vector<2x32xf32> -> vector<2x32xf32>
    %981 = vector.broadcast %3 : vector<1x32xf32> to vector<2x32xf32>
    %982 = arith.addf %980, %981 : vector<2x32xf32>
    %983 = math.tanh %982 : vector<2x32xf32>
    %984 = arith.truncf %983 : vector<2x32xf32> to vector<2x32xbf16>
    %cst_228 = arith.constant dense<0.000000e+00> : vector<2x32xf32>
    %985 = tpu.matmul %984, %2, %cst_228 {dimension_numbers = #tpu.dot_dimension_numbers<[1], [0], [0], [1], [0, 0, 1, 1], [], []>} : vector<2x32xbf16>, vector<32x32xbf16>, vector<2x32xf32> -> vector<2x32xf32>
    %986 = vector.broadcast %4 : vector<1x32xf32> to vector<2x32xf32>
    %987 = arith.addf %985, %986 : vector<2x32xf32>
    %988 = arith.mulf %987, %927 : vector<2x32xf32>
    %989 = arith.addf %978, %988 : vector<2x32xf32>
    %990 = arith.truncf %989 : vector<2x32xf32> to vector<2x32xbf16>
    %cst_229 = arith.constant dense<0.000000e+00> : vector<2x32xf32>
    %991 = tpu.matmul %990, %1, %cst_229 {dimension_numbers = #tpu.dot_dimension_numbers<[1], [0], [0], [1], [0, 0, 1, 1], [], []>} : vector<2x32xbf16>, vector<32x32xbf16>, vector<2x32xf32> -> vector<2x32xf32>
    %992 = vector.broadcast %3 : vector<1x32xf32> to vector<2x32xf32>
    %993 = arith.addf %991, %992 : vector<2x32xf32>
    %994 = math.tanh %993 : vector<2x32xf32>
    %995 = arith.truncf %994 : vector<2x32xf32> to vector<2x32xbf16>
    %cst_230 = arith.constant dense<0.000000e+00> : vector<2x32xf32>
    %996 = tpu.matmul %995, %2, %cst_230 {dimension_numbers = #tpu.dot_dimension_numbers<[1], [0], [0], [1], [0, 0, 1, 1], [], []>} : vector<2x32xbf16>, vector<32x32xbf16>, vector<2x32xf32> -> vector<2x32xf32>
    %997 = vector.broadcast %4 : vector<1x32xf32> to vector<2x32xf32>
    %998 = arith.addf %996, %997 : vector<2x32xf32>
    %999 = arith.mulf %998, %927 : vector<2x32xf32>
    %1000 = arith.addf %978, %999 : vector<2x32xf32>
    %1001 = arith.truncf %1000 : vector<2x32xf32> to vector<2x32xbf16>
    %cst_231 = arith.constant dense<0.000000e+00> : vector<2x32xf32>
    %1002 = tpu.matmul %1001, %1, %cst_231 {dimension_numbers = #tpu.dot_dimension_numbers<[1], [0], [0], [1], [0, 0, 1, 1], [], []>} : vector<2x32xbf16>, vector<32x32xbf16>, vector<2x32xf32> -> vector<2x32xf32>
    %1003 = vector.broadcast %3 : vector<1x32xf32> to vector<2x32xf32>
    %1004 = arith.addf %1002, %1003 : vector<2x32xf32>
    %1005 = math.tanh %1004 : vector<2x32xf32>
    %1006 = arith.truncf %1005 : vector<2x32xf32> to vector<2x32xbf16>
    %cst_232 = arith.constant dense<0.000000e+00> : vector<2x32xf32>
    %1007 = tpu.matmul %1006, %2, %cst_232 {dimension_numbers = #tpu.dot_dimension_numbers<[1], [0], [0], [1], [0, 0, 1, 1], [], []>} : vector<2x32xbf16>, vector<32x32xbf16>, vector<2x32xf32> -> vector<2x32xf32>
    %1008 = vector.broadcast %4 : vector<1x32xf32> to vector<2x32xf32>
    %1009 = arith.addf %1007, %1008 : vector<2x32xf32>
    %1010 = arith.mulf %1009, %925 : vector<2x32xf32>
    %1011 = arith.addf %978, %1010 : vector<2x32xf32>
    %1012 = arith.truncf %1011 : vector<2x32xf32> to vector<2x32xbf16>
    %cst_233 = arith.constant dense<0.000000e+00> : vector<2x32xf32>
    %1013 = tpu.matmul %1012, %1, %cst_233 {dimension_numbers = #tpu.dot_dimension_numbers<[1], [0], [0], [1], [0, 0, 1, 1], [], []>} : vector<2x32xbf16>, vector<32x32xbf16>, vector<2x32xf32> -> vector<2x32xf32>
    %1014 = vector.broadcast %3 : vector<1x32xf32> to vector<2x32xf32>
    %1015 = arith.addf %1013, %1014 : vector<2x32xf32>
    %1016 = math.tanh %1015 : vector<2x32xf32>
    %1017 = arith.truncf %1016 : vector<2x32xf32> to vector<2x32xbf16>
    %cst_234 = arith.constant dense<0.000000e+00> : vector<2x32xf32>
    %1018 = tpu.matmul %1017, %2, %cst_234 {dimension_numbers = #tpu.dot_dimension_numbers<[1], [0], [0], [1], [0, 0, 1, 1], [], []>} : vector<2x32xbf16>, vector<32x32xbf16>, vector<2x32xf32> -> vector<2x32xf32>
    %1019 = vector.broadcast %4 : vector<1x32xf32> to vector<2x32xf32>
    %1020 = arith.addf %1018, %1019 : vector<2x32xf32>
    %1021 = arith.addf %987, %1020 : vector<2x32xf32>
    %1022 = arith.addf %998, %1009 : vector<2x32xf32>
    %cst_235 = arith.constant 2.000000e+00 : f32
    %1023 = vector.broadcast %cst_235 : f32 to vector<2x32xf32>
    %1024 = arith.mulf %1023, %1022 : vector<2x32xf32>
    %1025 = arith.addf %1021, %1024 : vector<2x32xf32>
    %1026 = arith.mulf %929, %1025 : vector<2x32xf32>
    %1027 = arith.addf %978, %1026 : vector<2x32xf32>
    %1028 = arith.truncf %1027 : vector<2x32xf32> to vector<2x32xbf16>
    %cst_236 = arith.constant dense<0.000000e+00> : vector<2x32xf32>
    %1029 = tpu.matmul %1028, %1, %cst_236 {dimension_numbers = #tpu.dot_dimension_numbers<[1], [0], [0], [1], [0, 0, 1, 1], [], []>} : vector<2x32xbf16>, vector<32x32xbf16>, vector<2x32xf32> -> vector<2x32xf32>
    %1030 = vector.broadcast %3 : vector<1x32xf32> to vector<2x32xf32>
    %1031 = arith.addf %1029, %1030 : vector<2x32xf32>
    %1032 = math.tanh %1031 : vector<2x32xf32>
    %1033 = arith.truncf %1032 : vector<2x32xf32> to vector<2x32xbf16>
    %cst_237 = arith.constant dense<0.000000e+00> : vector<2x32xf32>
    %1034 = tpu.matmul %1033, %2, %cst_237 {dimension_numbers = #tpu.dot_dimension_numbers<[1], [0], [0], [1], [0, 0, 1, 1], [], []>} : vector<2x32xbf16>, vector<32x32xbf16>, vector<2x32xf32> -> vector<2x32xf32>
    %1035 = vector.broadcast %4 : vector<1x32xf32> to vector<2x32xf32>
    %1036 = arith.addf %1034, %1035 : vector<2x32xf32>
    %1037 = arith.mulf %1036, %927 : vector<2x32xf32>
    %1038 = arith.addf %1027, %1037 : vector<2x32xf32>
    %1039 = arith.truncf %1038 : vector<2x32xf32> to vector<2x32xbf16>
    %cst_238 = arith.constant dense<0.000000e+00> : vector<2x32xf32>
    %1040 = tpu.matmul %1039, %1, %cst_238 {dimension_numbers = #tpu.dot_dimension_numbers<[1], [0], [0], [1], [0, 0, 1, 1], [], []>} : vector<2x32xbf16>, vector<32x32xbf16>, vector<2x32xf32> -> vector<2x32xf32>
    %1041 = vector.broadcast %3 : vector<1x32xf32> to vector<2x32xf32>
    %1042 = arith.addf %1040, %1041 : vector<2x32xf32>
    %1043 = math.tanh %1042 : vector<2x32xf32>
    %1044 = arith.truncf %1043 : vector<2x32xf32> to vector<2x32xbf16>
    %cst_239 = arith.constant dense<0.000000e+00> : vector<2x32xf32>
    %1045 = tpu.matmul %1044, %2, %cst_239 {dimension_numbers = #tpu.dot_dimension_numbers<[1], [0], [0], [1], [0, 0, 1, 1], [], []>} : vector<2x32xbf16>, vector<32x32xbf16>, vector<2x32xf32> -> vector<2x32xf32>
    %1046 = vector.broadcast %4 : vector<1x32xf32> to vector<2x32xf32>
    %1047 = arith.addf %1045, %1046 : vector<2x32xf32>
    %1048 = arith.mulf %1047, %927 : vector<2x32xf32>
    %1049 = arith.addf %1027, %1048 : vector<2x32xf32>
    %1050 = arith.truncf %1049 : vector<2x32xf32> to vector<2x32xbf16>
    %cst_240 = arith.constant dense<0.000000e+00> : vector<2x32xf32>
    %1051 = tpu.matmul %1050, %1, %cst_240 {dimension_numbers = #tpu.dot_dimension_numbers<[1], [0], [0], [1], [0, 0, 1, 1], [], []>} : vector<2x32xbf16>, vector<32x32xbf16>, vector<2x32xf32> -> vector<2x32xf32>
    %1052 = vector.broadcast %3 : vector<1x32xf32> to vector<2x32xf32>
    %1053 = arith.addf %1051, %1052 : vector<2x32xf32>
    %1054 = math.tanh %1053 : vector<2x32xf32>
    %1055 = arith.truncf %1054 : vector<2x32xf32> to vector<2x32xbf16>
    %cst_241 = arith.constant dense<0.000000e+00> : vector<2x32xf32>
    %1056 = tpu.matmul %1055, %2, %cst_241 {dimension_numbers = #tpu.dot_dimension_numbers<[1], [0], [0], [1], [0, 0, 1, 1], [], []>} : vector<2x32xbf16>, vector<32x32xbf16>, vector<2x32xf32> -> vector<2x32xf32>
    %1057 = vector.broadcast %4 : vector<1x32xf32> to vector<2x32xf32>
    %1058 = arith.addf %1056, %1057 : vector<2x32xf32>
    %1059 = arith.mulf %1058, %925 : vector<2x32xf32>
    %1060 = arith.addf %1027, %1059 : vector<2x32xf32>
    %1061 = arith.truncf %1060 : vector<2x32xf32> to vector<2x32xbf16>
    %cst_242 = arith.constant dense<0.000000e+00> : vector<2x32xf32>
    %1062 = tpu.matmul %1061, %1, %cst_242 {dimension_numbers = #tpu.dot_dimension_numbers<[1], [0], [0], [1], [0, 0, 1, 1], [], []>} : vector<2x32xbf16>, vector<32x32xbf16>, vector<2x32xf32> -> vector<2x32xf32>
    %1063 = vector.broadcast %3 : vector<1x32xf32> to vector<2x32xf32>
    %1064 = arith.addf %1062, %1063 : vector<2x32xf32>
    %1065 = math.tanh %1064 : vector<2x32xf32>
    %1066 = arith.truncf %1065 : vector<2x32xf32> to vector<2x32xbf16>
    %cst_243 = arith.constant dense<0.000000e+00> : vector<2x32xf32>
    %1067 = tpu.matmul %1066, %2, %cst_243 {dimension_numbers = #tpu.dot_dimension_numbers<[1], [0], [0], [1], [0, 0, 1, 1], [], []>} : vector<2x32xbf16>, vector<32x32xbf16>, vector<2x32xf32> -> vector<2x32xf32>
    %1068 = vector.broadcast %4 : vector<1x32xf32> to vector<2x32xf32>
    %1069 = arith.addf %1067, %1068 : vector<2x32xf32>
    %1070 = arith.addf %1036, %1069 : vector<2x32xf32>
    %1071 = arith.addf %1047, %1058 : vector<2x32xf32>
    %cst_244 = arith.constant 2.000000e+00 : f32
    %1072 = vector.broadcast %cst_244 : f32 to vector<2x32xf32>
    %1073 = arith.mulf %1072, %1071 : vector<2x32xf32>
    %1074 = arith.addf %1070, %1073 : vector<2x32xf32>
    %1075 = arith.mulf %929, %1074 : vector<2x32xf32>
    %1076 = arith.addf %1027, %1075 : vector<2x32xf32>
    %c0_245 = arith.constant 0 : index
    %1077 = arith.index_cast %c5_i32 : i32 to index
    %c0_246 = arith.constant 0 : index
    %c0_247 = arith.constant 0 : index
    %1078 = vector.load %arg6[%c0_245, %1077, %c0_246, %c0_247] : memref<1x8x2x32xf32, #tpu.memory_space<vmem>>, vector<1x1x2x32xf32>
    %1079 = vector.shape_cast %1078 : vector<1x1x2x32xf32> to vector<2x32xf32>
    %1080 = vector.shape_cast %1076 : vector<2x32xf32> to vector<1x1x2x32xf32>
    tpu.vector_store %arg6[%c0_245, %1077, %c0_246, %c0_247], %1080 {strides = array<i32>} : memref<1x8x2x32xf32, #tpu.memory_space<vmem>>, vector<1x1x2x32xf32>,
    %c6_i32 = arith.constant 6 : i32
    %c0_248 = arith.constant 0 : index
    %1081 = arith.index_cast %c6_i32 : i32 to index
    %c0_249 = arith.constant 0 : index
    %c0_250 = arith.constant 0 : index
    %1082 = vector.load %arg1[%c0_248, %1081, %c0_249, %c0_250] : memref<1x8x2x128xf32, #tpu.memory_space<vmem>>, vector<1x1x2x128xf32>
    %1083 = vector.shape_cast %1082 : vector<1x1x2x128xf32> to vector<2x128xf32>
    %1084 = arith.truncf %1076 : vector<2x32xf32> to vector<2x32xbf16>
    %cst_251 = arith.constant dense<0.000000e+00> : vector<2x128xf32>
    %1085 = tpu.matmul %1084, %0, %cst_251 {dimension_numbers = #tpu.dot_dimension_numbers<[1], [0], [0], [1], [0, 0, 1, 1], [], []>} : vector<2x32xbf16>, vector<32x128xbf16>, vector<2x128xf32> -> vector<2x128xf32>
    %1086 = arith.addf %1083, %1085 : vector<2x128xf32>
    %1087 = arith.negf %1086 : vector<2x128xf32>
    %1088 = math.exp %1087 : vector<2x128xf32>
    %cst_252 = arith.constant 1.000000e+00 : f32
    %1089 = vector.broadcast %cst_252 : f32 to vector<2x128xf32>
    %1090 = arith.addf %1089, %1088 : vector<2x128xf32>
    %1091 = arith.divf %1089, %1090 : vector<2x128xf32>
    %1092 = math.tanh %1086 : vector<2x128xf32>
    %1093 = vector.extract_strided_slice %1091 {offsets = [0, 0], sizes = [2, 32], strides = [1, 1]} : vector<2x128xf32> to vector<2x32xf32>
    %1094 = vector.extract_strided_slice %1091 {offsets = [0, 32], sizes = [2, 32], strides = [1, 1]} : vector<2x128xf32> to vector<2x32xf32>
    %1095 = vector.extract_strided_slice %1092 {offsets = [0, 64], sizes = [2, 32], strides = [1, 1]} : vector<2x128xf32> to vector<2x32xf32>
    %1096 = vector.extract_strided_slice %1091 {offsets = [0, 96], sizes = [2, 32], strides = [1, 1]} : vector<2x128xf32> to vector<2x32xf32>
    %1097 = arith.mulf %1094, %920 : vector<2x32xf32>
    %1098 = arith.mulf %1093, %1095 : vector<2x32xf32>
    %1099 = arith.addf %1097, %1098 : vector<2x32xf32>
    %1100 = math.tanh %1099 : vector<2x32xf32>
    %1101 = arith.mulf %1096, %1100 : vector<2x32xf32>
    %c0_253 = arith.constant 0 : index
    %1102 = arith.index_cast %c6_i32 : i32 to index
    %c0_254 = arith.constant 0 : index
    %c0_255 = arith.constant 0 : index
    %1103 = vector.load %arg2[%c0_253, %1102, %c0_254, %c0_255] : memref<1x8x2x32xf32, #tpu.memory_space<vmem>>, vector<1x1x2x32xf32>
    %1104 = vector.shape_cast %1103 : vector<1x1x2x32xf32> to vector<2x32xf32>
    %cst_256 = arith.constant 5.000000e-01 : f32
    %1105 = vector.broadcast %cst_256 : f32 to vector<2x32xf32>
    %1106 = arith.mulf %1105, %1104 : vector<2x32xf32>
    %cst_257 = arith.constant 0.166666672 : f32
    %1107 = vector.broadcast %cst_257 : f32 to vector<2x32xf32>
    %1108 = arith.mulf %1104, %1107 : vector<2x32xf32>
    %1109 = arith.truncf %1101 : vector<2x32xf32> to vector<2x32xbf16>
    %cst_258 = arith.constant dense<0.000000e+00> : vector<2x32xf32>
    %1110 = tpu.matmul %1109, %1, %cst_258 {dimension_numbers = #tpu.dot_dimension_numbers<[1], [0], [0], [1], [0, 0, 1, 1], [], []>} : vector<2x32xbf16>, vector<32x32xbf16>, vector<2x32xf32> -> vector<2x32xf32>
    %1111 = vector.broadcast %3 : vector<1x32xf32> to vector<2x32xf32>
    %1112 = arith.addf %1110, %1111 : vector<2x32xf32>
    %1113 = math.tanh %1112 : vector<2x32xf32>
    %1114 = arith.truncf %1113 : vector<2x32xf32> to vector<2x32xbf16>
    %cst_259 = arith.constant dense<0.000000e+00> : vector<2x32xf32>
    %1115 = tpu.matmul %1114, %2, %cst_259 {dimension_numbers = #tpu.dot_dimension_numbers<[1], [0], [0], [1], [0, 0, 1, 1], [], []>} : vector<2x32xbf16>, vector<32x32xbf16>, vector<2x32xf32> -> vector<2x32xf32>
    %1116 = vector.broadcast %4 : vector<1x32xf32> to vector<2x32xf32>
    %1117 = arith.addf %1115, %1116 : vector<2x32xf32>
    %1118 = arith.mulf %1117, %1106 : vector<2x32xf32>
    %1119 = arith.addf %1101, %1118 : vector<2x32xf32>
    %1120 = arith.truncf %1119 : vector<2x32xf32> to vector<2x32xbf16>
    %cst_260 = arith.constant dense<0.000000e+00> : vector<2x32xf32>
    %1121 = tpu.matmul %1120, %1, %cst_260 {dimension_numbers = #tpu.dot_dimension_numbers<[1], [0], [0], [1], [0, 0, 1, 1], [], []>} : vector<2x32xbf16>, vector<32x32xbf16>, vector<2x32xf32> -> vector<2x32xf32>
    %1122 = vector.broadcast %3 : vector<1x32xf32> to vector<2x32xf32>
    %1123 = arith.addf %1121, %1122 : vector<2x32xf32>
    %1124 = math.tanh %1123 : vector<2x32xf32>
    %1125 = arith.truncf %1124 : vector<2x32xf32> to vector<2x32xbf16>
    %cst_261 = arith.constant dense<0.000000e+00> : vector<2x32xf32>
    %1126 = tpu.matmul %1125, %2, %cst_261 {dimension_numbers = #tpu.dot_dimension_numbers<[1], [0], [0], [1], [0, 0, 1, 1], [], []>} : vector<2x32xbf16>, vector<32x32xbf16>, vector<2x32xf32> -> vector<2x32xf32>
    %1127 = vector.broadcast %4 : vector<1x32xf32> to vector<2x32xf32>
    %1128 = arith.addf %1126, %1127 : vector<2x32xf32>
    %1129 = arith.mulf %1128, %1106 : vector<2x32xf32>
    %1130 = arith.addf %1101, %1129 : vector<2x32xf32>
    %1131 = arith.truncf %1130 : vector<2x32xf32> to vector<2x32xbf16>
    %cst_262 = arith.constant dense<0.000000e+00> : vector<2x32xf32>
    %1132 = tpu.matmul %1131, %1, %cst_262 {dimension_numbers = #tpu.dot_dimension_numbers<[1], [0], [0], [1], [0, 0, 1, 1], [], []>} : vector<2x32xbf16>, vector<32x32xbf16>, vector<2x32xf32> -> vector<2x32xf32>
    %1133 = vector.broadcast %3 : vector<1x32xf32> to vector<2x32xf32>
    %1134 = arith.addf %1132, %1133 : vector<2x32xf32>
    %1135 = math.tanh %1134 : vector<2x32xf32>
    %1136 = arith.truncf %1135 : vector<2x32xf32> to vector<2x32xbf16>
    %cst_263 = arith.constant dense<0.000000e+00> : vector<2x32xf32>
    %1137 = tpu.matmul %1136, %2, %cst_263 {dimension_numbers = #tpu.dot_dimension_numbers<[1], [0], [0], [1], [0, 0, 1, 1], [], []>} : vector<2x32xbf16>, vector<32x32xbf16>, vector<2x32xf32> -> vector<2x32xf32>
    %1138 = vector.broadcast %4 : vector<1x32xf32> to vector<2x32xf32>
    %1139 = arith.addf %1137, %1138 : vector<2x32xf32>
    %1140 = arith.mulf %1139, %1104 : vector<2x32xf32>
    %1141 = arith.addf %1101, %1140 : vector<2x32xf32>
    %1142 = arith.truncf %1141 : vector<2x32xf32> to vector<2x32xbf16>
    %cst_264 = arith.constant dense<0.000000e+00> : vector<2x32xf32>
    %1143 = tpu.matmul %1142, %1, %cst_264 {dimension_numbers = #tpu.dot_dimension_numbers<[1], [0], [0], [1], [0, 0, 1, 1], [], []>} : vector<2x32xbf16>, vector<32x32xbf16>, vector<2x32xf32> -> vector<2x32xf32>
    %1144 = vector.broadcast %3 : vector<1x32xf32> to vector<2x32xf32>
    %1145 = arith.addf %1143, %1144 : vector<2x32xf32>
    %1146 = math.tanh %1145 : vector<2x32xf32>
    %1147 = arith.truncf %1146 : vector<2x32xf32> to vector<2x32xbf16>
    %cst_265 = arith.constant dense<0.000000e+00> : vector<2x32xf32>
    %1148 = tpu.matmul %1147, %2, %cst_265 {dimension_numbers = #tpu.dot_dimension_numbers<[1], [0], [0], [1], [0, 0, 1, 1], [], []>} : vector<2x32xbf16>, vector<32x32xbf16>, vector<2x32xf32> -> vector<2x32xf32>
    %1149 = vector.broadcast %4 : vector<1x32xf32> to vector<2x32xf32>
    %1150 = arith.addf %1148, %1149 : vector<2x32xf32>
    %1151 = arith.addf %1117, %1150 : vector<2x32xf32>
    %1152 = arith.addf %1128, %1139 : vector<2x32xf32>
    %cst_266 = arith.constant 2.000000e+00 : f32
    %1153 = vector.broadcast %cst_266 : f32 to vector<2x32xf32>
    %1154 = arith.mulf %1153, %1152 : vector<2x32xf32>
    %1155 = arith.addf %1151, %1154 : vector<2x32xf32>
    %1156 = arith.mulf %1108, %1155 : vector<2x32xf32>
    %1157 = arith.addf %1101, %1156 : vector<2x32xf32>
    %1158 = arith.truncf %1157 : vector<2x32xf32> to vector<2x32xbf16>
    %cst_267 = arith.constant dense<0.000000e+00> : vector<2x32xf32>
    %1159 = tpu.matmul %1158, %1, %cst_267 {dimension_numbers = #tpu.dot_dimension_numbers<[1], [0], [0], [1], [0, 0, 1, 1], [], []>} : vector<2x32xbf16>, vector<32x32xbf16>, vector<2x32xf32> -> vector<2x32xf32>
    %1160 = vector.broadcast %3 : vector<1x32xf32> to vector<2x32xf32>
    %1161 = arith.addf %1159, %1160 : vector<2x32xf32>
    %1162 = math.tanh %1161 : vector<2x32xf32>
    %1163 = arith.truncf %1162 : vector<2x32xf32> to vector<2x32xbf16>
    %cst_268 = arith.constant dense<0.000000e+00> : vector<2x32xf32>
    %1164 = tpu.matmul %1163, %2, %cst_268 {dimension_numbers = #tpu.dot_dimension_numbers<[1], [0], [0], [1], [0, 0, 1, 1], [], []>} : vector<2x32xbf16>, vector<32x32xbf16>, vector<2x32xf32> -> vector<2x32xf32>
    %1165 = vector.broadcast %4 : vector<1x32xf32> to vector<2x32xf32>
    %1166 = arith.addf %1164, %1165 : vector<2x32xf32>
    %1167 = arith.mulf %1166, %1106 : vector<2x32xf32>
    %1168 = arith.addf %1157, %1167 : vector<2x32xf32>
    %1169 = arith.truncf %1168 : vector<2x32xf32> to vector<2x32xbf16>
    %cst_269 = arith.constant dense<0.000000e+00> : vector<2x32xf32>
    %1170 = tpu.matmul %1169, %1, %cst_269 {dimension_numbers = #tpu.dot_dimension_numbers<[1], [0], [0], [1], [0, 0, 1, 1], [], []>} : vector<2x32xbf16>, vector<32x32xbf16>, vector<2x32xf32> -> vector<2x32xf32>
    %1171 = vector.broadcast %3 : vector<1x32xf32> to vector<2x32xf32>
    %1172 = arith.addf %1170, %1171 : vector<2x32xf32>
    %1173 = math.tanh %1172 : vector<2x32xf32>
    %1174 = arith.truncf %1173 : vector<2x32xf32> to vector<2x32xbf16>
    %cst_270 = arith.constant dense<0.000000e+00> : vector<2x32xf32>
    %1175 = tpu.matmul %1174, %2, %cst_270 {dimension_numbers = #tpu.dot_dimension_numbers<[1], [0], [0], [1], [0, 0, 1, 1], [], []>} : vector<2x32xbf16>, vector<32x32xbf16>, vector<2x32xf32> -> vector<2x32xf32>
    %1176 = vector.broadcast %4 : vector<1x32xf32> to vector<2x32xf32>
    %1177 = arith.addf %1175, %1176 : vector<2x32xf32>
    %1178 = arith.mulf %1177, %1106 : vector<2x32xf32>
    %1179 = arith.addf %1157, %1178 : vector<2x32xf32>
    %1180 = arith.truncf %1179 : vector<2x32xf32> to vector<2x32xbf16>
    %cst_271 = arith.constant dense<0.000000e+00> : vector<2x32xf32>
    %1181 = tpu.matmul %1180, %1, %cst_271 {dimension_numbers = #tpu.dot_dimension_numbers<[1], [0], [0], [1], [0, 0, 1, 1], [], []>} : vector<2x32xbf16>, vector<32x32xbf16>, vector<2x32xf32> -> vector<2x32xf32>
    %1182 = vector.broadcast %3 : vector<1x32xf32> to vector<2x32xf32>
    %1183 = arith.addf %1181, %1182 : vector<2x32xf32>
    %1184 = math.tanh %1183 : vector<2x32xf32>
    %1185 = arith.truncf %1184 : vector<2x32xf32> to vector<2x32xbf16>
    %cst_272 = arith.constant dense<0.000000e+00> : vector<2x32xf32>
    %1186 = tpu.matmul %1185, %2, %cst_272 {dimension_numbers = #tpu.dot_dimension_numbers<[1], [0], [0], [1], [0, 0, 1, 1], [], []>} : vector<2x32xbf16>, vector<32x32xbf16>, vector<2x32xf32> -> vector<2x32xf32>
    %1187 = vector.broadcast %4 : vector<1x32xf32> to vector<2x32xf32>
    %1188 = arith.addf %1186, %1187 : vector<2x32xf32>
    %1189 = arith.mulf %1188, %1104 : vector<2x32xf32>
    %1190 = arith.addf %1157, %1189 : vector<2x32xf32>
    %1191 = arith.truncf %1190 : vector<2x32xf32> to vector<2x32xbf16>
    %cst_273 = arith.constant dense<0.000000e+00> : vector<2x32xf32>
    %1192 = tpu.matmul %1191, %1, %cst_273 {dimension_numbers = #tpu.dot_dimension_numbers<[1], [0], [0], [1], [0, 0, 1, 1], [], []>} : vector<2x32xbf16>, vector<32x32xbf16>, vector<2x32xf32> -> vector<2x32xf32>
    %1193 = vector.broadcast %3 : vector<1x32xf32> to vector<2x32xf32>
    %1194 = arith.addf %1192, %1193 : vector<2x32xf32>
    %1195 = math.tanh %1194 : vector<2x32xf32>
    %1196 = arith.truncf %1195 : vector<2x32xf32> to vector<2x32xbf16>
    %cst_274 = arith.constant dense<0.000000e+00> : vector<2x32xf32>
    %1197 = tpu.matmul %1196, %2, %cst_274 {dimension_numbers = #tpu.dot_dimension_numbers<[1], [0], [0], [1], [0, 0, 1, 1], [], []>} : vector<2x32xbf16>, vector<32x32xbf16>, vector<2x32xf32> -> vector<2x32xf32>
    %1198 = vector.broadcast %4 : vector<1x32xf32> to vector<2x32xf32>
    %1199 = arith.addf %1197, %1198 : vector<2x32xf32>
    %1200 = arith.addf %1166, %1199 : vector<2x32xf32>
    %1201 = arith.addf %1177, %1188 : vector<2x32xf32>
    %cst_275 = arith.constant 2.000000e+00 : f32
    %1202 = vector.broadcast %cst_275 : f32 to vector<2x32xf32>
    %1203 = arith.mulf %1202, %1201 : vector<2x32xf32>
    %1204 = arith.addf %1200, %1203 : vector<2x32xf32>
    %1205 = arith.mulf %1108, %1204 : vector<2x32xf32>
    %1206 = arith.addf %1157, %1205 : vector<2x32xf32>
    %1207 = arith.truncf %1206 : vector<2x32xf32> to vector<2x32xbf16>
    %cst_276 = arith.constant dense<0.000000e+00> : vector<2x32xf32>
    %1208 = tpu.matmul %1207, %1, %cst_276 {dimension_numbers = #tpu.dot_dimension_numbers<[1], [0], [0], [1], [0, 0, 1, 1], [], []>} : vector<2x32xbf16>, vector<32x32xbf16>, vector<2x32xf32> -> vector<2x32xf32>
    %1209 = vector.broadcast %3 : vector<1x32xf32> to vector<2x32xf32>
    %1210 = arith.addf %1208, %1209 : vector<2x32xf32>
    %1211 = math.tanh %1210 : vector<2x32xf32>
    %1212 = arith.truncf %1211 : vector<2x32xf32> to vector<2x32xbf16>
    %cst_277 = arith.constant dense<0.000000e+00> : vector<2x32xf32>
    %1213 = tpu.matmul %1212, %2, %cst_277 {dimension_numbers = #tpu.dot_dimension_numbers<[1], [0], [0], [1], [0, 0, 1, 1], [], []>} : vector<2x32xbf16>, vector<32x32xbf16>, vector<2x32xf32> -> vector<2x32xf32>
    %1214 = vector.broadcast %4 : vector<1x32xf32> to vector<2x32xf32>
    %1215 = arith.addf %1213, %1214 : vector<2x32xf32>
    %1216 = arith.mulf %1215, %1106 : vector<2x32xf32>
    %1217 = arith.addf %1206, %1216 : vector<2x32xf32>
    %1218 = arith.truncf %1217 : vector<2x32xf32> to vector<2x32xbf16>
    %cst_278 = arith.constant dense<0.000000e+00> : vector<2x32xf32>
    %1219 = tpu.matmul %1218, %1, %cst_278 {dimension_numbers = #tpu.dot_dimension_numbers<[1], [0], [0], [1], [0, 0, 1, 1], [], []>} : vector<2x32xbf16>, vector<32x32xbf16>, vector<2x32xf32> -> vector<2x32xf32>
    %1220 = vector.broadcast %3 : vector<1x32xf32> to vector<2x32xf32>
    %1221 = arith.addf %1219, %1220 : vector<2x32xf32>
    %1222 = math.tanh %1221 : vector<2x32xf32>
    %1223 = arith.truncf %1222 : vector<2x32xf32> to vector<2x32xbf16>
    %cst_279 = arith.constant dense<0.000000e+00> : vector<2x32xf32>
    %1224 = tpu.matmul %1223, %2, %cst_279 {dimension_numbers = #tpu.dot_dimension_numbers<[1], [0], [0], [1], [0, 0, 1, 1], [], []>} : vector<2x32xbf16>, vector<32x32xbf16>, vector<2x32xf32> -> vector<2x32xf32>
    %1225 = vector.broadcast %4 : vector<1x32xf32> to vector<2x32xf32>
    %1226 = arith.addf %1224, %1225 : vector<2x32xf32>
    %1227 = arith.mulf %1226, %1106 : vector<2x32xf32>
    %1228 = arith.addf %1206, %1227 : vector<2x32xf32>
    %1229 = arith.truncf %1228 : vector<2x32xf32> to vector<2x32xbf16>
    %cst_280 = arith.constant dense<0.000000e+00> : vector<2x32xf32>
    %1230 = tpu.matmul %1229, %1, %cst_280 {dimension_numbers = #tpu.dot_dimension_numbers<[1], [0], [0], [1], [0, 0, 1, 1], [], []>} : vector<2x32xbf16>, vector<32x32xbf16>, vector<2x32xf32> -> vector<2x32xf32>
    %1231 = vector.broadcast %3 : vector<1x32xf32> to vector<2x32xf32>
    %1232 = arith.addf %1230, %1231 : vector<2x32xf32>
    %1233 = math.tanh %1232 : vector<2x32xf32>
    %1234 = arith.truncf %1233 : vector<2x32xf32> to vector<2x32xbf16>
    %cst_281 = arith.constant dense<0.000000e+00> : vector<2x32xf32>
    %1235 = tpu.matmul %1234, %2, %cst_281 {dimension_numbers = #tpu.dot_dimension_numbers<[1], [0], [0], [1], [0, 0, 1, 1], [], []>} : vector<2x32xbf16>, vector<32x32xbf16>, vector<2x32xf32> -> vector<2x32xf32>
    %1236 = vector.broadcast %4 : vector<1x32xf32> to vector<2x32xf32>
    %1237 = arith.addf %1235, %1236 : vector<2x32xf32>
    %1238 = arith.mulf %1237, %1104 : vector<2x32xf32>
    %1239 = arith.addf %1206, %1238 : vector<2x32xf32>
    %1240 = arith.truncf %1239 : vector<2x32xf32> to vector<2x32xbf16>
    %cst_282 = arith.constant dense<0.000000e+00> : vector<2x32xf32>
    %1241 = tpu.matmul %1240, %1, %cst_282 {dimension_numbers = #tpu.dot_dimension_numbers<[1], [0], [0], [1], [0, 0, 1, 1], [], []>} : vector<2x32xbf16>, vector<32x32xbf16>, vector<2x32xf32> -> vector<2x32xf32>
    %1242 = vector.broadcast %3 : vector<1x32xf32> to vector<2x32xf32>
    %1243 = arith.addf %1241, %1242 : vector<2x32xf32>
    %1244 = math.tanh %1243 : vector<2x32xf32>
    %1245 = arith.truncf %1244 : vector<2x32xf32> to vector<2x32xbf16>
    %cst_283 = arith.constant dense<0.000000e+00> : vector<2x32xf32>
    %1246 = tpu.matmul %1245, %2, %cst_283 {dimension_numbers = #tpu.dot_dimension_numbers<[1], [0], [0], [1], [0, 0, 1, 1], [], []>} : vector<2x32xbf16>, vector<32x32xbf16>, vector<2x32xf32> -> vector<2x32xf32>
    %1247 = vector.broadcast %4 : vector<1x32xf32> to vector<2x32xf32>
    %1248 = arith.addf %1246, %1247 : vector<2x32xf32>
    %1249 = arith.addf %1215, %1248 : vector<2x32xf32>
    %1250 = arith.addf %1226, %1237 : vector<2x32xf32>
    %cst_284 = arith.constant 2.000000e+00 : f32
    %1251 = vector.broadcast %cst_284 : f32 to vector<2x32xf32>
    %1252 = arith.mulf %1251, %1250 : vector<2x32xf32>
    %1253 = arith.addf %1249, %1252 : vector<2x32xf32>
    %1254 = arith.mulf %1108, %1253 : vector<2x32xf32>
    %1255 = arith.addf %1206, %1254 : vector<2x32xf32>
    %c0_285 = arith.constant 0 : index
    %1256 = arith.index_cast %c6_i32 : i32 to index
    %c0_286 = arith.constant 0 : index
    %c0_287 = arith.constant 0 : index
    %1257 = vector.load %arg6[%c0_285, %1256, %c0_286, %c0_287] : memref<1x8x2x32xf32, #tpu.memory_space<vmem>>, vector<1x1x2x32xf32>
    %1258 = vector.shape_cast %1257 : vector<1x1x2x32xf32> to vector<2x32xf32>
    %1259 = vector.shape_cast %1255 : vector<2x32xf32> to vector<1x1x2x32xf32>
    tpu.vector_store %arg6[%c0_285, %1256, %c0_286, %c0_287], %1259 {strides = array<i32>} : memref<1x8x2x32xf32, #tpu.memory_space<vmem>>, vector<1x1x2x32xf32>,
    %c7_i32 = arith.constant 7 : i32
    %c0_288 = arith.constant 0 : index
    %1260 = arith.index_cast %c7_i32 : i32 to index
    %c0_289 = arith.constant 0 : index
    %c0_290 = arith.constant 0 : index
    %1261 = vector.load %arg1[%c0_288, %1260, %c0_289, %c0_290] : memref<1x8x2x128xf32, #tpu.memory_space<vmem>>, vector<1x1x2x128xf32>
    %1262 = vector.shape_cast %1261 : vector<1x1x2x128xf32> to vector<2x128xf32>
    %1263 = arith.truncf %1255 : vector<2x32xf32> to vector<2x32xbf16>
    %cst_291 = arith.constant dense<0.000000e+00> : vector<2x128xf32>
    %1264 = tpu.matmul %1263, %0, %cst_291 {dimension_numbers = #tpu.dot_dimension_numbers<[1], [0], [0], [1], [0, 0, 1, 1], [], []>} : vector<2x32xbf16>, vector<32x128xbf16>, vector<2x128xf32> -> vector<2x128xf32>
    %1265 = arith.addf %1262, %1264 : vector<2x128xf32>
    %1266 = arith.negf %1265 : vector<2x128xf32>
    %1267 = math.exp %1266 : vector<2x128xf32>
    %cst_292 = arith.constant 1.000000e+00 : f32
    %1268 = vector.broadcast %cst_292 : f32 to vector<2x128xf32>
    %1269 = arith.addf %1268, %1267 : vector<2x128xf32>
    %1270 = arith.divf %1268, %1269 : vector<2x128xf32>
    %1271 = math.tanh %1265 : vector<2x128xf32>
    %1272 = vector.extract_strided_slice %1270 {offsets = [0, 0], sizes = [2, 32], strides = [1, 1]} : vector<2x128xf32> to vector<2x32xf32>
    %1273 = vector.extract_strided_slice %1270 {offsets = [0, 32], sizes = [2, 32], strides = [1, 1]} : vector<2x128xf32> to vector<2x32xf32>
    %1274 = vector.extract_strided_slice %1271 {offsets = [0, 64], sizes = [2, 32], strides = [1, 1]} : vector<2x128xf32> to vector<2x32xf32>
    %1275 = vector.extract_strided_slice %1270 {offsets = [0, 96], sizes = [2, 32], strides = [1, 1]} : vector<2x128xf32> to vector<2x32xf32>
    %1276 = arith.mulf %1273, %1099 : vector<2x32xf32>
    %1277 = arith.mulf %1272, %1274 : vector<2x32xf32>
    %1278 = arith.addf %1276, %1277 : vector<2x32xf32>
    %1279 = math.tanh %1278 : vector<2x32xf32>
    %1280 = arith.mulf %1275, %1279 : vector<2x32xf32>
    %c0_293 = arith.constant 0 : index
    %1281 = arith.index_cast %c7_i32 : i32 to index
    %c0_294 = arith.constant 0 : index
    %c0_295 = arith.constant 0 : index
    %1282 = vector.load %arg2[%c0_293, %1281, %c0_294, %c0_295] : memref<1x8x2x32xf32, #tpu.memory_space<vmem>>, vector<1x1x2x32xf32>
    %1283 = vector.shape_cast %1282 : vector<1x1x2x32xf32> to vector<2x32xf32>
    %cst_296 = arith.constant 5.000000e-01 : f32
    %1284 = vector.broadcast %cst_296 : f32 to vector<2x32xf32>
    %1285 = arith.mulf %1284, %1283 : vector<2x32xf32>
    %cst_297 = arith.constant 0.166666672 : f32
    %1286 = vector.broadcast %cst_297 : f32 to vector<2x32xf32>
    %1287 = arith.mulf %1283, %1286 : vector<2x32xf32>
    %1288 = arith.truncf %1280 : vector<2x32xf32> to vector<2x32xbf16>
    %cst_298 = arith.constant dense<0.000000e+00> : vector<2x32xf32>
    %1289 = tpu.matmul %1288, %1, %cst_298 {dimension_numbers = #tpu.dot_dimension_numbers<[1], [0], [0], [1], [0, 0, 1, 1], [], []>} : vector<2x32xbf16>, vector<32x32xbf16>, vector<2x32xf32> -> vector<2x32xf32>
    %1290 = vector.broadcast %3 : vector<1x32xf32> to vector<2x32xf32>
    %1291 = arith.addf %1289, %1290 : vector<2x32xf32>
    %1292 = math.tanh %1291 : vector<2x32xf32>
    %1293 = arith.truncf %1292 : vector<2x32xf32> to vector<2x32xbf16>
    %cst_299 = arith.constant dense<0.000000e+00> : vector<2x32xf32>
    %1294 = tpu.matmul %1293, %2, %cst_299 {dimension_numbers = #tpu.dot_dimension_numbers<[1], [0], [0], [1], [0, 0, 1, 1], [], []>} : vector<2x32xbf16>, vector<32x32xbf16>, vector<2x32xf32> -> vector<2x32xf32>
    %1295 = vector.broadcast %4 : vector<1x32xf32> to vector<2x32xf32>
    %1296 = arith.addf %1294, %1295 : vector<2x32xf32>
    %1297 = arith.mulf %1296, %1285 : vector<2x32xf32>
    %1298 = arith.addf %1280, %1297 : vector<2x32xf32>
    %1299 = arith.truncf %1298 : vector<2x32xf32> to vector<2x32xbf16>
    %cst_300 = arith.constant dense<0.000000e+00> : vector<2x32xf32>
    %1300 = tpu.matmul %1299, %1, %cst_300 {dimension_numbers = #tpu.dot_dimension_numbers<[1], [0], [0], [1], [0, 0, 1, 1], [], []>} : vector<2x32xbf16>, vector<32x32xbf16>, vector<2x32xf32> -> vector<2x32xf32>
    %1301 = vector.broadcast %3 : vector<1x32xf32> to vector<2x32xf32>
    %1302 = arith.addf %1300, %1301 : vector<2x32xf32>
    %1303 = math.tanh %1302 : vector<2x32xf32>
    %1304 = arith.truncf %1303 : vector<2x32xf32> to vector<2x32xbf16>
    %cst_301 = arith.constant dense<0.000000e+00> : vector<2x32xf32>
    %1305 = tpu.matmul %1304, %2, %cst_301 {dimension_numbers = #tpu.dot_dimension_numbers<[1], [0], [0], [1], [0, 0, 1, 1], [], []>} : vector<2x32xbf16>, vector<32x32xbf16>, vector<2x32xf32> -> vector<2x32xf32>
    %1306 = vector.broadcast %4 : vector<1x32xf32> to vector<2x32xf32>
    %1307 = arith.addf %1305, %1306 : vector<2x32xf32>
    %1308 = arith.mulf %1307, %1285 : vector<2x32xf32>
    %1309 = arith.addf %1280, %1308 : vector<2x32xf32>
    %1310 = arith.truncf %1309 : vector<2x32xf32> to vector<2x32xbf16>
    %cst_302 = arith.constant dense<0.000000e+00> : vector<2x32xf32>
    %1311 = tpu.matmul %1310, %1, %cst_302 {dimension_numbers = #tpu.dot_dimension_numbers<[1], [0], [0], [1], [0, 0, 1, 1], [], []>} : vector<2x32xbf16>, vector<32x32xbf16>, vector<2x32xf32> -> vector<2x32xf32>
    %1312 = vector.broadcast %3 : vector<1x32xf32> to vector<2x32xf32>
    %1313 = arith.addf %1311, %1312 : vector<2x32xf32>
    %1314 = math.tanh %1313 : vector<2x32xf32>
    %1315 = arith.truncf %1314 : vector<2x32xf32> to vector<2x32xbf16>
    %cst_303 = arith.constant dense<0.000000e+00> : vector<2x32xf32>
    %1316 = tpu.matmul %1315, %2, %cst_303 {dimension_numbers = #tpu.dot_dimension_numbers<[1], [0], [0], [1], [0, 0, 1, 1], [], []>} : vector<2x32xbf16>, vector<32x32xbf16>, vector<2x32xf32> -> vector<2x32xf32>
    %1317 = vector.broadcast %4 : vector<1x32xf32> to vector<2x32xf32>
    %1318 = arith.addf %1316, %1317 : vector<2x32xf32>
    %1319 = arith.mulf %1318, %1283 : vector<2x32xf32>
    %1320 = arith.addf %1280, %1319 : vector<2x32xf32>
    %1321 = arith.truncf %1320 : vector<2x32xf32> to vector<2x32xbf16>
    %cst_304 = arith.constant dense<0.000000e+00> : vector<2x32xf32>
    %1322 = tpu.matmul %1321, %1, %cst_304 {dimension_numbers = #tpu.dot_dimension_numbers<[1], [0], [0], [1], [0, 0, 1, 1], [], []>} : vector<2x32xbf16>, vector<32x32xbf16>, vector<2x32xf32> -> vector<2x32xf32>
    %1323 = vector.broadcast %3 : vector<1x32xf32> to vector<2x32xf32>
    %1324 = arith.addf %1322, %1323 : vector<2x32xf32>
    %1325 = math.tanh %1324 : vector<2x32xf32>
    %1326 = arith.truncf %1325 : vector<2x32xf32> to vector<2x32xbf16>
    %cst_305 = arith.constant dense<0.000000e+00> : vector<2x32xf32>
    %1327 = tpu.matmul %1326, %2, %cst_305 {dimension_numbers = #tpu.dot_dimension_numbers<[1], [0], [0], [1], [0, 0, 1, 1], [], []>} : vector<2x32xbf16>, vector<32x32xbf16>, vector<2x32xf32> -> vector<2x32xf32>
    %1328 = vector.broadcast %4 : vector<1x32xf32> to vector<2x32xf32>
    %1329 = arith.addf %1327, %1328 : vector<2x32xf32>
    %1330 = arith.addf %1296, %1329 : vector<2x32xf32>
    %1331 = arith.addf %1307, %1318 : vector<2x32xf32>
    %cst_306 = arith.constant 2.000000e+00 : f32
    %1332 = vector.broadcast %cst_306 : f32 to vector<2x32xf32>
    %1333 = arith.mulf %1332, %1331 : vector<2x32xf32>
    %1334 = arith.addf %1330, %1333 : vector<2x32xf32>
    %1335 = arith.mulf %1287, %1334 : vector<2x32xf32>
    %1336 = arith.addf %1280, %1335 : vector<2x32xf32>
    %1337 = arith.truncf %1336 : vector<2x32xf32> to vector<2x32xbf16>
    %cst_307 = arith.constant dense<0.000000e+00> : vector<2x32xf32>
    %1338 = tpu.matmul %1337, %1, %cst_307 {dimension_numbers = #tpu.dot_dimension_numbers<[1], [0], [0], [1], [0, 0, 1, 1], [], []>} : vector<2x32xbf16>, vector<32x32xbf16>, vector<2x32xf32> -> vector<2x32xf32>
    %1339 = vector.broadcast %3 : vector<1x32xf32> to vector<2x32xf32>
    %1340 = arith.addf %1338, %1339 : vector<2x32xf32>
    %1341 = math.tanh %1340 : vector<2x32xf32>
    %1342 = arith.truncf %1341 : vector<2x32xf32> to vector<2x32xbf16>
    %cst_308 = arith.constant dense<0.000000e+00> : vector<2x32xf32>
    %1343 = tpu.matmul %1342, %2, %cst_308 {dimension_numbers = #tpu.dot_dimension_numbers<[1], [0], [0], [1], [0, 0, 1, 1], [], []>} : vector<2x32xbf16>, vector<32x32xbf16>, vector<2x32xf32> -> vector<2x32xf32>
    %1344 = vector.broadcast %4 : vector<1x32xf32> to vector<2x32xf32>
    %1345 = arith.addf %1343, %1344 : vector<2x32xf32>
    %1346 = arith.mulf %1345, %1285 : vector<2x32xf32>
    %1347 = arith.addf %1336, %1346 : vector<2x32xf32>
    %1348 = arith.truncf %1347 : vector<2x32xf32> to vector<2x32xbf16>
    %cst_309 = arith.constant dense<0.000000e+00> : vector<2x32xf32>
    %1349 = tpu.matmul %1348, %1, %cst_309 {dimension_numbers = #tpu.dot_dimension_numbers<[1], [0], [0], [1], [0, 0, 1, 1], [], []>} : vector<2x32xbf16>, vector<32x32xbf16>, vector<2x32xf32> -> vector<2x32xf32>
    %1350 = vector.broadcast %3 : vector<1x32xf32> to vector<2x32xf32>
    %1351 = arith.addf %1349, %1350 : vector<2x32xf32>
    %1352 = math.tanh %1351 : vector<2x32xf32>
    %1353 = arith.truncf %1352 : vector<2x32xf32> to vector<2x32xbf16>
    %cst_310 = arith.constant dense<0.000000e+00> : vector<2x32xf32>
    %1354 = tpu.matmul %1353, %2, %cst_310 {dimension_numbers = #tpu.dot_dimension_numbers<[1], [0], [0], [1], [0, 0, 1, 1], [], []>} : vector<2x32xbf16>, vector<32x32xbf16>, vector<2x32xf32> -> vector<2x32xf32>
    %1355 = vector.broadcast %4 : vector<1x32xf32> to vector<2x32xf32>
    %1356 = arith.addf %1354, %1355 : vector<2x32xf32>
    %1357 = arith.mulf %1356, %1285 : vector<2x32xf32>
    %1358 = arith.addf %1336, %1357 : vector<2x32xf32>
    %1359 = arith.truncf %1358 : vector<2x32xf32> to vector<2x32xbf16>
    %cst_311 = arith.constant dense<0.000000e+00> : vector<2x32xf32>
    %1360 = tpu.matmul %1359, %1, %cst_311 {dimension_numbers = #tpu.dot_dimension_numbers<[1], [0], [0], [1], [0, 0, 1, 1], [], []>} : vector<2x32xbf16>, vector<32x32xbf16>, vector<2x32xf32> -> vector<2x32xf32>
    %1361 = vector.broadcast %3 : vector<1x32xf32> to vector<2x32xf32>
    %1362 = arith.addf %1360, %1361 : vector<2x32xf32>
    %1363 = math.tanh %1362 : vector<2x32xf32>
    %1364 = arith.truncf %1363 : vector<2x32xf32> to vector<2x32xbf16>
    %cst_312 = arith.constant dense<0.000000e+00> : vector<2x32xf32>
    %1365 = tpu.matmul %1364, %2, %cst_312 {dimension_numbers = #tpu.dot_dimension_numbers<[1], [0], [0], [1], [0, 0, 1, 1], [], []>} : vector<2x32xbf16>, vector<32x32xbf16>, vector<2x32xf32> -> vector<2x32xf32>
    %1366 = vector.broadcast %4 : vector<1x32xf32> to vector<2x32xf32>
    %1367 = arith.addf %1365, %1366 : vector<2x32xf32>
    %1368 = arith.mulf %1367, %1283 : vector<2x32xf32>
    %1369 = arith.addf %1336, %1368 : vector<2x32xf32>
    %1370 = arith.truncf %1369 : vector<2x32xf32> to vector<2x32xbf16>
    %cst_313 = arith.constant dense<0.000000e+00> : vector<2x32xf32>
    %1371 = tpu.matmul %1370, %1, %cst_313 {dimension_numbers = #tpu.dot_dimension_numbers<[1], [0], [0], [1], [0, 0, 1, 1], [], []>} : vector<2x32xbf16>, vector<32x32xbf16>, vector<2x32xf32> -> vector<2x32xf32>
    %1372 = vector.broadcast %3 : vector<1x32xf32> to vector<2x32xf32>
    %1373 = arith.addf %1371, %1372 : vector<2x32xf32>
    %1374 = math.tanh %1373 : vector<2x32xf32>
    %1375 = arith.truncf %1374 : vector<2x32xf32> to vector<2x32xbf16>
    %cst_314 = arith.constant dense<0.000000e+00> : vector<2x32xf32>
    %1376 = tpu.matmul %1375, %2, %cst_314 {dimension_numbers = #tpu.dot_dimension_numbers<[1], [0], [0], [1], [0, 0, 1, 1], [], []>} : vector<2x32xbf16>, vector<32x32xbf16>, vector<2x32xf32> -> vector<2x32xf32>
    %1377 = vector.broadcast %4 : vector<1x32xf32> to vector<2x32xf32>
    %1378 = arith.addf %1376, %1377 : vector<2x32xf32>
    %1379 = arith.addf %1345, %1378 : vector<2x32xf32>
    %1380 = arith.addf %1356, %1367 : vector<2x32xf32>
    %cst_315 = arith.constant 2.000000e+00 : f32
    %1381 = vector.broadcast %cst_315 : f32 to vector<2x32xf32>
    %1382 = arith.mulf %1381, %1380 : vector<2x32xf32>
    %1383 = arith.addf %1379, %1382 : vector<2x32xf32>
    %1384 = arith.mulf %1287, %1383 : vector<2x32xf32>
    %1385 = arith.addf %1336, %1384 : vector<2x32xf32>
    %1386 = arith.truncf %1385 : vector<2x32xf32> to vector<2x32xbf16>
    %cst_316 = arith.constant dense<0.000000e+00> : vector<2x32xf32>
    %1387 = tpu.matmul %1386, %1, %cst_316 {dimension_numbers = #tpu.dot_dimension_numbers<[1], [0], [0], [1], [0, 0, 1, 1], [], []>} : vector<2x32xbf16>, vector<32x32xbf16>, vector<2x32xf32> -> vector<2x32xf32>
    %1388 = vector.broadcast %3 : vector<1x32xf32> to vector<2x32xf32>
    %1389 = arith.addf %1387, %1388 : vector<2x32xf32>
    %1390 = math.tanh %1389 : vector<2x32xf32>
    %1391 = arith.truncf %1390 : vector<2x32xf32> to vector<2x32xbf16>
    %cst_317 = arith.constant dense<0.000000e+00> : vector<2x32xf32>
    %1392 = tpu.matmul %1391, %2, %cst_317 {dimension_numbers = #tpu.dot_dimension_numbers<[1], [0], [0], [1], [0, 0, 1, 1], [], []>} : vector<2x32xbf16>, vector<32x32xbf16>, vector<2x32xf32> -> vector<2x32xf32>
    %1393 = vector.broadcast %4 : vector<1x32xf32> to vector<2x32xf32>
    %1394 = arith.addf %1392, %1393 : vector<2x32xf32>
    %1395 = arith.mulf %1394, %1285 : vector<2x32xf32>
    %1396 = arith.addf %1385, %1395 : vector<2x32xf32>
    %1397 = arith.truncf %1396 : vector<2x32xf32> to vector<2x32xbf16>
    %cst_318 = arith.constant dense<0.000000e+00> : vector<2x32xf32>
    %1398 = tpu.matmul %1397, %1, %cst_318 {dimension_numbers = #tpu.dot_dimension_numbers<[1], [0], [0], [1], [0, 0, 1, 1], [], []>} : vector<2x32xbf16>, vector<32x32xbf16>, vector<2x32xf32> -> vector<2x32xf32>
    %1399 = vector.broadcast %3 : vector<1x32xf32> to vector<2x32xf32>
    %1400 = arith.addf %1398, %1399 : vector<2x32xf32>
    %1401 = math.tanh %1400 : vector<2x32xf32>
    %1402 = arith.truncf %1401 : vector<2x32xf32> to vector<2x32xbf16>
    %cst_319 = arith.constant dense<0.000000e+00> : vector<2x32xf32>
    %1403 = tpu.matmul %1402, %2, %cst_319 {dimension_numbers = #tpu.dot_dimension_numbers<[1], [0], [0], [1], [0, 0, 1, 1], [], []>} : vector<2x32xbf16>, vector<32x32xbf16>, vector<2x32xf32> -> vector<2x32xf32>
    %1404 = vector.broadcast %4 : vector<1x32xf32> to vector<2x32xf32>
    %1405 = arith.addf %1403, %1404 : vector<2x32xf32>
    %1406 = arith.mulf %1405, %1285 : vector<2x32xf32>
    %1407 = arith.addf %1385, %1406 : vector<2x32xf32>
    %1408 = arith.truncf %1407 : vector<2x32xf32> to vector<2x32xbf16>
    %cst_320 = arith.constant dense<0.000000e+00> : vector<2x32xf32>
    %1409 = tpu.matmul %1408, %1, %cst_320 {dimension_numbers = #tpu.dot_dimension_numbers<[1], [0], [0], [1], [0, 0, 1, 1], [], []>} : vector<2x32xbf16>, vector<32x32xbf16>, vector<2x32xf32> -> vector<2x32xf32>
    %1410 = vector.broadcast %3 : vector<1x32xf32> to vector<2x32xf32>
    %1411 = arith.addf %1409, %1410 : vector<2x32xf32>
    %1412 = math.tanh %1411 : vector<2x32xf32>
    %1413 = arith.truncf %1412 : vector<2x32xf32> to vector<2x32xbf16>
    %cst_321 = arith.constant dense<0.000000e+00> : vector<2x32xf32>
    %1414 = tpu.matmul %1413, %2, %cst_321 {dimension_numbers = #tpu.dot_dimension_numbers<[1], [0], [0], [1], [0, 0, 1, 1], [], []>} : vector<2x32xbf16>, vector<32x32xbf16>, vector<2x32xf32> -> vector<2x32xf32>
    %1415 = vector.broadcast %4 : vector<1x32xf32> to vector<2x32xf32>
    %1416 = arith.addf %1414, %1415 : vector<2x32xf32>
    %1417 = arith.mulf %1416, %1283 : vector<2x32xf32>
    %1418 = arith.addf %1385, %1417 : vector<2x32xf32>
    %1419 = arith.truncf %1418 : vector<2x32xf32> to vector<2x32xbf16>
    %cst_322 = arith.constant dense<0.000000e+00> : vector<2x32xf32>
    %1420 = tpu.matmul %1419, %1, %cst_322 {dimension_numbers = #tpu.dot_dimension_numbers<[1], [0], [0], [1], [0, 0, 1, 1], [], []>} : vector<2x32xbf16>, vector<32x32xbf16>, vector<2x32xf32> -> vector<2x32xf32>
    %1421 = vector.broadcast %3 : vector<1x32xf32> to vector<2x32xf32>
    %1422 = arith.addf %1420, %1421 : vector<2x32xf32>
    %1423 = math.tanh %1422 : vector<2x32xf32>
    %1424 = arith.truncf %1423 : vector<2x32xf32> to vector<2x32xbf16>
    %cst_323 = arith.constant dense<0.000000e+00> : vector<2x32xf32>
    %1425 = tpu.matmul %1424, %2, %cst_323 {dimension_numbers = #tpu.dot_dimension_numbers<[1], [0], [0], [1], [0, 0, 1, 1], [], []>} : vector<2x32xbf16>, vector<32x32xbf16>, vector<2x32xf32> -> vector<2x32xf32>
    %1426 = vector.broadcast %4 : vector<1x32xf32> to vector<2x32xf32>
    %1427 = arith.addf %1425, %1426 : vector<2x32xf32>
    %1428 = arith.addf %1394, %1427 : vector<2x32xf32>
    %1429 = arith.addf %1405, %1416 : vector<2x32xf32>
    %cst_324 = arith.constant 2.000000e+00 : f32
    %1430 = vector.broadcast %cst_324 : f32 to vector<2x32xf32>
    %1431 = arith.mulf %1430, %1429 : vector<2x32xf32>
    %1432 = arith.addf %1428, %1431 : vector<2x32xf32>
    %1433 = arith.mulf %1287, %1432 : vector<2x32xf32>
    %1434 = arith.addf %1385, %1433 : vector<2x32xf32>
    %c0_325 = arith.constant 0 : index
    %1435 = arith.index_cast %c7_i32 : i32 to index
    %c0_326 = arith.constant 0 : index
    %c0_327 = arith.constant 0 : index
    %1436 = vector.load %arg6[%c0_325, %1435, %c0_326, %c0_327] : memref<1x8x2x32xf32, #tpu.memory_space<vmem>>, vector<1x1x2x32xf32>
    %1437 = vector.shape_cast %1436 : vector<1x1x2x32xf32> to vector<2x32xf32>
    %1438 = vector.shape_cast %1434 : vector<2x32xf32> to vector<1x1x2x32xf32>
    tpu.vector_store %arg6[%c0_325, %1435, %c0_326, %c0_327], %1438 {strides = array<i32>} : memref<1x8x2x32xf32, #tpu.memory_space<vmem>>, vector<1x1x2x32xf32>,
    %c8_i32 = arith.constant 8 : i32
    return
  }
  func.func @transform_0(%arg0: i32) -> (i32, i32, i32, i32) {
    %c0_i32 = arith.constant 0 : i32
    %c0_i32_0 = arith.constant 0 : i32
    %c0_i32_1 = arith.constant 0 : i32
    %c0_i32_2 = arith.constant 0 : i32
    return %arg0, %c0_i32, %c0_i32_0, %c0_i32_1 : i32, i32, i32, i32
  }
  func.func @transform_1(%arg0: i32) -> (i32, i32, i32, i32) {
    %c0_i32 = arith.constant 0 : i32
    %c0_i32_0 = arith.constant 0 : i32
    %c0_i32_1 = arith.constant 0 : i32
    %c0_i32_2 = arith.constant 0 : i32
    return %arg0, %c0_i32, %c0_i32_0, %c0_i32_1 : i32, i32, i32, i32
  }
  func.func @transform_2(%arg0: i32) -> (i32, i32) {
    %c0_i32 = arith.constant 0 : i32
    %c0_i32_0 = arith.constant 0 : i32
    %c0_i32_1 = arith.constant 0 : i32
    return %c0_i32, %c0_i32_0 : i32, i32
  }
  func.func @transform_3(%arg0: i32) -> (i32, i32) {
    %c0_i32 = arith.constant 0 : i32
    %c0_i32_0 = arith.constant 0 : i32
    %c0_i32_1 = arith.constant 0 : i32
    return %c0_i32, %c0_i32_0 : i32, i32
  }
  func.func @transform_4(%arg0: i32) -> (i32, i32) {
    %c0_i32 = arith.constant 0 : i32
    %c0_i32_0 = arith.constant 0 : i32
    %c0_i32_1 = arith.constant 0 : i32
    return %c0_i32, %c0_i32_0 : i32, i32
  }
  func.func @transform_5(%arg0: i32) -> (i32, i32, i32, i32) {
    %c0_i32 = arith.constant 0 : i32
    %c0_i32_0 = arith.constant 0 : i32
    %c0_i32_1 = arith.constant 0 : i32
    %c0_i32_2 = arith.constant 0 : i32
    return %arg0, %c0_i32, %c0_i32_0, %c0_i32_1 : i32, i32, i32, i32
  }
}

</mosaic_0001>

<bundles_post_ra>
// kernel: tpu_custom_call.1
= control target key start
LH: loop header
LB: loop body
LE: loop exit
PB: predicated region body
PF: predicated region fallthrough
CT: control target
= control target key end

     0   :  { %v13030_v1 = vmov 0.0   ;;  %vm13031_vm0 = vmmov 0   ;;  %s15808_s0 = inlined_call_operand.vmem [shape: f32[1,8,2,128], index: 0, kind: input, shape index: {}]   ;;  %s15809_s1 = inlined_call_operand.vmem [shape: f32[1,8,2,32], index: 1, kind: input, shape index: {}]   ;;  %s15810_s2 = inlined_call_operand.vmem [shape: bf16[32,128], index: 2, kind: input, shape index: {}]   ;;  %s15811_s3 = inlined_call_operand.vmem [shape: bf16[64,32], index: 3, kind: input, shape index: {}]   ;;  %s15812_s4 = inlined_call_operand.vmem [shape: f32[2,32], index: 4, kind: input, shape index: {}]   ;;  %s15813_s5 = inlined_call_operand.hbm [shape: f32[1,8,2,32], index: 5, kind: output, shape index: {}]  }
   0x1   :  { %v13071_v0 = vld [vmem:[%s15810_s2 + $0x8] sm:$0xff]   ;;  %11096 = vmatprep.subr.bf16.mxu0 %v13030_v1  ;;  %11104 = vmatprep.subr.bf16.mxu1 %v13030_v1  ;;  %v13079_v2 = vld [vmem:[%s15810_s2] sm:$0xff]  }
   0x2   :  { %11097 = vmatpush3.bf16.msra.mxu0 %v13071_v0  ;;  %11100 = vmatprep.mubr.msk.bf16.mxu0 %vm13031_vm0, %v13030_v1 }
   0x3   :  { %11098 = vmatprep.subr.bf16.mxu0 %v13030_v1  ;;  %11108 = vmatprep.mubr.msk.bf16.mxu1 %vm13031_vm0, %v13030_v1 }
   0x4   :  { %10 = vsyncpa [#allocation3], 0  ;;  %v13032_v3 = vmov 0   ;;  %v36_v4 = vld [vmem:[%s15808_s0] sm:$0x3]  ;;  %s13033_s24 = smov 64  }
   0x5   :  { %s13034_s25 = smov 32   ;;  %v13101_v20 = vld [vmem:[%s15811_s3 + $0x8] sm:$0xff]   ;;  %v13107_v21 = vld [vmem:[%s15811_s3] sm:$0xff]   ;;  %vm49_vm1 = vcmask 261120   ;;  %v13128_v27 = vld [vmem:[%s15811_s3 + $0x18] sm:$0xff]   ;;  %s13035_s15 = smov 96  }
   0x6   :  { %11099 = vmatpush3.bf16.msra.mxu0 %v13079_v2  ;;  %11105 = vmatpush3.bf16.msra.mxu1 %v13101_v20  ;;  %v13135_v28 = vld [vmem:[%s15811_s3 + $0x10] sm:$0xff]   ;;  %v13142_v29 = vld [vmem:[%s15812_s4] ss:$0 sm:$0xff]  ;;  %v13160_v38 = vld [vmem:[%s15812_s4 + $0x1] ss:$0 sm:$0xff]  ;;  %vm1345_vm2 = vcmask 254976  }
   0x7   :  { %11112 = vmatprep.subr.bf16.mxu0 %v13030_v1  ;;  %11106 = vmatprep.subr.bf16.mxu1 %v13030_v1  ;;  %v13155_v37 = vld [vmem:[%s15809_s1] sm:$0x3] }
   0x8   :  { %v13163_v39 = vmul.f32 0.5, %v13155_v37 }
   0x9   :  { %11101 = vmatmul.mubr.bf16.vlgmr.msra.gmra.mxu0 %v13032_v3 }
   0xa   :  { %11116 = vmatprep.mubr.msk.bf16.mxu0 %vm13031_vm0, %v13030_v1  ;;  %11107 = vmatpush3.bf16.msra.mxu1 %v13107_v21 }
   0xb   :  { %11120 = vmatprep.subr.bf16.mxu1 %v13030_v1  ;;  %11113 = vmatpush3.bf16.msra.mxu0 %v13128_v27 }
   0xc   :  { %11114 = vmatprep.subr.bf16.mxu0 %v13030_v1 }
   0xf   :  { %11115 = vmatpush3.bf16.msra.mxu0 %v13135_v28 }
  0x10   :  { %11128 = vmatprep.subr.bf16.mxu0 %v13030_v1 }
  0xc9   :  { %v87_v5 = vpop.f32.mrf.mxu0 }
  0xca   :  { %v93_v6 = vadd.f32 %v87_v5, %v36_v4 }
  0xcb   :  { %v11102_v7 = vpop.f32.mrf.mxu0 }
  0xcc   :  { %12710 = vtanh.f32 %v93_v6  ;;  %v10269_v11 = vmul.f32 -1.442695, %v93_v6 }
  0xcd   :  { %v90_v8 = vpop.f32.mrf.mxu0 }
  0xce   :  { %12712 = vpow2.f32 %v10269_v11 }
  0xcf   :  { %v11103_v9 = vpop.f32.mrf.mxu0 }
  0xd9   :  { %v12711_v10 = vpop.eup %12710 }
  0xda   :  { %103 = vrot.lane.b32.xlu0 %v12711_v10, %s13033_s24 }
  0xdb   :  { %v12713_v12 = vpop.eup %12712 }
  0xdc   :  { %v97_v13 = vadd.f32 1.0, %v12713_v12 }
  0xde   :  { %12714 = vrcp.f32 %v97_v13 }
  0xeb   :  { %v12715_v14 = vpop.eup %12714 }
  0xec   :  { %v101_v17 = vmul.f32 0.0, %v12715_v14 }
 0x14c   :  { %v104_v15 = vpop.permute.xlu0 %103 }
 0x14d   :  { %v106_v16 = vmul.f32 %v12715_v14, %v104_v15 }
 0x14f   :  { %108 = vrot.lane.b32.xlu0 %v106_v16, %s13034_s25 }
 0x1c1   :  { %v109_v18 = vpop.permute.xlu0 %108 }
 0x1c2   :  { %v13095_v19 = vadd.f32 %v109_v18, %v101_v17 }
 0x1c4   :  { %12716 = vtanh.f32 %v13095_v19 }
 0x1d1   :  { %v12717_v22 = vpop.eup %12716 }
 0x1d2   :  { %114 = vrot.lane.b32.xlu1 %v12717_v22, %s13033_s24 }
 0x244   :  { %v115_v23 = vpop.permute.xlu1 %114 }
 0x245   :  { %v13113_v24 = vmul.f32 %v12715_v14, %v115_v23 }
 0x247   :  { %v121_v25 = vpack.c.bf16 %v13113_v24, %v13113_v24 }
 0x249   :  { %127 = vrot.lane.b32.xlu1 %v121_v25, %s13034_s25 }
 0x2bb   :  { %v128_v26 = vpop.permute.xlu1 %127 }
 0x2bc   :  { %11109 = vmatmul.mubr.msk.bf16.vlgmr.msra.gmra.mxu1 %vm49_vm1, %v128_v26 }
 0x2bd   :  { %11121 = vmatpush3.bf16.msra.mxu1 %v13101_v20  ;;  %11124 = vmatprep.mubr.msk.bf16.mxu1 %vm13031_vm0, %v13030_v1 }
 0x2be   :  { %11122 = vmatprep.subr.bf16.mxu1 %v13030_v1 }
 0x2c1   :  { %11123 = vmatpush3.bf16.msra.mxu1 %v13107_v21 }
 0x2c2   :  { %11136 = vmatprep.subr.bf16.mxu1 %v13030_v1 }
 0x37c   :  { %v178_v30 = vpop.f32.mrf.mxu1 }
 0x37d   :  { %v179_v31 = vadd.f32 %v13142_v29, %v178_v30 }
 0x37e   :  { %v11110_v32 = vpop.f32.mrf.mxu1 }
 0x37f   :  { %12718 = vtanh.f32 %v179_v31 }
 0x380   :  { %v181_v33 = vpop.f32.mrf.mxu1 }
 0x382   :  { %v11111_v34 = vpop.f32.mrf.mxu1 }
 0x38c   :  { %v12719_v35 = vpop.eup %12718 }
 0x38d   :  { %v185_v36 = vpack.c.bf16 %v12719_v35, %v12719_v35 }
 0x38f   :  { %11117 = vmatmul.mubr.msk.bf16.vlgmr.msra.gmra.mxu0 %vm49_vm1, %v185_v36 }
 0x390   :  { %11129 = vmatpush3.bf16.msra.mxu0 %v13128_v27  ;;  %11132 = vmatprep.mubr.msk.bf16.mxu0 %vm13031_vm0, %v13030_v1 }
 0x391   :  { %11130 = vmatprep.subr.bf16.mxu0 %v13030_v1 }
 0x394   :  { %11131 = vmatpush3.bf16.msra.mxu0 %v13135_v28 }
 0x395   :  { %11144 = vmatprep.subr.bf16.mxu0 %v13030_v1 }
 0x44f   :  { %v239_v40 = vpop.f32.mrf.mxu0 }
 0x450   :  { %v13166_v41 = vadd.f32 %v13160_v38, %v239_v40 }
 0x451   :  { %v11118_v42 = vpop.f32.mrf.mxu0 }
 0x452   :  { %v245_v43 = vmul.f32 %v13166_v41, %v13163_v39 }
 0x453   :  { %v242_v44 = vpop.f32.mrf.mxu0 }
 0x454   :  { %247 = vrot.lane.b32.xlu0 %v245_v43, %s13035_s15 }
 0x455   :  { %v11119_v45 = vpop.f32.mrf.mxu0 }
 0x4c6   :  { %v248_v46 = vpop.permute.xlu0 %247 }
 0x4c7   :  { %v250_v47 = vadd.f32 %v248_v46, %v13113_v24 }
 0x4c9   :  { %v251_v48 = vpack.c.bf16 %v250_v47, %v250_v47  ;;  %v13235_v47 = vmul.f32 0.16666667, %v13155_v37 }
 0x4cb   :  { %253 = vrot.lane.b32.xlu1 %v251_v48, %s13034_s25 }
 0x53d   :  { %v254_v49 = vpop.permute.xlu1 %253 }
 0x53e   :  { %11125 = vmatmul.mubr.msk.bf16.vlgmr.msra.gmra.mxu1 %vm49_vm1, %v254_v49 }
 0x53f   :  { %11137 = vmatpush3.bf16.msra.mxu1 %v13101_v20  ;;  %11140 = vmatprep.mubr.msk.bf16.mxu1 %vm13031_vm0, %v13030_v1 }
 0x540   :  { %11138 = vmatprep.subr.bf16.mxu1 %v13030_v1 }
 0x543   :  { %11139 = vmatpush3.bf16.msra.mxu1 %v13107_v21 }
 0x544   :  { %11152 = vmatprep.subr.bf16.mxu1 %v13030_v1 }
 0x5fe   :  { %v292_v50 = vpop.f32.mrf.mxu1 }
 0x5ff   :  { %v293_v51 = vadd.f32 %v13142_v29, %v292_v50 }
 0x600   :  { %v11126_v52 = vpop.f32.mrf.mxu1 }
 0x601   :  { %12720 = vtanh.f32 %v293_v51 }
 0x602   :  { %v295_v53 = vpop.f32.mrf.mxu1 }
 0x604   :  { %v11127_v54 = vpop.f32.mrf.mxu1 }
 0x60e   :  { %v12721_v55 = vpop.eup %12720 }
 0x60f   :  { %v299_v56 = vpack.c.bf16 %v12721_v55, %v12721_v55 }
 0x611   :  { %11133 = vmatmul.mubr.msk.bf16.vlgmr.msra.gmra.mxu0 %vm49_vm1, %v299_v56 }
 0x612   :  { %11145 = vmatpush3.bf16.msra.mxu0 %v13128_v27  ;;  %11148 = vmatprep.mubr.msk.bf16.mxu0 %vm13031_vm0, %v13030_v1 }
 0x613   :  { %11146 = vmatprep.subr.bf16.mxu0 %v13030_v1 }
 0x616   :  { %11147 = vmatpush3.bf16.msra.mxu0 %v13135_v28 }
 0x617   :  { %11160 = vmatprep.subr.bf16.mxu0 %v13030_v1 }
 0x6d1   :  { %v337_v57 = vpop.f32.mrf.mxu0 }
 0x6d2   :  { %v13189_v58 = vadd.f32 %v13160_v38, %v337_v57 }
 0x6d3   :  { %v11134_v59 = vpop.f32.mrf.mxu0 }
 0x6d4   :  { %v343_v60 = vmul.f32 %v13189_v58, %v13163_v39 }
 0x6d5   :  { %v340_v61 = vpop.f32.mrf.mxu0 }
 0x6d6   :  { %345 = vrot.lane.b32.xlu0 %v343_v60, %s13035_s15 }
 0x6d7   :  { %v11135_v62 = vpop.f32.mrf.mxu0 }
 0x748   :  { %v346_v63 = vpop.permute.xlu0 %345 }
 0x749   :  { %v348_v3 = vadd.f32 %v346_v63, %v13113_v24 }
 0x74b   :  { %v349_v4 = vpack.c.bf16 %v348_v3, %v348_v3 }
 0x74d   :  { %351 = vrot.lane.b32.xlu1 %v349_v4, %s13034_s25 }
 0x7bf   :  { %v352_v5 = vpop.permute.xlu1 %351 }
 0x7c0   :  { %11141 = vmatmul.mubr.msk.bf16.vlgmr.msra.gmra.mxu1 %vm49_vm1, %v352_v5 }
 0x7c1   :  { %11153 = vmatpush3.bf16.msra.mxu1 %v13101_v20  ;;  %11156 = vmatprep.mubr.msk.bf16.mxu1 %vm13031_vm0, %v13030_v1 }
 0x7c2   :  { %11154 = vmatprep.subr.bf16.mxu1 %v13030_v1 }
 0x7c5   :  { %11155 = vmatpush3.bf16.msra.mxu1 %v13107_v21 }
 0x7c6   :  { %11168 = vmatprep.subr.bf16.mxu1 %v13030_v1 }
 0x880   :  { %v390_v6 = vpop.f32.mrf.mxu1 }
 0x881   :  { %v391_v7 = vadd.f32 %v13142_v29, %v390_v6 }
 0x882   :  { %v11142_v8 = vpop.f32.mrf.mxu1 }
 0x883   :  { %12722 = vtanh.f32 %v391_v7 }
 0x884   :  { %v393_v9 = vpop.f32.mrf.mxu1 }
 0x886   :  { %v11143_v10 = vpop.f32.mrf.mxu1 }
 0x890   :  { %v12723_v11 = vpop.eup %12722 }
 0x891   :  { %v397_v12 = vpack.c.bf16 %v12723_v11, %v12723_v11 }
 0x893   :  { %11149 = vmatmul.mubr.msk.bf16.vlgmr.msra.gmra.mxu0 %vm49_vm1, %v397_v12 }
 0x894   :  { %11161 = vmatpush3.bf16.msra.mxu0 %v13128_v27  ;;  %11164 = vmatprep.mubr.msk.bf16.mxu0 %vm13031_vm0, %v13030_v1 }
 0x895   :  { %11162 = vmatprep.subr.bf16.mxu0 %v13030_v1 }
 0x898   :  { %11163 = vmatpush3.bf16.msra.mxu0 %v13135_v28 }
 0x899   :  { %11176 = vmatprep.subr.bf16.mxu0 %v13030_v1 }
 0x953   :  { %v435_v13 = vpop.f32.mrf.mxu0 }
 0x954   :  { %v436_v14 = vadd.f32 %v13160_v38, %v435_v13 }
 0x955   :  { %v11150_v15 = vpop.f32.mrf.mxu0 }
 0x956   :  { %v441_v16 = vmul.f32 %v436_v14, %v13155_v37  ;;  %v540_v40 = vadd.f32 %v436_v14, %v13189_v58 }
 0x957   :  { %v438_v17 = vpop.f32.mrf.mxu0 }
 0x958   :  { %443 = vrot.lane.b32.xlu0 %v441_v16, %s13035_s15  ;;  %v541_v45 = vmul.f32 2.0, %v540_v40 }
 0x959   :  { %v11151_v18 = vpop.f32.mrf.mxu0 }
 0x9ca   :  { %v444_v22 = vpop.permute.xlu0 %443 }
 0x9cb   :  { %v446_v23 = vadd.f32 %v444_v22, %v13113_v24 }
 0x9cd   :  { %v447_v25 = vpack.c.bf16 %v446_v23, %v446_v23 }
 0x9cf   :  { %449 = vrot.lane.b32.xlu1 %v447_v25, %s13034_s25 }
 0xa41   :  { %v450_v26 = vpop.permute.xlu1 %449 }
 0xa42   :  { %11157 = vmatmul.mubr.msk.bf16.vlgmr.msra.gmra.mxu1 %vm49_vm1, %v450_v26 }
 0xa43   :  { %11169 = vmatpush3.bf16.msra.mxu1 %v13101_v20  ;;  %11172 = vmatprep.mubr.msk.bf16.mxu1 %vm13031_vm0, %v13030_v1 }
 0xa44   :  { %11170 = vmatprep.subr.bf16.mxu1 %v13030_v1 }
 0xa47   :  { %11171 = vmatpush3.bf16.msra.mxu1 %v13107_v21 }
 0xa48   :  { %11184 = vmatprep.subr.bf16.mxu1 %v13030_v1 }
 0xb02   :  { %v488_v30 = vpop.f32.mrf.mxu1 }
 0xb03   :  { %v489_v31 = vadd.f32 %v13142_v29, %v488_v30 }
 0xb04   :  { %v11158_v32 = vpop.f32.mrf.mxu1 }
 0xb05   :  { %12724 = vtanh.f32 %v489_v31 }
 0xb06   :  { %v491_v33 = vpop.f32.mrf.mxu1 }
 0xb08   :  { %v11159_v34 = vpop.f32.mrf.mxu1 }
 0xb12   :  { %v12725_v35 = vpop.eup %12724 }
 0xb13   :  { %v495_v36 = vpack.c.bf16 %v12725_v35, %v12725_v35 }
 0xb15   :  { %11165 = vmatmul.mubr.msk.bf16.vlgmr.msra.gmra.mxu0 %vm49_vm1, %v495_v36 }
 0xb16   :  { %11177 = vmatpush3.bf16.msra.mxu0 %v13128_v27  ;;  %11180 = vmatprep.mubr.msk.bf16.mxu0 %vm13031_vm0, %v13030_v1 }
 0xb17   :  { %11178 = vmatprep.subr.bf16.mxu0 %v13030_v1 }
 0xb1a   :  { %11179 = vmatpush3.bf16.msra.mxu0 %v13135_v28 }
 0xb1b   :  { %11192 = vmatprep.subr.bf16.mxu0 %v13030_v1 }
 0xbd5   :  { %v533_v42 = vpop.f32.mrf.mxu0 }
 0xbd6   :  { %v534_v43 = vadd.f32 %v13160_v38, %v533_v42 }
 0xbd7   :  { %v11166_v44 = vpop.f32.mrf.mxu0 }
 0xbd8   :  { %v539_v46 = vadd.f32 %v534_v43, %v13166_v41 }
 0xbd9   :  { %v536_v48 = vpop.f32.mrf.mxu0 }
 0xbda   :  { %v542_v49 = vadd.f32 %v541_v45, %v539_v46 }
 0xbdb   :  { %v11167_v50 = vpop.f32.mrf.mxu0 }
 0xbdc   :  { %v543_v51 = vmul.f32 %v542_v49, %v13235_v47 }
 0xbde   :  { %545 = vrot.lane.b32.xlu0 %v543_v51, %s13035_s15 }
 0xc50   :  { %v546_v52 = vpop.permute.xlu0 %545 }
 0xc51   :  { %v13240_v53 = vadd.f32 %v546_v52, %v13113_v24 }
 0xc53   :  { %v549_v54 = vpack.c.bf16 %v13240_v53, %v13240_v53 }
 0xc55   :  { %551 = vrot.lane.b32.xlu1 %v549_v54, %s13034_s25 }
 0xcc7   :  { %v552_v41 = vpop.permute.xlu1 %551 }
 0xcc8   :  { %11173 = vmatmul.mubr.msk.bf16.vlgmr.msra.gmra.mxu1 %vm49_vm1, %v552_v41 }
 0xcc9   :  { %11185 = vmatpush3.bf16.msra.mxu1 %v13101_v20  ;;  %11188 = vmatprep.mubr.msk.bf16.mxu1 %vm13031_vm0, %v13030_v1 }
 0xcca   :  { %11186 = vmatprep.subr.bf16.mxu1 %v13030_v1 }
 0xccd   :  { %11187 = vmatpush3.bf16.msra.mxu1 %v13107_v21 }
 0xcce   :  { %11200 = vmatprep.subr.bf16.mxu1 %v13030_v1 }
 0xd88   :  { %v590_v24 = vpop.f32.mrf.mxu1 }
 0xd89   :  { %v591_v55 = vadd.f32 %v13142_v29, %v590_v24 }
 0xd8a   :  { %v11174_v56 = vpop.f32.mrf.mxu1 }
 0xd8b   :  { %12726 = vtanh.f32 %v591_v55 }
 0xd8c   :  { %v593_v57 = vpop.f32.mrf.mxu1 }
 0xd8e   :  { %v11175_v58 = vpop.f32.mrf.mxu1 }
 0xd98   :  { %v12727_v59 = vpop.eup %12726 }
 0xd99   :  { %v597_v60 = vpack.c.bf16 %v12727_v59, %v12727_v59 }
 0xd9b   :  { %11181 = vmatmul.mubr.msk.bf16.vlgmr.msra.gmra.mxu0 %vm49_vm1, %v597_v60 }
 0xd9c   :  { %11193 = vmatpush3.bf16.msra.mxu0 %v13128_v27  ;;  %11196 = vmatprep.mubr.msk.bf16.mxu0 %vm13031_vm0, %v13030_v1 }
 0xd9d   :  { %11194 = vmatprep.subr.bf16.mxu0 %v13030_v1 }
 0xda0   :  { %11195 = vmatpush3.bf16.msra.mxu0 %v13135_v28 }
 0xda1   :  { %11208 = vmatprep.subr.bf16.mxu0 %v13030_v1 }
 0xe5b   :  { %v635_v61 = vpop.f32.mrf.mxu0 }
 0xe5c   :  { %v13261_v62 = vadd.f32 %v13160_v38, %v635_v61 }
 0xe5d   :  { %v11182_v63 = vpop.f32.mrf.mxu0 }
 0xe5e   :  { %v641_v3 = vmul.f32 %v13261_v62, %v13163_v39 }
 0xe5f   :  { %v638_v4 = vpop.f32.mrf.mxu0 }
 0xe60   :  { %643 = vrot.lane.b32.xlu0 %v641_v3, %s13035_s15 }
 0xe61   :  { %v11183_v5 = vpop.f32.mrf.mxu0 }
 0xed2   :  { %v644_v6 = vpop.permute.xlu0 %643 }
 0xed3   :  { %v646_v7 = vadd.f32 %v644_v6, %v13240_v53 }
 0xed5   :  { %v647_v8 = vpack.c.bf16 %v646_v7, %v646_v7 }
 0xed7   :  { %649 = vrot.lane.b32.xlu1 %v647_v8, %s13034_s25 }
 0xf49   :  { %v650_v9 = vpop.permute.xlu1 %649 }
 0xf4a   :  { %11189 = vmatmul.mubr.msk.bf16.vlgmr.msra.gmra.mxu1 %vm49_vm1, %v650_v9 }
 0xf4b   :  { %11201 = vmatpush3.bf16.msra.mxu1 %v13101_v20  ;;  %11204 = vmatprep.mubr.msk.bf16.mxu1 %vm13031_vm0, %v13030_v1 }
 0xf4c   :  { %11202 = vmatprep.subr.bf16.mxu1 %v13030_v1 }
 0xf4f   :  { %11203 = vmatpush3.bf16.msra.mxu1 %v13107_v21 }
 0xf50   :  { %11216 = vmatprep.subr.bf16.mxu1 %v13030_v1 }
0x100a   :  { %v688_v10 = vpop.f32.mrf.mxu1 }
0x100b   :  { %v689_v11 = vadd.f32 %v13142_v29, %v688_v10 }
0x100c   :  { %v11190_v12 = vpop.f32.mrf.mxu1 }
0x100d   :  { %12728 = vtanh.f32 %v689_v11 }
0x100e   :  { %v691_v13 = vpop.f32.mrf.mxu1 }
0x1010   :  { %v11191_v14 = vpop.f32.mrf.mxu1 }
0x101a   :  { %v12729_v15 = vpop.eup %12728 }
0x101b   :  { %v695_v16 = vpack.c.bf16 %v12729_v15, %v12729_v15 }
0x101d   :  { %11197 = vmatmul.mubr.msk.bf16.vlgmr.msra.gmra.mxu0 %vm49_vm1, %v695_v16 }
0x101e   :  { %11209 = vmatpush3.bf16.msra.mxu0 %v13128_v27  ;;  %11212 = vmatprep.mubr.msk.bf16.mxu0 %vm13031_vm0, %v13030_v1 }
0x101f   :  { %11210 = vmatprep.subr.bf16.mxu0 %v13030_v1 }
0x1022   :  { %11211 = vmatpush3.bf16.msra.mxu0 %v13135_v28 }
0x1023   :  { %11224 = vmatprep.subr.bf16.mxu0 %v13030_v1 }
0x10dd   :  { %v733_v17 = vpop.f32.mrf.mxu0 }
0x10de   :  { %v13284_v18 = vadd.f32 %v13160_v38, %v733_v17 }
0x10df   :  { %v11198_v22 = vpop.f32.mrf.mxu0 }
0x10e0   :  { %v739_v23 = vmul.f32 %v13284_v18, %v13163_v39 }
0x10e1   :  { %v736_v25 = vpop.f32.mrf.mxu0 }
0x10e2   :  { %741 = vrot.lane.b32.xlu0 %v739_v23, %s13035_s15 }
0x10e3   :  { %v11199_v26 = vpop.f32.mrf.mxu0 }
0x1154   :  { %v742_v30 = vpop.permute.xlu0 %741 }
0x1155   :  { %v744_v31 = vadd.f32 %v742_v30, %v13240_v53 }
0x1157   :  { %v745_v32 = vpack.c.bf16 %v744_v31, %v744_v31 }
0x1159   :  { %747 = vrot.lane.b32.xlu1 %v745_v32, %s13034_s25 }
0x11cb   :  { %v748_v33 = vpop.permute.xlu1 %747 }
0x11cc   :  { %11205 = vmatmul.mubr.msk.bf16.vlgmr.msra.gmra.mxu1 %vm49_vm1, %v748_v33 }
0x11cd   :  { %11217 = vmatpush3.bf16.msra.mxu1 %v13101_v20  ;;  %11220 = vmatprep.mubr.msk.bf16.mxu1 %vm13031_vm0, %v13030_v1 }
0x11ce   :  { %11218 = vmatprep.subr.bf16.mxu1 %v13030_v1 }
0x11d1   :  { %11219 = vmatpush3.bf16.msra.mxu1 %v13107_v21 }
0x11d2   :  { %11232 = vmatprep.subr.bf16.mxu1 %v13030_v1 }
0x128c   :  { %v786_v34 = vpop.f32.mrf.mxu1 }
0x128d   :  { %v787_v35 = vadd.f32 %v13142_v29, %v786_v34 }
0x128e   :  { %v11206_v36 = vpop.f32.mrf.mxu1 }
0x128f   :  { %12730 = vtanh.f32 %v787_v35 }
0x1290   :  { %v789_v40 = vpop.f32.mrf.mxu1 }
0x1292   :  { %v11207_v42 = vpop.f32.mrf.mxu1 }
0x129c   :  { %v12731_v43 = vpop.eup %12730 }
0x129d   :  { %v793_v44 = vpack.c.bf16 %v12731_v43, %v12731_v43 }
0x129f   :  { %11213 = vmatmul.mubr.msk.bf16.vlgmr.msra.gmra.mxu0 %vm49_vm1, %v793_v44 }
0x12a0   :  { %11225 = vmatpush3.bf16.msra.mxu0 %v13128_v27  ;;  %11228 = vmatprep.mubr.msk.bf16.mxu0 %vm13031_vm0, %v13030_v1 }
0x12a1   :  { %11226 = vmatprep.subr.bf16.mxu0 %v13030_v1 }
0x12a4   :  { %11227 = vmatpush3.bf16.msra.mxu0 %v13135_v28 }
0x12a5   :  { %11240 = vmatprep.subr.bf16.mxu0 %v13030_v1 }
0x135f   :  { %v831_v45 = vpop.f32.mrf.mxu0 }
0x1360   :  { %v832_v46 = vadd.f32 %v13160_v38, %v831_v45 }
0x1361   :  { %v11214_v48 = vpop.f32.mrf.mxu0 }
0x1362   :  { %v837_v49 = vmul.f32 %v832_v46, %v13155_v37  ;;  %v936_v63 = vadd.f32 %v832_v46, %v13284_v18 }
0x1363   :  { %v834_v50 = vpop.f32.mrf.mxu0 }
0x1364   :  { %839 = vrot.lane.b32.xlu0 %v837_v49, %s13035_s15  ;;  %v937_v6 = vmul.f32 2.0, %v936_v63 }
0x1365   :  { %v11215_v51 = vpop.f32.mrf.mxu0 }
0x13d6   :  { %v840_v52 = vpop.permute.xlu0 %839 }
0x13d7   :  { %v842_v54 = vadd.f32 %v840_v52, %v13240_v53 }
0x13d9   :  { %v843_v41 = vpack.c.bf16 %v842_v54, %v842_v54 }
0x13db   :  { %845 = vrot.lane.b32.xlu1 %v843_v41, %s13034_s25 }
0x144d   :  { %v846_v24 = vpop.permute.xlu1 %845 }
0x144e   :  { %11221 = vmatmul.mubr.msk.bf16.vlgmr.msra.gmra.mxu1 %vm49_vm1, %v846_v24 }
0x144f   :  { %11233 = vmatpush3.bf16.msra.mxu1 %v13101_v20  ;;  %11236 = vmatprep.mubr.msk.bf16.mxu1 %vm13031_vm0, %v13030_v1 }
0x1450   :  { %11234 = vmatprep.subr.bf16.mxu1 %v13030_v1 }
0x1453   :  { %11235 = vmatpush3.bf16.msra.mxu1 %v13107_v21 }
0x1454   :  { %11248 = vmatprep.subr.bf16.mxu1 %v13030_v1 }
0x150e   :  { %v884_v55 = vpop.f32.mrf.mxu1 }
0x150f   :  { %v885_v56 = vadd.f32 %v13142_v29, %v884_v55 }
0x1510   :  { %v11222_v57 = vpop.f32.mrf.mxu1 }
0x1511   :  { %12732 = vtanh.f32 %v885_v56 }
0x1512   :  { %v887_v58 = vpop.f32.mrf.mxu1 }
0x1514   :  { %v11223_v59 = vpop.f32.mrf.mxu1 }
0x151e   :  { %v12733_v60 = vpop.eup %12732 }
0x151f   :  { %v891_v61 = vpack.c.bf16 %v12733_v60, %v12733_v60 }
0x1521   :  { %11229 = vmatmul.mubr.msk.bf16.vlgmr.msra.gmra.mxu0 %vm49_vm1, %v891_v61 }
0x1522   :  { %11241 = vmatpush3.bf16.msra.mxu0 %v13128_v27  ;;  %11244 = vmatprep.mubr.msk.bf16.mxu0 %vm13031_vm0, %v13030_v1 }
0x1523   :  { %11242 = vmatprep.subr.bf16.mxu0 %v13030_v1 }
0x1526   :  { %11243 = vmatpush3.bf16.msra.mxu0 %v13135_v28 }
0x1527   :  { %11256 = vmatprep.subr.bf16.mxu0 %v13030_v1 }
0x15e1   :  { %v929_v3 = vpop.f32.mrf.mxu0 }
0x15e2   :  { %v930_v4 = vadd.f32 %v13160_v38, %v929_v3 }
0x15e3   :  { %v11230_v5 = vpop.f32.mrf.mxu0 }
0x15e4   :  { %v935_v7 = vadd.f32 %v930_v4, %v13261_v62 }
0x15e5   :  { %v932_v8 = vpop.f32.mrf.mxu0 }
0x15e6   :  { %v938_v9 = vadd.f32 %v937_v6, %v935_v7 }
0x15e7   :  { %v11231_v10 = vpop.f32.mrf.mxu0 }
0x15e8   :  { %v939_v11 = vmul.f32 %v938_v9, %v13235_v47 }
0x15ea   :  { %941 = vrot.lane.b32.xlu0 %v939_v11, %s13035_s15 }
0x165c   :  { %v942_v12 = vpop.permute.xlu0 %941 }
0x165d   :  { %v13332_v13 = vadd.f32 %v942_v12, %v13240_v53 }
0x165f   :  { %v945_v14 = vpack.c.bf16 %v13332_v13, %v13332_v13 }
0x1661   :  { %947 = vrot.lane.b32.xlu1 %v945_v14, %s13034_s25 }
0x16d3   :  { %v948_v15 = vpop.permute.xlu1 %947 }
0x16d4   :  { %11237 = vmatmul.mubr.msk.bf16.vlgmr.msra.gmra.mxu1 %vm49_vm1, %v948_v15 }
0x16d5   :  { %11249 = vmatpush3.bf16.msra.mxu1 %v13101_v20  ;;  %11252 = vmatprep.mubr.msk.bf16.mxu1 %vm13031_vm0, %v13030_v1 }
0x16d6   :  { %11250 = vmatprep.subr.bf16.mxu1 %v13030_v1 }
0x16d9   :  { %11251 = vmatpush3.bf16.msra.mxu1 %v13107_v21 }
0x16da   :  { %11264 = vmatprep.subr.bf16.mxu1 %v13030_v1 }
0x1794   :  { %v986_v53 = vpop.f32.mrf.mxu1 }
0x1795   :  { %v987_v62 = vadd.f32 %v13142_v29, %v986_v53 }
0x1796   :  { %v11238_v16 = vpop.f32.mrf.mxu1 }
0x1797   :  { %12734 = vtanh.f32 %v987_v62 }
0x1798   :  { %v989_v17 = vpop.f32.mrf.mxu1 }
0x179a   :  { %v11239_v18 = vpop.f32.mrf.mxu1 }
0x17a4   :  { %v12735_v22 = vpop.eup %12734 }
0x17a5   :  { %v993_v23 = vpack.c.bf16 %v12735_v22, %v12735_v22 }
0x17a7   :  { %11245 = vmatmul.mubr.msk.bf16.vlgmr.msra.gmra.mxu0 %vm49_vm1, %v993_v23 }
0x17a8   :  { %11257 = vmatpush3.bf16.msra.mxu0 %v13128_v27  ;;  %11260 = vmatprep.mubr.msk.bf16.mxu0 %vm13031_vm0, %v13030_v1 }
0x17a9   :  { %11258 = vmatprep.subr.bf16.mxu0 %v13030_v1 }
0x17ac   :  { %11259 = vmatpush3.bf16.msra.mxu0 %v13135_v28 }
0x17ad   :  { %11272 = vmatprep.subr.bf16.mxu0 %v13030_v1 }
0x1867   :  { %v1031_v25 = vpop.f32.mrf.mxu0 }
0x1868   :  { %v13353_v26 = vadd.f32 %v13160_v38, %v1031_v25 }
0x1869   :  { %v11246_v30 = vpop.f32.mrf.mxu0 }
0x186a   :  { %v1037_v31 = vmul.f32 %v13353_v26, %v13163_v39 }
0x186b   :  { %v1034_v32 = vpop.f32.mrf.mxu0 }
0x186c   :  { %1039 = vrot.lane.b32.xlu0 %v1037_v31, %s13035_s15 }
0x186d   :  { %v11247_v33 = vpop.f32.mrf.mxu0 }
0x18de   :  { %v1040_v34 = vpop.permute.xlu0 %1039 }
0x18df   :  { %v1042_v35 = vadd.f32 %v1040_v34, %v13332_v13 }
0x18e1   :  { %v1043_v36 = vpack.c.bf16 %v1042_v35, %v1042_v35 }
0x18e3   :  { %1045 = vrot.lane.b32.xlu1 %v1043_v36, %s13034_s25 }
0x1955   :  { %v1046_v40 = vpop.permute.xlu1 %1045 }
0x1956   :  { %11253 = vmatmul.mubr.msk.bf16.vlgmr.msra.gmra.mxu1 %vm49_vm1, %v1046_v40 }
0x1957   :  { %11265 = vmatpush3.bf16.msra.mxu1 %v13101_v20  ;;  %11268 = vmatprep.mubr.msk.bf16.mxu1 %vm13031_vm0, %v13030_v1 }
0x1958   :  { %11266 = vmatprep.subr.bf16.mxu1 %v13030_v1 }
0x195b   :  { %11267 = vmatpush3.bf16.msra.mxu1 %v13107_v21 }
0x195c   :  { %11280 = vmatprep.subr.bf16.mxu1 %v13030_v1 }
0x1a16   :  { %v1084_v42 = vpop.f32.mrf.mxu1 }
0x1a17   :  { %v1085_v43 = vadd.f32 %v13142_v29, %v1084_v42 }
0x1a18   :  { %v11254_v44 = vpop.f32.mrf.mxu1 }
0x1a19   :  { %12736 = vtanh.f32 %v1085_v43 }
0x1a1a   :  { %v1087_v45 = vpop.f32.mrf.mxu1 }
0x1a1c   :  { %v11255_v46 = vpop.f32.mrf.mxu1 }
0x1a26   :  { %v12737_v48 = vpop.eup %12736 }
0x1a27   :  { %v1091_v49 = vpack.c.bf16 %v12737_v48, %v12737_v48 }
0x1a29   :  { %11261 = vmatmul.mubr.msk.bf16.vlgmr.msra.gmra.mxu0 %vm49_vm1, %v1091_v49 }
0x1a2a   :  { %11273 = vmatpush3.bf16.msra.mxu0 %v13128_v27  ;;  %11276 = vmatprep.mubr.msk.bf16.mxu0 %vm13031_vm0, %v13030_v1 }
0x1a2b   :  { %11274 = vmatprep.subr.bf16.mxu0 %v13030_v1 }
0x1a2e   :  { %11275 = vmatpush3.bf16.msra.mxu0 %v13135_v28 }
0x1a2f   :  { %11288 = vmatprep.subr.bf16.mxu0 %v13030_v1 }
0x1ae9   :  { %v1129_v50 = vpop.f32.mrf.mxu0 }
0x1aea   :  { %v13376_v51 = vadd.f32 %v13160_v38, %v1129_v50 }
0x1aeb   :  { %v11262_v52 = vpop.f32.mrf.mxu0 }
0x1aec   :  { %v1135_v54 = vmul.f32 %v13376_v51, %v13163_v39 }
0x1aed   :  { %v1132_v41 = vpop.f32.mrf.mxu0 }
0x1aee   :  { %1137 = vrot.lane.b32.xlu0 %v1135_v54, %s13035_s15 }
0x1aef   :  { %v11263_v24 = vpop.f32.mrf.mxu0 }
0x1b60   :  { %v1138_v55 = vpop.permute.xlu0 %1137 }
0x1b61   :  { %v1140_v56 = vadd.f32 %v1138_v55, %v13332_v13 }
0x1b63   :  { %v1141_v57 = vpack.c.bf16 %v1140_v56, %v1140_v56 }
0x1b65   :  { %1143 = vrot.lane.b32.xlu1 %v1141_v57, %s13034_s25 }
0x1bd7   :  { %v1144_v58 = vpop.permute.xlu1 %1143 }
0x1bd8   :  { %11269 = vmatmul.mubr.msk.bf16.vlgmr.msra.gmra.mxu1 %vm49_vm1, %v1144_v58 }
0x1bd9   :  { %11281 = vmatpush3.bf16.msra.mxu1 %v13101_v20  ;;  %11284 = vmatprep.mubr.msk.bf16.mxu1 %vm13031_vm0, %v13030_v1 }
0x1bda   :  { %11282 = vmatprep.subr.bf16.mxu1 %v13030_v1 }
0x1bdd   :  { %11283 = vmatpush3.bf16.msra.mxu1 %v13107_v21 }
0x1bde   :  { %11296 = vmatprep.subr.bf16.mxu1 %v13030_v1 }
0x1c98   :  { %v1182_v39 = vpop.f32.mrf.mxu1 }
0x1c99   :  { %v1183_v59 = vadd.f32 %v13142_v29, %v1182_v39 }
0x1c9a   :  { %v11270_v60 = vpop.f32.mrf.mxu1 }
0x1c9b   :  { %12738 = vtanh.f32 %v1183_v59 }
0x1c9c   :  { %v1185_v61 = vpop.f32.mrf.mxu1 }
0x1c9e   :  { %v11271_v63 = vpop.f32.mrf.mxu1 }
0x1ca8   :  { %v12739_v3 = vpop.eup %12738 }
0x1ca9   :  { %v1189_v4 = vpack.c.bf16 %v12739_v3, %v12739_v3 }
0x1cab   :  { %11277 = vmatmul.mubr.msk.bf16.vlgmr.msra.gmra.mxu0 %vm49_vm1, %v1189_v4 }
0x1cac   :  { %11289 = vmatpush3.bf16.msra.mxu0 %v13128_v27  ;;  %11292 = vmatprep.mubr.msk.bf16.mxu0 %vm13031_vm0, %v13030_v1 }
0x1cad   :  { %11290 = vmatprep.subr.bf16.mxu0 %v13030_v1 }
0x1cb0   :  { %11291 = vmatpush3.bf16.msra.mxu0 %v13135_v28 }
0x1cb1   :  { %11304 = vmatprep.subr.bf16.mxu0 %v13030_v1 }
0x1d6b   :  { %v1227_v5 = vpop.f32.mrf.mxu0 }
0x1d6c   :  { %v1228_v6 = vadd.f32 %v13160_v38, %v1227_v5 }
0x1d6d   :  { %v11278_v7 = vpop.f32.mrf.mxu0 }
0x1d6e   :  { %v1233_v8 = vmul.f32 %v1228_v6, %v13155_v37  ;;  %v13469_v7 = vld [vmem:[%s15809_s1 + $0x2] sm:$0x3] }
0x1d6f   :  { %v1230_v9 = vpop.f32.mrf.mxu0 }
0x1d70   :  { %1235 = vrot.lane.b32.xlu0 %v1233_v8, %s13035_s15  ;;  %v13472_v8 = vmul.f32 0.5, %v13469_v7 }
0x1d71   :  { %v11279_v10 = vpop.f32.mrf.mxu0 }
0x1de2   :  { %v1236_v11 = vpop.permute.xlu0 %1235 }
0x1de3   :  { %v1238_v12 = vadd.f32 %v1236_v11, %v13332_v13 }
0x1de5   :  { %v1239_v14 = vpack.c.bf16 %v1238_v12, %v1238_v12 }
0x1de7   :  { %1241 = vrot.lane.b32.xlu1 %v1239_v14, %s13034_s25 }
0x1e59   :  { %v1242_v15 = vpop.permute.xlu1 %1241 }
0x1e5a   :  { %11285 = vmatmul.mubr.msk.bf16.vlgmr.msra.gmra.mxu1 %vm49_vm1, %v1242_v15 }
0x1e5b   :  { %11297 = vmatpush3.bf16.msra.mxu1 %v13071_v0  ;;  %11300 = vmatprep.mubr.msk.bf16.mxu1 %vm13031_vm0, %v13030_v1  ;;  %v1332_v0 = vadd.f32 %v1228_v6, %v13376_v51 }
0x1e5c   :  { %11298 = vmatprep.subr.bf16.mxu1 %v13030_v1 }
0x1e5d   :  { %v1333_v30 = vmul.f32 2.0, %v1332_v0 }
0x1e5f   :  { %11299 = vmatpush3.bf16.msra.mxu1 %v13079_v2 }
0x1e60   :  { %11312 = vmatprep.subr.bf16.mxu1 %v13030_v1 }
0x1f1a   :  { %v1280_v37 = vpop.f32.mrf.mxu1 }
0x1f1b   :  { %v1281_v53 = vadd.f32 %v13142_v29, %v1280_v37 }
0x1f1c   :  { %v11286_v62 = vpop.f32.mrf.mxu1 }
0x1f1d   :  { %12740 = vtanh.f32 %v1281_v53 }
0x1f1e   :  { %v1283_v16 = vpop.f32.mrf.mxu1 }
0x1f20   :  { %v11287_v17 = vpop.f32.mrf.mxu1 }
0x1f2a   :  { %v12741_v18 = vpop.eup %12740 }
0x1f2b   :  { %v1287_v22 = vpack.c.bf16 %v12741_v18, %v12741_v18 }
0x1f2d   :  { %11293 = vmatmul.mubr.msk.bf16.vlgmr.msra.gmra.mxu0 %vm49_vm1, %v1287_v22 }
0x1f2e   :  { %11305 = vmatpush3.bf16.msra.mxu0 %v13101_v20  ;;  %11308 = vmatprep.mubr.msk.bf16.mxu0 %vm13031_vm0, %v13030_v1 }
0x1f2f   :  { %11306 = vmatprep.subr.bf16.mxu0 %v13030_v1 }
0x1f32   :  { %11307 = vmatpush3.bf16.msra.mxu0 %v13107_v21 }
0x1f33   :  { %11320 = vmatprep.subr.bf16.mxu0 %v13030_v1 }
0x1fed   :  { %v1325_v2 = vpop.f32.mrf.mxu0 }
0x1fee   :  { %v1326_v23 = vadd.f32 %v13160_v38, %v1325_v2 }
0x1fef   :  { %v11294_v25 = vpop.f32.mrf.mxu0 }
0x1ff0   :  { %v1331_v31 = vadd.f32 %v1326_v23, %v13353_v26 }
0x1ff1   :  { %v1328_v32 = vpop.f32.mrf.mxu0 }
0x1ff2   :  { %v1334_v33 = vadd.f32 %v1333_v30, %v1331_v31 }
0x1ff3   :  { %v11295_v34 = vpop.f32.mrf.mxu0 }
0x1ff4   :  { %v1335_v35 = vmul.f32 %v1334_v33, %v13235_v47  ;;  %v10300_v47 = vld [vmem:[%s15808_s0 + $0x2] sm:$0x3] }
0x1ff6   :  { %1337 = vrot.lane.b32.xlu0 %v1335_v35, %s13035_s15 }
0x2068   :  { %v1338_v36 = vpop.permute.xlu0 %1337 }
0x2069   :  { %v13424_v40 = vadd.f32 %v1338_v36, %v13332_v13  ;;  %v13509_v36 = vld [vmem:[%s15811_s3 + $0x8] sm:$0xff]  }
0x206b   :  { %v1349_v42 = vpack.c.bf16 %v13424_v40, %v13424_v40 }
0x206d   :  { %1351 = vrot.lane.b32.xlu1 %v1349_v42, %s13034_s25  ;;  %v13518_v42 = vld [vmem:[%s15811_s3] sm:$0xff]  }
0x20df   :  { %v1352_v43 = vpop.permute.xlu1 %1351 }
0x20e0   :  { %11301 = vmatmul.mubr.msk.bf16.vlgmr.msra.gmra.mxu1 %vm49_vm1, %v1352_v43 }
0x20e1   :  { %11313 = vmatpush3.bf16.msra.mxu1 %v13128_v27  ;;  %11316 = vmatprep.mubr.msk.bf16.mxu1 %vm13031_vm0, %v13030_v1 }
0x20e2   :  { %11314 = vmatprep.subr.bf16.mxu1 %v13030_v1 }
0x20e5   :  { %11315 = vmatpush3.bf16.msra.mxu1 %v13135_v28 }
0x20e6   :  { %11328 = vmatprep.subr.bf16.mxu1 %v13030_v1 }
0x21a0   :  { %v1390_v13 = vpop.f32.mrf.mxu1 }
0x21a1   :  { %v1396_v26 = vadd.f32 %v10300_v47, %v1390_v13 }
0x21a2   :  { %v11302_v44 = vpop.f32.mrf.mxu1 }
0x21a3   :  { %12742 = vtanh.f32 %v1396_v26  ;;  %v10302_v49 = vmul.f32 -1.442695, %v1396_v26 }
0x21a4   :  { %v1393_v45 = vpop.f32.mrf.mxu1 }
0x21a5   :  { %12744 = vpow2.f32 %v10302_v49 }
0x21a6   :  { %v11303_v46 = vpop.f32.mrf.mxu1 }
0x21b0   :  { %v12743_v48 = vpop.eup %12742 }
0x21b1   :  { %1406 = vrot.lane.b32.xlu0 %v12743_v48, %s13033_s24  ;;  %v13527_v48 = vld [vmem:[%s15811_s3 + $0x18] sm:$0xff]  }
0x21b2   :  { %v12745_v50 = vpop.eup %12744 }
0x21b3   :  { %v1400_v51 = vadd.f32 1.0, %v12745_v50 }
0x21b5   :  { %12746 = vrcp.f32 %v1400_v51 }
0x21c2   :  { %v12747_v52 = vpop.eup %12746 }
0x21c3   :  { %v1404_v24 = vmul.f32 %v12747_v52, %v13095_v19 }
0x2223   :  { %v1407_v54 = vpop.permute.xlu0 %1406 }
0x2224   :  { %v1409_v41 = vmul.f32 %v12747_v52, %v1407_v54 }
0x2226   :  { %1411 = vrot.lane.b32.xlu1 %v1409_v41, %s13034_s25 }
0x2298   :  { %v1412_v55 = vpop.permute.xlu1 %1411 }
0x2299   :  { %v13442_v56 = vadd.f32 %v1412_v55, %v1404_v24 }
0x229b   :  { %12748 = vtanh.f32 %v13442_v56 }
0x22a8   :  { %v12749_v57 = vpop.eup %12748 }
0x22a9   :  { %1417 = vrot.lane.b32.xlu0 %v12749_v57, %s13033_s24 }
0x231b   :  { %v1418_v58 = vpop.permute.xlu0 %1417 }
0x231c   :  { %v13446_v39 = vmul.f32 %v12747_v52, %v1418_v58 }
0x231e   :  { %v1425_v59 = vpack.c.bf16 %v13446_v39, %v13446_v39 }
0x2320   :  { %1427 = vrot.lane.b32.xlu1 %v1425_v59, %s13034_s25  ;;  %v13555_v59 = vld [vmem:[%s15812_s4] ss:$0 sm:$0xff] }
0x2392   :  { %v1428_v60 = vpop.permute.xlu1 %1427 }
0x2393   :  { %11309 = vmatmul.mubr.msk.bf16.vlgmr.msra.gmra.mxu0 %vm49_vm1, %v1428_v60 }
0x2394   :  { %11321 = vmatpush3.bf16.msra.mxu0 %v13101_v20  ;;  %11324 = vmatprep.mubr.msk.bf16.mxu0 %vm13031_vm0, %v13030_v1 }
0x2395   :  { %11322 = vmatprep.subr.bf16.mxu0 %v13030_v1 }
0x2398   :  { %11323 = vmatpush3.bf16.msra.mxu0 %v13107_v21 }
0x2399   :  { %11336 = vmatprep.subr.bf16.mxu0 %v13030_v1 }
0x2453   :  { %v1466_v19 = vpop.f32.mrf.mxu0 }
0x2454   :  { %v1467_v61 = vadd.f32 %v13142_v29, %v1466_v19 }
0x2455   :  { %v11310_v63 = vpop.f32.mrf.mxu0 }
0x2456   :  { %12750 = vtanh.f32 %v1467_v61 }
0x2457   :  { %v1469_v3 = vpop.f32.mrf.mxu0 }
0x2459   :  { %v11311_v4 = vpop.f32.mrf.mxu0 }
0x2463   :  { %v12751_v5 = vpop.eup %12750 }
0x2464   :  { %v1473_v6 = vpack.c.bf16 %v12751_v5, %v12751_v5 }
0x2466   :  { %11317 = vmatmul.mubr.msk.bf16.vlgmr.msra.gmra.mxu1 %vm49_vm1, %v1473_v6 }
0x2467   :  { %11329 = vmatpush3.bf16.msra.mxu1 %v13128_v27  ;;  %11332 = vmatprep.mubr.msk.bf16.mxu1 %vm13031_vm0, %v13030_v1 }
0x2468   :  { %11330 = vmatprep.subr.bf16.mxu1 %v13030_v1 }
0x246b   :  { %11331 = vmatpush3.bf16.msra.mxu1 %v13135_v28 }
0x246c   :  { %11344 = vmatprep.subr.bf16.mxu1 %v13030_v1 }
0x2526   :  { %v1511_v9 = vpop.f32.mrf.mxu1 }
0x2527   :  { %v13475_v10 = vadd.f32 %v13160_v38, %v1511_v9  ;;  %v13569_v9 = vld [vmem:[%s15812_s4 + $0x1] ss:$0 sm:$0xff] }
0x2528   :  { %v11318_v11 = vpop.f32.mrf.mxu1 }
0x2529   :  { %v1517_v12 = vmul.f32 %v13475_v10, %v13472_v8 }
0x252a   :  { %v1514_v14 = vpop.f32.mrf.mxu1 }
0x252b   :  { %1519 = vrot.lane.b32.xlu0 %v1517_v12, %s13035_s15 }
0x252c   :  { %v11319_v15 = vpop.f32.mrf.mxu1 }
0x259d   :  { %v1520_v37 = vpop.permute.xlu0 %1519 }
0x259e   :  { %v1522_v53 = vadd.f32 %v1520_v37, %v13446_v39  ;;  %v13574_v37 = vmul.f32 0.16666667, %v13469_v7 }
0x25a0   :  { %v1523_v62 = vpack.c.bf16 %v1522_v53, %v1522_v53 }
0x25a2   :  { %1525 = vrot.lane.b32.xlu1 %v1523_v62, %s13034_s25 }
0x2614   :  { %v1526_v16 = vpop.permute.xlu1 %1525 }
0x2615   :  { %11325 = vmatmul.mubr.msk.bf16.vlgmr.msra.gmra.mxu0 %vm49_vm1, %v1526_v16 }
0x2616   :  { %11337 = vmatpush3.bf16.msra.mxu0 %v13101_v20  ;;  %11340 = vmatprep.mubr.msk.bf16.mxu0 %vm13031_vm0, %v13030_v1 }
0x2617   :  { %11338 = vmatprep.subr.bf16.mxu0 %v13030_v1 }
0x261a   :  { %11339 = vmatpush3.bf16.msra.mxu0 %v13107_v21 }
0x261b   :  { %11352 = vmatprep.subr.bf16.mxu0 %v13030_v1 }
0x26d5   :  { %v1564_v17 = vpop.f32.mrf.mxu0 }
0x26d6   :  { %v1565_v18 = vadd.f32 %v13142_v29, %v1564_v17 }
0x26d7   :  { %v11326_v22 = vpop.f32.mrf.mxu0 }
0x26d8   :  { %12752 = vtanh.f32 %v1565_v18 }
0x26d9   :  { %v1567_v0 = vpop.f32.mrf.mxu0 }
0x26db   :  { %v11327_v2 = vpop.f32.mrf.mxu0 }
0x26e5   :  { %v12753_v23 = vpop.eup %12752 }
0x26e6   :  { %v1571_v25 = vpack.c.bf16 %v12753_v23, %v12753_v23 }
0x26e8   :  { %11333 = vmatmul.mubr.msk.bf16.vlgmr.msra.gmra.mxu1 %vm49_vm1, %v1571_v25 }
0x26e9   :  { %11345 = vmatpush3.bf16.msra.mxu1 %v13128_v27  ;;  %11348 = vmatprep.mubr.msk.bf16.mxu1 %vm13031_vm0, %v13030_v1 }
0x26ea   :  { %11346 = vmatprep.subr.bf16.mxu1 %v13030_v1 }
0x26ed   :  { %11347 = vmatpush3.bf16.msra.mxu1 %v13135_v28 }
0x26ee   :  { %11360 = vmatprep.subr.bf16.mxu1 %v13030_v1 }
0x27a8   :  { %v1609_v20 = vpop.f32.mrf.mxu1 }
0x27a9   :  { %v13498_v21 = vadd.f32 %v13160_v38, %v1609_v20 }
0x27aa   :  { %v11334_v30 = vpop.f32.mrf.mxu1 }
0x27ab   :  { %v1615_v31 = vmul.f32 %v13498_v21, %v13472_v8 }
0x27ac   :  { %v1612_v32 = vpop.f32.mrf.mxu1 }
0x27ad   :  { %1617 = vrot.lane.b32.xlu0 %v1615_v31, %s13035_s15 }
0x27ae   :  { %v11335_v27 = vpop.f32.mrf.mxu1 }
0x281f   :  { %v1618_v33 = vpop.permute.xlu0 %1617 }
0x2820   :  { %v1620_v34 = vadd.f32 %v1618_v33, %v13446_v39 }
0x2822   :  { %v1621_v35 = vpack.c.bf16 %v1620_v34, %v1620_v34 }
0x2824   :  { %1623 = vrot.lane.b32.xlu1 %v1621_v35, %s13034_s25 }
0x2896   :  { %v1624_v28 = vpop.permute.xlu1 %1623 }
0x2897   :  { %11341 = vmatmul.mubr.msk.bf16.vlgmr.msra.gmra.mxu0 %vm49_vm1, %v1624_v28 }
0x2898   :  { %11353 = vmatpush3.bf16.msra.mxu0 %v13509_v36  ;;  %11356 = vmatprep.mubr.msk.bf16.mxu0 %vm13031_vm0, %v13030_v1 }
0x2899   :  { %11354 = vmatprep.subr.bf16.mxu0 %v13030_v1 }
0x289c   :  { %11355 = vmatpush3.bf16.msra.mxu0 %v13518_v42 }
0x289d   :  { %11368 = vmatprep.subr.bf16.mxu0 %v13030_v1 }
0x2957   :  { %v1662_v43 = vpop.f32.mrf.mxu0 }
0x2958   :  { %v1663_v47 = vadd.f32 %v13142_v29, %v1662_v43  ;;  %v13536_v29 = vld [vmem:[%s15811_s3 + $0x10] sm:$0xff]  }
0x2959   :  { %v11342_v13 = vpop.f32.mrf.mxu0 }
0x295a   :  { %12754 = vtanh.f32 %v1663_v47 }
0x295b   :  { %v1665_v26 = vpop.f32.mrf.mxu0 }
0x295d   :  { %v11343_v44 = vpop.f32.mrf.mxu0 }
0x2967   :  { %v12755_v45 = vpop.eup %12754 }
0x2968   :  { %v1669_v46 = vpack.c.bf16 %v12755_v45, %v12755_v45 }
0x296a   :  { %11349 = vmatmul.mubr.msk.bf16.vlgmr.msra.gmra.mxu1 %vm49_vm1, %v1669_v46 }
0x296b   :  { %11361 = vmatpush3.bf16.msra.mxu1 %v13527_v48  ;;  %11364 = vmatprep.mubr.msk.bf16.mxu1 %vm13031_vm0, %v13030_v1 }
0x296c   :  { %11362 = vmatprep.subr.bf16.mxu1 %v13030_v1 }
0x296f   :  { %11363 = vmatpush3.bf16.msra.mxu1 %v13536_v29 }
0x2970   :  { %11376 = vmatprep.subr.bf16.mxu1 %v13030_v1 }
0x2a2a   :  { %v1707_v49 = vpop.f32.mrf.mxu1 }
0x2a2b   :  { %v1708_v50 = vadd.f32 %v13160_v38, %v1707_v49 }
0x2a2c   :  { %v11350_v51 = vpop.f32.mrf.mxu1 }
0x2a2d   :  { %v1713_v52 = vmul.f32 %v13469_v7, %v1708_v50  ;;  %v1812_v5 = vadd.f32 %v1708_v50, %v13498_v21 }
0x2a2e   :  { %v1710_v54 = vpop.f32.mrf.mxu1 }
0x2a2f   :  { %1715 = vrot.lane.b32.xlu0 %v1713_v52, %s13035_s15  ;;  %v1813_v14 = vmul.f32 2.0, %v1812_v5 }
0x2a30   :  { %v11351_v41 = vpop.f32.mrf.mxu1 }
0x2aa1   :  { %v1716_v24 = vpop.permute.xlu0 %1715 }
0x2aa2   :  { %v1718_v55 = vadd.f32 %v1716_v24, %v13446_v39 }
0x2aa4   :  { %v1719_v57 = vpack.c.bf16 %v1718_v55, %v1718_v55 }
0x2aa6   :  { %1721 = vrot.lane.b32.xlu1 %v1719_v57, %s13034_s25 }
0x2b18   :  { %v1722_v58 = vpop.permute.xlu1 %1721 }
0x2b19   :  { %11357 = vmatmul.mubr.msk.bf16.vlgmr.msra.gmra.mxu0 %vm49_vm1, %v1722_v58 }
0x2b1a   :  { %11369 = vmatpush3.bf16.msra.mxu0 %v13509_v36  ;;  %11372 = vmatprep.mubr.msk.bf16.mxu0 %vm13031_vm0, %v13030_v1 }
0x2b1b   :  { %11370 = vmatprep.subr.bf16.mxu0 %v13030_v1 }
0x2b1e   :  { %11371 = vmatpush3.bf16.msra.mxu0 %v13518_v42 }
0x2b1f   :  { %11384 = vmatprep.subr.bf16.mxu0 %v13030_v1 }
0x2bd9   :  { %v1760_v38 = vpop.f32.mrf.mxu0 }
0x2bda   :  { %v1761_v60 = vadd.f32 %v13555_v59, %v1760_v38 }
0x2bdb   :  { %v11358_v19 = vpop.f32.mrf.mxu0 }
0x2bdc   :  { %12756 = vtanh.f32 %v1761_v60 }
0x2bdd   :  { %v1763_v61 = vpop.f32.mrf.mxu0 }
0x2bdf   :  { %v11359_v63 = vpop.f32.mrf.mxu0 }
0x2be9   :  { %v12757_v3 = vpop.eup %12756 }
0x2bea   :  { %v1767_v4 = vpack.c.bf16 %v12757_v3, %v12757_v3 }
0x2bec   :  { %11365 = vmatmul.mubr.msk.bf16.vlgmr.msra.gmra.mxu1 %vm49_vm1, %v1767_v4 }
0x2bed   :  { %11377 = vmatpush3.bf16.msra.mxu1 %v13527_v48  ;;  %11380 = vmatprep.mubr.msk.bf16.mxu1 %vm13031_vm0, %v13030_v1 }
0x2bee   :  { %11378 = vmatprep.subr.bf16.mxu1 %v13030_v1 }
0x2bf1   :  { %11379 = vmatpush3.bf16.msra.mxu1 %v13536_v29 }
0x2bf2   :  { %11392 = vmatprep.subr.bf16.mxu1 %v13030_v1 }
0x2cac   :  { %v1805_v6 = vpop.f32.mrf.mxu1 }
0x2cad   :  { %v1806_v11 = vadd.f32 %v13569_v9, %v1805_v6 }
0x2cae   :  { %v11366_v12 = vpop.f32.mrf.mxu1 }
0x2caf   :  { %v1811_v15 = vadd.f32 %v1806_v11, %v13475_v10 }
0x2cb0   :  { %v1808_v53 = vpop.f32.mrf.mxu1 }
0x2cb1   :  { %v1814_v62 = vadd.f32 %v1813_v14, %v1811_v15 }
0x2cb2   :  { %v11367_v16 = vpop.f32.mrf.mxu1 }
0x2cb3   :  { %v1815_v17 = vmul.f32 %v1814_v62, %v13574_v37 }
0x2cb5   :  { %1817 = vrot.lane.b32.xlu0 %v1815_v17, %s13035_s15 }
0x2d27   :  { %v1818_v18 = vpop.permute.xlu0 %1817 }
0x2d28   :  { %v13579_v22 = vadd.f32 %v1818_v18, %v13446_v39 }
0x2d2a   :  { %v1821_v0 = vpack.c.bf16 %v13579_v22, %v13579_v22 }
0x2d2c   :  { %1823 = vrot.lane.b32.xlu1 %v1821_v0, %s13034_s25 }
0x2d9e   :  { %v1824_v10 = vpop.permute.xlu1 %1823 }
0x2d9f   :  { %11373 = vmatmul.mubr.msk.bf16.vlgmr.msra.gmra.mxu0 %vm49_vm1, %v1824_v10 }
0x2da0   :  { %11385 = vmatpush3.bf16.msra.mxu0 %v13509_v36  ;;  %11388 = vmatprep.mubr.msk.bf16.mxu0 %vm13031_vm0, %v13030_v1 }
0x2da1   :  { %11386 = vmatprep.subr.bf16.mxu0 %v13030_v1 }
0x2da4   :  { %11387 = vmatpush3.bf16.msra.mxu0 %v13518_v42 }
0x2da5   :  { %11400 = vmatprep.subr.bf16.mxu0 %v13030_v1 }
0x2e5f   :  { %v1862_v39 = vpop.f32.mrf.mxu0 }
0x2e60   :  { %v1863_v2 = vadd.f32 %v13555_v59, %v1862_v39 }
0x2e61   :  { %v11374_v23 = vpop.f32.mrf.mxu0 }
0x2e62   :  { %12758 = vtanh.f32 %v1863_v2 }
0x2e63   :  { %v1865_v25 = vpop.f32.mrf.mxu0 }
0x2e65   :  { %v11375_v20 = vpop.f32.mrf.mxu0 }
0x2e6f   :  { %v12759_v21 = vpop.eup %12758 }
0x2e70   :  { %v1869_v30 = vpack.c.bf16 %v12759_v21, %v12759_v21 }
0x2e72   :  { %11381 = vmatmul.mubr.msk.bf16.vlgmr.msra.gmra.mxu1 %vm49_vm1, %v1869_v30 }
0x2e73   :  { %11393 = vmatpush3.bf16.msra.mxu1 %v13527_v48  ;;  %11396 = vmatprep.mubr.msk.bf16.mxu1 %vm13031_vm0, %v13030_v1 }
0x2e74   :  { %11394 = vmatprep.subr.bf16.mxu1 %v13030_v1 }
0x2e77   :  { %11395 = vmatpush3.bf16.msra.mxu1 %v13536_v29 }
0x2e78   :  { %11408 = vmatprep.subr.bf16.mxu1 %v13030_v1 }
0x2f32   :  { %v1907_v31 = vpop.f32.mrf.mxu1 }
0x2f33   :  { %v13600_v32 = vadd.f32 %v13569_v9, %v1907_v31 }
0x2f34   :  { %v11382_v27 = vpop.f32.mrf.mxu1 }
0x2f35   :  { %v1913_v33 = vmul.f32 %v13600_v32, %v13472_v8 }
0x2f36   :  { %v1910_v34 = vpop.f32.mrf.mxu1 }
0x2f37   :  { %1915 = vrot.lane.b32.xlu0 %v1913_v33, %s13035_s15 }
0x2f38   :  { %v11383_v35 = vpop.f32.mrf.mxu1 }
0x2fa9   :  { %v1916_v28 = vpop.permute.xlu0 %1915 }
0x2faa   :  { %v1918_v43 = vadd.f32 %v1916_v28, %v13579_v22 }
0x2fac   :  { %v1919_v47 = vpack.c.bf16 %v1918_v43, %v1918_v43 }
0x2fae   :  { %1921 = vrot.lane.b32.xlu1 %v1919_v47, %s13034_s25 }
0x3020   :  { %v1922_v13 = vpop.permute.xlu1 %1921 }
0x3021   :  { %11389 = vmatmul.mubr.msk.bf16.vlgmr.msra.gmra.mxu0 %vm49_vm1, %v1922_v13 }
0x3022   :  { %11401 = vmatpush3.bf16.msra.mxu0 %v13509_v36  ;;  %11404 = vmatprep.mubr.msk.bf16.mxu0 %vm13031_vm0, %v13030_v1 }
0x3023   :  { %11402 = vmatprep.subr.bf16.mxu0 %v13030_v1 }
0x3026   :  { %11403 = vmatpush3.bf16.msra.mxu0 %v13518_v42 }
0x3027   :  { %11416 = vmatprep.subr.bf16.mxu0 %v13030_v1 }
0x30e1   :  { %v1960_v26 = vpop.f32.mrf.mxu0 }
0x30e2   :  { %v1961_v44 = vadd.f32 %v13555_v59, %v1960_v26 }
0x30e3   :  { %v11390_v45 = vpop.f32.mrf.mxu0 }
0x30e4   :  { %12760 = vtanh.f32 %v1961_v44 }
0x30e5   :  { %v1963_v46 = vpop.f32.mrf.mxu0 }
0x30e7   :  { %v11391_v49 = vpop.f32.mrf.mxu0 }
0x30f1   :  { %v12761_v50 = vpop.eup %12760 }
0x30f2   :  { %v1967_v51 = vpack.c.bf16 %v12761_v50, %v12761_v50 }
0x30f4   :  { %11397 = vmatmul.mubr.msk.bf16.vlgmr.msra.gmra.mxu1 %vm49_vm1, %v1967_v51 }
0x30f5   :  { %11409 = vmatpush3.bf16.msra.mxu1 %v13527_v48  ;;  %11412 = vmatprep.mubr.msk.bf16.mxu1 %vm13031_vm0, %v13030_v1 }
0x30f6   :  { %11410 = vmatprep.subr.bf16.mxu1 %v13030_v1 }
0x30f9   :  { %11411 = vmatpush3.bf16.msra.mxu1 %v13536_v29 }
0x30fa   :  { %11424 = vmatprep.subr.bf16.mxu1 %v13030_v1 }
0x31b4   :  { %v2005_v52 = vpop.f32.mrf.mxu1 }
0x31b5   :  { %v13623_v54 = vadd.f32 %v13569_v9, %v2005_v52 }
0x31b6   :  { %v11398_v41 = vpop.f32.mrf.mxu1 }
0x31b7   :  { %v2011_v24 = vmul.f32 %v13623_v54, %v13472_v8 }
0x31b8   :  { %v2008_v55 = vpop.f32.mrf.mxu1 }
0x31b9   :  { %2013 = vrot.lane.b32.xlu0 %v2011_v24, %s13035_s15 }
0x31ba   :  { %v11399_v57 = vpop.f32.mrf.mxu1 }
0x322b   :  { %v2014_v58 = vpop.permute.xlu0 %2013 }
0x322c   :  { %v2016_v38 = vadd.f32 %v2014_v58, %v13579_v22 }
0x322e   :  { %v2017_v60 = vpack.c.bf16 %v2016_v38, %v2016_v38 }
0x3230   :  { %2019 = vrot.lane.b32.xlu1 %v2017_v60, %s13034_s25 }
0x32a2   :  { %v2020_v19 = vpop.permute.xlu1 %2019 }
0x32a3   :  { %11405 = vmatmul.mubr.msk.bf16.vlgmr.msra.gmra.mxu0 %vm49_vm1, %v2020_v19 }
0x32a4   :  { %11417 = vmatpush3.bf16.msra.mxu0 %v13509_v36  ;;  %11420 = vmatprep.mubr.msk.bf16.mxu0 %vm13031_vm0, %v13030_v1 }
0x32a5   :  { %11418 = vmatprep.subr.bf16.mxu0 %v13030_v1 }
0x32a8   :  { %11419 = vmatpush3.bf16.msra.mxu0 %v13518_v42 }
0x32a9   :  { %11432 = vmatprep.subr.bf16.mxu0 %v13030_v1 }
0x3363   :  { %v2058_v61 = vpop.f32.mrf.mxu0 }
0x3364   :  { %v2059_v63 = vadd.f32 %v13555_v59, %v2058_v61 }
0x3365   :  { %v11406_v3 = vpop.f32.mrf.mxu0 }
0x3366   :  { %12762 = vtanh.f32 %v2059_v63 }
0x3367   :  { %v2061_v4 = vpop.f32.mrf.mxu0 }
0x3369   :  { %v11407_v5 = vpop.f32.mrf.mxu0 }
0x3373   :  { %v12763_v6 = vpop.eup %12762 }
0x3374   :  { %v2065_v11 = vpack.c.bf16 %v12763_v6, %v12763_v6 }
0x3376   :  { %11413 = vmatmul.mubr.msk.bf16.vlgmr.msra.gmra.mxu1 %vm49_vm1, %v2065_v11 }
0x3377   :  { %11425 = vmatpush3.bf16.msra.mxu1 %v13527_v48  ;;  %11428 = vmatprep.mubr.msk.bf16.mxu1 %vm13031_vm0, %v13030_v1 }
0x3378   :  { %11426 = vmatprep.subr.bf16.mxu1 %v13030_v1 }
0x337b   :  { %11427 = vmatpush3.bf16.msra.mxu1 %v13536_v29 }
0x337c   :  { %11440 = vmatprep.subr.bf16.mxu1 %v13030_v1 }
0x3436   :  { %v2103_v12 = vpop.f32.mrf.mxu1 }
0x3437   :  { %v2104_v14 = vadd.f32 %v13569_v9, %v2103_v12 }
0x3438   :  { %v11414_v15 = vpop.f32.mrf.mxu1 }
0x3439   :  { %v2109_v53 = vmul.f32 %v13469_v7, %v2104_v14  ;;  %v2208_v31 = vadd.f32 %v2104_v14, %v13623_v54 }
0x343a   :  { %v2106_v62 = vpop.f32.mrf.mxu1 }
0x343b   :  { %2111 = vrot.lane.b32.xlu0 %v2109_v53, %s13035_s15  ;;  %v2209_v35 = vmul.f32 2.0, %v2208_v31 }
0x343c   :  { %v11415_v16 = vpop.f32.mrf.mxu1 }
0x34ad   :  { %v2112_v17 = vpop.permute.xlu0 %2111 }
0x34ae   :  { %v2114_v18 = vadd.f32 %v2112_v17, %v13579_v22 }
0x34b0   :  { %v2115_v0 = vpack.c.bf16 %v2114_v18, %v2114_v18 }
0x34b2   :  { %2117 = vrot.lane.b32.xlu1 %v2115_v0, %s13034_s25 }
0x3524   :  { %v2118_v10 = vpop.permute.xlu1 %2117 }
0x3525   :  { %11421 = vmatmul.mubr.msk.bf16.vlgmr.msra.gmra.mxu0 %vm49_vm1, %v2118_v10 }
0x3526   :  { %11433 = vmatpush3.bf16.msra.mxu0 %v13509_v36  ;;  %11436 = vmatprep.mubr.msk.bf16.mxu0 %vm13031_vm0, %v13030_v1 }
0x3527   :  { %11434 = vmatprep.subr.bf16.mxu0 %v13030_v1 }
0x352a   :  { %11435 = vmatpush3.bf16.msra.mxu0 %v13518_v42 }
0x352b   :  { %11448 = vmatprep.subr.bf16.mxu0 %v13030_v1 }
0x35e5   :  { %v2156_v39 = vpop.f32.mrf.mxu0 }
0x35e6   :  { %v2157_v2 = vadd.f32 %v13555_v59, %v2156_v39 }
0x35e7   :  { %v11422_v23 = vpop.f32.mrf.mxu0 }
0x35e8   :  { %12764 = vtanh.f32 %v2157_v2 }
0x35e9   :  { %v2159_v25 = vpop.f32.mrf.mxu0 }
0x35eb   :  { %v11423_v20 = vpop.f32.mrf.mxu0 }
0x35f5   :  { %v12765_v21 = vpop.eup %12764 }
0x35f6   :  { %v2163_v30 = vpack.c.bf16 %v12765_v21, %v12765_v21 }
0x35f8   :  { %11429 = vmatmul.mubr.msk.bf16.vlgmr.msra.gmra.mxu1 %vm49_vm1, %v2163_v30 }
0x35f9   :  { %11441 = vmatpush3.bf16.msra.mxu1 %v13527_v48  ;;  %11444 = vmatprep.mubr.msk.bf16.mxu1 %vm13031_vm0, %v13030_v1 }
0x35fa   :  { %11442 = vmatprep.subr.bf16.mxu1 %v13030_v1 }
0x35fd   :  { %11443 = vmatpush3.bf16.msra.mxu1 %v13536_v29 }
0x35fe   :  { %11456 = vmatprep.subr.bf16.mxu1 %v13030_v1 }
0x36b8   :  { %v2201_v27 = vpop.f32.mrf.mxu1 }
0x36b9   :  { %v2202_v33 = vadd.f32 %v13569_v9, %v2201_v27 }
0x36ba   :  { %v11430_v34 = vpop.f32.mrf.mxu1 }
0x36bb   :  { %v2207_v28 = vadd.f32 %v2202_v33, %v13600_v32 }
0x36bc   :  { %v2204_v43 = vpop.f32.mrf.mxu1 }
0x36bd   :  { %v2210_v47 = vadd.f32 %v2209_v35, %v2207_v28 }
0x36be   :  { %v11431_v13 = vpop.f32.mrf.mxu1 }
0x36bf   :  { %v2211_v26 = vmul.f32 %v2210_v47, %v13574_v37 }
0x36c1   :  { %2213 = vrot.lane.b32.xlu0 %v2211_v26, %s13035_s15 }
0x3733   :  { %v2214_v44 = vpop.permute.xlu0 %2213 }
0x3734   :  { %v13671_v45 = vadd.f32 %v2214_v44, %v13579_v22 }
0x3736   :  { %v2217_v46 = vpack.c.bf16 %v13671_v45, %v13671_v45 }
0x3738   :  { %2219 = vrot.lane.b32.xlu1 %v2217_v46, %s13034_s25 }
0x37aa   :  { %v2220_v49 = vpop.permute.xlu1 %2219 }
0x37ab   :  { %11437 = vmatmul.mubr.msk.bf16.vlgmr.msra.gmra.mxu0 %vm49_vm1, %v2220_v49  ;;  %v13746_v49 = vld [vmem:[%s15810_s2 + $0x8] sm:$0xff]  }
0x37ac   :  { %11449 = vmatpush3.bf16.msra.mxu0 %v13509_v36  ;;  %11452 = vmatprep.mubr.msk.bf16.mxu0 %vm13031_vm0, %v13030_v1 }
0x37ad   :  { %11450 = vmatprep.subr.bf16.mxu0 %v13030_v1 }
0x37b0   :  { %11451 = vmatpush3.bf16.msra.mxu0 %v13518_v42 }
0x37b1   :  { %11464 = vmatprep.subr.bf16.mxu0 %v13030_v1 }
0x386b   :  { %v2258_v22 = vpop.f32.mrf.mxu0 }
0x386c   :  { %v2259_v32 = vadd.f32 %v13555_v59, %v2258_v22 }
0x386d   :  { %v11438_v50 = vpop.f32.mrf.mxu0 }
0x386e   :  { %12766 = vtanh.f32 %v2259_v32 }
0x386f   :  { %v2261_v51 = vpop.f32.mrf.mxu0 }
0x3871   :  { %v11439_v52 = vpop.f32.mrf.mxu0 }
0x387b   :  { %v12767_v54 = vpop.eup %12766 }
0x387c   :  { %v2265_v41 = vpack.c.bf16 %v12767_v54, %v12767_v54 }
0x387e   :  { %11445 = vmatmul.mubr.msk.bf16.vlgmr.msra.gmra.mxu1 %vm49_vm1, %v2265_v41 }
0x387f   :  { %11457 = vmatpush3.bf16.msra.mxu1 %v13527_v48  ;;  %11460 = vmatprep.mubr.msk.bf16.mxu1 %vm13031_vm0, %v13030_v1 }
0x3880   :  { %11458 = vmatprep.subr.bf16.mxu1 %v13030_v1 }
0x3883   :  { %11459 = vmatpush3.bf16.msra.mxu1 %v13536_v29 }
0x3884   :  { %11472 = vmatprep.subr.bf16.mxu1 %v13030_v1 }
0x393e   :  { %v2303_v24 = vpop.f32.mrf.mxu1 }
0x393f   :  { %v13692_v55 = vadd.f32 %v13569_v9, %v2303_v24 }
0x3940   :  { %v11446_v57 = vpop.f32.mrf.mxu1 }
0x3941   :  { %v2309_v58 = vmul.f32 %v13692_v55, %v13472_v8 }
0x3942   :  { %v2306_v38 = vpop.f32.mrf.mxu1 }
0x3943   :  { %2311 = vrot.lane.b32.xlu0 %v2309_v58, %s13035_s15 }
0x3944   :  { %v11447_v60 = vpop.f32.mrf.mxu1 }
0x39b5   :  { %v2312_v19 = vpop.permute.xlu0 %2311 }
0x39b6   :  { %v2314_v61 = vadd.f32 %v2312_v19, %v13671_v45 }
0x39b8   :  { %v2315_v63 = vpack.c.bf16 %v2314_v61, %v2314_v61 }
0x39ba   :  { %2317 = vrot.lane.b32.xlu1 %v2315_v63, %s13034_s25 }
0x3a2c   :  { %v2318_v3 = vpop.permute.xlu1 %2317 }
0x3a2d   :  { %11453 = vmatmul.mubr.msk.bf16.vlgmr.msra.gmra.mxu0 %vm49_vm1, %v2318_v3 }
0x3a2e   :  { %11465 = vmatpush3.bf16.msra.mxu0 %v13509_v36  ;;  %11468 = vmatprep.mubr.msk.bf16.mxu0 %vm13031_vm0, %v13030_v1 }
0x3a2f   :  { %11466 = vmatprep.subr.bf16.mxu0 %v13030_v1 }
0x3a32   :  { %11467 = vmatpush3.bf16.msra.mxu0 %v13518_v42 }
0x3a33   :  { %11480 = vmatprep.subr.bf16.mxu0 %v13030_v1 }
0x3aed   :  { %v2356_v4 = vpop.f32.mrf.mxu0 }
0x3aee   :  { %v2357_v5 = vadd.f32 %v13555_v59, %v2356_v4 }
0x3aef   :  { %v11454_v6 = vpop.f32.mrf.mxu0 }
0x3af0   :  { %12768 = vtanh.f32 %v2357_v5 }
0x3af1   :  { %v2359_v11 = vpop.f32.mrf.mxu0 }
0x3af3   :  { %v11455_v12 = vpop.f32.mrf.mxu0 }
0x3afd   :  { %v12769_v14 = vpop.eup %12768 }
0x3afe   :  { %v2363_v15 = vpack.c.bf16 %v12769_v14, %v12769_v14 }
0x3b00   :  { %11461 = vmatmul.mubr.msk.bf16.vlgmr.msra.gmra.mxu1 %vm49_vm1, %v2363_v15 }
0x3b01   :  { %11473 = vmatpush3.bf16.msra.mxu1 %v13527_v48  ;;  %11476 = vmatprep.mubr.msk.bf16.mxu1 %vm13031_vm0, %v13030_v1 }
0x3b02   :  { %11474 = vmatprep.subr.bf16.mxu1 %v13030_v1 }
0x3b05   :  { %11475 = vmatpush3.bf16.msra.mxu1 %v13536_v29 }
0x3b06   :  { %11488 = vmatprep.subr.bf16.mxu1 %v13030_v1 }
0x3bc0   :  { %v2401_v53 = vpop.f32.mrf.mxu1 }
0x3bc1   :  { %v13715_v62 = vadd.f32 %v13569_v9, %v2401_v53 }
0x3bc2   :  { %v11462_v16 = vpop.f32.mrf.mxu1 }
0x3bc3   :  { %v2407_v17 = vmul.f32 %v13715_v62, %v13472_v8 }
0x3bc4   :  { %v2404_v18 = vpop.f32.mrf.mxu1 }
0x3bc5   :  { %2409 = vrot.lane.b32.xlu0 %v2407_v17, %s13035_s15 }
0x3bc6   :  { %v11463_v0 = vpop.f32.mrf.mxu1 }
0x3c37   :  { %v2410_v10 = vpop.permute.xlu0 %2409 }
0x3c38   :  { %v2412_v39 = vadd.f32 %v2410_v10, %v13671_v45 }
0x3c3a   :  { %v2413_v2 = vpack.c.bf16 %v2412_v39, %v2412_v39 }
0x3c3c   :  { %2415 = vrot.lane.b32.xlu1 %v2413_v2, %s13034_s25 }
0x3cae   :  { %v2416_v23 = vpop.permute.xlu1 %2415 }
0x3caf   :  { %11469 = vmatmul.mubr.msk.bf16.vlgmr.msra.gmra.mxu0 %vm49_vm1, %v2416_v23 }
0x3cb0   :  { %11481 = vmatpush3.bf16.msra.mxu0 %v13509_v36  ;;  %11484 = vmatprep.mubr.msk.bf16.mxu0 %vm13031_vm0, %v13030_v1 }
0x3cb1   :  { %11482 = vmatprep.subr.bf16.mxu0 %v13030_v1 }
0x3cb4   :  { %11483 = vmatpush3.bf16.msra.mxu0 %v13518_v42 }
0x3cb5   :  { %11496 = vmatprep.subr.bf16.mxu0 %v13030_v1 }
0x3d6f   :  { %v2454_v8 = vpop.f32.mrf.mxu0 }
0x3d70   :  { %v2455_v25 = vadd.f32 %v13555_v59, %v2454_v8 }
0x3d71   :  { %v11470_v20 = vpop.f32.mrf.mxu0 }
0x3d72   :  { %12770 = vtanh.f32 %v2455_v25 }
0x3d73   :  { %v2457_v21 = vpop.f32.mrf.mxu0 }
0x3d75   :  { %v11471_v30 = vpop.f32.mrf.mxu0 }
0x3d7f   :  { %v12771_v31 = vpop.eup %12770 }
0x3d80   :  { %v2461_v27 = vpack.c.bf16 %v12771_v31, %v12771_v31 }
0x3d82   :  { %11477 = vmatmul.mubr.msk.bf16.vlgmr.msra.gmra.mxu1 %vm49_vm1, %v2461_v27 }
0x3d83   :  { %11489 = vmatpush3.bf16.msra.mxu1 %v13527_v48  ;;  %11492 = vmatprep.mubr.msk.bf16.mxu1 %vm13031_vm0, %v13030_v1 }
0x3d84   :  { %11490 = vmatprep.subr.bf16.mxu1 %v13030_v1 }
0x3d87   :  { %11491 = vmatpush3.bf16.msra.mxu1 %v13536_v29 }
0x3d88   :  { %11504 = vmatprep.subr.bf16.mxu1 %v13030_v1 }
0x3e42   :  { %v2499_v33 = vpop.f32.mrf.mxu1 }
0x3e43   :  { %v2500_v34 = vadd.f32 %v13569_v9, %v2499_v33 }
0x3e44   :  { %v11478_v35 = vpop.f32.mrf.mxu1 }
0x3e45   :  { %v2505_v28 = vmul.f32 %v13469_v7, %v2500_v34  ;;  %v13755_v7 = vld [vmem:[%s15810_s2] sm:$0xff]   ;;  %v2604_v24 = vadd.f32 %v2500_v34, %v13715_v62 }
0x3e46   :  { %v2502_v43 = vpop.f32.mrf.mxu1 }
0x3e47   :  { %2507 = vrot.lane.b32.xlu0 %v2505_v28, %s13035_s15  ;;  %v2605_v60 = vmul.f32 2.0, %v2604_v24 }
0x3e48   :  { %v11479_v47 = vpop.f32.mrf.mxu1 }
0x3e49   :  { %v13818_v47 = vld [vmem:[%s15809_s1 + $0x4] sm:$0x3] }
0x3eb9   :  { %v2508_v13 = vpop.permute.xlu0 %2507 }
0x3eba   :  { %v2510_v26 = vadd.f32 %v2508_v13, %v13671_v45  ;;  %v13821_v13 = vmul.f32 0.5, %v13818_v47 }
0x3ebc   :  { %v2511_v44 = vpack.c.bf16 %v2510_v26, %v2510_v26 }
0x3ebe   :  { %2513 = vrot.lane.b32.xlu1 %v2511_v44, %s13034_s25 }
0x3f30   :  { %v2514_v46 = vpop.permute.xlu1 %2513 }
0x3f31   :  { %11485 = vmatmul.mubr.msk.bf16.vlgmr.msra.gmra.mxu0 %vm49_vm1, %v2514_v46 }
0x3f32   :  { %11497 = vmatpush3.bf16.msra.mxu0 %v13746_v49  ;;  %11500 = vmatprep.mubr.msk.bf16.mxu0 %vm13031_vm0, %v13030_v1 }
0x3f33   :  { %11498 = vmatprep.subr.bf16.mxu0 %v13030_v1 }
0x3f36   :  { %11499 = vmatpush3.bf16.msra.mxu0 %v13755_v7 }
0x3f37   :  { %11512 = vmatprep.subr.bf16.mxu0 %v13030_v1 }
0x3ff1   :  { %v2552_v22 = vpop.f32.mrf.mxu0 }
0x3ff2   :  { %v2553_v32 = vadd.f32 %v13555_v59, %v2552_v22 }
0x3ff3   :  { %v11486_v50 = vpop.f32.mrf.mxu0 }
0x3ff4   :  { %12772 = vtanh.f32 %v2553_v32 }
0x3ff5   :  { %v2555_v51 = vpop.f32.mrf.mxu0 }
0x3ff7   :  { %v11487_v52 = vpop.f32.mrf.mxu0 }
0x4001   :  { %v12773_v54 = vpop.eup %12772 }
0x4002   :  { %v2559_v41 = vpack.c.bf16 %v12773_v54, %v12773_v54 }
0x4004   :  { %11493 = vmatmul.mubr.msk.bf16.vlgmr.msra.gmra.mxu1 %vm49_vm1, %v2559_v41 }
0x4005   :  { %11505 = vmatpush3.bf16.msra.mxu1 %v13509_v36  ;;  %11508 = vmatprep.mubr.msk.bf16.mxu1 %vm13031_vm0, %v13030_v1 }
0x4006   :  { %11506 = vmatprep.subr.bf16.mxu1 %v13030_v1 }
0x4009   :  { %11507 = vmatpush3.bf16.msra.mxu1 %v13518_v42 }
0x400a   :  { %11520 = vmatprep.subr.bf16.mxu1 %v13030_v1 }
0x40c4   :  { %v2597_v57 = vpop.f32.mrf.mxu1 }
0x40c5   :  { %v2598_v58 = vadd.f32 %v13569_v9, %v2597_v57 }
0x40c6   :  { %v11494_v38 = vpop.f32.mrf.mxu1 }
0x40c7   :  { %v2603_v19 = vadd.f32 %v2598_v58, %v13692_v55 }
0x40c8   :  { %v2600_v61 = vpop.f32.mrf.mxu1 }
0x40c9   :  { %v2606_v63 = vadd.f32 %v2605_v60, %v2603_v19 }
0x40ca   :  { %v11495_v3 = vpop.f32.mrf.mxu1 }
0x40cb   :  { %v2607_v4 = vmul.f32 %v2606_v63, %v13574_v37  ;;  %v10328_v37 = vld [vmem:[%s15808_s0 + $0x4] sm:$0x3] }
0x40cd   :  { %2609 = vrot.lane.b32.xlu0 %v2607_v4, %s13035_s15 }
0x413f   :  { %v2610_v5 = vpop.permute.xlu0 %2609 }
0x4140   :  { %v13773_v6 = vadd.f32 %v2610_v5, %v13671_v45 }
0x4142   :  { %v2621_v11 = vpack.c.bf16 %v13773_v6, %v13773_v6 }
0x4144   :  { %2623 = vrot.lane.b32.xlu1 %v2621_v11, %s13034_s25 }
0x41b6   :  { %v2624_v12 = vpop.permute.xlu1 %2623 }
0x41b7   :  { %11501 = vmatmul.mubr.msk.bf16.vlgmr.msra.gmra.mxu0 %vm49_vm1, %v2624_v12 }
0x41b8   :  { %11513 = vmatpush3.bf16.msra.mxu0 %v13527_v48  ;;  %11516 = vmatprep.mubr.msk.bf16.mxu0 %vm13031_vm0, %v13030_v1 }
0x41b9   :  { %11514 = vmatprep.subr.bf16.mxu0 %v13030_v1 }
0x41bc   :  { %11515 = vmatpush3.bf16.msra.mxu0 %v13536_v29 }
0x41bd   :  { %11528 = vmatprep.subr.bf16.mxu0 %v13030_v1 }
0x4277   :  { %v2662_v45 = vpop.f32.mrf.mxu0 }
0x4278   :  { %v2668_v55 = vadd.f32 %v10328_v37, %v2662_v45 }
0x4279   :  { %v11502_v14 = vpop.f32.mrf.mxu0 }
0x427a   :  { %12774 = vtanh.f32 %v2668_v55  ;;  %v10330_v16 = vmul.f32 -1.442695, %v2668_v55 }
0x427b   :  { %v2665_v15 = vpop.f32.mrf.mxu0 }
0x427c   :  { %12776 = vpow2.f32 %v10330_v16 }
0x427d   :  { %v11503_v53 = vpop.f32.mrf.mxu0 }
0x4287   :  { %v12775_v62 = vpop.eup %12774 }
0x4288   :  { %2678 = vrot.lane.b32.xlu0 %v12775_v62, %s13033_s24 }
0x4289   :  { %v12777_v17 = vpop.eup %12776 }
0x428a   :  { %v2672_v18 = vadd.f32 1.0, %v12777_v17 }
0x428c   :  { %12778 = vrcp.f32 %v2672_v18 }
0x4299   :  { %v12779_v0 = vpop.eup %12778 }
0x429a   :  { %v2676_v2 = vmul.f32 %v12779_v0, %v13442_v56 }
0x42fa   :  { %v2679_v10 = vpop.permute.xlu0 %2678 }
0x42fb   :  { %v2681_v39 = vmul.f32 %v12779_v0, %v2679_v10 }
0x42fd   :  { %2683 = vrot.lane.b32.xlu1 %v2681_v39, %s13034_s25 }
0x436f   :  { %v2684_v23 = vpop.permute.xlu1 %2683 }
0x4370   :  { %v13791_v8 = vadd.f32 %v2684_v23, %v2676_v2 }
0x4372   :  { %12780 = vtanh.f32 %v13791_v8 }
0x437f   :  { %v12781_v25 = vpop.eup %12780 }
0x4380   :  { %2689 = vrot.lane.b32.xlu0 %v12781_v25, %s13033_s24 }
0x43f2   :  { %v2690_v20 = vpop.permute.xlu0 %2689 }
0x43f3   :  { %v13795_v21 = vmul.f32 %v12779_v0, %v2690_v20 }
0x43f5   :  { %v2697_v30 = vpack.c.bf16 %v13795_v21, %v13795_v21 }
0x43f7   :  { %2699 = vrot.lane.b32.xlu1 %v2697_v30, %s13034_s25 }
0x4469   :  { %v2700_v31 = vpop.permute.xlu1 %2699 }
0x446a   :  { %11509 = vmatmul.mubr.msk.bf16.vlgmr.msra.gmra.mxu1 %vm49_vm1, %v2700_v31 }
0x446b   :  { %11521 = vmatpush3.bf16.msra.mxu1 %v13509_v36  ;;  %11524 = vmatprep.mubr.msk.bf16.mxu1 %vm13031_vm0, %v13030_v1 }
0x446c   :  { %11522 = vmatprep.subr.bf16.mxu1 %v13030_v1 }
0x446f   :  { %11523 = vmatpush3.bf16.msra.mxu1 %v13518_v42 }
0x4470   :  { %11536 = vmatprep.subr.bf16.mxu1 %v13030_v1 }
0x452a   :  { %v2738_v56 = vpop.f32.mrf.mxu1 }
0x452b   :  { %v2739_v27 = vadd.f32 %v13555_v59, %v2738_v56 }
0x452c   :  { %v11510_v33 = vpop.f32.mrf.mxu1 }
0x452d   :  { %12782 = vtanh.f32 %v2739_v27 }
0x452e   :  { %v2741_v34 = vpop.f32.mrf.mxu1 }
0x4530   :  { %v11511_v35 = vpop.f32.mrf.mxu1 }
0x453a   :  { %v12783_v28 = vpop.eup %12782 }
0x453b   :  { %v2745_v43 = vpack.c.bf16 %v12783_v28, %v12783_v28 }
0x453d   :  { %11517 = vmatmul.mubr.msk.bf16.vlgmr.msra.gmra.mxu0 %vm49_vm1, %v2745_v43 }
0x453e   :  { %11529 = vmatpush3.bf16.msra.mxu0 %v13527_v48  ;;  %11532 = vmatprep.mubr.msk.bf16.mxu0 %vm13031_vm0, %v13030_v1 }
0x453f   :  { %11530 = vmatprep.subr.bf16.mxu0 %v13030_v1 }
0x4542   :  { %11531 = vmatpush3.bf16.msra.mxu0 %v13536_v29 }
0x4543   :  { %11544 = vmatprep.subr.bf16.mxu0 %v13030_v1 }
0x45fd   :  { %v2783_v26 = vpop.f32.mrf.mxu0 }
0x45fe   :  { %v13824_v44 = vadd.f32 %v13569_v9, %v2783_v26 }
0x45ff   :  { %v11518_v46 = vpop.f32.mrf.mxu0 }
0x4600   :  { %v2789_v22 = vmul.f32 %v13824_v44, %v13821_v13 }
0x4601   :  { %v2786_v32 = vpop.f32.mrf.mxu0 }
0x4602   :  { %2791 = vrot.lane.b32.xlu0 %v2789_v22, %s13035_s15 }
0x4603   :  { %v11519_v50 = vpop.f32.mrf.mxu0 }
0x4674   :  { %v2792_v51 = vpop.permute.xlu0 %2791 }
0x4675   :  { %v2794_v52 = vadd.f32 %v2792_v51, %v13795_v21 }
0x4677   :  { %v2795_v54 = vpack.c.bf16 %v2794_v52, %v2794_v52 }
0x4679   :  { %2797 = vrot.lane.b32.xlu1 %v2795_v54, %s13034_s25 }
0x46eb   :  { %v2798_v41 = vpop.permute.xlu1 %2797 }
0x46ec   :  { %11525 = vmatmul.mubr.msk.bf16.vlgmr.msra.gmra.mxu1 %vm49_vm1, %v2798_v41  ;;  %v13893_v41 = vmul.f32 0.16666667, %v13818_v47 }
0x46ed   :  { %11537 = vmatpush3.bf16.msra.mxu1 %v13509_v36  ;;  %11540 = vmatprep.mubr.msk.bf16.mxu1 %vm13031_vm0, %v13030_v1 }
0x46ee   :  { %11538 = vmatprep.subr.bf16.mxu1 %v13030_v1 }
0x46f1   :  { %11539 = vmatpush3.bf16.msra.mxu1 %v13518_v42 }
0x46f2   :  { %11552 = vmatprep.subr.bf16.mxu1 %v13030_v1 }
0x47ac   :  { %v2836_v24 = vpop.f32.mrf.mxu1 }
0x47ad   :  { %v2837_v57 = vadd.f32 %v13555_v59, %v2836_v24 }
0x47ae   :  { %v11526_v58 = vpop.f32.mrf.mxu1 }
0x47af   :  { %12784 = vtanh.f32 %v2837_v57 }
0x47b0   :  { %v2839_v38 = vpop.f32.mrf.mxu1 }
0x47b2   :  { %v11527_v60 = vpop.f32.mrf.mxu1 }
0x47bc   :  { %v12785_v19 = vpop.eup %12784 }
0x47bd   :  { %v2843_v61 = vpack.c.bf16 %v12785_v19, %v12785_v19 }
0x47bf   :  { %11533 = vmatmul.mubr.msk.bf16.vlgmr.msra.gmra.mxu0 %vm49_vm1, %v2843_v61 }
0x47c0   :  { %11545 = vmatpush3.bf16.msra.mxu0 %v13527_v48  ;;  %11548 = vmatprep.mubr.msk.bf16.mxu0 %vm13031_vm0, %v13030_v1 }
0x47c1   :  { %11546 = vmatprep.subr.bf16.mxu0 %v13030_v1 }
0x47c4   :  { %11547 = vmatpush3.bf16.msra.mxu0 %v13536_v29 }
0x47c5   :  { %11560 = vmatprep.subr.bf16.mxu0 %v13030_v1 }
0x487f   :  { %v2881_v63 = vpop.f32.mrf.mxu0 }
0x4880   :  { %v13847_v3 = vadd.f32 %v13569_v9, %v2881_v63 }
0x4881   :  { %v11534_v4 = vpop.f32.mrf.mxu0 }
0x4882   :  { %v2887_v5 = vmul.f32 %v13847_v3, %v13821_v13 }
0x4883   :  { %v2884_v11 = vpop.f32.mrf.mxu0 }
0x4884   :  { %2889 = vrot.lane.b32.xlu0 %v2887_v5, %s13035_s15 }
0x4885   :  { %v11535_v12 = vpop.f32.mrf.mxu0 }
0x48f6   :  { %v2890_v37 = vpop.permute.xlu0 %2889 }
0x48f7   :  { %v2892_v45 = vadd.f32 %v2890_v37, %v13795_v21 }
0x48f9   :  { %v2893_v55 = vpack.c.bf16 %v2892_v45, %v2892_v45 }
0x48fb   :  { %2895 = vrot.lane.b32.xlu1 %v2893_v55, %s13034_s25 }
0x496d   :  { %v2896_v14 = vpop.permute.xlu1 %2895 }
0x496e   :  { %11541 = vmatmul.mubr.msk.bf16.vlgmr.msra.gmra.mxu1 %vm49_vm1, %v2896_v14 }
0x496f   :  { %11553 = vmatpush3.bf16.msra.mxu1 %v13509_v36  ;;  %11556 = vmatprep.mubr.msk.bf16.mxu1 %vm13031_vm0, %v13030_v1 }
0x4970   :  { %11554 = vmatprep.subr.bf16.mxu1 %v13030_v1 }
0x4973   :  { %11555 = vmatpush3.bf16.msra.mxu1 %v13518_v42 }
0x4974   :  { %11568 = vmatprep.subr.bf16.mxu1 %v13030_v1 }
0x4a2e   :  { %v2934_v15 = vpop.f32.mrf.mxu1 }
0x4a2f   :  { %v2935_v53 = vadd.f32 %v13555_v59, %v2934_v15 }
0x4a30   :  { %v11542_v62 = vpop.f32.mrf.mxu1 }
0x4a31   :  { %12786 = vtanh.f32 %v2935_v53  ;;  %v13930_v62 = vld [vmem:[%s15811_s3 + $0x8] sm:$0xff]  }
0x4a32   :  { %v2937_v16 = vpop.f32.mrf.mxu1 }
0x4a33   :  { %v13939_v16 = vld [vmem:[%s15811_s3] sm:$0xff]  }
0x4a34   :  { %v11543_v17 = vpop.f32.mrf.mxu1 }
0x4a3e   :  { %v12787_v18 = vpop.eup %12786 }
0x4a3f   :  { %v2941_v0 = vpack.c.bf16 %v12787_v18, %v12787_v18 }
0x4a41   :  { %11549 = vmatmul.mubr.msk.bf16.vlgmr.msra.gmra.mxu0 %vm49_vm1, %v2941_v0 }
0x4a42   :  { %11561 = vmatpush3.bf16.msra.mxu0 %v13527_v48  ;;  %11564 = vmatprep.mubr.msk.bf16.mxu0 %vm13031_vm0, %v13030_v1 }
0x4a43   :  { %11562 = vmatprep.subr.bf16.mxu0 %v13030_v1 }
0x4a46   :  { %11563 = vmatpush3.bf16.msra.mxu0 %v13536_v29 }
0x4a47   :  { %11576 = vmatprep.subr.bf16.mxu0 %v13030_v1 }
0x4b01   :  { %v2979_v10 = vpop.f32.mrf.mxu0 }
0x4b02   :  { %v2980_v39 = vadd.f32 %v13569_v9, %v2979_v10 }
0x4b03   :  { %v11550_v2 = vpop.f32.mrf.mxu0 }
0x4b04   :  { %v2985_v23 = vmul.f32 %v13818_v47, %v2980_v39  ;;  %v3084_v22 = vadd.f32 %v2980_v39, %v13847_v3 }
0x4b05   :  { %v2982_v25 = vpop.f32.mrf.mxu0 }
0x4b06   :  { %2987 = vrot.lane.b32.xlu0 %v2985_v23, %s13035_s15  ;;  %v3085_v52 = vmul.f32 2.0, %v3084_v22  ;;  %v13948_v25 = vld [vmem:[%s15811_s3 + $0x18] sm:$0xff]  }
0x4b07   :  { %v11551_v20 = vpop.f32.mrf.mxu0 }
0x4b78   :  { %v2988_v30 = vpop.permute.xlu0 %2987 }
0x4b79   :  { %v2990_v31 = vadd.f32 %v2988_v30, %v13795_v21 }
0x4b7b   :  { %v2991_v56 = vpack.c.bf16 %v2990_v31, %v2990_v31 }
0x4b7d   :  { %2993 = vrot.lane.b32.xlu1 %v2991_v56, %s13034_s25 }
0x4bef   :  { %v2994_v27 = vpop.permute.xlu1 %2993 }
0x4bf0   :  { %11557 = vmatmul.mubr.msk.bf16.vlgmr.msra.gmra.mxu1 %vm49_vm1, %v2994_v27 }
0x4bf1   :  { %11569 = vmatpush3.bf16.msra.mxu1 %v13509_v36  ;;  %11572 = vmatprep.mubr.msk.bf16.mxu1 %vm13031_vm0, %v13030_v1 }
0x4bf2   :  { %11570 = vmatprep.subr.bf16.mxu1 %v13030_v1 }
0x4bf5   :  { %11571 = vmatpush3.bf16.msra.mxu1 %v13518_v42 }
0x4bf6   :  { %11584 = vmatprep.subr.bf16.mxu1 %v13030_v1 }
0x4cb0   :  { %v3032_v33 = vpop.f32.mrf.mxu1 }
0x4cb1   :  { %v3033_v34 = vadd.f32 %v13555_v59, %v3032_v33 }
0x4cb2   :  { %v11558_v35 = vpop.f32.mrf.mxu1 }
0x4cb3   :  { %12788 = vtanh.f32 %v3033_v34 }
0x4cb4   :  { %v3035_v28 = vpop.f32.mrf.mxu1 }
0x4cb6   :  { %v11559_v43 = vpop.f32.mrf.mxu1 }
0x4cc0   :  { %v12789_v26 = vpop.eup %12788 }
0x4cc1   :  { %v3039_v46 = vpack.c.bf16 %v12789_v26, %v12789_v26  ;;  %v13979_v26 = vld [vmem:[%s15812_s4] ss:$0 sm:$0xff] }
0x4cc3   :  { %11565 = vmatmul.mubr.msk.bf16.vlgmr.msra.gmra.mxu0 %vm49_vm1, %v3039_v46 }
0x4cc4   :  { %11577 = vmatpush3.bf16.msra.mxu0 %v13527_v48  ;;  %11580 = vmatprep.mubr.msk.bf16.mxu0 %vm13031_vm0, %v13030_v1 }
0x4cc5   :  { %11578 = vmatprep.subr.bf16.mxu0 %v13030_v1 }
0x4cc8   :  { %11579 = vmatpush3.bf16.msra.mxu0 %v13536_v29 }
0x4cc9   :  { %11592 = vmatprep.subr.bf16.mxu0 %v13030_v1 }
0x4d83   :  { %v3077_v32 = vpop.f32.mrf.mxu0 }
0x4d84   :  { %v3078_v50 = vadd.f32 %v13569_v9, %v3077_v32 }
0x4d85   :  { %v11566_v51 = vpop.f32.mrf.mxu0 }
0x4d86   :  { %v3083_v54 = vadd.f32 %v3078_v50, %v13824_v44 }
0x4d87   :  { %v3080_v24 = vpop.f32.mrf.mxu0 }
0x4d88   :  { %v3086_v57 = vadd.f32 %v3085_v52, %v3083_v54  ;;  %v13992_v24 = vld [vmem:[%s15812_s4 + $0x1] ss:$0 sm:$0xff] }
0x4d89   :  { %v11567_v58 = vpop.f32.mrf.mxu0 }
0x4d8a   :  { %v3087_v38 = vmul.f32 %v3086_v57, %v13893_v41 }
0x4d8c   :  { %3089 = vrot.lane.b32.xlu0 %v3087_v38, %s13035_s15 }
0x4dfe   :  { %v3090_v60 = vpop.permute.xlu0 %3089 }
0x4dff   :  { %v13898_v19 = vadd.f32 %v3090_v60, %v13795_v21 }
0x4e01   :  { %v3093_v61 = vpack.c.bf16 %v13898_v19, %v13898_v19 }
0x4e03   :  { %3095 = vrot.lane.b32.xlu1 %v3093_v61, %s13034_s25 }
0x4e75   :  { %v3096_v44 = vpop.permute.xlu1 %3095 }
0x4e76   :  { %11573 = vmatmul.mubr.msk.bf16.vlgmr.msra.gmra.mxu1 %vm49_vm1, %v3096_v44 }
0x4e77   :  { %11585 = vmatpush3.bf16.msra.mxu1 %v13509_v36  ;;  %11588 = vmatprep.mubr.msk.bf16.mxu1 %vm13031_vm0, %v13030_v1 }
0x4e78   :  { %11586 = vmatprep.subr.bf16.mxu1 %v13030_v1 }
0x4e7b   :  { %11587 = vmatpush3.bf16.msra.mxu1 %v13518_v42 }
0x4e7c   :  { %11600 = vmatprep.subr.bf16.mxu1 %v13030_v1 }
0x4f36   :  { %v3134_v21 = vpop.f32.mrf.mxu1 }
0x4f37   :  { %v3135_v63 = vadd.f32 %v13555_v59, %v3134_v21 }
0x4f38   :  { %v11574_v3 = vpop.f32.mrf.mxu1 }
0x4f39   :  { %12790 = vtanh.f32 %v3135_v63 }
0x4f3a   :  { %v3137_v4 = vpop.f32.mrf.mxu1 }
0x4f3c   :  { %v11575_v5 = vpop.f32.mrf.mxu1 }
0x4f46   :  { %v12791_v11 = vpop.eup %12790 }
0x4f47   :  { %v3141_v12 = vpack.c.bf16 %v12791_v11, %v12791_v11 }
0x4f49   :  { %11581 = vmatmul.mubr.msk.bf16.vlgmr.msra.gmra.mxu0 %vm49_vm1, %v3141_v12 }
0x4f4a   :  { %11593 = vmatpush3.bf16.msra.mxu0 %v13527_v48  ;;  %11596 = vmatprep.mubr.msk.bf16.mxu0 %vm13031_vm0, %v13030_v1 }
0x4f4b   :  { %11594 = vmatprep.subr.bf16.mxu0 %v13030_v1 }
0x4f4e   :  { %11595 = vmatpush3.bf16.msra.mxu0 %v13536_v29 }
0x4f4f   :  { %11608 = vmatprep.subr.bf16.mxu0 %v13030_v1 }
0x5009   :  { %v3179_v36 = vpop.f32.mrf.mxu0 }
0x500a   :  { %v13919_v42 = vadd.f32 %v13569_v9, %v3179_v36 }
0x500b   :  { %v11582_v37 = vpop.f32.mrf.mxu0 }
0x500c   :  { %v3185_v45 = vmul.f32 %v13919_v42, %v13821_v13 }
0x500d   :  { %v3182_v55 = vpop.f32.mrf.mxu0 }
0x500e   :  { %3187 = vrot.lane.b32.xlu0 %v3185_v45, %s13035_s15 }
0x500f   :  { %v11583_v48 = vpop.f32.mrf.mxu0 }
0x5080   :  { %v3188_v14 = vpop.permute.xlu0 %3187 }
0x5081   :  { %v3190_v15 = vadd.f32 %v3188_v14, %v13898_v19 }
0x5083   :  { %v3191_v53 = vpack.c.bf16 %v3190_v15, %v3190_v15 }
0x5085   :  { %3193 = vrot.lane.b32.xlu1 %v3191_v53, %s13034_s25 }
0x50f7   :  { %v3194_v29 = vpop.permute.xlu1 %3193 }
0x50f8   :  { %11589 = vmatmul.mubr.msk.bf16.vlgmr.msra.gmra.mxu1 %vm49_vm1, %v3194_v29 }
0x50f9   :  { %11601 = vmatpush3.bf16.msra.mxu1 %v13930_v62  ;;  %11604 = vmatprep.mubr.msk.bf16.mxu1 %vm13031_vm0, %v13030_v1 }
0x50fa   :  { %11602 = vmatprep.subr.bf16.mxu1 %v13030_v1 }
0x50fd   :  { %11603 = vmatpush3.bf16.msra.mxu1 %v13939_v16 }
0x50fe   :  { %11616 = vmatprep.subr.bf16.mxu1 %v13030_v1 }
0x51b8   :  { %v3232_v17 = vpop.f32.mrf.mxu1 }
0x51b9   :  { %v3233_v18 = vadd.f32 %v13555_v59, %v3232_v17  ;;  %v13957_v59 = vld [vmem:[%s15811_s3 + $0x10] sm:$0xff]  }
0x51ba   :  { %v11590_v0 = vpop.f32.mrf.mxu1 }
0x51bb   :  { %12792 = vtanh.f32 %v3233_v18 }
0x51bc   :  { %v3235_v10 = vpop.f32.mrf.mxu1 }
0x51be   :  { %v11591_v39 = vpop.f32.mrf.mxu1 }
0x51c8   :  { %v12793_v2 = vpop.eup %12792 }
0x51c9   :  { %v3239_v23 = vpack.c.bf16 %v12793_v2, %v12793_v2 }
0x51cb   :  { %11597 = vmatmul.mubr.msk.bf16.vlgmr.msra.gmra.mxu0 %vm49_vm1, %v3239_v23 }
0x51cc   :  { %11609 = vmatpush3.bf16.msra.mxu0 %v13948_v25  ;;  %11612 = vmatprep.mubr.msk.bf16.mxu0 %vm13031_vm0, %v13030_v1 }
0x51cd   :  { %11610 = vmatprep.subr.bf16.mxu0 %v13030_v1 }
0x51d0   :  { %11611 = vmatpush3.bf16.msra.mxu0 %v13957_v59 }
0x51d1   :  { %11624 = vmatprep.subr.bf16.mxu0 %v13030_v1 }
0x528b   :  { %v3277_v20 = vpop.f32.mrf.mxu0 }
0x528c   :  { %v13962_v30 = vadd.f32 %v13569_v9, %v3277_v20 }
0x528d   :  { %v11598_v31 = vpop.f32.mrf.mxu0 }
0x528e   :  { %v3283_v56 = vmul.f32 %v13962_v30, %v13821_v13 }
0x528f   :  { %v3280_v27 = vpop.f32.mrf.mxu0 }
0x5290   :  { %3285 = vrot.lane.b32.xlu0 %v3283_v56, %s13035_s15 }
0x5291   :  { %v11599_v33 = vpop.f32.mrf.mxu0 }
0x5302   :  { %v3286_v34 = vpop.permute.xlu0 %3285 }
0x5303   :  { %v3288_v35 = vadd.f32 %v3286_v34, %v13898_v19 }
0x5305   :  { %v3289_v28 = vpack.c.bf16 %v3288_v35, %v3288_v35 }
0x5307   :  { %3291 = vrot.lane.b32.xlu1 %v3289_v28, %s13034_s25 }
0x5379   :  { %v3292_v43 = vpop.permute.xlu1 %3291 }
0x537a   :  { %11605 = vmatmul.mubr.msk.bf16.vlgmr.msra.gmra.mxu1 %vm49_vm1, %v3292_v43 }
0x537b   :  { %11617 = vmatpush3.bf16.msra.mxu1 %v13930_v62  ;;  %11620 = vmatprep.mubr.msk.bf16.mxu1 %vm13031_vm0, %v13030_v1 }
0x537c   :  { %11618 = vmatprep.subr.bf16.mxu1 %v13030_v1 }
0x537f   :  { %11619 = vmatpush3.bf16.msra.mxu1 %v13939_v16 }
0x5380   :  { %11632 = vmatprep.subr.bf16.mxu1 %v13030_v1 }
0x543a   :  { %v3330_v9 = vpop.f32.mrf.mxu1 }
0x543b   :  { %v3331_v46 = vadd.f32 %v13979_v26, %v3330_v9 }
0x543c   :  { %v11606_v22 = vpop.f32.mrf.mxu1 }
0x543d   :  { %12794 = vtanh.f32 %v3331_v46 }
0x543e   :  { %v3333_v32 = vpop.f32.mrf.mxu1 }
0x5440   :  { %v11607_v50 = vpop.f32.mrf.mxu1 }
0x544a   :  { %v12795_v51 = vpop.eup %12794 }
0x544b   :  { %v3337_v52 = vpack.c.bf16 %v12795_v51, %v12795_v51 }
0x544d   :  { %11613 = vmatmul.mubr.msk.bf16.vlgmr.msra.gmra.mxu0 %vm49_vm1, %v3337_v52 }
0x544e   :  { %11625 = vmatpush3.bf16.msra.mxu0 %v13948_v25  ;;  %11628 = vmatprep.mubr.msk.bf16.mxu0 %vm13031_vm0, %v13030_v1 }
0x544f   :  { %11626 = vmatprep.subr.bf16.mxu0 %v13030_v1 }
0x5452   :  { %11627 = vmatpush3.bf16.msra.mxu0 %v13957_v59 }
0x5453   :  { %11640 = vmatprep.subr.bf16.mxu0 %v13030_v1 }
0x550d   :  { %v3375_v54 = vpop.f32.mrf.mxu0 }
0x550e   :  { %v3376_v57 = vadd.f32 %v13992_v24, %v3375_v54 }
0x550f   :  { %v11614_v58 = vpop.f32.mrf.mxu0 }
0x5510   :  { %v3381_v38 = vmul.f32 %v13818_v47, %v3376_v57  ;;  %v3480_v55 = vadd.f32 %v3376_v57, %v13962_v30 }
0x5511   :  { %v3378_v60 = vpop.f32.mrf.mxu0 }
0x5512   :  { %3383 = vrot.lane.b32.xlu0 %v3381_v38, %s13035_s15  ;;  %v3481_v53 = vmul.f32 2.0, %v3480_v55 }
0x5513   :  { %v11615_v61 = vpop.f32.mrf.mxu0 }
0x5584   :  { %v3384_v44 = vpop.permute.xlu0 %3383 }
0x5585   :  { %v3386_v21 = vadd.f32 %v3384_v44, %v13898_v19 }
0x5587   :  { %v3387_v63 = vpack.c.bf16 %v3386_v21, %v3386_v21 }
0x5589   :  { %3389 = vrot.lane.b32.xlu1 %v3387_v63, %s13034_s25 }
0x55fb   :  { %v3390_v3 = vpop.permute.xlu1 %3389 }
0x55fc   :  { %11621 = vmatmul.mubr.msk.bf16.vlgmr.msra.gmra.mxu1 %vm49_vm1, %v3390_v3 }
0x55fd   :  { %11633 = vmatpush3.bf16.msra.mxu1 %v13930_v62  ;;  %11636 = vmatprep.mubr.msk.bf16.mxu1 %vm13031_vm0, %v13030_v1 }
0x55fe   :  { %11634 = vmatprep.subr.bf16.mxu1 %v13030_v1 }
0x5601   :  { %11635 = vmatpush3.bf16.msra.mxu1 %v13939_v16 }
0x5602   :  { %11648 = vmatprep.subr.bf16.mxu1 %v13030_v1 }
0x56bc   :  { %v3428_v4 = vpop.f32.mrf.mxu1 }
0x56bd   :  { %v3429_v5 = vadd.f32 %v13979_v26, %v3428_v4 }
0x56be   :  { %v11622_v11 = vpop.f32.mrf.mxu1 }
0x56bf   :  { %12796 = vtanh.f32 %v3429_v5 }
0x56c0   :  { %v3431_v12 = vpop.f32.mrf.mxu1 }
0x56c2   :  { %v11623_v36 = vpop.f32.mrf.mxu1 }
0x56cc   :  { %v12797_v37 = vpop.eup %12796 }
0x56cd   :  { %v3435_v45 = vpack.c.bf16 %v12797_v37, %v12797_v37 }
0x56cf   :  { %11629 = vmatmul.mubr.msk.bf16.vlgmr.msra.gmra.mxu0 %vm49_vm1, %v3435_v45 }
0x56d0   :  { %11641 = vmatpush3.bf16.msra.mxu0 %v13948_v25  ;;  %11644 = vmatprep.mubr.msk.bf16.mxu0 %vm13031_vm0, %v13030_v1 }
0x56d1   :  { %11642 = vmatprep.subr.bf16.mxu0 %v13030_v1 }
0x56d4   :  { %11643 = vmatpush3.bf16.msra.mxu0 %v13957_v59 }
0x56d5   :  { %11656 = vmatprep.subr.bf16.mxu0 %v13030_v1 }
0x578f   :  { %v3473_v48 = vpop.f32.mrf.mxu0 }
0x5790   :  { %v3474_v14 = vadd.f32 %v13992_v24, %v3473_v48 }
0x5791   :  { %v11630_v15 = vpop.f32.mrf.mxu0 }
0x5792   :  { %v3479_v29 = vadd.f32 %v3474_v14, %v13919_v42 }
0x5793   :  { %v3476_v17 = vpop.f32.mrf.mxu0 }
0x5794   :  { %v3482_v18 = vadd.f32 %v3481_v53, %v3479_v29 }
0x5795   :  { %v11631_v0 = vpop.f32.mrf.mxu0 }
0x5796   :  { %v3483_v10 = vmul.f32 %v3482_v18, %v13893_v41 }
0x5798   :  { %3485 = vrot.lane.b32.xlu0 %v3483_v10, %s13035_s15 }
0x580a   :  { %v3486_v39 = vpop.permute.xlu0 %3485 }
0x580b   :  { %v14020_v2 = vadd.f32 %v3486_v39, %v13898_v19 }
0x580d   :  { %v3489_v23 = vpack.c.bf16 %v14020_v2, %v14020_v2 }
0x580f   :  { %3491 = vrot.lane.b32.xlu1 %v3489_v23, %s13034_s25 }
0x5881   :  { %v3492_v20 = vpop.permute.xlu1 %3491 }
0x5882   :  { %11637 = vmatmul.mubr.msk.bf16.vlgmr.msra.gmra.mxu1 %vm49_vm1, %v3492_v20 }
0x5883   :  { %11649 = vmatpush3.bf16.msra.mxu1 %v13930_v62  ;;  %11652 = vmatprep.mubr.msk.bf16.mxu1 %vm13031_vm0, %v13030_v1 }
0x5884   :  { %11650 = vmatprep.subr.bf16.mxu1 %v13030_v1 }
0x5887   :  { %11651 = vmatpush3.bf16.msra.mxu1 %v13939_v16 }
0x5888   :  { %11664 = vmatprep.subr.bf16.mxu1 %v13030_v1 }
0x5942   :  { %v3530_v19 = vpop.f32.mrf.mxu1 }
0x5943   :  { %v3531_v42 = vadd.f32 %v13979_v26, %v3530_v19 }
0x5944   :  { %v11638_v30 = vpop.f32.mrf.mxu1 }
0x5945   :  { %12798 = vtanh.f32 %v3531_v42 }
0x5946   :  { %v3533_v31 = vpop.f32.mrf.mxu1 }
0x5948   :  { %v11639_v56 = vpop.f32.mrf.mxu1 }
0x5952   :  { %v12799_v27 = vpop.eup %12798 }
0x5953   :  { %v3537_v33 = vpack.c.bf16 %v12799_v27, %v12799_v27 }
0x5955   :  { %11645 = vmatmul.mubr.msk.bf16.vlgmr.msra.gmra.mxu0 %vm49_vm1, %v3537_v33 }
0x5956   :  { %11657 = vmatpush3.bf16.msra.mxu0 %v13948_v25  ;;  %11660 = vmatprep.mubr.msk.bf16.mxu0 %vm13031_vm0, %v13030_v1 }
0x5957   :  { %11658 = vmatprep.subr.bf16.mxu0 %v13030_v1 }
0x595a   :  { %11659 = vmatpush3.bf16.msra.mxu0 %v13957_v59 }
0x595b   :  { %11672 = vmatprep.subr.bf16.mxu0 %v13030_v1 }
0x5a15   :  { %v3575_v34 = vpop.f32.mrf.mxu0 }
0x5a16   :  { %v14041_v35 = vadd.f32 %v13992_v24, %v3575_v34 }
0x5a17   :  { %v11646_v28 = vpop.f32.mrf.mxu0 }
0x5a18   :  { %v3581_v43 = vmul.f32 %v14041_v35, %v13821_v13 }
0x5a19   :  { %v3578_v9 = vpop.f32.mrf.mxu0 }
0x5a1a   :  { %3583 = vrot.lane.b32.xlu0 %v3581_v43, %s13035_s15 }
0x5a1b   :  { %v11647_v46 = vpop.f32.mrf.mxu0 }
0x5a8c   :  { %v3584_v22 = vpop.permute.xlu0 %3583 }
0x5a8d   :  { %v3586_v32 = vadd.f32 %v3584_v22, %v14020_v2 }
0x5a8f   :  { %v3587_v50 = vpack.c.bf16 %v3586_v32, %v3586_v32 }
0x5a91   :  { %3589 = vrot.lane.b32.xlu1 %v3587_v50, %s13034_s25 }
0x5b03   :  { %v3590_v51 = vpop.permute.xlu1 %3589 }
0x5b04   :  { %11653 = vmatmul.mubr.msk.bf16.vlgmr.msra.gmra.mxu1 %vm49_vm1, %v3590_v51 }
0x5b05   :  { %11665 = vmatpush3.bf16.msra.mxu1 %v13930_v62  ;;  %11668 = vmatprep.mubr.msk.bf16.mxu1 %vm13031_vm0, %v13030_v1 }
0x5b06   :  { %11666 = vmatprep.subr.bf16.mxu1 %v13030_v1 }
0x5b09   :  { %11667 = vmatpush3.bf16.msra.mxu1 %v13939_v16 }
0x5b0a   :  { %11680 = vmatprep.subr.bf16.mxu1 %v13030_v1 }
0x5bc4   :  { %v3628_v52 = vpop.f32.mrf.mxu1 }
0x5bc5   :  { %v3629_v54 = vadd.f32 %v13979_v26, %v3628_v52 }
0x5bc6   :  { %v11654_v57 = vpop.f32.mrf.mxu1 }
0x5bc7   :  { %12800 = vtanh.f32 %v3629_v54 }
0x5bc8   :  { %v3631_v58 = vpop.f32.mrf.mxu1 }
0x5bca   :  { %v11655_v38 = vpop.f32.mrf.mxu1 }
0x5bd4   :  { %v12801_v60 = vpop.eup %12800 }
0x5bd5   :  { %v3635_v61 = vpack.c.bf16 %v12801_v60, %v12801_v60 }
0x5bd7   :  { %11661 = vmatmul.mubr.msk.bf16.vlgmr.msra.gmra.mxu0 %vm49_vm1, %v3635_v61 }
0x5bd8   :  { %11673 = vmatpush3.bf16.msra.mxu0 %v13948_v25  ;;  %11676 = vmatprep.mubr.msk.bf16.mxu0 %vm13031_vm0, %v13030_v1 }
0x5bd9   :  { %11674 = vmatprep.subr.bf16.mxu0 %v13030_v1 }
0x5bdc   :  { %11675 = vmatpush3.bf16.msra.mxu0 %v13957_v59 }
0x5bdd   :  { %11688 = vmatprep.subr.bf16.mxu0 %v13030_v1 }
0x5c97   :  { %v3673_v44 = vpop.f32.mrf.mxu0 }
0x5c98   :  { %v14064_v21 = vadd.f32 %v13992_v24, %v3673_v44 }
0x5c99   :  { %v11662_v63 = vpop.f32.mrf.mxu0 }
0x5c9a   :  { %v3679_v3 = vmul.f32 %v14064_v21, %v13821_v13 }
0x5c9b   :  { %v3676_v4 = vpop.f32.mrf.mxu0 }
0x5c9c   :  { %3681 = vrot.lane.b32.xlu0 %v3679_v3, %s13035_s15 }
0x5c9d   :  { %v11663_v5 = vpop.f32.mrf.mxu0 }
0x5d0e   :  { %v3682_v11 = vpop.permute.xlu0 %3681 }
0x5d0f   :  { %v3684_v12 = vadd.f32 %v3682_v11, %v14020_v2 }
0x5d11   :  { %v3685_v36 = vpack.c.bf16 %v3684_v12, %v3684_v12 }
0x5d13   :  { %3687 = vrot.lane.b32.xlu1 %v3685_v36, %s13034_s25 }
0x5d85   :  { %v3688_v37 = vpop.permute.xlu1 %3687 }
0x5d86   :  { %11669 = vmatmul.mubr.msk.bf16.vlgmr.msra.gmra.mxu1 %vm49_vm1, %v3688_v37 }
0x5d87   :  { %11681 = vmatpush3.bf16.msra.mxu1 %v13930_v62  ;;  %11684 = vmatprep.mubr.msk.bf16.mxu1 %vm13031_vm0, %v13030_v1 }
0x5d88   :  { %11682 = vmatprep.subr.bf16.mxu1 %v13030_v1 }
0x5d8b   :  { %11683 = vmatpush3.bf16.msra.mxu1 %v13939_v16 }
0x5d8c   :  { %11696 = vmatprep.subr.bf16.mxu1 %v13030_v1 }
0x5e46   :  { %v3726_v13 = vpop.f32.mrf.mxu1 }
0x5e47   :  { %v3727_v45 = vadd.f32 %v13979_v26, %v3726_v13 }
0x5e48   :  { %v11670_v55 = vpop.f32.mrf.mxu1 }
0x5e49   :  { %12802 = vtanh.f32 %v3727_v45 }
0x5e4a   :  { %v3729_v48 = vpop.f32.mrf.mxu1 }
0x5e4c   :  { %v11671_v14 = vpop.f32.mrf.mxu1 }
0x5e56   :  { %v12803_v15 = vpop.eup %12802 }
0x5e57   :  { %v3733_v53 = vpack.c.bf16 %v12803_v15, %v12803_v15 }
0x5e59   :  { %11677 = vmatmul.mubr.msk.bf16.vlgmr.msra.gmra.mxu0 %vm49_vm1, %v3733_v53 }
0x5e5a   :  { %11689 = vmatpush3.bf16.msra.mxu0 %v13948_v25  ;;  %11692 = vmatprep.mubr.msk.bf16.mxu0 %vm13031_vm0, %v13030_v1 }
0x5e5b   :  { %11690 = vmatprep.subr.bf16.mxu0 %v13030_v1 }
0x5e5e   :  { %11691 = vmatpush3.bf16.msra.mxu0 %v13957_v59 }
0x5e5f   :  { %11704 = vmatprep.subr.bf16.mxu0 %v13030_v1 }
0x5f19   :  { %v3771_v29 = vpop.f32.mrf.mxu0 }
0x5f1a   :  { %v3772_v17 = vadd.f32 %v13992_v24, %v3771_v29 }
0x5f1b   :  { %v11678_v18 = vpop.f32.mrf.mxu0 }
0x5f1c   :  { %v3777_v0 = vmul.f32 %v13818_v47, %v3772_v17 }
0x5f1d   :  { %v3774_v10 = vpop.f32.mrf.mxu0 }
0x5f1e   :  { %3779 = vrot.lane.b32.xlu0 %v3777_v0, %s13035_s15  ;;  %v14157_v10 = vld [vmem:[%s15809_s1 + $0x6] sm:$0x3] }
0x5f1f   :  { %v11679_v39 = vpop.f32.mrf.mxu0 }
0x5f20   :  { %v14160_v39 = vmul.f32 0.5, %v14157_v10 }
0x5f90   :  { %v3780_v23 = vpop.permute.xlu0 %3779 }
0x5f91   :  { %v3782_v20 = vadd.f32 %v3780_v23, %v14020_v2 }
0x5f93   :  { %v3783_v19 = vpack.c.bf16 %v3782_v20, %v3782_v20 }
0x5f95   :  { %3785 = vrot.lane.b32.xlu1 %v3783_v19, %s13034_s25 }
0x6007   :  { %v3786_v42 = vpop.permute.xlu1 %3785 }
0x6008   :  { %11685 = vmatmul.mubr.msk.bf16.vlgmr.msra.gmra.mxu1 %vm49_vm1, %v3786_v42 }
0x6009   :  { %11697 = vmatpush3.bf16.msra.mxu1 %v13746_v49  ;;  %11700 = vmatprep.mubr.msk.bf16.mxu1 %vm13031_vm0, %v13030_v1  ;;  %v3876_v49 = vadd.f32 %v3772_v17, %v14064_v21 }
0x600a   :  { %11698 = vmatprep.subr.bf16.mxu1 %v13030_v1 }
0x600b   :  { %v3877_v9 = vmul.f32 2.0, %v3876_v49 }
0x600d   :  { %11699 = vmatpush3.bf16.msra.mxu1 %v13755_v7 }
0x600e   :  { %11712 = vmatprep.subr.bf16.mxu1 %v13030_v1 }
0x60c8   :  { %v3824_v47 = vpop.f32.mrf.mxu1 }
0x60c9   :  { %v3825_v30 = vadd.f32 %v13979_v26, %v3824_v47 }
0x60ca   :  { %v11686_v31 = vpop.f32.mrf.mxu1 }
0x60cb   :  { %12804 = vtanh.f32 %v3825_v30 }
0x60cc   :  { %v3827_v56 = vpop.f32.mrf.mxu1 }
0x60ce   :  { %v11687_v27 = vpop.f32.mrf.mxu1 }
0x60d8   :  { %v12805_v33 = vpop.eup %12804 }
0x60d9   :  { %v3831_v34 = vpack.c.bf16 %v12805_v33, %v12805_v33 }
0x60db   :  { %11693 = vmatmul.mubr.msk.bf16.vlgmr.msra.gmra.mxu0 %vm49_vm1, %v3831_v34 }
0x60dc   :  { %11705 = vmatpush3.bf16.msra.mxu0 %v13930_v62  ;;  %11708 = vmatprep.mubr.msk.bf16.mxu0 %vm13031_vm0, %v13030_v1 }
0x60dd   :  { %11706 = vmatprep.subr.bf16.mxu0 %v13030_v1 }
0x60e0   :  { %11707 = vmatpush3.bf16.msra.mxu0 %v13939_v16 }
0x60e1   :  { %11720 = vmatprep.subr.bf16.mxu0 %v13030_v1 }
0x619b   :  { %v3869_v7 = vpop.f32.mrf.mxu0 }
0x619c   :  { %v3870_v28 = vadd.f32 %v13992_v24, %v3869_v7 }
0x619d   :  { %v11694_v43 = vpop.f32.mrf.mxu0 }
0x619e   :  { %v3875_v46 = vadd.f32 %v3870_v28, %v14041_v35 }
0x619f   :  { %v3872_v22 = vpop.f32.mrf.mxu0 }
0x61a0   :  { %v3878_v32 = vadd.f32 %v3877_v9, %v3875_v46 }
0x61a1   :  { %v11695_v50 = vpop.f32.mrf.mxu0 }
0x61a2   :  { %v3879_v51 = vmul.f32 %v3878_v32, %v13893_v41  ;;  %v10356_v41 = vld [vmem:[%s15808_s0 + $0x6] sm:$0x3] }
0x61a4   :  { %3881 = vrot.lane.b32.xlu0 %v3879_v51, %s13035_s15 }
0x6216   :  { %v3882_v52 = vpop.permute.xlu0 %3881 }
0x6217   :  { %v14112_v54 = vadd.f32 %v3882_v52, %v14020_v2 }
0x6219   :  { %v3893_v57 = vpack.c.bf16 %v14112_v54, %v14112_v54 }
0x621b   :  { %3895 = vrot.lane.b32.xlu1 %v3893_v57, %s13034_s25 }
0x628d   :  { %v3896_v58 = vpop.permute.xlu1 %3895 }
0x628e   :  { %11701 = vmatmul.mubr.msk.bf16.vlgmr.msra.gmra.mxu1 %vm49_vm1, %v3896_v58 }
0x628f   :  { %11713 = vmatpush3.bf16.msra.mxu1 %v13948_v25  ;;  %11716 = vmatprep.mubr.msk.bf16.mxu1 %vm13031_vm0, %v13030_v1 }
0x6290   :  { %11714 = vmatprep.subr.bf16.mxu1 %v13030_v1 }
0x6293   :  { %11715 = vmatpush3.bf16.msra.mxu1 %v13957_v59 }
0x6294   :  { %11728 = vmatprep.subr.bf16.mxu1 %v13030_v1 }
0x634e   :  { %v3934_v2 = vpop.f32.mrf.mxu1 }
0x634f   :  { %v3940_v35 = vadd.f32 %v10356_v41, %v3934_v2 }
0x6350   :  { %v11702_v38 = vpop.f32.mrf.mxu1 }
0x6351   :  { %12806 = vtanh.f32 %v3940_v35  ;;  %v10358_v21 = vmul.f32 -1.442695, %v3940_v35 }
0x6352   :  { %v3937_v60 = vpop.f32.mrf.mxu1 }
0x6353   :  { %12808 = vpow2.f32 %v10358_v21 }
0x6354   :  { %v11703_v61 = vpop.f32.mrf.mxu1 }
0x635e   :  { %v12807_v44 = vpop.eup %12806 }
0x635f   :  { %3950 = vrot.lane.b32.xlu0 %v12807_v44, %s13033_s24 }
0x6360   :  { %v12809_v63 = vpop.eup %12808 }
0x6361   :  { %v3944_v3 = vadd.f32 1.0, %v12809_v63 }
0x6363   :  { %12810 = vrcp.f32 %v3944_v3 }
0x6370   :  { %v12811_v4 = vpop.eup %12810 }
0x6371   :  { %v3948_v12 = vmul.f32 %v12811_v4, %v13791_v8 }
0x63d1   :  { %v3951_v5 = vpop.permute.xlu0 %3950 }
0x63d2   :  { %v3953_v11 = vmul.f32 %v12811_v4, %v3951_v5 }
0x63d4   :  { %3955 = vrot.lane.b32.xlu1 %v3953_v11, %s13034_s25 }
0x6446   :  { %v3956_v36 = vpop.permute.xlu1 %3955 }
0x6447   :  { %v14130_v37 = vadd.f32 %v3956_v36, %v3948_v12 }
0x6449   :  { %12812 = vtanh.f32 %v14130_v37 }
0x6456   :  { %v12813_v13 = vpop.eup %12812 }
0x6457   :  { %3961 = vrot.lane.b32.xlu0 %v12813_v13, %s13033_s24 }
0x64c9   :  { %v3962_v45 = vpop.permute.xlu0 %3961 }
0x64ca   :  { %v14134_v55 = vmul.f32 %v12811_v4, %v3962_v45 }
0x64cc   :  { %v3969_v48 = vpack.c.bf16 %v14134_v55, %v14134_v55 }
0x64ce   :  { %3971 = vrot.lane.b32.xlu1 %v3969_v48, %s13034_s25 }
0x6540   :  { %v3972_v14 = vpop.permute.xlu1 %3971 }
0x6541   :  { %11709 = vmatmul.mubr.msk.bf16.vlgmr.msra.gmra.mxu0 %vm49_vm1, %v3972_v14 }
0x6542   :  { %11721 = vmatpush3.bf16.msra.mxu0 %v13930_v62  ;;  %11724 = vmatprep.mubr.msk.bf16.mxu0 %vm13031_vm0, %v13030_v1 }
0x6543   :  { %11722 = vmatprep.subr.bf16.mxu0 %v13030_v1 }
0x6546   :  { %11723 = vmatpush3.bf16.msra.mxu0 %v13939_v16 }
0x6547   :  { %11736 = vmatprep.subr.bf16.mxu0 %v13030_v1 }
0x6601   :  { %v4010_v8 = vpop.f32.mrf.mxu0 }
0x6602   :  { %v4011_v15 = vadd.f32 %v13979_v26, %v4010_v8 }
0x6603   :  { %v11710_v53 = vpop.f32.mrf.mxu0 }
0x6604   :  { %12814 = vtanh.f32 %v4011_v15 }
0x6605   :  { %v4013_v29 = vpop.f32.mrf.mxu0 }
0x6607   :  { %v11711_v17 = vpop.f32.mrf.mxu0 }
0x6611   :  { %v12815_v18 = vpop.eup %12814 }
0x6612   :  { %v4017_v0 = vpack.c.bf16 %v12815_v18, %v12815_v18 }
0x6614   :  { %11717 = vmatmul.mubr.msk.bf16.vlgmr.msra.gmra.mxu1 %vm49_vm1, %v4017_v0 }
0x6615   :  { %11729 = vmatpush3.bf16.msra.mxu1 %v13948_v25  ;;  %11732 = vmatprep.mubr.msk.bf16.mxu1 %vm13031_vm0, %v13030_v1 }
0x6616   :  { %11730 = vmatprep.subr.bf16.mxu1 %v13030_v1 }
0x6619   :  { %11731 = vmatpush3.bf16.msra.mxu1 %v13957_v59 }
0x661a   :  { %11744 = vmatprep.subr.bf16.mxu1 %v13030_v1 }
0x66d4   :  { %v4055_v23 = vpop.f32.mrf.mxu1 }
0x66d5   :  { %v14163_v20 = vadd.f32 %v13992_v24, %v4055_v23 }
0x66d6   :  { %v11718_v19 = vpop.f32.mrf.mxu1 }
0x66d7   :  { %v4061_v42 = vmul.f32 %v14163_v20, %v14160_v39 }
0x66d8   :  { %v4058_v47 = vpop.f32.mrf.mxu1 }
0x66d9   :  { %4063 = vrot.lane.b32.xlu0 %v4061_v42, %s13035_s15 }
0x66da   :  { %v11719_v30 = vpop.f32.mrf.mxu1 }
0x674b   :  { %v4064_v31 = vpop.permute.xlu0 %4063 }
0x674c   :  { %v4066_v56 = vadd.f32 %v4064_v31, %v14134_v55 }
0x674e   :  { %v4067_v27 = vpack.c.bf16 %v4066_v56, %v4066_v56 }
0x6750   :  { %4069 = vrot.lane.b32.xlu1 %v4067_v27, %s13034_s25  ;;  %v14232_v27 = vmul.f32 0.16666667, %v14157_v10 }
0x67c2   :  { %v4070_v33 = vpop.permute.xlu1 %4069 }
0x67c3   :  { %11725 = vmatmul.mubr.msk.bf16.vlgmr.msra.gmra.mxu0 %vm49_vm1, %v4070_v33 }
0x67c4   :  { %11737 = vmatpush3.bf16.msra.mxu0 %v13930_v62  ;;  %11740 = vmatprep.mubr.msk.bf16.mxu0 %vm13031_vm0, %v13030_v1 }
0x67c5   :  { %11738 = vmatprep.subr.bf16.mxu0 %v13030_v1 }
0x67c8   :  { %11739 = vmatpush3.bf16.msra.mxu0 %v13939_v16 }
0x67c9   :  { %11752 = vmatprep.subr.bf16.mxu0 %v13030_v1 }
0x6883   :  { %v4108_v34 = vpop.f32.mrf.mxu0 }
0x6884   :  { %v4109_v49 = vadd.f32 %v13979_v26, %v4108_v34 }
0x6885   :  { %v11726_v7 = vpop.f32.mrf.mxu0 }
0x6886   :  { %12816 = vtanh.f32 %v4109_v49 }
0x6887   :  { %v4111_v28 = vpop.f32.mrf.mxu0 }
0x6889   :  { %v11727_v43 = vpop.f32.mrf.mxu0 }
0x6893   :  { %v12817_v9 = vpop.eup %12816 }
0x6894   :  { %v4115_v46 = vpack.c.bf16 %v12817_v9, %v12817_v9 }
0x6896   :  { %11733 = vmatmul.mubr.msk.bf16.vlgmr.msra.gmra.mxu1 %vm49_vm1, %v4115_v46 }
0x6897   :  { %11745 = vmatpush3.bf16.msra.mxu1 %v13948_v25  ;;  %11748 = vmatprep.mubr.msk.bf16.mxu1 %vm13031_vm0, %v13030_v1 }
0x6898   :  { %11746 = vmatprep.subr.bf16.mxu1 %v13030_v1 }
0x689b   :  { %11747 = vmatpush3.bf16.msra.mxu1 %v13957_v59 }
0x689c   :  { %11760 = vmatprep.subr.bf16.mxu1 %v13030_v1 }
0x6956   :  { %v4153_v22 = vpop.f32.mrf.mxu1 }
0x6957   :  { %v14186_v32 = vadd.f32 %v13992_v24, %v4153_v22 }
0x6958   :  { %v11734_v50 = vpop.f32.mrf.mxu1 }
0x6959   :  { %v4159_v51 = vmul.f32 %v14186_v32, %v14160_v39 }
0x695a   :  { %v4156_v52 = vpop.f32.mrf.mxu1 }
0x695b   :  { %4161 = vrot.lane.b32.xlu0 %v4159_v51, %s13035_s15 }
0x695c   :  { %v11735_v57 = vpop.f32.mrf.mxu1 }
0x69cd   :  { %v4162_v58 = vpop.permute.xlu0 %4161 }
0x69ce   :  { %v4164_v41 = vadd.f32 %v4162_v58, %v14134_v55 }
0x69d0   :  { %v4165_v2 = vpack.c.bf16 %v4164_v41, %v4164_v41 }
0x69d2   :  { %4167 = vrot.lane.b32.xlu1 %v4165_v2, %s13034_s25 }
0x6a44   :  { %v4168_v35 = vpop.permute.xlu1 %4167 }
0x6a45   :  { %11741 = vmatmul.mubr.msk.bf16.vlgmr.msra.gmra.mxu0 %vm49_vm1, %v4168_v35 }
0x6a46   :  { %11753 = vmatpush3.bf16.msra.mxu0 %v13930_v62  ;;  %11756 = vmatprep.mubr.msk.bf16.mxu0 %vm13031_vm0, %v13030_v1 }
0x6a47   :  { %11754 = vmatprep.subr.bf16.mxu0 %v13030_v1 }
0x6a4a   :  { %11755 = vmatpush3.bf16.msra.mxu0 %v13939_v16 }
0x6a4b   :  { %11768 = vmatprep.subr.bf16.mxu0 %v13030_v1 }
0x6b05   :  { %v4206_v38 = vpop.f32.mrf.mxu0 }
0x6b06   :  { %v4207_v60 = vadd.f32 %v13979_v26, %v4206_v38 }
0x6b07   :  { %v11742_v61 = vpop.f32.mrf.mxu0 }
0x6b08   :  { %12818 = vtanh.f32 %v4207_v60 }
0x6b09   :  { %v4209_v44 = vpop.f32.mrf.mxu0 }
0x6b0b   :  { %v11743_v21 = vpop.f32.mrf.mxu0 }
0x6b15   :  { %v12819_v63 = vpop.eup %12818 }
0x6b16   :  { %v4213_v3 = vpack.c.bf16 %v12819_v63, %v12819_v63 }
0x6b18   :  { %11749 = vmatmul.mubr.msk.bf16.vlgmr.msra.gmra.mxu1 %vm49_vm1, %v4213_v3 }
0x6b19   :  { %11761 = vmatpush3.bf16.msra.mxu1 %v13948_v25  ;;  %11764 = vmatprep.mubr.msk.bf16.mxu1 %vm13031_vm0, %v13030_v1 }
0x6b1a   :  { %11762 = vmatprep.subr.bf16.mxu1 %v13030_v1 }
0x6b1d   :  { %11763 = vmatpush3.bf16.msra.mxu1 %v13957_v59 }
0x6b1e   :  { %11776 = vmatprep.subr.bf16.mxu1 %v13030_v1 }
0x6bd8   :  { %v4251_v4 = vpop.f32.mrf.mxu1 }
0x6bd9   :  { %v4252_v5 = vadd.f32 %v13992_v24, %v4251_v4 }
0x6bda   :  { %v11750_v11 = vpop.f32.mrf.mxu1 }
0x6bdb   :  { %v4257_v12 = vmul.f32 %v14157_v10, %v4252_v5  ;;  %v4356_v19 = vadd.f32 %v4252_v5, %v14186_v32 }
0x6bdc   :  { %v4254_v36 = vpop.f32.mrf.mxu1 }
0x6bdd   :  { %4259 = vrot.lane.b32.xlu0 %v4257_v12, %s13035_s15  ;;  %v4357_v31 = vmul.f32 2.0, %v4356_v19 }
0x6bde   :  { %v11751_v13 = vpop.f32.mrf.mxu1 }
0x6c4f   :  { %v4260_v45 = vpop.permute.xlu0 %4259 }
0x6c50   :  { %v4262_v48 = vadd.f32 %v4260_v45, %v14134_v55 }
0x6c52   :  { %v4263_v14 = vpack.c.bf16 %v4262_v48, %v4262_v48 }
0x6c54   :  { %4265 = vrot.lane.b32.xlu1 %v4263_v14, %s13034_s25 }
0x6cc6   :  { %v4266_v8 = vpop.permute.xlu1 %4265 }
0x6cc7   :  { %11757 = vmatmul.mubr.msk.bf16.vlgmr.msra.gmra.mxu0 %vm49_vm1, %v4266_v8 }
0x6cc8   :  { %11769 = vmatpush3.bf16.msra.mxu0 %v13930_v62  ;;  %11772 = vmatprep.mubr.msk.bf16.mxu0 %vm13031_vm0, %v13030_v1 }
0x6cc9   :  { %11770 = vmatprep.subr.bf16.mxu0 %v13030_v1 }
0x6ccc   :  { %11771 = vmatpush3.bf16.msra.mxu0 %v13939_v16 }
0x6ccd   :  { %11784 = vmatprep.subr.bf16.mxu0 %v13030_v1 }
0x6d87   :  { %v4304_v15 = vpop.f32.mrf.mxu0 }
0x6d88   :  { %v4305_v53 = vadd.f32 %v13979_v26, %v4304_v15 }
0x6d89   :  { %v11758_v29 = vpop.f32.mrf.mxu0 }
0x6d8a   :  { %12820 = vtanh.f32 %v4305_v53 }
0x6d8b   :  { %v4307_v17 = vpop.f32.mrf.mxu0 }
0x6d8d   :  { %v11759_v18 = vpop.f32.mrf.mxu0 }
0x6d97   :  { %v12821_v0 = vpop.eup %12820 }
0x6d98   :  { %v4311_v23 = vpack.c.bf16 %v12821_v0, %v12821_v0 }
0x6d9a   :  { %11765 = vmatmul.mubr.msk.bf16.vlgmr.msra.gmra.mxu1 %vm49_vm1, %v4311_v23 }
0x6d9b   :  { %11777 = vmatpush3.bf16.msra.mxu1 %v13948_v25  ;;  %11780 = vmatprep.mubr.msk.bf16.mxu1 %vm13031_vm0, %v13030_v1 }
0x6d9c   :  { %11778 = vmatprep.subr.bf16.mxu1 %v13030_v1 }
0x6d9f   :  { %11779 = vmatpush3.bf16.msra.mxu1 %v13957_v59 }
0x6da0   :  { %11792 = vmatprep.subr.bf16.mxu1 %v13030_v1 }
0x6e5a   :  { %v4349_v42 = vpop.f32.mrf.mxu1 }
0x6e5b   :  { %v4350_v47 = vadd.f32 %v13992_v24, %v4349_v42 }
0x6e5c   :  { %v11766_v30 = vpop.f32.mrf.mxu1 }
0x6e5d   :  { %v4355_v56 = vadd.f32 %v4350_v47, %v14163_v20 }
0x6e5e   :  { %v4352_v33 = vpop.f32.mrf.mxu1 }
0x6e5f   :  { %v4358_v34 = vadd.f32 %v4357_v31, %v4355_v56 }
0x6e60   :  { %v11767_v49 = vpop.f32.mrf.mxu1 }
0x6e61   :  { %v4359_v7 = vmul.f32 %v4358_v34, %v14232_v27 }
0x6e63   :  { %4361 = vrot.lane.b32.xlu0 %v4359_v7, %s13035_s15 }
0x6ed5   :  { %v4362_v28 = vpop.permute.xlu0 %4361 }
0x6ed6   :  { %v14237_v43 = vadd.f32 %v4362_v28, %v14134_v55 }
0x6ed8   :  { %v4365_v9 = vpack.c.bf16 %v14237_v43, %v14237_v43 }
0x6eda   :  { %4367 = vrot.lane.b32.xlu1 %v4365_v9, %s13034_s25 }
0x6f4c   :  { %v4368_v20 = vpop.permute.xlu1 %4367 }
0x6f4d   :  { %11773 = vmatmul.mubr.msk.bf16.vlgmr.msra.gmra.mxu0 %vm49_vm1, %v4368_v20 }
0x6f4e   :  { %11785 = vmatpush3.bf16.msra.mxu0 %v13930_v62  ;;  %11788 = vmatprep.mubr.msk.bf16.mxu0 %vm13031_vm0, %v13030_v1 }
0x6f4f   :  { %11786 = vmatprep.subr.bf16.mxu0 %v13030_v1 }
0x6f52   :  { %11787 = vmatpush3.bf16.msra.mxu0 %v13939_v16 }
0x6f53   :  { %11800 = vmatprep.subr.bf16.mxu0 %v13030_v1 }
0x700d   :  { %v4406_v55 = vpop.f32.mrf.mxu0 }
0x700e   :  { %v4407_v46 = vadd.f32 %v13979_v26, %v4406_v55 }
0x700f   :  { %v11774_v22 = vpop.f32.mrf.mxu0 }
0x7010   :  { %12822 = vtanh.f32 %v4407_v46 }
0x7011   :  { %v4409_v32 = vpop.f32.mrf.mxu0 }
0x7013   :  { %v11775_v50 = vpop.f32.mrf.mxu0 }
0x701d   :  { %v12823_v51 = vpop.eup %12822 }
0x701e   :  { %v4413_v52 = vpack.c.bf16 %v12823_v51, %v12823_v51 }
0x7020   :  { %11781 = vmatmul.mubr.msk.bf16.vlgmr.msra.gmra.mxu1 %vm49_vm1, %v4413_v52 }
0x7021   :  { %11793 = vmatpush3.bf16.msra.mxu1 %v13948_v25  ;;  %11796 = vmatprep.mubr.msk.bf16.mxu1 %vm13031_vm0, %v13030_v1 }
0x7022   :  { %11794 = vmatprep.subr.bf16.mxu1 %v13030_v1 }
0x7025   :  { %11795 = vmatpush3.bf16.msra.mxu1 %v13957_v59 }
0x7026   :  { %11808 = vmatprep.subr.bf16.mxu1 %v13030_v1 }
0x70e0   :  { %v4451_v57 = vpop.f32.mrf.mxu1 }
0x70e1   :  { %v14258_v58 = vadd.f32 %v13992_v24, %v4451_v57 }
0x70e2   :  { %v11782_v41 = vpop.f32.mrf.mxu1 }
0x70e3   :  { %v4457_v2 = vmul.f32 %v14258_v58, %v14160_v39 }
0x70e4   :  { %v4454_v35 = vpop.f32.mrf.mxu1 }
0x70e5   :  { %4459 = vrot.lane.b32.xlu0 %v4457_v2, %s13035_s15 }
0x70e6   :  { %v11783_v38 = vpop.f32.mrf.mxu1 }
0x7157   :  { %v4460_v60 = vpop.permute.xlu0 %4459 }
0x7158   :  { %v4462_v61 = vadd.f32 %v4460_v60, %v14237_v43 }
0x715a   :  { %v4463_v44 = vpack.c.bf16 %v4462_v61, %v4462_v61 }
0x715c   :  { %4465 = vrot.lane.b32.xlu1 %v4463_v44, %s13034_s25 }
0x71ce   :  { %v4466_v21 = vpop.permute.xlu1 %4465 }
0x71cf   :  { %11789 = vmatmul.mubr.msk.bf16.vlgmr.msra.gmra.mxu0 %vm49_vm1, %v4466_v21 }
0x71d0   :  { %11801 = vmatpush3.bf16.msra.mxu0 %v13930_v62  ;;  %11804 = vmatprep.mubr.msk.bf16.mxu0 %vm13031_vm0, %v13030_v1 }
0x71d1   :  { %11802 = vmatprep.subr.bf16.mxu0 %v13030_v1 }
0x71d4   :  { %11803 = vmatpush3.bf16.msra.mxu0 %v13939_v16 }
0x71d5   :  { %11816 = vmatprep.subr.bf16.mxu0 %v13030_v1 }
0x728f   :  { %v4504_v63 = vpop.f32.mrf.mxu0 }
0x7290   :  { %v4505_v3 = vadd.f32 %v13979_v26, %v4504_v63 }
0x7291   :  { %v11790_v4 = vpop.f32.mrf.mxu0 }
0x7292   :  { %12824 = vtanh.f32 %v4505_v3 }
0x7293   :  { %v4507_v5 = vpop.f32.mrf.mxu0 }
0x7295   :  { %v11791_v11 = vpop.f32.mrf.mxu0 }
0x729f   :  { %v12825_v12 = vpop.eup %12824 }
0x72a0   :  { %v4511_v36 = vpack.c.bf16 %v12825_v12, %v12825_v12 }
0x72a2   :  { %11797 = vmatmul.mubr.msk.bf16.vlgmr.msra.gmra.mxu1 %vm49_vm1, %v4511_v36 }
0x72a3   :  { %11809 = vmatpush3.bf16.msra.mxu1 %v13948_v25  ;;  %11812 = vmatprep.mubr.msk.bf16.mxu1 %vm13031_vm0, %v13030_v1 }
0x72a4   :  { %11810 = vmatprep.subr.bf16.mxu1 %v13030_v1 }
0x72a7   :  { %11811 = vmatpush3.bf16.msra.mxu1 %v13957_v59 }
0x72a8   :  { %11824 = vmatprep.subr.bf16.mxu1 %v13030_v1 }
0x7362   :  { %v4549_v13 = vpop.f32.mrf.mxu1 }
0x7363   :  { %v14281_v45 = vadd.f32 %v13992_v24, %v4549_v13 }
0x7364   :  { %v11798_v48 = vpop.f32.mrf.mxu1 }
0x7365   :  { %v4555_v14 = vmul.f32 %v14281_v45, %v14160_v39 }
0x7366   :  { %v4552_v8 = vpop.f32.mrf.mxu1 }
0x7367   :  { %4557 = vrot.lane.b32.xlu0 %v4555_v14, %s13035_s15  ;;  %v14356_v14 = vld [vmem:[%s15811_s3 + $0x18] sm:$0xff]  }
0x7368   :  { %v11799_v15 = vpop.f32.mrf.mxu1 }
0x73d9   :  { %v4558_v53 = vpop.permute.xlu0 %4557 }
0x73da   :  { %v4560_v29 = vadd.f32 %v4558_v53, %v14237_v43 }
0x73dc   :  { %v4561_v17 = vpack.c.bf16 %v4560_v29, %v4560_v29 }
0x73de   :  { %4563 = vrot.lane.b32.xlu1 %v4561_v17, %s13034_s25 }
0x7450   :  { %v4564_v18 = vpop.permute.xlu1 %4563 }
0x7451   :  { %11805 = vmatmul.mubr.msk.bf16.vlgmr.msra.gmra.mxu0 %vm49_vm1, %v4564_v18 }
0x7452   :  { %11817 = vmatpush3.bf16.msra.mxu0 %v13930_v62  ;;  %11820 = vmatprep.mubr.msk.bf16.mxu0 %vm13031_vm0, %v13030_v1 }
0x7453   :  { %11818 = vmatprep.subr.bf16.mxu0 %v13030_v1 }
0x7456   :  { %11819 = vmatpush3.bf16.msra.mxu0 %v13939_v16 }
0x7457   :  { %11832 = vmatprep.subr.bf16.mxu0 %v13030_v1 }
0x7511   :  { %v4602_v0 = vpop.f32.mrf.mxu0 }
0x7512   :  { %v4603_v23 = vadd.f32 %v13979_v26, %v4602_v0 }
0x7513   :  { %v11806_v19 = vpop.f32.mrf.mxu0 }
0x7514   :  { %12826 = vtanh.f32 %v4603_v23 }
0x7515   :  { %v4605_v42 = vpop.f32.mrf.mxu0 }
0x7517   :  { %v11807_v47 = vpop.f32.mrf.mxu0 }
0x7518   :  { %v14387_v47 = vld [vmem:[%s15812_s4] ss:$0 sm:$0xff] }
0x7521   :  { %v12827_v30 = vpop.eup %12826 }
0x7522   :  { %v4609_v31 = vpack.c.bf16 %v12827_v30, %v12827_v30 }
0x7524   :  { %11813 = vmatmul.mubr.msk.bf16.vlgmr.msra.gmra.mxu1 %vm49_vm1, %v4609_v31 }
0x7525   :  { %11825 = vmatpush3.bf16.msra.mxu1 %v13948_v25  ;;  %11828 = vmatprep.mubr.msk.bf16.mxu1 %vm13031_vm0, %v13030_v1 }
0x7526   :  { %11826 = vmatprep.subr.bf16.mxu1 %v13030_v1 }
0x7529   :  { %11827 = vmatpush3.bf16.msra.mxu1 %v13957_v59 }
0x752a   :  { %11840 = vmatprep.subr.bf16.mxu1 %v13030_v1 }
0x75e4   :  { %v4647_v56 = vpop.f32.mrf.mxu1 }
0x75e5   :  { %v4648_v33 = vadd.f32 %v13992_v24, %v4647_v56 }
0x75e6   :  { %v11814_v34 = vpop.f32.mrf.mxu1 }
0x75e7   :  { %v4653_v49 = vmul.f32 %v14157_v10, %v4648_v33 }
0x75e8   :  { %v4650_v7 = vpop.f32.mrf.mxu1 }
0x75e9   :  { %4655 = vrot.lane.b32.xlu0 %v4653_v49, %s13035_s15 }
0x75ea   :  { %v11815_v28 = vpop.f32.mrf.mxu1 }
0x75eb   :  { %v14400_v28 = vld [vmem:[%s15812_s4 + $0x1] ss:$0 sm:$0xff] }
0x765b   :  { %v4656_v9 = vpop.permute.xlu0 %4655 }
0x765c   :  { %v4658_v20 = vadd.f32 %v4656_v9, %v14237_v43 }
0x765e   :  { %v4659_v55 = vpack.c.bf16 %v4658_v20, %v4658_v20 }
0x7660   :  { %4661 = vrot.lane.b32.xlu1 %v4659_v55, %s13034_s25 }
0x76d2   :  { %v4662_v46 = vpop.permute.xlu1 %4661 }
0x76d3   :  { %11821 = vmatmul.mubr.msk.bf16.vlgmr.msra.gmra.mxu0 %vm49_vm1, %v4662_v46 }
0x76d4   :  { %11833 = vmatpush3.bf16.msra.mxu0 %v13930_v62  ;;  %11836 = vmatprep.mubr.msk.bf16.mxu0 %vm13031_vm0, %v13030_v1  ;;  %v4752_v62 = vadd.f32 %v4648_v33, %v14281_v45 }
0x76d5   :  { %11834 = vmatprep.subr.bf16.mxu0 %v13030_v1 }
0x76d6   :  { %v4753_v38 = vmul.f32 2.0, %v4752_v62 }
0x76d8   :  { %11835 = vmatpush3.bf16.msra.mxu0 %v13939_v16 }
0x76d9   :  { %11848 = vmatprep.subr.bf16.mxu0 %v13030_v1 }
0x7793   :  { %v4700_v22 = vpop.f32.mrf.mxu0 }
0x7794   :  { %v4701_v32 = vadd.f32 %v13979_v26, %v4700_v22 }
0x7795   :  { %v11822_v50 = vpop.f32.mrf.mxu0 }
0x7796   :  { %12828 = vtanh.f32 %v4701_v32 }
0x7797   :  { %v4703_v51 = vpop.f32.mrf.mxu0 }
0x7799   :  { %v11823_v52 = vpop.f32.mrf.mxu0 }
0x77a3   :  { %v12829_v57 = vpop.eup %12828 }
0x77a4   :  { %v4707_v41 = vpack.c.bf16 %v12829_v57, %v12829_v57 }
0x77a6   :  { %11829 = vmatmul.mubr.msk.bf16.vlgmr.msra.gmra.mxu1 %vm49_vm1, %v4707_v41 }
0x77a7   :  { %11841 = vmatpush3.bf16.msra.mxu1 %v13948_v25  ;;  %11844 = vmatprep.mubr.msk.bf16.mxu1 %vm13031_vm0, %v13030_v1 }
0x77a8   :  { %11842 = vmatprep.subr.bf16.mxu1 %v13030_v1 }
0x77ab   :  { %11843 = vmatpush3.bf16.msra.mxu1 %v13957_v59 }
0x77ac   :  { %11856 = vmatprep.subr.bf16.mxu1 %v13030_v1 }
0x7866   :  { %v4745_v16 = vpop.f32.mrf.mxu1 }
0x7867   :  { %v4746_v2 = vadd.f32 %v13992_v24, %v4745_v16 }
0x7868   :  { %v11830_v35 = vpop.f32.mrf.mxu1 }
0x7869   :  { %v4751_v60 = vadd.f32 %v4746_v2, %v14258_v58  ;;  %v14338_v58 = vld [vmem:[%s15811_s3 + $0x8] sm:$0xff]  }
0x786a   :  { %v4748_v61 = vpop.f32.mrf.mxu1 }
0x786b   :  { %v4754_v25 = vadd.f32 %v4753_v38, %v4751_v60 }
0x786c   :  { %v11831_v44 = vpop.f32.mrf.mxu1 }
0x786d   :  { %v4755_v21 = vmul.f32 %v4754_v25, %v14232_v27 }
0x786f   :  { %4757 = vrot.lane.b32.xlu0 %v4755_v21, %s13035_s15 }
0x78e1   :  { %v4758_v63 = vpop.permute.xlu0 %4757 }
0x78e2   :  { %v14329_v59 = vadd.f32 %v4758_v63, %v14237_v43  ;;  %v14347_v43 = vld [vmem:[%s15811_s3] sm:$0xff]  }
0x78e4   :  { %v4761_v3 = vpack.c.bf16 %v14329_v59, %v14329_v59 }
0x78e6   :  { %4763 = vrot.lane.b32.xlu1 %v4761_v3, %s13034_s25 }
0x7958   :  { %v4764_v4 = vpop.permute.xlu1 %4763 }
0x7959   :  { %11837 = vmatmul.mubr.msk.bf16.vlgmr.msra.gmra.mxu0 %vm49_vm1, %v4764_v4 }
0x795a   :  { %11849 = vmatpush3.bf16.msra.mxu0 %v14338_v58  ;;  %11852 = vmatprep.mubr.msk.bf16.mxu0 %vm13031_vm0, %v13030_v1 }
0x795b   :  { %11850 = vmatprep.subr.bf16.mxu0 %v13030_v1 }
0x795e   :  { %11851 = vmatpush3.bf16.msra.mxu0 %v14347_v43 }
0x795f   :  { %11864 = vmatprep.subr.bf16.mxu0 %v13030_v1 }
0x7a19   :  { %v4802_v5 = vpop.f32.mrf.mxu0 }
0x7a1a   :  { %v4803_v11 = vadd.f32 %v13979_v26, %v4802_v5  ;;  %v14365_v26 = vld [vmem:[%s15811_s3 + $0x10] sm:$0xff]  }
0x7a1b   :  { %v11838_v12 = vpop.f32.mrf.mxu0 }
0x7a1c   :  { %12830 = vtanh.f32 %v4803_v11  ;;  %v14434_v11 = vld [vmem:[%s15810_s2 + $0x8] sm:$0xff]  }
0x7a1d   :  { %v4805_v36 = vpop.f32.mrf.mxu0 }
0x7a1f   :  { %v11839_v13 = vpop.f32.mrf.mxu0 }
0x7a29   :  { %v12831_v45 = vpop.eup %12830 }
0x7a2a   :  { %v4809_v48 = vpack.c.bf16 %v12831_v45, %v12831_v45 }
0x7a2c   :  { %11845 = vmatmul.mubr.msk.bf16.vlgmr.msra.gmra.mxu1 %vm49_vm1, %v4809_v48 }
0x7a2d   :  { %11857 = vmatpush3.bf16.msra.mxu1 %v14356_v14  ;;  %11860 = vmatprep.mubr.msk.bf16.mxu1 %vm13031_vm0, %v13030_v1 }
0x7a2e   :  { %11858 = vmatprep.subr.bf16.mxu1 %v13030_v1 }
0x7a31   :  { %11859 = vmatpush3.bf16.msra.mxu1 %v14365_v26 }
0x7a32   :  { %11872 = vmatprep.subr.bf16.mxu1 %v13030_v1 }
0x7aec   :  { %v4847_v8 = vpop.f32.mrf.mxu1 }
0x7aed   :  { %v14370_v15 = vadd.f32 %v13992_v24, %v4847_v8 }
0x7aee   :  { %v11846_v53 = vpop.f32.mrf.mxu1 }
0x7aef   :  { %v4853_v29 = vmul.f32 %v14370_v15, %v14160_v39 }
0x7af0   :  { %v4850_v17 = vpop.f32.mrf.mxu1 }
0x7af1   :  { %4855 = vrot.lane.b32.xlu0 %v4853_v29, %s13035_s15 }
0x7af2   :  { %v11847_v18 = vpop.f32.mrf.mxu1 }
0x7b63   :  { %v4856_v0 = vpop.permute.xlu0 %4855 }
0x7b64   :  { %v4858_v23 = vadd.f32 %v4856_v0, %v14329_v59 }
0x7b66   :  { %v4859_v19 = vpack.c.bf16 %v4858_v23, %v4858_v23 }
0x7b68   :  { %4861 = vrot.lane.b32.xlu1 %v4859_v19, %s13034_s25 }
0x7bda   :  { %v4862_v42 = vpop.permute.xlu1 %4861 }
0x7bdb   :  { %11853 = vmatmul.mubr.msk.bf16.vlgmr.msra.gmra.mxu0 %vm49_vm1, %v4862_v42 }
0x7bdc   :  { %11865 = vmatpush3.bf16.msra.mxu0 %v14338_v58  ;;  %11868 = vmatprep.mubr.msk.bf16.mxu0 %vm13031_vm0, %v13030_v1 }
0x7bdd   :  { %11866 = vmatprep.subr.bf16.mxu0 %v13030_v1 }
0x7be0   :  { %11867 = vmatpush3.bf16.msra.mxu0 %v14347_v43 }
0x7be1   :  { %11880 = vmatprep.subr.bf16.mxu0 %v13030_v1 }
0x7c9b   :  { %v4900_v24 = vpop.f32.mrf.mxu0 }
0x7c9c   :  { %v4901_v30 = vadd.f32 %v14387_v47, %v4900_v24 }
0x7c9d   :  { %v11854_v31 = vpop.f32.mrf.mxu0 }
0x7c9e   :  { %12832 = vtanh.f32 %v4901_v30 }
0x7c9f   :  { %v4903_v56 = vpop.f32.mrf.mxu0 }
0x7ca1   :  { %v11855_v33 = vpop.f32.mrf.mxu0 }
0x7cab   :  { %v12833_v34 = vpop.eup %12832 }
0x7cac   :  { %v4907_v49 = vpack.c.bf16 %v12833_v34, %v12833_v34 }
0x7cae   :  { %11861 = vmatmul.mubr.msk.bf16.vlgmr.msra.gmra.mxu1 %vm49_vm1, %v4907_v49 }
0x7caf   :  { %11873 = vmatpush3.bf16.msra.mxu1 %v14356_v14  ;;  %11876 = vmatprep.mubr.msk.bf16.mxu1 %vm13031_vm0, %v13030_v1 }
0x7cb0   :  { %11874 = vmatprep.subr.bf16.mxu1 %v13030_v1 }
0x7cb3   :  { %11875 = vmatpush3.bf16.msra.mxu1 %v14365_v26 }
0x7cb4   :  { %11888 = vmatprep.subr.bf16.mxu1 %v13030_v1 }
0x7d6e   :  { %v4945_v7 = vpop.f32.mrf.mxu1 }
0x7d6f   :  { %v14403_v9 = vadd.f32 %v14400_v28, %v4945_v7 }
0x7d70   :  { %v11862_v20 = vpop.f32.mrf.mxu1 }
0x7d71   :  { %v4951_v55 = vmul.f32 %v14403_v9, %v14160_v39 }
0x7d72   :  { %v4948_v46 = vpop.f32.mrf.mxu1 }
0x7d73   :  { %4953 = vrot.lane.b32.xlu0 %v4951_v55, %s13035_s15 }
0x7d74   :  { %v11863_v22 = vpop.f32.mrf.mxu1 }
0x7de5   :  { %v4954_v32 = vpop.permute.xlu0 %4953 }
0x7de6   :  { %v4956_v50 = vadd.f32 %v4954_v32, %v14329_v59 }
0x7de8   :  { %v4957_v51 = vpack.c.bf16 %v4956_v50, %v4956_v50 }
0x7dea   :  { %4959 = vrot.lane.b32.xlu1 %v4957_v51, %s13034_s25 }
0x7e5c   :  { %v4960_v52 = vpop.permute.xlu1 %4959 }
0x7e5d   :  { %11869 = vmatmul.mubr.msk.bf16.vlgmr.msra.gmra.mxu0 %vm49_vm1, %v4960_v52 }
0x7e5e   :  { %11881 = vmatpush3.bf16.msra.mxu0 %v14338_v58  ;;  %11884 = vmatprep.mubr.msk.bf16.mxu0 %vm13031_vm0, %v13030_v1 }
0x7e5f   :  { %11882 = vmatprep.subr.bf16.mxu0 %v13030_v1 }
0x7e62   :  { %11883 = vmatpush3.bf16.msra.mxu0 %v14347_v43 }
0x7e63   :  { %11896 = vmatprep.subr.bf16.mxu0 %v13030_v1 }
0x7f1d   :  { %v4998_v39 = vpop.f32.mrf.mxu0 }
0x7f1e   :  { %v4999_v57 = vadd.f32 %v14387_v47, %v4998_v39 }
0x7f1f   :  { %v11870_v41 = vpop.f32.mrf.mxu0 }
0x7f20   :  { %12834 = vtanh.f32 %v4999_v57 }
0x7f21   :  { %v5001_v62 = vpop.f32.mrf.mxu0 }
0x7f23   :  { %v11871_v16 = vpop.f32.mrf.mxu0 }
0x7f2d   :  { %v12835_v2 = vpop.eup %12834 }
0x7f2e   :  { %v5005_v35 = vpack.c.bf16 %v12835_v2, %v12835_v2 }
0x7f30   :  { %11877 = vmatmul.mubr.msk.bf16.vlgmr.msra.gmra.mxu1 %vm49_vm1, %v5005_v35 }
0x7f31   :  { %11889 = vmatpush3.bf16.msra.mxu1 %v14356_v14  ;;  %11892 = vmatprep.mubr.msk.bf16.mxu1 %vm13031_vm0, %v13030_v1 }
0x7f32   :  { %11890 = vmatprep.subr.bf16.mxu1 %v13030_v1 }
0x7f35   :  { %11891 = vmatpush3.bf16.msra.mxu1 %v14365_v26 }
0x7f36   :  { %11904 = vmatprep.subr.bf16.mxu1 %v13030_v1 }
0x7ff0   :  { %v5043_v38 = vpop.f32.mrf.mxu1 }
0x7ff1   :  { %v5044_v60 = vadd.f32 %v14400_v28, %v5043_v38 }
0x7ff2   :  { %v11878_v61 = vpop.f32.mrf.mxu1 }
0x7ff3   :  { %v5049_v25 = vmul.f32 %v14157_v10, %v5044_v60  ;;  %v14443_v10 = vld [vmem:[%s15810_s2] sm:$0xff]   ;;  %v5148_v29 = vadd.f32 %v5044_v60, %v14403_v9 }
0x7ff4   :  { %v5046_v44 = vpop.f32.mrf.mxu1 }
0x7ff5   :  { %5051 = vrot.lane.b32.xlu0 %v5049_v25, %s13035_s15  ;;  %v5149_v23 = vmul.f32 2.0, %v5148_v29 }
0x7ff6   :  { %v11879_v21 = vpop.f32.mrf.mxu1 }
0x8067   :  { %v5052_v63 = vpop.permute.xlu0 %5051 }
0x8068   :  { %v5054_v3 = vadd.f32 %v5052_v63, %v14329_v59 }
0x806a   :  { %v5055_v4 = vpack.c.bf16 %v5054_v3, %v5054_v3  ;;  %v14506_v3 = vld [vmem:[%s15809_s1 + $0x8] sm:$0x3] }
0x806c   :  { %5057 = vrot.lane.b32.xlu1 %v5055_v4, %s13034_s25  ;;  %v14509_v4 = vmul.f32 0.5, %v14506_v3 }
0x80de   :  { %v5058_v5 = vpop.permute.xlu1 %5057 }
0x80df   :  { %11885 = vmatmul.mubr.msk.bf16.vlgmr.msra.gmra.mxu0 %vm49_vm1, %v5058_v5 }
0x80e0   :  { %11897 = vmatpush3.bf16.msra.mxu0 %v14434_v11  ;;  %11900 = vmatprep.mubr.msk.bf16.mxu0 %vm13031_vm0, %v13030_v1 }
0x80e1   :  { %11898 = vmatprep.subr.bf16.mxu0 %v13030_v1 }
0x80e4   :  { %11899 = vmatpush3.bf16.msra.mxu0 %v14443_v10 }
0x80e5   :  { %11912 = vmatprep.subr.bf16.mxu0 %v13030_v1 }
0x819f   :  { %v5096_v12 = vpop.f32.mrf.mxu0 }
0x81a0   :  { %v5097_v36 = vadd.f32 %v14387_v47, %v5096_v12 }
0x81a1   :  { %v11886_v13 = vpop.f32.mrf.mxu0 }
0x81a2   :  { %12836 = vtanh.f32 %v5097_v36 }
0x81a3   :  { %v5099_v45 = vpop.f32.mrf.mxu0 }
0x81a5   :  { %v11887_v48 = vpop.f32.mrf.mxu0 }
0x81af   :  { %v12837_v8 = vpop.eup %12836 }
0x81b0   :  { %v5103_v53 = vpack.c.bf16 %v12837_v8, %v12837_v8 }
0x81b2   :  { %11893 = vmatmul.mubr.msk.bf16.vlgmr.msra.gmra.mxu1 %vm49_vm1, %v5103_v53 }
0x81b3   :  { %11905 = vmatpush3.bf16.msra.mxu1 %v14338_v58  ;;  %11908 = vmatprep.mubr.msk.bf16.mxu1 %vm13031_vm0, %v13030_v1 }
0x81b4   :  { %11906 = vmatprep.subr.bf16.mxu1 %v13030_v1 }
0x81b7   :  { %11907 = vmatpush3.bf16.msra.mxu1 %v14347_v43 }
0x81b8   :  { %11920 = vmatprep.subr.bf16.mxu1 %v13030_v1 }
0x8272   :  { %v5141_v17 = vpop.f32.mrf.mxu1 }
0x8273   :  { %v5142_v18 = vadd.f32 %v14400_v28, %v5141_v17 }
0x8274   :  { %v11894_v0 = vpop.f32.mrf.mxu1 }
0x8275   :  { %v5147_v19 = vadd.f32 %v5142_v18, %v14370_v15 }
0x8276   :  { %v5144_v42 = vpop.f32.mrf.mxu1 }
0x8277   :  { %v5150_v24 = vadd.f32 %v5149_v23, %v5147_v19 }
0x8278   :  { %v11895_v30 = vpop.f32.mrf.mxu1 }
0x8279   :  { %v5151_v31 = vmul.f32 %v5150_v24, %v14232_v27  ;;  %v10384_v27 = vld [vmem:[%s15808_s0 + $0x8] sm:$0x3] }
0x827b   :  { %5153 = vrot.lane.b32.xlu0 %v5151_v31, %s13035_s15 }
0x82ed   :  { %v5154_v56 = vpop.permute.xlu0 %5153 }
0x82ee   :  { %v14461_v33 = vadd.f32 %v5154_v56, %v14329_v59 }
0x82f0   :  { %v5165_v34 = vpack.c.bf16 %v14461_v33, %v14461_v33 }
0x82f2   :  { %5167 = vrot.lane.b32.xlu1 %v5165_v34, %s13034_s25 }
0x8364   :  { %v5168_v49 = vpop.permute.xlu1 %5167 }
0x8365   :  { %11901 = vmatmul.mubr.msk.bf16.vlgmr.msra.gmra.mxu0 %vm49_vm1, %v5168_v49 }
0x8366   :  { %11913 = vmatpush3.bf16.msra.mxu0 %v14356_v14  ;;  %11916 = vmatprep.mubr.msk.bf16.mxu0 %vm13031_vm0, %v13030_v1 }
0x8367   :  { %11914 = vmatprep.subr.bf16.mxu0 %v13030_v1 }
0x836a   :  { %11915 = vmatpush3.bf16.msra.mxu0 %v14365_v26 }
0x836b   :  { %11928 = vmatprep.subr.bf16.mxu0 %v13030_v1 }
0x8425   :  { %v5206_v59 = vpop.f32.mrf.mxu0 }
0x8426   :  { %v5212_v15 = vadd.f32 %v10384_v27, %v5206_v59 }
0x8427   :  { %v11902_v7 = vpop.f32.mrf.mxu0 }
0x8428   :  { %12838 = vtanh.f32 %v5212_v15  ;;  %v10386_v46 = vmul.f32 -1.442695, %v5212_v15 }
0x8429   :  { %v5209_v9 = vpop.f32.mrf.mxu0 }
0x842a   :  { %12840 = vpow2.f32 %v10386_v46 }
0x842b   :  { %v11903_v20 = vpop.f32.mrf.mxu0 }
0x8435   :  { %v12839_v55 = vpop.eup %12838 }
0x8436   :  { %5222 = vrot.lane.b32.xlu0 %v12839_v55, %s13033_s24 }
0x8437   :  { %v12841_v22 = vpop.eup %12840 }
0x8438   :  { %v5216_v32 = vadd.f32 1.0, %v12841_v22 }
0x843a   :  { %12842 = vrcp.f32 %v5216_v32 }
0x8447   :  { %v12843_v50 = vpop.eup %12842 }
0x8448   :  { %v5220_v39 = vmul.f32 %v12843_v50, %v14130_v37 }
0x84a8   :  { %v5223_v51 = vpop.permute.xlu0 %5222 }
0x84a9   :  { %v5225_v52 = vmul.f32 %v12843_v50, %v5223_v51 }
0x84ab   :  { %5227 = vrot.lane.b32.xlu1 %v5225_v52, %s13034_s25 }
0x851d   :  { %v5228_v57 = vpop.permute.xlu1 %5227 }
0x851e   :  { %v14479_v41 = vadd.f32 %v5228_v57, %v5220_v39 }
0x8520   :  { %12844 = vtanh.f32 %v14479_v41 }
0x852d   :  { %v12845_v62 = vpop.eup %12844 }
0x852e   :  { %5233 = vrot.lane.b32.xlu0 %v12845_v62, %s13033_s24 }
0x85a0   :  { %v5234_v16 = vpop.permute.xlu0 %5233 }
0x85a1   :  { %v14483_v2 = vmul.f32 %v12843_v50, %v5234_v16 }
0x85a3   :  { %v5241_v35 = vpack.c.bf16 %v14483_v2, %v14483_v2 }
0x85a5   :  { %5243 = vrot.lane.b32.xlu1 %v5241_v35, %s13034_s25 }
0x8617   :  { %v5244_v38 = vpop.permute.xlu1 %5243 }
0x8618   :  { %11909 = vmatmul.mubr.msk.bf16.vlgmr.msra.gmra.mxu1 %vm49_vm1, %v5244_v38 }
0x8619   :  { %11921 = vmatpush3.bf16.msra.mxu1 %v14338_v58  ;;  %11924 = vmatprep.mubr.msk.bf16.mxu1 %vm13031_vm0, %v13030_v1 }
0x861a   :  { %11922 = vmatprep.subr.bf16.mxu1 %v13030_v1 }
0x861d   :  { %11923 = vmatpush3.bf16.msra.mxu1 %v14347_v43 }
0x861e   :  { %11936 = vmatprep.subr.bf16.mxu1 %v13030_v1 }
0x86d8   :  { %v5282_v37 = vpop.f32.mrf.mxu1 }
0x86d9   :  { %v5283_v60 = vadd.f32 %v14387_v47, %v5282_v37 }
0x86da   :  { %v11910_v61 = vpop.f32.mrf.mxu1 }
0x86db   :  { %12846 = vtanh.f32 %v5283_v60 }
0x86dc   :  { %v5285_v25 = vpop.f32.mrf.mxu1 }
0x86de   :  { %v11911_v44 = vpop.f32.mrf.mxu1 }
0x86e8   :  { %v12847_v21 = vpop.eup %12846 }
0x86e9   :  { %v5289_v63 = vpack.c.bf16 %v12847_v21, %v12847_v21 }
0x86eb   :  { %11917 = vmatmul.mubr.msk.bf16.vlgmr.msra.gmra.mxu0 %vm49_vm1, %v5289_v63 }
0x86ec   :  { %11929 = vmatpush3.bf16.msra.mxu0 %v14356_v14  ;;  %11932 = vmatprep.mubr.msk.bf16.mxu0 %vm13031_vm0, %v13030_v1 }
0x86ed   :  { %11930 = vmatprep.subr.bf16.mxu0 %v13030_v1 }
0x86f0   :  { %11931 = vmatpush3.bf16.msra.mxu0 %v14365_v26 }
0x86f1   :  { %11944 = vmatprep.subr.bf16.mxu0 %v13030_v1 }
0x87ab   :  { %v5327_v5 = vpop.f32.mrf.mxu0 }
0x87ac   :  { %v14512_v12 = vadd.f32 %v14400_v28, %v5327_v5 }
0x87ad   :  { %v11918_v36 = vpop.f32.mrf.mxu0 }
0x87ae   :  { %v5333_v13 = vmul.f32 %v14512_v12, %v14509_v4 }
0x87af   :  { %v5330_v45 = vpop.f32.mrf.mxu0 }
0x87b0   :  { %5335 = vrot.lane.b32.xlu0 %v5333_v13, %s13035_s15 }
0x87b1   :  { %v11919_v48 = vpop.f32.mrf.mxu0 }
0x8822   :  { %v5336_v8 = vpop.permute.xlu0 %5335 }
0x8823   :  { %v5338_v53 = vadd.f32 %v5336_v8, %v14483_v2 }
0x8825   :  { %v5339_v29 = vpack.c.bf16 %v5338_v53, %v5338_v53 }
0x8827   :  { %5341 = vrot.lane.b32.xlu1 %v5339_v29, %s13034_s25 }
0x8899   :  { %v5342_v17 = vpop.permute.xlu1 %5341 }
0x889a   :  { %11925 = vmatmul.mubr.msk.bf16.vlgmr.msra.gmra.mxu1 %vm49_vm1, %v5342_v17 }
0x889b   :  { %11937 = vmatpush3.bf16.msra.mxu1 %v14338_v58  ;;  %11940 = vmatprep.mubr.msk.bf16.mxu1 %vm13031_vm0, %v13030_v1 }
0x889c   :  { %11938 = vmatprep.subr.bf16.mxu1 %v13030_v1 }
0x889f   :  { %11939 = vmatpush3.bf16.msra.mxu1 %v14347_v43 }
0x88a0   :  { %11952 = vmatprep.subr.bf16.mxu1 %v13030_v1 }
0x895a   :  { %v5380_v18 = vpop.f32.mrf.mxu1 }
0x895b   :  { %v5381_v0 = vadd.f32 %v14387_v47, %v5380_v18  ;;  %v14580_v18 = vmul.f32 0.16666667, %v14506_v3 }
0x895c   :  { %v11926_v23 = vpop.f32.mrf.mxu1 }
0x895d   :  { %12848 = vtanh.f32 %v5381_v0 }
0x895e   :  { %v5383_v19 = vpop.f32.mrf.mxu1 }
0x8960   :  { %v11927_v42 = vpop.f32.mrf.mxu1 }
0x896a   :  { %v12849_v24 = vpop.eup %12848 }
0x896b   :  { %v5387_v30 = vpack.c.bf16 %v12849_v24, %v12849_v24 }
0x896d   :  { %11933 = vmatmul.mubr.msk.bf16.vlgmr.msra.gmra.mxu0 %vm49_vm1, %v5387_v30 }
0x896e   :  { %11945 = vmatpush3.bf16.msra.mxu0 %v14356_v14  ;;  %11948 = vmatprep.mubr.msk.bf16.mxu0 %vm13031_vm0, %v13030_v1 }
0x896f   :  { %11946 = vmatprep.subr.bf16.mxu0 %v13030_v1 }
0x8972   :  { %11947 = vmatpush3.bf16.msra.mxu0 %v14365_v26 }
0x8973   :  { %11960 = vmatprep.subr.bf16.mxu0 %v13030_v1 }
0x8a2d   :  { %v5425_v31 = vpop.f32.mrf.mxu0 }
0x8a2e   :  { %v14535_v56 = vadd.f32 %v14400_v28, %v5425_v31 }
0x8a2f   :  { %v11934_v34 = vpop.f32.mrf.mxu0 }
0x8a30   :  { %v5431_v49 = vmul.f32 %v14535_v56, %v14509_v4 }
0x8a31   :  { %v5428_v27 = vpop.f32.mrf.mxu0 }
0x8a32   :  { %5433 = vrot.lane.b32.xlu0 %v5431_v49, %s13035_s15 }
0x8a33   :  { %v11935_v59 = vpop.f32.mrf.mxu0 }
0x8aa4   :  { %v5434_v15 = vpop.permute.xlu0 %5433 }
0x8aa5   :  { %v5436_v7 = vadd.f32 %v5434_v15, %v14483_v2 }
0x8aa7   :  { %v5437_v9 = vpack.c.bf16 %v5436_v7, %v5436_v7 }
0x8aa9   :  { %5439 = vrot.lane.b32.xlu1 %v5437_v9, %s13034_s25 }
0x8b1b   :  { %v5440_v20 = vpop.permute.xlu1 %5439 }
0x8b1c   :  { %11941 = vmatmul.mubr.msk.bf16.vlgmr.msra.gmra.mxu1 %vm49_vm1, %v5440_v20 }
0x8b1d   :  { %11953 = vmatpush3.bf16.msra.mxu1 %v14338_v58  ;;  %11956 = vmatprep.mubr.msk.bf16.mxu1 %vm13031_vm0, %v13030_v1 }
0x8b1e   :  { %11954 = vmatprep.subr.bf16.mxu1 %v13030_v1 }
0x8b21   :  { %11955 = vmatpush3.bf16.msra.mxu1 %v14347_v43 }
0x8b22   :  { %11968 = vmatprep.subr.bf16.mxu1 %v13030_v1 }
0x8bdc   :  { %v5478_v55 = vpop.f32.mrf.mxu1 }
0x8bdd   :  { %v5479_v46 = vadd.f32 %v14387_v47, %v5478_v55 }
0x8bde   :  { %v11942_v22 = vpop.f32.mrf.mxu1 }
0x8bdf   :  { %12850 = vtanh.f32 %v5479_v46 }
0x8be0   :  { %v5481_v32 = vpop.f32.mrf.mxu1 }
0x8be2   :  { %v11943_v50 = vpop.f32.mrf.mxu1 }
0x8bec   :  { %v12851_v51 = vpop.eup %12850 }
0x8bed   :  { %v5485_v52 = vpack.c.bf16 %v12851_v51, %v12851_v51 }
0x8bef   :  { %11949 = vmatmul.mubr.msk.bf16.vlgmr.msra.gmra.mxu0 %vm49_vm1, %v5485_v52 }
0x8bf0   :  { %11961 = vmatpush3.bf16.msra.mxu0 %v14356_v14  ;;  %11964 = vmatprep.mubr.msk.bf16.mxu0 %vm13031_vm0, %v13030_v1 }
0x8bf1   :  { %11962 = vmatprep.subr.bf16.mxu0 %v13030_v1 }
0x8bf4   :  { %11963 = vmatpush3.bf16.msra.mxu0 %v14365_v26 }
0x8bf5   :  { %11976 = vmatprep.subr.bf16.mxu0 %v13030_v1 }
0x8caf   :  { %v5523_v39 = vpop.f32.mrf.mxu0 }
0x8cb0   :  { %v5524_v57 = vadd.f32 %v14400_v28, %v5523_v39 }
0x8cb1   :  { %v11950_v62 = vpop.f32.mrf.mxu0 }
0x8cb2   :  { %v5529_v16 = vmul.f32 %v14506_v3, %v5524_v57  ;;  %v5628_v48 = vadd.f32 %v5524_v57, %v14535_v56 }
0x8cb3   :  { %v5526_v35 = vpop.f32.mrf.mxu0 }
0x8cb4   :  { %5531 = vrot.lane.b32.xlu0 %v5529_v16, %s13035_s15  ;;  %v5629_v17 = vmul.f32 2.0, %v5628_v48 }
0x8cb5   :  { %v11951_v38 = vpop.f32.mrf.mxu0 }
0x8d26   :  { %v5532_v37 = vpop.permute.xlu0 %5531 }
0x8d27   :  { %v5534_v60 = vadd.f32 %v5532_v37, %v14483_v2 }
0x8d29   :  { %v5535_v61 = vpack.c.bf16 %v5534_v60, %v5534_v60 }
0x8d2b   :  { %5537 = vrot.lane.b32.xlu1 %v5535_v61, %s13034_s25 }
0x8d9d   :  { %v5538_v25 = vpop.permute.xlu1 %5537 }
0x8d9e   :  { %11957 = vmatmul.mubr.msk.bf16.vlgmr.msra.gmra.mxu1 %vm49_vm1, %v5538_v25 }
0x8d9f   :  { %11969 = vmatpush3.bf16.msra.mxu1 %v14338_v58  ;;  %11972 = vmatprep.mubr.msk.bf16.mxu1 %vm13031_vm0, %v13030_v1 }
0x8da0   :  { %11970 = vmatprep.subr.bf16.mxu1 %v13030_v1 }
0x8da3   :  { %11971 = vmatpush3.bf16.msra.mxu1 %v14347_v43 }
0x8da4   :  { %11984 = vmatprep.subr.bf16.mxu1 %v13030_v1 }
0x8e5e   :  { %v5576_v44 = vpop.f32.mrf.mxu1 }
0x8e5f   :  { %v5577_v21 = vadd.f32 %v14387_v47, %v5576_v44 }
0x8e60   :  { %v11958_v63 = vpop.f32.mrf.mxu1 }
0x8e61   :  { %12852 = vtanh.f32 %v5577_v21 }
0x8e62   :  { %v5579_v5 = vpop.f32.mrf.mxu1 }
0x8e64   :  { %v11959_v36 = vpop.f32.mrf.mxu1 }
0x8e6e   :  { %v12853_v13 = vpop.eup %12852 }
0x8e6f   :  { %v5583_v45 = vpack.c.bf16 %v12853_v13, %v12853_v13 }
0x8e71   :  { %11965 = vmatmul.mubr.msk.bf16.vlgmr.msra.gmra.mxu0 %vm49_vm1, %v5583_v45 }
0x8e72   :  { %11977 = vmatpush3.bf16.msra.mxu0 %v14356_v14  ;;  %11980 = vmatprep.mubr.msk.bf16.mxu0 %vm13031_vm0, %v13030_v1 }
0x8e73   :  { %11978 = vmatprep.subr.bf16.mxu0 %v13030_v1 }
0x8e76   :  { %11979 = vmatpush3.bf16.msra.mxu0 %v14365_v26 }
0x8e77   :  { %11992 = vmatprep.subr.bf16.mxu0 %v13030_v1 }
0x8f31   :  { %v5621_v8 = vpop.f32.mrf.mxu0 }
0x8f32   :  { %v5622_v53 = vadd.f32 %v14400_v28, %v5621_v8 }
0x8f33   :  { %v11966_v29 = vpop.f32.mrf.mxu0 }
0x8f34   :  { %v5627_v0 = vadd.f32 %v5622_v53, %v14512_v12 }
0x8f35   :  { %v5624_v23 = vpop.f32.mrf.mxu0 }
0x8f36   :  { %v5630_v19 = vadd.f32 %v5629_v17, %v5627_v0 }
0x8f37   :  { %v11967_v42 = vpop.f32.mrf.mxu0 }
0x8f38   :  { %v5631_v24 = vmul.f32 %v5630_v19, %v14580_v18 }
0x8f3a   :  { %5633 = vrot.lane.b32.xlu0 %v5631_v24, %s13035_s15 }
0x8fac   :  { %v5634_v30 = vpop.permute.xlu0 %5633 }
0x8fad   :  { %v14586_v31 = vadd.f32 %v5634_v30, %v14483_v2 }
0x8faf   :  { %v5637_v56 = vpack.c.bf16 %v14586_v31, %v14586_v31 }
0x8fb1   :  { %5639 = vrot.lane.b32.xlu1 %v5637_v56, %s13034_s25 }
0x9023   :  { %v5640_v34 = vpop.permute.xlu1 %5639 }
0x9024   :  { %11973 = vmatmul.mubr.msk.bf16.vlgmr.msra.gmra.mxu1 %vm49_vm1, %v5640_v34 }
0x9025   :  { %11985 = vmatpush3.bf16.msra.mxu1 %v14338_v58  ;;  %11988 = vmatprep.mubr.msk.bf16.mxu1 %vm13031_vm0, %v13030_v1 }
0x9026   :  { %11986 = vmatprep.subr.bf16.mxu1 %v13030_v1 }
0x9029   :  { %11987 = vmatpush3.bf16.msra.mxu1 %v14347_v43 }
0x902a   :  { %12000 = vmatprep.subr.bf16.mxu1 %v13030_v1 }
0x90e4   :  { %v5678_v2 = vpop.f32.mrf.mxu1 }
0x90e5   :  { %v5679_v12 = vadd.f32 %v14387_v47, %v5678_v2 }
0x90e6   :  { %v11974_v49 = vpop.f32.mrf.mxu1 }
0x90e7   :  { %12854 = vtanh.f32 %v5679_v12 }
0x90e8   :  { %v5681_v27 = vpop.f32.mrf.mxu1 }
0x90ea   :  { %v11975_v59 = vpop.f32.mrf.mxu1 }
0x90f4   :  { %v12855_v15 = vpop.eup %12854 }
0x90f5   :  { %v5685_v7 = vpack.c.bf16 %v12855_v15, %v12855_v15 }
0x90f7   :  { %11981 = vmatmul.mubr.msk.bf16.vlgmr.msra.gmra.mxu0 %vm49_vm1, %v5685_v7 }
0x90f8   :  { %11993 = vmatpush3.bf16.msra.mxu0 %v14356_v14  ;;  %11996 = vmatprep.mubr.msk.bf16.mxu0 %vm13031_vm0, %v13030_v1 }
0x90f9   :  { %11994 = vmatprep.subr.bf16.mxu0 %v13030_v1 }
0x90fc   :  { %11995 = vmatpush3.bf16.msra.mxu0 %v14365_v26 }
0x90fd   :  { %12008 = vmatprep.subr.bf16.mxu0 %v13030_v1 }
0x91b7   :  { %v5723_v9 = vpop.f32.mrf.mxu0 }
0x91b8   :  { %v14607_v20 = vadd.f32 %v14400_v28, %v5723_v9 }
0x91b9   :  { %v11982_v55 = vpop.f32.mrf.mxu0 }
0x91ba   :  { %v5729_v46 = vmul.f32 %v14607_v20, %v14509_v4 }
0x91bb   :  { %v5726_v22 = vpop.f32.mrf.mxu0 }
0x91bc   :  { %5731 = vrot.lane.b32.xlu0 %v5729_v46, %s13035_s15 }
0x91bd   :  { %v11983_v32 = vpop.f32.mrf.mxu0 }
0x922e   :  { %v5732_v50 = vpop.permute.xlu0 %5731 }
0x922f   :  { %v5734_v51 = vadd.f32 %v5732_v50, %v14586_v31 }
0x9231   :  { %v5735_v52 = vpack.c.bf16 %v5734_v51, %v5734_v51 }
0x9233   :  { %5737 = vrot.lane.b32.xlu1 %v5735_v52, %s13034_s25 }
0x92a5   :  { %v5738_v39 = vpop.permute.xlu1 %5737 }
0x92a6   :  { %11989 = vmatmul.mubr.msk.bf16.vlgmr.msra.gmra.mxu1 %vm49_vm1, %v5738_v39 }
0x92a7   :  { %12001 = vmatpush3.bf16.msra.mxu1 %v14338_v58  ;;  %12004 = vmatprep.mubr.msk.bf16.mxu1 %vm13031_vm0, %v13030_v1 }
0x92a8   :  { %12002 = vmatprep.subr.bf16.mxu1 %v13030_v1 }
0x92ab   :  { %12003 = vmatpush3.bf16.msra.mxu1 %v14347_v43 }
0x92ac   :  { %12016 = vmatprep.subr.bf16.mxu1 %v13030_v1 }
0x9366   :  { %v5776_v57 = vpop.f32.mrf.mxu1 }
0x9367   :  { %v5777_v62 = vadd.f32 %v14387_v47, %v5776_v57 }
0x9368   :  { %v11990_v16 = vpop.f32.mrf.mxu1 }
0x9369   :  { %12856 = vtanh.f32 %v5777_v62 }
0x936a   :  { %v5779_v35 = vpop.f32.mrf.mxu1 }
0x936c   :  { %v11991_v38 = vpop.f32.mrf.mxu1 }
0x9376   :  { %v12857_v37 = vpop.eup %12856 }
0x9377   :  { %v5783_v60 = vpack.c.bf16 %v12857_v37, %v12857_v37 }
0x9379   :  { %11997 = vmatmul.mubr.msk.bf16.vlgmr.msra.gmra.mxu0 %vm49_vm1, %v5783_v60 }
0x937a   :  { %12009 = vmatpush3.bf16.msra.mxu0 %v14356_v14  ;;  %12012 = vmatprep.mubr.msk.bf16.mxu0 %vm13031_vm0, %v13030_v1 }
0x937b   :  { %12010 = vmatprep.subr.bf16.mxu0 %v13030_v1 }
0x937e   :  { %12011 = vmatpush3.bf16.msra.mxu0 %v14365_v26 }
0x937f   :  { %12024 = vmatprep.subr.bf16.mxu0 %v13030_v1 }
0x9439   :  { %v5821_v61 = vpop.f32.mrf.mxu0 }
0x943a   :  { %v14630_v25 = vadd.f32 %v14400_v28, %v5821_v61 }
0x943b   :  { %v11998_v44 = vpop.f32.mrf.mxu0 }
0x943c   :  { %v5827_v21 = vmul.f32 %v14630_v25, %v14509_v4 }
0x943d   :  { %v5824_v63 = vpop.f32.mrf.mxu0 }
0x943e   :  { %5829 = vrot.lane.b32.xlu0 %v5827_v21, %s13035_s15 }
0x943f   :  { %v11999_v5 = vpop.f32.mrf.mxu0 }
0x94b0   :  { %v5830_v36 = vpop.permute.xlu0 %5829 }
0x94b1   :  { %v5832_v13 = vadd.f32 %v5830_v36, %v14586_v31 }
0x94b3   :  { %v5833_v45 = vpack.c.bf16 %v5832_v13, %v5832_v13 }
0x94b5   :  { %5835 = vrot.lane.b32.xlu1 %v5833_v45, %s13034_s25 }
0x9527   :  { %v5836_v48 = vpop.permute.xlu1 %5835 }
0x9528   :  { %12005 = vmatmul.mubr.msk.bf16.vlgmr.msra.gmra.mxu1 %vm49_vm1, %v5836_v48 }
0x9529   :  { %12017 = vmatpush3.bf16.msra.mxu1 %v14338_v58  ;;  %12020 = vmatprep.mubr.msk.bf16.mxu1 %vm13031_vm0, %v13030_v1 }
0x952a   :  { %12018 = vmatprep.subr.bf16.mxu1 %v13030_v1 }
0x952d   :  { %12019 = vmatpush3.bf16.msra.mxu1 %v14347_v43 }
0x952e   :  { %12032 = vmatprep.subr.bf16.mxu1 %v13030_v1 }
0x95e8   :  { %v5874_v8 = vpop.f32.mrf.mxu1 }
0x95e9   :  { %v5875_v53 = vadd.f32 %v14387_v47, %v5874_v8 }
0x95ea   :  { %v12006_v29 = vpop.f32.mrf.mxu1 }
0x95eb   :  { %12858 = vtanh.f32 %v5875_v53 }
0x95ec   :  { %v5877_v17 = vpop.f32.mrf.mxu1 }
0x95ee   :  { %v12007_v0 = vpop.f32.mrf.mxu1 }
0x95f8   :  { %v12859_v23 = vpop.eup %12858 }
0x95f9   :  { %v5881_v19 = vpack.c.bf16 %v12859_v23, %v12859_v23 }
0x95fb   :  { %12013 = vmatmul.mubr.msk.bf16.vlgmr.msra.gmra.mxu0 %vm49_vm1, %v5881_v19 }
0x95fc   :  { %12025 = vmatpush3.bf16.msra.mxu0 %v14356_v14  ;;  %12028 = vmatprep.mubr.msk.bf16.mxu0 %vm13031_vm0, %v13030_v1 }
0x95fd   :  { %12026 = vmatprep.subr.bf16.mxu0 %v13030_v1 }
0x9600   :  { %12027 = vmatpush3.bf16.msra.mxu0 %v14365_v26 }
0x9601   :  { %12040 = vmatprep.subr.bf16.mxu0 %v13030_v1 }
0x96bb   :  { %v5919_v42 = vpop.f32.mrf.mxu0 }
0x96bc   :  { %v5920_v24 = vadd.f32 %v14400_v28, %v5919_v42 }
0x96bd   :  { %v12014_v30 = vpop.f32.mrf.mxu0 }
0x96be   :  { %v5925_v56 = vmul.f32 %v14506_v3, %v5920_v24  ;;  %v6024_v50 = vadd.f32 %v5920_v24, %v14630_v25 }
0x96bf   :  { %v5922_v34 = vpop.f32.mrf.mxu0 }
0x96c0   :  { %5927 = vrot.lane.b32.xlu0 %v5925_v56, %s13035_s15  ;;  %v6025_v57 = vmul.f32 2.0, %v6024_v50 }
0x96c1   :  { %v12015_v2 = vpop.f32.mrf.mxu0 }
0x9732   :  { %v5928_v12 = vpop.permute.xlu0 %5927 }
0x9733   :  { %v5930_v49 = vadd.f32 %v5928_v12, %v14586_v31 }
0x9735   :  { %v5931_v27 = vpack.c.bf16 %v5930_v49, %v5930_v49 }
0x9737   :  { %5933 = vrot.lane.b32.xlu1 %v5931_v27, %s13034_s25 }
0x97a9   :  { %v5934_v59 = vpop.permute.xlu1 %5933 }
0x97aa   :  { %12021 = vmatmul.mubr.msk.bf16.vlgmr.msra.gmra.mxu1 %vm49_vm1, %v5934_v59 }
0x97ab   :  { %12033 = vmatpush3.bf16.msra.mxu1 %v14338_v58  ;;  %12036 = vmatprep.mubr.msk.bf16.mxu1 %vm13031_vm0, %v13030_v1 }
0x97ac   :  { %12034 = vmatprep.subr.bf16.mxu1 %v13030_v1 }
0x97af   :  { %12035 = vmatpush3.bf16.msra.mxu1 %v14347_v43 }
0x97b0   :  { %12048 = vmatprep.subr.bf16.mxu1 %v13030_v1 }
0x986a   :  { %v5972_v15 = vpop.f32.mrf.mxu1 }
0x986b   :  { %v5973_v7 = vadd.f32 %v14387_v47, %v5972_v15 }
0x986c   :  { %v12022_v9 = vpop.f32.mrf.mxu1 }
0x986d   :  { %12860 = vtanh.f32 %v5973_v7 }
0x986e   :  { %v5975_v55 = vpop.f32.mrf.mxu1 }
0x9870   :  { %v12023_v46 = vpop.f32.mrf.mxu1 }
0x987a   :  { %v12861_v22 = vpop.eup %12860 }
0x987b   :  { %v5979_v32 = vpack.c.bf16 %v12861_v22, %v12861_v22 }
0x987d   :  { %12029 = vmatmul.mubr.msk.bf16.vlgmr.msra.gmra.mxu0 %vm49_vm1, %v5979_v32 }
0x987e   :  { %12041 = vmatpush3.bf16.msra.mxu0 %v14356_v14  ;;  %12044 = vmatprep.mubr.msk.bf16.mxu0 %vm13031_vm0, %v13030_v1 }
0x987f   :  { %12042 = vmatprep.subr.bf16.mxu0 %v13030_v1 }
0x9882   :  { %12043 = vmatpush3.bf16.msra.mxu0 %v14365_v26 }
0x9883   :  { %12056 = vmatprep.subr.bf16.mxu0 %v13030_v1 }
0x993d   :  { %v6017_v51 = vpop.f32.mrf.mxu0 }
0x993e   :  { %v6018_v52 = vadd.f32 %v14400_v28, %v6017_v51 }
0x993f   :  { %v12030_v39 = vpop.f32.mrf.mxu0 }
0x9940   :  { %v6023_v62 = vadd.f32 %v6018_v52, %v14607_v20 }
0x9941   :  { %v6020_v16 = vpop.f32.mrf.mxu0 }
0x9942   :  { %v6026_v35 = vadd.f32 %v6025_v57, %v6023_v62 }
0x9943   :  { %v12031_v38 = vpop.f32.mrf.mxu0 }
0x9944   :  { %v6027_v37 = vmul.f32 %v6026_v35, %v14580_v18 }
0x9946   :  { %6029 = vrot.lane.b32.xlu0 %v6027_v37, %s13035_s15 }
0x99b8   :  { %v6030_v60 = vpop.permute.xlu0 %6029 }
0x99b9   :  { %v14678_v61 = vadd.f32 %v6030_v60, %v14586_v31 }
0x99bb   :  { %v6033_v25 = vpack.c.bf16 %v14678_v61, %v14678_v61 }
0x99bd   :  { %6035 = vrot.lane.b32.xlu1 %v6033_v25, %s13034_s25 }
0x9a2f   :  { %v6036_v44 = vpop.permute.xlu1 %6035 }
0x9a30   :  { %12037 = vmatmul.mubr.msk.bf16.vlgmr.msra.gmra.mxu1 %vm49_vm1, %v6036_v44 }
0x9a31   :  { %12049 = vmatpush3.bf16.msra.mxu1 %v14338_v58  ;;  %12052 = vmatprep.mubr.msk.bf16.mxu1 %vm13031_vm0, %v13030_v1 }
0x9a32   :  { %12050 = vmatprep.subr.bf16.mxu1 %v13030_v1 }
0x9a35   :  { %12051 = vmatpush3.bf16.msra.mxu1 %v14347_v43 }
0x9a36   :  { %12064 = vmatprep.subr.bf16.mxu1 %v13030_v1 }
0x9af0   :  { %v6074_v31 = vpop.f32.mrf.mxu1 }
0x9af1   :  { %v6075_v20 = vadd.f32 %v14387_v47, %v6074_v31 }
0x9af2   :  { %v12038_v21 = vpop.f32.mrf.mxu1 }
0x9af3   :  { %12862 = vtanh.f32 %v6075_v20 }
0x9af4   :  { %v6077_v63 = vpop.f32.mrf.mxu1 }
0x9af6   :  { %v12039_v5 = vpop.f32.mrf.mxu1 }
0x9b00   :  { %v12863_v36 = vpop.eup %12862 }
0x9b01   :  { %v6081_v13 = vpack.c.bf16 %v12863_v36, %v12863_v36 }
0x9b03   :  { %12045 = vmatmul.mubr.msk.bf16.vlgmr.msra.gmra.mxu0 %vm49_vm1, %v6081_v13 }
0x9b04   :  { %12057 = vmatpush3.bf16.msra.mxu0 %v14356_v14  ;;  %12060 = vmatprep.mubr.msk.bf16.mxu0 %vm13031_vm0, %v13030_v1 }
0x9b05   :  { %12058 = vmatprep.subr.bf16.mxu0 %v13030_v1 }
0x9b08   :  { %12059 = vmatpush3.bf16.msra.mxu0 %v14365_v26 }
0x9b09   :  { %12072 = vmatprep.subr.bf16.mxu0 %v13030_v1 }
0x9bc3   :  { %v6119_v45 = vpop.f32.mrf.mxu0 }
0x9bc4   :  { %v14699_v48 = vadd.f32 %v14400_v28, %v6119_v45 }
0x9bc5   :  { %v12046_v8 = vpop.f32.mrf.mxu0 }
0x9bc6   :  { %v6125_v53 = vmul.f32 %v14699_v48, %v14509_v4 }
0x9bc7   :  { %v6122_v29 = vpop.f32.mrf.mxu0 }
0x9bc8   :  { %6127 = vrot.lane.b32.xlu0 %v6125_v53, %s13035_s15 }
0x9bc9   :  { %v12047_v17 = vpop.f32.mrf.mxu0 }
0x9c3a   :  { %v6128_v0 = vpop.permute.xlu0 %6127 }
0x9c3b   :  { %v6130_v23 = vadd.f32 %v6128_v0, %v14678_v61 }
0x9c3d   :  { %v6131_v19 = vpack.c.bf16 %v6130_v23, %v6130_v23 }
0x9c3f   :  { %6133 = vrot.lane.b32.xlu1 %v6131_v19, %s13034_s25 }
0x9cb1   :  { %v6134_v42 = vpop.permute.xlu1 %6133 }
0x9cb2   :  { %12053 = vmatmul.mubr.msk.bf16.vlgmr.msra.gmra.mxu1 %vm49_vm1, %v6134_v42 }
0x9cb3   :  { %12065 = vmatpush3.bf16.msra.mxu1 %v14338_v58  ;;  %12068 = vmatprep.mubr.msk.bf16.mxu1 %vm13031_vm0, %v13030_v1 }
0x9cb4   :  { %12066 = vmatprep.subr.bf16.mxu1 %v13030_v1 }
0x9cb7   :  { %12067 = vmatpush3.bf16.msra.mxu1 %v14347_v43 }
0x9cb8   :  { %12080 = vmatprep.subr.bf16.mxu1 %v13030_v1 }
0x9d72   :  { %v6172_v24 = vpop.f32.mrf.mxu1 }
0x9d73   :  { %v6173_v30 = vadd.f32 %v14387_v47, %v6172_v24 }
0x9d74   :  { %v12054_v56 = vpop.f32.mrf.mxu1 }
0x9d75   :  { %12864 = vtanh.f32 %v6173_v30 }
0x9d76   :  { %v6175_v34 = vpop.f32.mrf.mxu1 }
0x9d78   :  { %v12055_v2 = vpop.f32.mrf.mxu1 }
0x9d82   :  { %v12865_v12 = vpop.eup %12864 }
0x9d83   :  { %v6179_v49 = vpack.c.bf16 %v12865_v12, %v12865_v12 }
0x9d85   :  { %12061 = vmatmul.mubr.msk.bf16.vlgmr.msra.gmra.mxu0 %vm49_vm1, %v6179_v49 }
0x9d86   :  { %12073 = vmatpush3.bf16.msra.mxu0 %v14356_v14  ;;  %12076 = vmatprep.mubr.msk.bf16.mxu0 %vm13031_vm0, %v13030_v1 }
0x9d87   :  { %12074 = vmatprep.subr.bf16.mxu0 %v13030_v1 }
0x9d8a   :  { %12075 = vmatpush3.bf16.msra.mxu0 %v14365_v26 }
0x9d8b   :  { %12088 = vmatprep.subr.bf16.mxu0 %v13030_v1 }
0x9e45   :  { %v6217_v27 = vpop.f32.mrf.mxu0 }
0x9e46   :  { %v14722_v59 = vadd.f32 %v14400_v28, %v6217_v27 }
0x9e47   :  { %v12062_v15 = vpop.f32.mrf.mxu0 }
0x9e48   :  { %v6223_v7 = vmul.f32 %v14722_v59, %v14509_v4 }
0x9e49   :  { %v6220_v9 = vpop.f32.mrf.mxu0 }
0x9e4a   :  { %6225 = vrot.lane.b32.xlu0 %v6223_v7, %s13035_s15 }
0x9e4b   :  { %v12063_v55 = vpop.f32.mrf.mxu0 }
0x9ebc   :  { %v6226_v46 = vpop.permute.xlu0 %6225 }
0x9ebd   :  { %v6228_v22 = vadd.f32 %v6226_v46, %v14678_v61 }
0x9ebf   :  { %v6229_v32 = vpack.c.bf16 %v6228_v22, %v6228_v22 }
0x9ec1   :  { %6231 = vrot.lane.b32.xlu1 %v6229_v32, %s13034_s25 }
0x9f33   :  { %v6232_v50 = vpop.permute.xlu1 %6231 }
0x9f34   :  { %12069 = vmatmul.mubr.msk.bf16.vlgmr.msra.gmra.mxu1 %vm49_vm1, %v6232_v50 }
0x9f35   :  { %12081 = vmatpush3.bf16.msra.mxu1 %v14338_v58  ;;  %12084 = vmatprep.mubr.msk.bf16.mxu1 %vm13031_vm0, %v13030_v1 }
0x9f36   :  { %12082 = vmatprep.subr.bf16.mxu1 %v13030_v1 }
0x9f39   :  { %12083 = vmatpush3.bf16.msra.mxu1 %v14347_v43 }
0x9f3a   :  { %12096 = vmatprep.subr.bf16.mxu1 %v13030_v1 }
0x9ff4   :  { %v6270_v4 = vpop.f32.mrf.mxu1 }
0x9ff5   :  { %v6271_v51 = vadd.f32 %v14387_v47, %v6270_v4 }
0x9ff6   :  { %v12070_v52 = vpop.f32.mrf.mxu1 }
0x9ff7   :  { %12866 = vtanh.f32 %v6271_v51 }
0x9ff8   :  { %v6273_v39 = vpop.f32.mrf.mxu1 }
0x9ffa   :  { %v12071_v57 = vpop.f32.mrf.mxu1 }
0xa004   :  { %v12867_v62 = vpop.eup %12866 }
0xa005   :  { %v6277_v16 = vpack.c.bf16 %v12867_v62, %v12867_v62  ;;  %v14827_v62 = vld [vmem:[%s15812_s4] ss:$0 sm:$0xff] }
0xa007   :  { %12077 = vmatmul.mubr.msk.bf16.vlgmr.msra.gmra.mxu0 %vm49_vm1, %v6277_v16 }
0xa008   :  { %12089 = vmatpush3.bf16.msra.mxu0 %v14356_v14  ;;  %12092 = vmatprep.mubr.msk.bf16.mxu0 %vm13031_vm0, %v13030_v1 }
0xa009   :  { %12090 = vmatprep.subr.bf16.mxu0 %v13030_v1 }
0xa00c   :  { %12091 = vmatpush3.bf16.msra.mxu0 %v14365_v26 }
0xa00d   :  { %12104 = vmatprep.subr.bf16.mxu0 %v13030_v1 }
0xa0c7   :  { %v6315_v58 = vpop.f32.mrf.mxu0 }
0xa0c8   :  { %v6316_v43 = vadd.f32 %v14400_v28, %v6315_v58 }
0xa0c9   :  { %v12078_v35 = vpop.f32.mrf.mxu0 }
0xa0ca   :  { %v6321_v38 = vmul.f32 %v14506_v3, %v6316_v43 }
0xa0cb   :  { %v6318_v37 = vpop.f32.mrf.mxu0 }
0xa0cc   :  { %6323 = vrot.lane.b32.xlu0 %v6321_v38, %s13035_s15 }
0xa0cd   :  { %v12079_v60 = vpop.f32.mrf.mxu0 }
0xa0ce   :  { %v14840_v60 = vld [vmem:[%s15809_s1 + $0xa] sm:$0x3] }
0xa13e   :  { %v6324_v14 = vpop.permute.xlu0 %6323 }
0xa13f   :  { %v6326_v25 = vadd.f32 %v6324_v14, %v14678_v61  ;;  %v14843_v14 = vmul.f32 0.5, %v14840_v60 }
0xa141   :  { %v6327_v44 = vpack.c.bf16 %v6326_v25, %v6326_v25 }
0xa143   :  { %6329 = vrot.lane.b32.xlu1 %v6327_v44, %s13034_s25  ;;  %v14848_v44 = vld [vmem:[%s15812_s4 + $0x1] ss:$0 sm:$0xff] }
0xa1b5   :  { %v6330_v31 = vpop.permute.xlu1 %6329 }
0xa1b6   :  { %12085 = vmatmul.mubr.msk.bf16.vlgmr.msra.gmra.mxu1 %vm49_vm1, %v6330_v31 }
0xa1b7   :  { %12097 = vmatpush3.bf16.msra.mxu1 %v14434_v11  ;;  %12100 = vmatprep.mubr.msk.bf16.mxu1 %vm13031_vm0, %v13030_v1  ;;  %v14761_v11 = vld [vmem:[%s15811_s3 + $0x8] sm:$0xff]  }
0xa1b8   :  { %12098 = vmatprep.subr.bf16.mxu1 %v13030_v1 }
0xa1bb   :  { %12099 = vmatpush3.bf16.msra.mxu1 %v14443_v10  ;;  %v6420_v10 = vadd.f32 %v6316_v43, %v14722_v59 }
0xa1bc   :  { %12112 = vmatprep.subr.bf16.mxu1 %v13030_v1 }
0xa1bd   :  { %v6421_v53 = vmul.f32 2.0, %v6420_v10 }
0xa276   :  { %v6368_v26 = vpop.f32.mrf.mxu1 }
0xa277   :  { %v6369_v3 = vadd.f32 %v14387_v47, %v6368_v26  ;;  %v14770_v47 = vld [vmem:[%s15811_s3] sm:$0xff]  }
0xa278   :  { %v12086_v20 = vpop.f32.mrf.mxu1 }
0xa279   :  { %12868 = vtanh.f32 %v6369_v3 }
0xa27a   :  { %v6371_v21 = vpop.f32.mrf.mxu1 }
0xa27c   :  { %v12087_v63 = vpop.f32.mrf.mxu1 }
0xa286   :  { %v12869_v5 = vpop.eup %12868 }
0xa287   :  { %v6375_v36 = vpack.c.bf16 %v12869_v5, %v12869_v5 }
0xa289   :  { %12093 = vmatmul.mubr.msk.bf16.vlgmr.msra.gmra.mxu0 %vm49_vm1, %v6375_v36 }
0xa28a   :  { %12105 = vmatpush3.bf16.msra.mxu0 %v14761_v11  ;;  %12108 = vmatprep.mubr.msk.bf16.mxu0 %vm13031_vm0, %v13030_v1 }
0xa28b   :  { %12106 = vmatprep.subr.bf16.mxu0 %v13030_v1 }
0xa28e   :  { %12107 = vmatpush3.bf16.msra.mxu0 %v14770_v47 }
0xa28f   :  { %12120 = vmatprep.subr.bf16.mxu0 %v13030_v1 }
0xa349   :  { %v6413_v13 = vpop.f32.mrf.mxu0 }
0xa34a   :  { %v6414_v45 = vadd.f32 %v14400_v28, %v6413_v13 }
0xa34b   :  { %v12094_v8 = vpop.f32.mrf.mxu0 }
0xa34c   :  { %v6419_v29 = vadd.f32 %v6414_v45, %v14699_v48  ;;  %v14789_v48 = vld [vmem:[%s15811_s3 + $0x18] sm:$0xff]  }
0xa34d   :  { %v6416_v17 = vpop.f32.mrf.mxu0 }
0xa34e   :  { %v6422_v0 = vadd.f32 %v6421_v53, %v6419_v29 }
0xa34f   :  { %v12095_v23 = vpop.f32.mrf.mxu0 }
0xa350   :  { %v6423_v19 = vmul.f32 %v6422_v0, %v14580_v18  ;;  %v14798_v18 = vld [vmem:[%s15811_s3 + $0x10] sm:$0xff]  }
0xa352   :  { %6425 = vrot.lane.b32.xlu0 %v6423_v19, %s13035_s15 }
0xa3c4   :  { %v6426_v42 = vpop.permute.xlu0 %6425 }
0xa3c5   :  { %v14780_v24 = vadd.f32 %v6426_v42, %v14678_v61  ;;  %v10412_v61 = vld [vmem:[%s15808_s0 + $0xa] sm:$0x3] }
0xa3c7   :  { %v6437_v30 = vpack.c.bf16 %v14780_v24, %v14780_v24 }
0xa3c9   :  { %6439 = vrot.lane.b32.xlu1 %v6437_v30, %s13034_s25 }
0xa43b   :  { %v6440_v28 = vpop.permute.xlu1 %6439 }
0xa43c   :  { %12101 = vmatmul.mubr.msk.bf16.vlgmr.msra.gmra.mxu1 %vm49_vm1, %v6440_v28 }
0xa43d   :  { %12113 = vmatpush3.bf16.msra.mxu1 %v14789_v48  ;;  %12116 = vmatprep.mubr.msk.bf16.mxu1 %vm13031_vm0, %v13030_v1 }
0xa43e   :  { %12114 = vmatprep.subr.bf16.mxu1 %v13030_v1 }
0xa441   :  { %12115 = vmatpush3.bf16.msra.mxu1 %v14798_v18 }
0xa442   :  { %12128 = vmatprep.subr.bf16.mxu1 %v13030_v1 }
0xa4fc   :  { %v6478_v56 = vpop.f32.mrf.mxu1 }
0xa4fd   :  { %v6484_v34 = vadd.f32 %v10412_v61, %v6478_v56 }
0xa4fe   :  { %v12102_v2 = vpop.f32.mrf.mxu1 }
0xa4ff   :  { %12870 = vtanh.f32 %v6484_v34  ;;  %v10414_v59 = vmul.f32 -1.442695, %v6484_v34 }
0xa500   :  { %v6481_v12 = vpop.f32.mrf.mxu1 }
0xa501   :  { %12872 = vpow2.f32 %v10414_v59 }
0xa502   :  { %v12103_v49 = vpop.f32.mrf.mxu1 }
0xa50c   :  { %v12871_v27 = vpop.eup %12870 }
0xa50d   :  { %6494 = vrot.lane.b32.xlu0 %v12871_v27, %s13033_s24 }
0xa50e   :  { %v12873_v15 = vpop.eup %12872 }
0xa50f   :  { %v6488_v7 = vadd.f32 1.0, %v12873_v15 }
0xa511   :  { %12874 = vrcp.f32 %v6488_v7 }
0xa51e   :  { %v12875_v9 = vpop.eup %12874 }
0xa51f   :  { %v6492_v22 = vmul.f32 %v12875_v9, %v14479_v41 }
0xa57f   :  { %v6495_v55 = vpop.permute.xlu0 %6494 }
0xa580   :  { %v6497_v46 = vmul.f32 %v12875_v9, %v6495_v55 }
0xa582   :  { %6499 = vrot.lane.b32.xlu1 %v6497_v46, %s13034_s25 }
0xa5f4   :  { %v6500_v32 = vpop.permute.xlu1 %6499 }
0xa5f5   :  { %v14808_v50 = vadd.f32 %v6500_v32, %v6492_v22 }
0xa5f7   :  { %12876 = vtanh.f32 %v14808_v50 }
0xa604   :  { %v12877_v4 = vpop.eup %12876 }
0xa605   :  { %6505 = vrot.lane.b32.xlu0 %v12877_v4, %s13033_s24 }
0xa677   :  { %v6506_v51 = vpop.permute.xlu0 %6505 }
0xa678   :  { %v14812_v52 = vmul.f32 %v12875_v9, %v6506_v51 }
0xa67a   :  { %v6513_v39 = vpack.c.bf16 %v14812_v52, %v14812_v52 }
0xa67c   :  { %6515 = vrot.lane.b32.xlu1 %v6513_v39, %s13034_s25 }
0xa6ee   :  { %v6516_v57 = vpop.permute.xlu1 %6515 }
0xa6ef   :  { %12109 = vmatmul.mubr.msk.bf16.vlgmr.msra.gmra.mxu0 %vm49_vm1, %v6516_v57 }
0xa6f0   :  { %12121 = vmatpush3.bf16.msra.mxu0 %v14761_v11  ;;  %12124 = vmatprep.mubr.msk.bf16.mxu0 %vm13031_vm0, %v13030_v1 }
0xa6f1   :  { %12122 = vmatprep.subr.bf16.mxu0 %v13030_v1 }
0xa6f4   :  { %12123 = vmatpush3.bf16.msra.mxu0 %v14770_v47 }
0xa6f5   :  { %12136 = vmatprep.subr.bf16.mxu0 %v13030_v1 }
0xa7af   :  { %v6554_v41 = vpop.f32.mrf.mxu0 }
0xa7b0   :  { %v6555_v16 = vadd.f32 %v14827_v62, %v6554_v41 }
0xa7b1   :  { %v12110_v58 = vpop.f32.mrf.mxu0 }
0xa7b2   :  { %12878 = vtanh.f32 %v6555_v16 }
0xa7b3   :  { %v6557_v43 = vpop.f32.mrf.mxu0 }
0xa7b5   :  { %v12111_v35 = vpop.f32.mrf.mxu0 }
0xa7bf   :  { %v12879_v38 = vpop.eup %12878 }
0xa7c0   :  { %v6561_v37 = vpack.c.bf16 %v12879_v38, %v12879_v38 }
0xa7c2   :  { %12117 = vmatmul.mubr.msk.bf16.vlgmr.msra.gmra.mxu1 %vm49_vm1, %v6561_v37 }
0xa7c3   :  { %12129 = vmatpush3.bf16.msra.mxu1 %v14789_v48  ;;  %12132 = vmatprep.mubr.msk.bf16.mxu1 %vm13031_vm0, %v13030_v1 }
0xa7c4   :  { %12130 = vmatprep.subr.bf16.mxu1 %v13030_v1 }
0xa7c7   :  { %12131 = vmatpush3.bf16.msra.mxu1 %v14798_v18 }
0xa7c8   :  { %12144 = vmatprep.subr.bf16.mxu1 %v13030_v1 }
0xa882   :  { %v6599_v25 = vpop.f32.mrf.mxu1 }
0xa883   :  { %v14851_v31 = vadd.f32 %v14848_v44, %v6599_v25 }
0xa884   :  { %v12118_v26 = vpop.f32.mrf.mxu1 }
0xa885   :  { %v6605_v3 = vmul.f32 %v14851_v31, %v14843_v14 }
0xa886   :  { %v6602_v20 = vpop.f32.mrf.mxu1 }
0xa887   :  { %6607 = vrot.lane.b32.xlu0 %v6605_v3, %s13035_s15 }
0xa888   :  { %v12119_v21 = vpop.f32.mrf.mxu1 }
0xa8f9   :  { %v6608_v63 = vpop.permute.xlu0 %6607 }
0xa8fa   :  { %v6610_v5 = vadd.f32 %v6608_v63, %v14812_v52 }
0xa8fc   :  { %v6611_v36 = vpack.c.bf16 %v6610_v5, %v6610_v5 }
0xa8fe   :  { %6613 = vrot.lane.b32.xlu1 %v6611_v36, %s13034_s25 }
0xa970   :  { %v6614_v10 = vpop.permute.xlu1 %6613 }
0xa971   :  { %12125 = vmatmul.mubr.msk.bf16.vlgmr.msra.gmra.mxu0 %vm49_vm1, %v6614_v10  ;;  %v14919_v10 = vmul.f32 0.16666667, %v14840_v60 }
0xa972   :  { %12137 = vmatpush3.bf16.msra.mxu0 %v14761_v11  ;;  %12140 = vmatprep.mubr.msk.bf16.mxu0 %vm13031_vm0, %v13030_v1 }
0xa973   :  { %12138 = vmatprep.subr.bf16.mxu0 %v13030_v1 }
0xa976   :  { %12139 = vmatpush3.bf16.msra.mxu0 %v14770_v47 }
0xa977   :  { %12152 = vmatprep.subr.bf16.mxu0 %v13030_v1 }
0xaa31   :  { %v6652_v13 = vpop.f32.mrf.mxu0 }
0xaa32   :  { %v6653_v45 = vadd.f32 %v14827_v62, %v6652_v13 }
0xaa33   :  { %v12126_v8 = vpop.f32.mrf.mxu0 }
0xaa34   :  { %12880 = vtanh.f32 %v6653_v45 }
0xaa35   :  { %v6655_v53 = vpop.f32.mrf.mxu0 }
0xaa37   :  { %v12127_v29 = vpop.f32.mrf.mxu0 }
0xaa41   :  { %v12881_v17 = vpop.eup %12880 }
0xaa42   :  { %v6659_v0 = vpack.c.bf16 %v12881_v17, %v12881_v17 }
0xaa44   :  { %12133 = vmatmul.mubr.msk.bf16.vlgmr.msra.gmra.mxu1 %vm49_vm1, %v6659_v0 }
0xaa45   :  { %12145 = vmatpush3.bf16.msra.mxu1 %v14789_v48  ;;  %12148 = vmatprep.mubr.msk.bf16.mxu1 %vm13031_vm0, %v13030_v1 }
0xaa46   :  { %12146 = vmatprep.subr.bf16.mxu1 %v13030_v1 }
0xaa49   :  { %12147 = vmatpush3.bf16.msra.mxu1 %v14798_v18 }
0xaa4a   :  { %12160 = vmatprep.subr.bf16.mxu1 %v13030_v1 }
0xab04   :  { %v6697_v23 = vpop.f32.mrf.mxu1 }
0xab05   :  { %v14874_v19 = vadd.f32 %v14848_v44, %v6697_v23 }
0xab06   :  { %v12134_v42 = vpop.f32.mrf.mxu1 }
0xab07   :  { %v6703_v30 = vmul.f32 %v14874_v19, %v14843_v14 }
0xab08   :  { %v6700_v28 = vpop.f32.mrf.mxu1 }
0xab09   :  { %6705 = vrot.lane.b32.xlu0 %v6703_v30, %s13035_s15 }
0xab0a   :  { %v12135_v61 = vpop.f32.mrf.mxu1 }
0xab7b   :  { %v6706_v56 = vpop.permute.xlu0 %6705 }
0xab7c   :  { %v6708_v34 = vadd.f32 %v6706_v56, %v14812_v52 }
0xab7e   :  { %v6709_v2 = vpack.c.bf16 %v6708_v34, %v6708_v34 }
0xab80   :  { %6711 = vrot.lane.b32.xlu1 %v6709_v2, %s13034_s25 }
0xabf2   :  { %v6712_v12 = vpop.permute.xlu1 %6711 }
0xabf3   :  { %12141 = vmatmul.mubr.msk.bf16.vlgmr.msra.gmra.mxu0 %vm49_vm1, %v6712_v12 }
0xabf4   :  { %12153 = vmatpush3.bf16.msra.mxu0 %v14761_v11  ;;  %12156 = vmatprep.mubr.msk.bf16.mxu0 %vm13031_vm0, %v13030_v1 }
0xabf5   :  { %12154 = vmatprep.subr.bf16.mxu0 %v13030_v1 }
0xabf8   :  { %12155 = vmatpush3.bf16.msra.mxu0 %v14770_v47 }
0xabf9   :  { %12168 = vmatprep.subr.bf16.mxu0 %v13030_v1 }
0xacb3   :  { %v6750_v49 = vpop.f32.mrf.mxu0 }
0xacb4   :  { %v6751_v27 = vadd.f32 %v14827_v62, %v6750_v49 }
0xacb5   :  { %v12142_v59 = vpop.f32.mrf.mxu0 }
0xacb6   :  { %12882 = vtanh.f32 %v6751_v27 }
0xacb7   :  { %v6753_v15 = vpop.f32.mrf.mxu0 }
0xacb9   :  { %v12143_v7 = vpop.f32.mrf.mxu0 }
0xacc3   :  { %v12883_v9 = vpop.eup %12882 }
0xacc4   :  { %v6757_v55 = vpack.c.bf16 %v12883_v9, %v12883_v9 }
0xacc6   :  { %12149 = vmatmul.mubr.msk.bf16.vlgmr.msra.gmra.mxu1 %vm49_vm1, %v6757_v55 }
0xacc7   :  { %12161 = vmatpush3.bf16.msra.mxu1 %v14789_v48  ;;  %12164 = vmatprep.mubr.msk.bf16.mxu1 %vm13031_vm0, %v13030_v1 }
0xacc8   :  { %12162 = vmatprep.subr.bf16.mxu1 %v13030_v1 }
0xaccb   :  { %12163 = vmatpush3.bf16.msra.mxu1 %v14798_v18 }
0xaccc   :  { %12176 = vmatprep.subr.bf16.mxu1 %v13030_v1 }
0xad86   :  { %v6795_v46 = vpop.f32.mrf.mxu1 }
0xad87   :  { %v6796_v22 = vadd.f32 %v14848_v44, %v6795_v46 }
0xad88   :  { %v12150_v32 = vpop.f32.mrf.mxu1 }
0xad89   :  { %v6801_v4 = vmul.f32 %v14840_v60, %v6796_v22  ;;  %v6900_v20 = vadd.f32 %v6796_v22, %v14874_v19 }
0xad8a   :  { %v6798_v51 = vpop.f32.mrf.mxu1 }
0xad8b   :  { %6803 = vrot.lane.b32.xlu0 %v6801_v4, %s13035_s15  ;;  %v6901_v36 = vmul.f32 2.0, %v6900_v20 }
0xad8c   :  { %v12151_v39 = vpop.f32.mrf.mxu1 }
0xadfd   :  { %v6804_v57 = vpop.permute.xlu0 %6803 }
0xadfe   :  { %v6806_v41 = vadd.f32 %v6804_v57, %v14812_v52 }
0xae00   :  { %v6807_v16 = vpack.c.bf16 %v6806_v41, %v6806_v41 }
0xae02   :  { %6809 = vrot.lane.b32.xlu1 %v6807_v16, %s13034_s25 }
0xae74   :  { %v6810_v58 = vpop.permute.xlu1 %6809 }
0xae75   :  { %12157 = vmatmul.mubr.msk.bf16.vlgmr.msra.gmra.mxu0 %vm49_vm1, %v6810_v58 }
0xae76   :  { %12169 = vmatpush3.bf16.msra.mxu0 %v14761_v11  ;;  %12172 = vmatprep.mubr.msk.bf16.mxu0 %vm13031_vm0, %v13030_v1 }
0xae77   :  { %12170 = vmatprep.subr.bf16.mxu0 %v13030_v1 }
0xae7a   :  { %12171 = vmatpush3.bf16.msra.mxu0 %v14770_v47 }
0xae7b   :  { %12184 = vmatprep.subr.bf16.mxu0 %v13030_v1 }
0xaf35   :  { %v6848_v43 = vpop.f32.mrf.mxu0 }
0xaf36   :  { %v6849_v35 = vadd.f32 %v14827_v62, %v6848_v43 }
0xaf37   :  { %v12158_v38 = vpop.f32.mrf.mxu0 }
0xaf38   :  { %12884 = vtanh.f32 %v6849_v35 }
0xaf39   :  { %v6851_v37 = vpop.f32.mrf.mxu0 }
0xaf3b   :  { %v12159_v25 = vpop.f32.mrf.mxu0 }
0xaf45   :  { %v12885_v26 = vpop.eup %12884 }
0xaf46   :  { %v6855_v3 = vpack.c.bf16 %v12885_v26, %v12885_v26 }
0xaf48   :  { %12165 = vmatmul.mubr.msk.bf16.vlgmr.msra.gmra.mxu1 %vm49_vm1, %v6855_v3 }
0xaf49   :  { %12177 = vmatpush3.bf16.msra.mxu1 %v14789_v48  ;;  %12180 = vmatprep.mubr.msk.bf16.mxu1 %vm13031_vm0, %v13030_v1 }
0xaf4a   :  { %12178 = vmatprep.subr.bf16.mxu1 %v13030_v1 }
0xaf4d   :  { %12179 = vmatpush3.bf16.msra.mxu1 %v14798_v18 }
0xaf4e   :  { %12192 = vmatprep.subr.bf16.mxu1 %v13030_v1 }
0xb008   :  { %v6893_v21 = vpop.f32.mrf.mxu1 }
0xb009   :  { %v6894_v63 = vadd.f32 %v14848_v44, %v6893_v21 }
0xb00a   :  { %v12166_v5 = vpop.f32.mrf.mxu1 }
0xb00b   :  { %v6899_v13 = vadd.f32 %v6894_v63, %v14851_v31 }
0xb00c   :  { %v6896_v45 = vpop.f32.mrf.mxu1 }
0xb00d   :  { %v6902_v8 = vadd.f32 %v6901_v36, %v6899_v13 }
0xb00e   :  { %v12167_v53 = vpop.f32.mrf.mxu1 }
0xb00f   :  { %v6903_v29 = vmul.f32 %v6902_v8, %v14919_v10 }
0xb011   :  { %6905 = vrot.lane.b32.xlu0 %v6903_v29, %s13035_s15 }
0xb083   :  { %v6906_v17 = vpop.permute.xlu0 %6905 }
0xb084   :  { %v14925_v0 = vadd.f32 %v6906_v17, %v14812_v52 }
0xb086   :  { %v6909_v23 = vpack.c.bf16 %v14925_v0, %v14925_v0 }
0xb088   :  { %6911 = vrot.lane.b32.xlu1 %v6909_v23, %s13034_s25 }
0xb0fa   :  { %v6912_v19 = vpop.permute.xlu1 %6911 }
0xb0fb   :  { %12173 = vmatmul.mubr.msk.bf16.vlgmr.msra.gmra.mxu0 %vm49_vm1, %v6912_v19 }
0xb0fc   :  { %12185 = vmatpush3.bf16.msra.mxu0 %v14761_v11  ;;  %12188 = vmatprep.mubr.msk.bf16.mxu0 %vm13031_vm0, %v13030_v1 }
0xb0fd   :  { %12186 = vmatprep.subr.bf16.mxu0 %v13030_v1 }
0xb100   :  { %12187 = vmatpush3.bf16.msra.mxu0 %v14770_v47 }
0xb101   :  { %12200 = vmatprep.subr.bf16.mxu0 %v13030_v1 }
0xb1bb   :  { %v6950_v52 = vpop.f32.mrf.mxu0 }
0xb1bc   :  { %v6951_v31 = vadd.f32 %v14827_v62, %v6950_v52 }
0xb1bd   :  { %v12174_v42 = vpop.f32.mrf.mxu0 }
0xb1be   :  { %12886 = vtanh.f32 %v6951_v31 }
0xb1bf   :  { %v6953_v30 = vpop.f32.mrf.mxu0 }
0xb1c1   :  { %v12175_v28 = vpop.f32.mrf.mxu0 }
0xb1cb   :  { %v12887_v61 = vpop.eup %12886 }
0xb1cc   :  { %v6957_v56 = vpack.c.bf16 %v12887_v61, %v12887_v61 }
0xb1ce   :  { %12181 = vmatmul.mubr.msk.bf16.vlgmr.msra.gmra.mxu1 %vm49_vm1, %v6957_v56 }
0xb1cf   :  { %12193 = vmatpush3.bf16.msra.mxu1 %v14789_v48  ;;  %12196 = vmatprep.mubr.msk.bf16.mxu1 %vm13031_vm0, %v13030_v1 }
0xb1d0   :  { %12194 = vmatprep.subr.bf16.mxu1 %v13030_v1 }
0xb1d3   :  { %12195 = vmatpush3.bf16.msra.mxu1 %v14798_v18 }
0xb1d4   :  { %12208 = vmatprep.subr.bf16.mxu1 %v13030_v1 }
0xb28e   :  { %v6995_v34 = vpop.f32.mrf.mxu1 }
0xb28f   :  { %v14946_v2 = vadd.f32 %v14848_v44, %v6995_v34 }
0xb290   :  { %v12182_v12 = vpop.f32.mrf.mxu1 }
0xb291   :  { %v7001_v49 = vmul.f32 %v14946_v2, %v14843_v14 }
0xb292   :  { %v6998_v27 = vpop.f32.mrf.mxu1 }
0xb293   :  { %7003 = vrot.lane.b32.xlu0 %v7001_v49, %s13035_s15 }
0xb294   :  { %v12183_v59 = vpop.f32.mrf.mxu1 }
0xb305   :  { %v7004_v15 = vpop.permute.xlu0 %7003 }
0xb306   :  { %v7006_v7 = vadd.f32 %v7004_v15, %v14925_v0 }
0xb308   :  { %v7007_v9 = vpack.c.bf16 %v7006_v7, %v7006_v7 }
0xb30a   :  { %7009 = vrot.lane.b32.xlu1 %v7007_v9, %s13034_s25 }
0xb37c   :  { %v7010_v55 = vpop.permute.xlu1 %7009 }
0xb37d   :  { %12189 = vmatmul.mubr.msk.bf16.vlgmr.msra.gmra.mxu0 %vm49_vm1, %v7010_v55 }
0xb37e   :  { %12201 = vmatpush3.bf16.msra.mxu0 %v14761_v11  ;;  %12204 = vmatprep.mubr.msk.bf16.mxu0 %vm13031_vm0, %v13030_v1 }
0xb37f   :  { %12202 = vmatprep.subr.bf16.mxu0 %v13030_v1 }
0xb382   :  { %12203 = vmatpush3.bf16.msra.mxu0 %v14770_v47 }
0xb383   :  { %12216 = vmatprep.subr.bf16.mxu0 %v13030_v1 }
0xb43d   :  { %v7048_v46 = vpop.f32.mrf.mxu0 }
0xb43e   :  { %v7049_v22 = vadd.f32 %v14827_v62, %v7048_v46 }
0xb43f   :  { %v12190_v32 = vpop.f32.mrf.mxu0 }
0xb440   :  { %12888 = vtanh.f32 %v7049_v22 }
0xb441   :  { %v7051_v4 = vpop.f32.mrf.mxu0 }
0xb443   :  { %v12191_v51 = vpop.f32.mrf.mxu0 }
0xb44d   :  { %v12889_v39 = vpop.eup %12888 }
0xb44e   :  { %v7055_v57 = vpack.c.bf16 %v12889_v39, %v12889_v39 }
0xb450   :  { %12197 = vmatmul.mubr.msk.bf16.vlgmr.msra.gmra.mxu1 %vm49_vm1, %v7055_v57 }
0xb451   :  { %12209 = vmatpush3.bf16.msra.mxu1 %v14789_v48  ;;  %12212 = vmatprep.mubr.msk.bf16.mxu1 %vm13031_vm0, %v13030_v1 }
0xb452   :  { %12210 = vmatprep.subr.bf16.mxu1 %v13030_v1 }
0xb455   :  { %12211 = vmatpush3.bf16.msra.mxu1 %v14798_v18 }
0xb456   :  { %12224 = vmatprep.subr.bf16.mxu1 %v13030_v1 }
0xb510   :  { %v7093_v41 = vpop.f32.mrf.mxu1 }
0xb511   :  { %v14969_v16 = vadd.f32 %v14848_v44, %v7093_v41 }
0xb512   :  { %v12198_v58 = vpop.f32.mrf.mxu1 }
0xb513   :  { %v7099_v43 = vmul.f32 %v14969_v16, %v14843_v14 }
0xb514   :  { %v7096_v35 = vpop.f32.mrf.mxu1 }
0xb515   :  { %7101 = vrot.lane.b32.xlu0 %v7099_v43, %s13035_s15 }
0xb516   :  { %v12199_v38 = vpop.f32.mrf.mxu1 }
0xb587   :  { %v7102_v37 = vpop.permute.xlu0 %7101 }
0xb588   :  { %v7104_v25 = vadd.f32 %v7102_v37, %v14925_v0 }
0xb58a   :  { %v7105_v26 = vpack.c.bf16 %v7104_v25, %v7104_v25 }
0xb58c   :  { %7107 = vrot.lane.b32.xlu1 %v7105_v26, %s13034_s25 }
0xb5fe   :  { %v7108_v3 = vpop.permute.xlu1 %7107 }
0xb5ff   :  { %12205 = vmatmul.mubr.msk.bf16.vlgmr.msra.gmra.mxu0 %vm49_vm1, %v7108_v3 }
0xb600   :  { %12217 = vmatpush3.bf16.msra.mxu0 %v14761_v11  ;;  %12220 = vmatprep.mubr.msk.bf16.mxu0 %vm13031_vm0, %v13030_v1 }
0xb601   :  { %12218 = vmatprep.subr.bf16.mxu0 %v13030_v1 }
0xb604   :  { %12219 = vmatpush3.bf16.msra.mxu0 %v14770_v47 }
0xb605   :  { %12232 = vmatprep.subr.bf16.mxu0 %v13030_v1 }
0xb6bf   :  { %v7146_v20 = vpop.f32.mrf.mxu0 }
0xb6c0   :  { %v7147_v21 = vadd.f32 %v14827_v62, %v7146_v20 }
0xb6c1   :  { %v12206_v63 = vpop.f32.mrf.mxu0 }
0xb6c2   :  { %12890 = vtanh.f32 %v7147_v21 }
0xb6c3   :  { %v7149_v5 = vpop.f32.mrf.mxu0 }
0xb6c5   :  { %v12207_v36 = vpop.f32.mrf.mxu0 }
0xb6cf   :  { %v12891_v13 = vpop.eup %12890 }
0xb6d0   :  { %v7153_v45 = vpack.c.bf16 %v12891_v13, %v12891_v13 }
0xb6d2   :  { %12213 = vmatmul.mubr.msk.bf16.vlgmr.msra.gmra.mxu1 %vm49_vm1, %v7153_v45 }
0xb6d3   :  { %12225 = vmatpush3.bf16.msra.mxu1 %v14789_v48  ;;  %12228 = vmatprep.mubr.msk.bf16.mxu1 %vm13031_vm0, %v13030_v1 }
0xb6d4   :  { %12226 = vmatprep.subr.bf16.mxu1 %v13030_v1 }
0xb6d7   :  { %12227 = vmatpush3.bf16.msra.mxu1 %v14798_v18 }
0xb6d8   :  { %12240 = vmatprep.subr.bf16.mxu1 %v13030_v1 }
0xb792   :  { %v7191_v8 = vpop.f32.mrf.mxu1 }
0xb793   :  { %v7192_v53 = vadd.f32 %v14848_v44, %v7191_v8 }
0xb794   :  { %v12214_v29 = vpop.f32.mrf.mxu1 }
0xb795   :  { %v7197_v17 = vmul.f32 %v14840_v60, %v7192_v53  ;;  %v7296_v59 = vadd.f32 %v7192_v53, %v14969_v16 }
0xb796   :  { %v7194_v23 = vpop.f32.mrf.mxu1 }
0xb797   :  { %7199 = vrot.lane.b32.xlu0 %v7197_v17, %s13035_s15  ;;  %v7297_v55 = vmul.f32 2.0, %v7296_v59 }
0xb798   :  { %v12215_v19 = vpop.f32.mrf.mxu1 }
0xb809   :  { %v7200_v52 = vpop.permute.xlu0 %7199 }
0xb80a   :  { %v7202_v31 = vadd.f32 %v7200_v52, %v14925_v0 }
0xb80c   :  { %v7203_v42 = vpack.c.bf16 %v7202_v31, %v7202_v31 }
0xb80e   :  { %7205 = vrot.lane.b32.xlu1 %v7203_v42, %s13034_s25 }
0xb880   :  { %v7206_v30 = vpop.permute.xlu1 %7205 }
0xb881   :  { %12221 = vmatmul.mubr.msk.bf16.vlgmr.msra.gmra.mxu0 %vm49_vm1, %v7206_v30 }
0xb882   :  { %12233 = vmatpush3.bf16.msra.mxu0 %v14761_v11  ;;  %12236 = vmatprep.mubr.msk.bf16.mxu0 %vm13031_vm0, %v13030_v1 }
0xb883   :  { %12234 = vmatprep.subr.bf16.mxu0 %v13030_v1 }
0xb886   :  { %12235 = vmatpush3.bf16.msra.mxu0 %v14770_v47 }
0xb887   :  { %12248 = vmatprep.subr.bf16.mxu0 %v13030_v1 }
0xb941   :  { %v7244_v28 = vpop.f32.mrf.mxu0 }
0xb942   :  { %v7245_v61 = vadd.f32 %v14827_v62, %v7244_v28 }
0xb943   :  { %v12222_v56 = vpop.f32.mrf.mxu0 }
0xb944   :  { %12892 = vtanh.f32 %v7245_v61 }
0xb945   :  { %v7247_v34 = vpop.f32.mrf.mxu0 }
0xb947   :  { %v12223_v12 = vpop.f32.mrf.mxu0 }
0xb951   :  { %v12893_v49 = vpop.eup %12892 }
0xb952   :  { %v7251_v27 = vpack.c.bf16 %v12893_v49, %v12893_v49 }
0xb954   :  { %12229 = vmatmul.mubr.msk.bf16.vlgmr.msra.gmra.mxu1 %vm49_vm1, %v7251_v27 }
0xb955   :  { %12241 = vmatpush3.bf16.msra.mxu1 %v14789_v48  ;;  %12244 = vmatprep.mubr.msk.bf16.mxu1 %vm13031_vm0, %v13030_v1 }
0xb956   :  { %12242 = vmatprep.subr.bf16.mxu1 %v13030_v1 }
0xb959   :  { %12243 = vmatpush3.bf16.msra.mxu1 %v14798_v18 }
0xb95a   :  { %12256 = vmatprep.subr.bf16.mxu1 %v13030_v1 }
0xba14   :  { %v7289_v15 = vpop.f32.mrf.mxu1 }
0xba15   :  { %v7290_v7 = vadd.f32 %v14848_v44, %v7289_v15 }
0xba16   :  { %v12230_v9 = vpop.f32.mrf.mxu1 }
0xba17   :  { %v7295_v46 = vadd.f32 %v7290_v7, %v14946_v2 }
0xba18   :  { %v7292_v22 = vpop.f32.mrf.mxu1 }
0xba19   :  { %v7298_v32 = vadd.f32 %v7297_v55, %v7295_v46 }
0xba1a   :  { %v12231_v4 = vpop.f32.mrf.mxu1 }
0xba1b   :  { %v7299_v51 = vmul.f32 %v7298_v32, %v14919_v10 }
0xba1d   :  { %7301 = vrot.lane.b32.xlu0 %v7299_v51, %s13035_s15 }
0xba8f   :  { %v7302_v39 = vpop.permute.xlu0 %7301 }
0xba90   :  { %v15017_v57 = vadd.f32 %v7302_v39, %v14925_v0 }
0xba92   :  { %v7305_v41 = vpack.c.bf16 %v15017_v57, %v15017_v57 }
0xba94   :  { %7307 = vrot.lane.b32.xlu1 %v7305_v41, %s13034_s25 }
0xbb06   :  { %v7308_v16 = vpop.permute.xlu1 %7307 }
0xbb07   :  { %12237 = vmatmul.mubr.msk.bf16.vlgmr.msra.gmra.mxu0 %vm49_vm1, %v7308_v16 }
0xbb08   :  { %12249 = vmatpush3.bf16.msra.mxu0 %v14761_v11  ;;  %12252 = vmatprep.mubr.msk.bf16.mxu0 %vm13031_vm0, %v13030_v1 }
0xbb09   :  { %12250 = vmatprep.subr.bf16.mxu0 %v13030_v1 }
0xbb0c   :  { %12251 = vmatpush3.bf16.msra.mxu0 %v14770_v47 }
0xbb0d   :  { %12264 = vmatprep.subr.bf16.mxu0 %v13030_v1 }
0xbbc7   :  { %v7346_v0 = vpop.f32.mrf.mxu0 }
0xbbc8   :  { %v7347_v2 = vadd.f32 %v14827_v62, %v7346_v0 }
0xbbc9   :  { %v12238_v58 = vpop.f32.mrf.mxu0 }
0xbbca   :  { %12894 = vtanh.f32 %v7347_v2 }
0xbbcb   :  { %v7349_v43 = vpop.f32.mrf.mxu0 }
0xbbcc   :  { %v15092_v43 = vld [vmem:[%s15810_s2 + $0x8] sm:$0xff]  }
0xbbcd   :  { %v12239_v35 = vpop.f32.mrf.mxu0 }
0xbbd7   :  { %v12895_v38 = vpop.eup %12894 }
0xbbd8   :  { %v7353_v37 = vpack.c.bf16 %v12895_v38, %v12895_v38 }
0xbbda   :  { %12245 = vmatmul.mubr.msk.bf16.vlgmr.msra.gmra.mxu1 %vm49_vm1, %v7353_v37 }
0xbbdb   :  { %12257 = vmatpush3.bf16.msra.mxu1 %v14789_v48  ;;  %12260 = vmatprep.mubr.msk.bf16.mxu1 %vm13031_vm0, %v13030_v1 }
0xbbdc   :  { %12258 = vmatprep.subr.bf16.mxu1 %v13030_v1 }
0xbbdf   :  { %12259 = vmatpush3.bf16.msra.mxu1 %v14798_v18 }
0xbbe0   :  { %12272 = vmatprep.subr.bf16.mxu1 %v13030_v1 }
0xbc9a   :  { %v7391_v25 = vpop.f32.mrf.mxu1 }
0xbc9b   :  { %v15038_v26 = vadd.f32 %v14848_v44, %v7391_v25 }
0xbc9c   :  { %v12246_v3 = vpop.f32.mrf.mxu1 }
0xbc9d   :  { %v7397_v20 = vmul.f32 %v15038_v26, %v14843_v14 }
0xbc9e   :  { %v7394_v21 = vpop.f32.mrf.mxu1 }
0xbc9f   :  { %7399 = vrot.lane.b32.xlu0 %v7397_v20, %s13035_s15 }
0xbca0   :  { %v12247_v63 = vpop.f32.mrf.mxu1 }
0xbd11   :  { %v7400_v5 = vpop.permute.xlu0 %7399 }
0xbd12   :  { %v7402_v36 = vadd.f32 %v7400_v5, %v15017_v57 }
0xbd14   :  { %v7403_v13 = vpack.c.bf16 %v7402_v36, %v7402_v36 }
0xbd16   :  { %7405 = vrot.lane.b32.xlu1 %v7403_v13, %s13034_s25 }
0xbd88   :  { %v7406_v45 = vpop.permute.xlu1 %7405 }
0xbd89   :  { %12253 = vmatmul.mubr.msk.bf16.vlgmr.msra.gmra.mxu0 %vm49_vm1, %v7406_v45 }
0xbd8a   :  { %12265 = vmatpush3.bf16.msra.mxu0 %v14761_v11  ;;  %12268 = vmatprep.mubr.msk.bf16.mxu0 %vm13031_vm0, %v13030_v1 }
0xbd8b   :  { %12266 = vmatprep.subr.bf16.mxu0 %v13030_v1 }
0xbd8e   :  { %12267 = vmatpush3.bf16.msra.mxu0 %v14770_v47 }
0xbd8f   :  { %12280 = vmatprep.subr.bf16.mxu0 %v13030_v1 }
0xbe49   :  { %v7444_v8 = vpop.f32.mrf.mxu0 }
0xbe4a   :  { %v7445_v53 = vadd.f32 %v14827_v62, %v7444_v8 }
0xbe4b   :  { %v12254_v29 = vpop.f32.mrf.mxu0 }
0xbe4c   :  { %12896 = vtanh.f32 %v7445_v53 }
0xbe4d   :  { %v7447_v17 = vpop.f32.mrf.mxu0 }
0xbe4f   :  { %v12255_v23 = vpop.f32.mrf.mxu0 }
0xbe59   :  { %v12897_v19 = vpop.eup %12896 }
0xbe5a   :  { %v7451_v52 = vpack.c.bf16 %v12897_v19, %v12897_v19 }
0xbe5c   :  { %12261 = vmatmul.mubr.msk.bf16.vlgmr.msra.gmra.mxu1 %vm49_vm1, %v7451_v52 }
0xbe5d   :  { %12273 = vmatpush3.bf16.msra.mxu1 %v14789_v48  ;;  %12276 = vmatprep.mubr.msk.bf16.mxu1 %vm13031_vm0, %v13030_v1 }
0xbe5e   :  { %12274 = vmatprep.subr.bf16.mxu1 %v13030_v1 }
0xbe61   :  { %12275 = vmatpush3.bf16.msra.mxu1 %v14798_v18 }
0xbe62   :  { %12288 = vmatprep.subr.bf16.mxu1 %v13030_v1 }
0xbf1c   :  { %v7489_v31 = vpop.f32.mrf.mxu1 }
0xbf1d   :  { %v15061_v42 = vadd.f32 %v14848_v44, %v7489_v31 }
0xbf1e   :  { %v12262_v30 = vpop.f32.mrf.mxu1 }
0xbf1f   :  { %v7495_v28 = vmul.f32 %v15061_v42, %v14843_v14 }
0xbf20   :  { %v7492_v61 = vpop.f32.mrf.mxu1 }
0xbf21   :  { %7497 = vrot.lane.b32.xlu0 %v7495_v28, %s13035_s15 }
0xbf22   :  { %v12263_v56 = vpop.f32.mrf.mxu1 }
0xbf93   :  { %v7498_v34 = vpop.permute.xlu0 %7497 }
0xbf94   :  { %v7500_v12 = vadd.f32 %v7498_v34, %v15017_v57 }
0xbf96   :  { %v7501_v49 = vpack.c.bf16 %v7500_v12, %v7500_v12 }
0xbf98   :  { %7503 = vrot.lane.b32.xlu1 %v7501_v49, %s13034_s25 }
0xc00a   :  { %v7504_v27 = vpop.permute.xlu1 %7503 }
0xc00b   :  { %12269 = vmatmul.mubr.msk.bf16.vlgmr.msra.gmra.mxu0 %vm49_vm1, %v7504_v27 }
0xc00c   :  { %12281 = vmatpush3.bf16.msra.mxu0 %v14761_v11  ;;  %12284 = vmatprep.mubr.msk.bf16.mxu0 %vm13031_vm0, %v13030_v1 }
0xc00d   :  { %12282 = vmatprep.subr.bf16.mxu0 %v13030_v1 }
0xc010   :  { %12283 = vmatpush3.bf16.msra.mxu0 %v14770_v47 }
0xc011   :  { %12296 = vmatprep.subr.bf16.mxu0 %v13030_v1 }
0xc0cb   :  { %v7542_v14 = vpop.f32.mrf.mxu0 }
0xc0cc   :  { %v7543_v59 = vadd.f32 %v14827_v62, %v7542_v14 }
0xc0cd   :  { %v12270_v15 = vpop.f32.mrf.mxu0 }
0xc0ce   :  { %12898 = vtanh.f32 %v7543_v59 }
0xc0cf   :  { %v7545_v7 = vpop.f32.mrf.mxu0 }
0xc0d1   :  { %v12271_v9 = vpop.f32.mrf.mxu0 }
0xc0db   :  { %v12899_v55 = vpop.eup %12898 }
0xc0dc   :  { %v7549_v46 = vpack.c.bf16 %v12899_v55, %v12899_v55 }
0xc0de   :  { %12277 = vmatmul.mubr.msk.bf16.vlgmr.msra.gmra.mxu1 %vm49_vm1, %v7549_v46 }
0xc0df   :  { %12289 = vmatpush3.bf16.msra.mxu1 %v14789_v48  ;;  %12292 = vmatprep.mubr.msk.bf16.mxu1 %vm13031_vm0, %v13030_v1 }
0xc0e0   :  { %12290 = vmatprep.subr.bf16.mxu1 %v13030_v1 }
0xc0e3   :  { %12291 = vmatpush3.bf16.msra.mxu1 %v14798_v18 }
0xc0e4   :  { %12304 = vmatprep.subr.bf16.mxu1 %v13030_v1 }
0xc19e   :  { %v7587_v22 = vpop.f32.mrf.mxu1 }
0xc19f   :  { %v7588_v32 = vadd.f32 %v14848_v44, %v7587_v22 }
0xc1a0   :  { %v12278_v4 = vpop.f32.mrf.mxu1 }
0xc1a1   :  { %v7593_v51 = vmul.f32 %v14840_v60, %v7588_v32  ;;  %v15101_v60 = vld [vmem:[%s15810_s2] sm:$0xff]   ;;  %v7692_v63 = vadd.f32 %v7588_v32, %v15061_v42 }
0xc1a2   :  { %v7590_v39 = vpop.f32.mrf.mxu1 }
0xc1a3   :  { %7595 = vrot.lane.b32.xlu0 %v7593_v51, %s13035_s15  ;;  %v7693_v45 = vmul.f32 2.0, %v7692_v63  ;;  %v15181_v63 = vld [vmem:[%s15811_s3 + $0x8] sm:$0xff]  }
0xc1a4   :  { %v12279_v41 = vpop.f32.mrf.mxu1 }
0xc215   :  { %v7596_v16 = vpop.permute.xlu0 %7595 }
0xc216   :  { %v7598_v0 = vadd.f32 %v7596_v16, %v15017_v57 }
0xc218   :  { %v7599_v2 = vpack.c.bf16 %v7598_v0, %v7598_v0 }
0xc21a   :  { %7601 = vrot.lane.b32.xlu1 %v7599_v2, %s13034_s25 }
0xc28c   :  { %v7602_v58 = vpop.permute.xlu1 %7601 }
0xc28d   :  { %12285 = vmatmul.mubr.msk.bf16.vlgmr.msra.gmra.mxu0 %vm49_vm1, %v7602_v58 }
0xc28e   :  { %12297 = vmatpush3.bf16.msra.mxu0 %v15092_v43  ;;  %12300 = vmatprep.mubr.msk.bf16.mxu0 %vm13031_vm0, %v13030_v1 }
0xc28f   :  { %12298 = vmatprep.subr.bf16.mxu0 %v13030_v1 }
0xc292   :  { %12299 = vmatpush3.bf16.msra.mxu0 %v15101_v60 }
0xc293   :  { %12312 = vmatprep.subr.bf16.mxu0 %v13030_v1 }
0xc34d   :  { %v7640_v35 = vpop.f32.mrf.mxu0 }
0xc34e   :  { %v7641_v38 = vadd.f32 %v14827_v62, %v7640_v35 }
0xc34f   :  { %v12286_v37 = vpop.f32.mrf.mxu0 }
0xc350   :  { %12900 = vtanh.f32 %v7641_v38 }
0xc351   :  { %v7643_v25 = vpop.f32.mrf.mxu0 }
0xc353   :  { %v12287_v3 = vpop.f32.mrf.mxu0 }
0xc35d   :  { %v12901_v20 = vpop.eup %12900 }
0xc35e   :  { %v7647_v21 = vpack.c.bf16 %v12901_v20, %v12901_v20 }
0xc360   :  { %12293 = vmatmul.mubr.msk.bf16.vlgmr.msra.gmra.mxu1 %vm49_vm1, %v7647_v21 }
0xc361   :  { %12305 = vmatpush3.bf16.msra.mxu1 %v14761_v11  ;;  %12308 = vmatprep.mubr.msk.bf16.mxu1 %vm13031_vm0, %v13030_v1 }
0xc362   :  { %12306 = vmatprep.subr.bf16.mxu1 %v13030_v1 }
0xc365   :  { %12307 = vmatpush3.bf16.msra.mxu1 %v14770_v47 }
0xc366   :  { %12320 = vmatprep.subr.bf16.mxu1 %v13030_v1 }
0xc420   :  { %v7685_v5 = vpop.f32.mrf.mxu1 }
0xc421   :  { %v7686_v36 = vadd.f32 %v14848_v44, %v7685_v5  ;;  %v15190_v5 = vld [vmem:[%s15811_s3] sm:$0xff]  }
0xc422   :  { %v12294_v13 = vpop.f32.mrf.mxu1 }
0xc423   :  { %v7691_v8 = vadd.f32 %v7686_v36, %v15038_v26 }
0xc424   :  { %v7688_v53 = vpop.f32.mrf.mxu1 }
0xc425   :  { %v7694_v29 = vadd.f32 %v7693_v45, %v7691_v8 }
0xc426   :  { %v12295_v17 = vpop.f32.mrf.mxu1 }
0xc427   :  { %v7695_v23 = vmul.f32 %v7694_v29, %v14919_v10  ;;  %v10440_v10 = vld [vmem:[%s15808_s0 + $0xc] sm:$0x3] }
0xc429   :  { %7697 = vrot.lane.b32.xlu0 %v7695_v23, %s13035_s15  ;;  %v15199_v23 = vld [vmem:[%s15811_s3 + $0x18] sm:$0xff]  }
0xc49b   :  { %v7698_v19 = vpop.permute.xlu0 %7697 }
0xc49c   :  { %v15119_v52 = vadd.f32 %v7698_v19, %v15017_v57  ;;  %v15208_v19 = vld [vmem:[%s15811_s3 + $0x10] sm:$0xff]  }
0xc49e   :  { %v7709_v31 = vpack.c.bf16 %v15119_v52, %v15119_v52 }
0xc4a0   :  { %7711 = vrot.lane.b32.xlu1 %v7709_v31, %s13034_s25 }
0xc512   :  { %v7712_v42 = vpop.permute.xlu1 %7711 }
0xc513   :  { %12301 = vmatmul.mubr.msk.bf16.vlgmr.msra.gmra.mxu0 %vm49_vm1, %v7712_v42 }
0xc514   :  { %12313 = vmatpush3.bf16.msra.mxu0 %v14789_v48  ;;  %12316 = vmatprep.mubr.msk.bf16.mxu0 %vm13031_vm0, %v13030_v1 }
0xc515   :  { %12314 = vmatprep.subr.bf16.mxu0 %v13030_v1 }
0xc518   :  { %12315 = vmatpush3.bf16.msra.mxu0 %v14798_v18 }
0xc519   :  { %12328 = vmatprep.subr.bf16.mxu0 %v13030_v1 }
0xc5d3   :  { %v7750_v57 = vpop.f32.mrf.mxu0 }
0xc5d4   :  { %v7756_v26 = vadd.f32 %v10440_v10, %v7750_v57 }
0xc5d5   :  { %v12302_v30 = vpop.f32.mrf.mxu0 }
0xc5d6   :  { %12902 = vtanh.f32 %v7756_v26  ;;  %v10442_v34 = vmul.f32 -1.442695, %v7756_v26 }
0xc5d7   :  { %v7753_v28 = vpop.f32.mrf.mxu0 }
0xc5d8   :  { %12904 = vpow2.f32 %v10442_v34 }
0xc5d9   :  { %v12303_v61 = vpop.f32.mrf.mxu0 }
0xc5e3   :  { %v12903_v56 = vpop.eup %12902 }
0xc5e4   :  { %7766 = vrot.lane.b32.xlu0 %v12903_v56, %s13033_s24 }
0xc5e5   :  { %v12905_v12 = vpop.eup %12904 }
0xc5e6   :  { %v7760_v49 = vadd.f32 1.0, %v12905_v12 }
0xc5e8   :  { %12906 = vrcp.f32 %v7760_v49 }
0xc5f5   :  { %v12907_v27 = vpop.eup %12906 }
0xc5f6   :  { %v7764_v15 = vmul.f32 %v12907_v27, %v14808_v50 }
0xc656   :  { %v7767_v14 = vpop.permute.xlu0 %7766 }
0xc657   :  { %v7769_v59 = vmul.f32 %v12907_v27, %v7767_v14 }
0xc659   :  { %7771 = vrot.lane.b32.xlu1 %v7769_v59, %s13034_s25 }
0xc6cb   :  { %v7772_v7 = vpop.permute.xlu1 %7771 }
0xc6cc   :  { %v15137_v9 = vadd.f32 %v7772_v7, %v7764_v15 }
0xc6ce   :  { %12908 = vtanh.f32 %v15137_v9 }
0xc6db   :  { %v12909_v55 = vpop.eup %12908 }
0xc6dc   :  { %7777 = vrot.lane.b32.xlu0 %v12909_v55, %s13033_s24 }
0xc74e   :  { %v7778_v46 = vpop.permute.xlu0 %7777 }
0xc74f   :  { %v15141_v22 = vmul.f32 %v12907_v27, %v7778_v46 }
0xc751   :  { %v7785_v32 = vpack.c.bf16 %v15141_v22, %v15141_v22 }
0xc753   :  { %7787 = vrot.lane.b32.xlu1 %v7785_v32, %s13034_s25 }
0xc7c5   :  { %v7788_v4 = vpop.permute.xlu1 %7787 }
0xc7c6   :  { %12309 = vmatmul.mubr.msk.bf16.vlgmr.msra.gmra.mxu1 %vm49_vm1, %v7788_v4 }
0xc7c7   :  { %12321 = vmatpush3.bf16.msra.mxu1 %v14761_v11  ;;  %12324 = vmatprep.mubr.msk.bf16.mxu1 %vm13031_vm0, %v13030_v1  ;;  %v15164_v11 = vld [vmem:[%s15809_s1 + $0xc] sm:$0x3] }
0xc7c8   :  { %12322 = vmatprep.subr.bf16.mxu1 %v13030_v1 }
0xc7cb   :  { %12323 = vmatpush3.bf16.msra.mxu1 %v14770_v47  ;;  %v15167_v47 = vmul.f32 0.5, %v15164_v11 }
0xc7cc   :  { %12336 = vmatprep.subr.bf16.mxu1 %v13030_v1 }
0xc886   :  { %v7826_v50 = vpop.f32.mrf.mxu1 }
0xc887   :  { %v7827_v51 = vadd.f32 %v14827_v62, %v7826_v50 }
0xc888   :  { %v12310_v39 = vpop.f32.mrf.mxu1 }
0xc889   :  { %12910 = vtanh.f32 %v7827_v51 }
0xc88a   :  { %v7829_v41 = vpop.f32.mrf.mxu1 }
0xc88c   :  { %v12311_v16 = vpop.f32.mrf.mxu1 }
0xc896   :  { %v12911_v0 = vpop.eup %12910 }
0xc897   :  { %v7833_v2 = vpack.c.bf16 %v12911_v0, %v12911_v0  ;;  %v15250_v0 = vld [vmem:[%s15812_s4] ss:$0 sm:$0xff] }
0xc899   :  { %12317 = vmatmul.mubr.msk.bf16.vlgmr.msra.gmra.mxu0 %vm49_vm1, %v7833_v2 }
0xc89a   :  { %12329 = vmatpush3.bf16.msra.mxu0 %v14789_v48  ;;  %12332 = vmatprep.mubr.msk.bf16.mxu0 %vm13031_vm0, %v13030_v1 }
0xc89b   :  { %12330 = vmatprep.subr.bf16.mxu0 %v13030_v1 }
0xc89e   :  { %12331 = vmatpush3.bf16.msra.mxu0 %v14798_v18 }
0xc89f   :  { %12344 = vmatprep.subr.bf16.mxu0 %v13030_v1 }
0xc959   :  { %v7871_v58 = vpop.f32.mrf.mxu0 }
0xc95a   :  { %v15170_v48 = vadd.f32 %v14848_v44, %v7871_v58 }
0xc95b   :  { %v12318_v35 = vpop.f32.mrf.mxu0 }
0xc95c   :  { %v7877_v38 = vmul.f32 %v15170_v48, %v15167_v47 }
0xc95d   :  { %v7874_v37 = vpop.f32.mrf.mxu0 }
0xc95e   :  { %7879 = vrot.lane.b32.xlu0 %v7877_v38, %s13035_s15 }
0xc95f   :  { %v12319_v18 = vpop.f32.mrf.mxu0 }
0xc9d0   :  { %v7880_v25 = vpop.permute.xlu0 %7879 }
0xc9d1   :  { %v7882_v3 = vadd.f32 %v7880_v25, %v15141_v22 }
0xc9d3   :  { %v7883_v20 = vpack.c.bf16 %v7882_v3, %v7882_v3 }
0xc9d5   :  { %7885 = vrot.lane.b32.xlu1 %v7883_v20, %s13034_s25  ;;  %v15264_v20 = vld [vmem:[%s15812_s4 + $0x1] ss:$0 sm:$0xff] }
0xca47   :  { %v7886_v21 = vpop.permute.xlu1 %7885 }
0xca48   :  { %12325 = vmatmul.mubr.msk.bf16.vlgmr.msra.gmra.mxu1 %vm49_vm1, %v7886_v21 }
0xca49   :  { %12337 = vmatpush3.bf16.msra.mxu1 %v15181_v63  ;;  %12340 = vmatprep.mubr.msk.bf16.mxu1 %vm13031_vm0, %v13030_v1 }
0xca4a   :  { %12338 = vmatprep.subr.bf16.mxu1 %v13030_v1 }
0xca4d   :  { %12339 = vmatpush3.bf16.msra.mxu1 %v15190_v5 }
0xca4e   :  { %12352 = vmatprep.subr.bf16.mxu1 %v13030_v1 }
0xcb08   :  { %v7924_v36 = vpop.f32.mrf.mxu1 }
0xcb09   :  { %v7925_v13 = vadd.f32 %v14827_v62, %v7924_v36 }
0xcb0a   :  { %v12326_v45 = vpop.f32.mrf.mxu1 }
0xcb0b   :  { %12912 = vtanh.f32 %v7925_v13  ;;  %v15268_v45 = vmul.f32 0.16666667, %v15164_v11 }
0xcb0c   :  { %v7927_v8 = vpop.f32.mrf.mxu1 }
0xcb0e   :  { %v12327_v53 = vpop.f32.mrf.mxu1 }
0xcb18   :  { %v12913_v29 = vpop.eup %12912 }
0xcb19   :  { %v7931_v17 = vpack.c.bf16 %v12913_v29, %v12913_v29 }
0xcb1b   :  { %12333 = vmatmul.mubr.msk.bf16.vlgmr.msra.gmra.mxu0 %vm49_vm1, %v7931_v17 }
0xcb1c   :  { %12345 = vmatpush3.bf16.msra.mxu0 %v15199_v23  ;;  %12348 = vmatprep.mubr.msk.bf16.mxu0 %vm13031_vm0, %v13030_v1 }
0xcb1d   :  { %12346 = vmatprep.subr.bf16.mxu0 %v13030_v1 }
0xcb20   :  { %12347 = vmatpush3.bf16.msra.mxu0 %v15208_v19 }
0xcb21   :  { %12360 = vmatprep.subr.bf16.mxu0 %v13030_v1 }
0xcbdb   :  { %v7969_v31 = vpop.f32.mrf.mxu0 }
0xcbdc   :  { %v15213_v42 = vadd.f32 %v14848_v44, %v7969_v31 }
0xcbdd   :  { %v12334_v10 = vpop.f32.mrf.mxu0 }
0xcbde   :  { %v7975_v57 = vmul.f32 %v15213_v42, %v15167_v47 }
0xcbdf   :  { %v7972_v26 = vpop.f32.mrf.mxu0 }
0xcbe0   :  { %7977 = vrot.lane.b32.xlu0 %v7975_v57, %s13035_s15 }
0xcbe1   :  { %v12335_v30 = vpop.f32.mrf.mxu0 }
0xcc52   :  { %v7978_v28 = vpop.permute.xlu0 %7977 }
0xcc53   :  { %v7980_v61 = vadd.f32 %v7978_v28, %v15141_v22 }
0xcc55   :  { %v7981_v56 = vpack.c.bf16 %v7980_v61, %v7980_v61 }
0xcc57   :  { %7983 = vrot.lane.b32.xlu1 %v7981_v56, %s13034_s25 }
0xccc9   :  { %v7984_v34 = vpop.permute.xlu1 %7983 }
0xccca   :  { %12341 = vmatmul.mubr.msk.bf16.vlgmr.msra.gmra.mxu1 %vm49_vm1, %v7984_v34 }
0xcccb   :  { %12353 = vmatpush3.bf16.msra.mxu1 %v15181_v63  ;;  %12356 = vmatprep.mubr.msk.bf16.mxu1 %vm13031_vm0, %v13030_v1 }
0xcccc   :  { %12354 = vmatprep.subr.bf16.mxu1 %v13030_v1 }
0xcccf   :  { %12355 = vmatpush3.bf16.msra.mxu1 %v15190_v5 }
0xccd0   :  { %12368 = vmatprep.subr.bf16.mxu1 %v13030_v1 }
0xcd8a   :  { %v8022_v12 = vpop.f32.mrf.mxu1 }
0xcd8b   :  { %v8023_v49 = vadd.f32 %v14827_v62, %v8022_v12 }
0xcd8c   :  { %v12342_v27 = vpop.f32.mrf.mxu1 }
0xcd8d   :  { %12914 = vtanh.f32 %v8023_v49 }
0xcd8e   :  { %v8025_v14 = vpop.f32.mrf.mxu1 }
0xcd90   :  { %v12343_v59 = vpop.f32.mrf.mxu1 }
0xcd9a   :  { %v12915_v15 = vpop.eup %12914 }
0xcd9b   :  { %v8029_v7 = vpack.c.bf16 %v12915_v15, %v12915_v15 }
0xcd9d   :  { %12349 = vmatmul.mubr.msk.bf16.vlgmr.msra.gmra.mxu0 %vm49_vm1, %v8029_v7 }
0xcd9e   :  { %12361 = vmatpush3.bf16.msra.mxu0 %v15199_v23  ;;  %12364 = vmatprep.mubr.msk.bf16.mxu0 %vm13031_vm0, %v13030_v1 }
0xcd9f   :  { %12362 = vmatprep.subr.bf16.mxu0 %v13030_v1 }
0xcda2   :  { %12363 = vmatpush3.bf16.msra.mxu0 %v15208_v19 }
0xcda3   :  { %12376 = vmatprep.subr.bf16.mxu0 %v13030_v1 }
0xce5d   :  { %v8067_v62 = vpop.f32.mrf.mxu0 }
0xce5e   :  { %v8068_v55 = vadd.f32 %v14848_v44, %v8067_v62 }
0xce5f   :  { %v12350_v46 = vpop.f32.mrf.mxu0 }
0xce60   :  { %v8073_v32 = vmul.f32 %v15164_v11, %v8068_v55  ;;  %v8172_v25 = vadd.f32 %v8068_v55, %v15213_v42 }
0xce61   :  { %v8070_v4 = vpop.f32.mrf.mxu0 }
0xce62   :  { %8075 = vrot.lane.b32.xlu0 %v8073_v32, %s13035_s15  ;;  %v8173_v13 = vmul.f32 2.0, %v8172_v25 }
0xce63   :  { %v12351_v50 = vpop.f32.mrf.mxu0 }
0xced4   :  { %v8076_v51 = vpop.permute.xlu0 %8075 }
0xced5   :  { %v8078_v39 = vadd.f32 %v8076_v51, %v15141_v22 }
0xced7   :  { %v8079_v41 = vpack.c.bf16 %v8078_v39, %v8078_v39 }
0xced9   :  { %8081 = vrot.lane.b32.xlu1 %v8079_v41, %s13034_s25 }
0xcf4b   :  { %v8082_v16 = vpop.permute.xlu1 %8081 }
0xcf4c   :  { %12357 = vmatmul.mubr.msk.bf16.vlgmr.msra.gmra.mxu1 %vm49_vm1, %v8082_v16 }
0xcf4d   :  { %12369 = vmatpush3.bf16.msra.mxu1 %v15181_v63  ;;  %12372 = vmatprep.mubr.msk.bf16.mxu1 %vm13031_vm0, %v13030_v1 }
0xcf4e   :  { %12370 = vmatprep.subr.bf16.mxu1 %v13030_v1 }
0xcf51   :  { %12371 = vmatpush3.bf16.msra.mxu1 %v15190_v5 }
0xcf52   :  { %12384 = vmatprep.subr.bf16.mxu1 %v13030_v1 }
0xd00c   :  { %v8120_v44 = vpop.f32.mrf.mxu1 }
0xd00d   :  { %v8121_v2 = vadd.f32 %v15250_v0, %v8120_v44 }
0xd00e   :  { %v12358_v58 = vpop.f32.mrf.mxu1 }
0xd00f   :  { %12916 = vtanh.f32 %v8121_v2 }
0xd010   :  { %v8123_v35 = vpop.f32.mrf.mxu1 }
0xd012   :  { %v12359_v38 = vpop.f32.mrf.mxu1 }
0xd01c   :  { %v12917_v37 = vpop.eup %12916 }
0xd01d   :  { %v8127_v18 = vpack.c.bf16 %v12917_v37, %v12917_v37 }
0xd01f   :  { %12365 = vmatmul.mubr.msk.bf16.vlgmr.msra.gmra.mxu0 %vm49_vm1, %v8127_v18 }
0xd020   :  { %12377 = vmatpush3.bf16.msra.mxu0 %v15199_v23  ;;  %12380 = vmatprep.mubr.msk.bf16.mxu0 %vm13031_vm0, %v13030_v1 }
0xd021   :  { %12378 = vmatprep.subr.bf16.mxu0 %v13030_v1 }
0xd024   :  { %12379 = vmatpush3.bf16.msra.mxu0 %v15208_v19 }
0xd025   :  { %12392 = vmatprep.subr.bf16.mxu0 %v13030_v1 }
0xd0df   :  { %v8165_v3 = vpop.f32.mrf.mxu0 }
0xd0e0   :  { %v8166_v21 = vadd.f32 %v15264_v20, %v8165_v3 }
0xd0e1   :  { %v12366_v36 = vpop.f32.mrf.mxu0 }
0xd0e2   :  { %v8171_v8 = vadd.f32 %v8166_v21, %v15170_v48 }
0xd0e3   :  { %v8168_v53 = vpop.f32.mrf.mxu0 }
0xd0e4   :  { %v8174_v29 = vadd.f32 %v8173_v13, %v8171_v8 }
0xd0e5   :  { %v12367_v17 = vpop.f32.mrf.mxu0 }
0xd0e6   :  { %v8175_v31 = vmul.f32 %v8174_v29, %v15268_v45 }
0xd0e8   :  { %8177 = vrot.lane.b32.xlu0 %v8175_v31, %s13035_s15 }
0xd15a   :  { %v8178_v42 = vpop.permute.xlu0 %8177 }
0xd15b   :  { %v15274_v10 = vadd.f32 %v8178_v42, %v15141_v22 }
0xd15d   :  { %v8181_v57 = vpack.c.bf16 %v15274_v10, %v15274_v10 }
0xd15f   :  { %8183 = vrot.lane.b32.xlu1 %v8181_v57, %s13034_s25 }
0xd1d1   :  { %v8184_v26 = vpop.permute.xlu1 %8183 }
0xd1d2   :  { %12373 = vmatmul.mubr.msk.bf16.vlgmr.msra.gmra.mxu1 %vm49_vm1, %v8184_v26 }
0xd1d3   :  { %12385 = vmatpush3.bf16.msra.mxu1 %v15181_v63  ;;  %12388 = vmatprep.mubr.msk.bf16.mxu1 %vm13031_vm0, %v13030_v1 }
0xd1d4   :  { %12386 = vmatprep.subr.bf16.mxu1 %v13030_v1 }
0xd1d7   :  { %12387 = vmatpush3.bf16.msra.mxu1 %v15190_v5 }
0xd1d8   :  { %12400 = vmatprep.subr.bf16.mxu1 %v13030_v1 }
0xd292   :  { %v8222_v22 = vpop.f32.mrf.mxu1 }
0xd293   :  { %v8223_v48 = vadd.f32 %v15250_v0, %v8222_v22 }
0xd294   :  { %v12374_v30 = vpop.f32.mrf.mxu1 }
0xd295   :  { %12918 = vtanh.f32 %v8223_v48 }
0xd296   :  { %v8225_v28 = vpop.f32.mrf.mxu1 }
0xd298   :  { %v12375_v61 = vpop.f32.mrf.mxu1 }
0xd2a2   :  { %v12919_v56 = vpop.eup %12918 }
0xd2a3   :  { %v8229_v34 = vpack.c.bf16 %v12919_v56, %v12919_v56 }
0xd2a5   :  { %12381 = vmatmul.mubr.msk.bf16.vlgmr.msra.gmra.mxu0 %vm49_vm1, %v8229_v34 }
0xd2a6   :  { %12393 = vmatpush3.bf16.msra.mxu0 %v15199_v23  ;;  %12396 = vmatprep.mubr.msk.bf16.mxu0 %vm13031_vm0, %v13030_v1 }
0xd2a7   :  { %12394 = vmatprep.subr.bf16.mxu0 %v13030_v1 }
0xd2aa   :  { %12395 = vmatpush3.bf16.msra.mxu0 %v15208_v19 }
0xd2ab   :  { %12408 = vmatprep.subr.bf16.mxu0 %v13030_v1 }
0xd365   :  { %v8267_v12 = vpop.f32.mrf.mxu0 }
0xd366   :  { %v15295_v49 = vadd.f32 %v15264_v20, %v8267_v12 }
0xd367   :  { %v12382_v27 = vpop.f32.mrf.mxu0 }
0xd368   :  { %v8273_v14 = vmul.f32 %v15295_v49, %v15167_v47 }
0xd369   :  { %v8270_v59 = vpop.f32.mrf.mxu0 }
0xd36a   :  { %8275 = vrot.lane.b32.xlu0 %v8273_v14, %s13035_s15 }
0xd36b   :  { %v12383_v15 = vpop.f32.mrf.mxu0 }
0xd3dc   :  { %v8276_v7 = vpop.permute.xlu0 %8275 }
0xd3dd   :  { %v8278_v62 = vadd.f32 %v8276_v7, %v15274_v10 }
0xd3df   :  { %v8279_v55 = vpack.c.bf16 %v8278_v62, %v8278_v62 }
0xd3e1   :  { %8281 = vrot.lane.b32.xlu1 %v8279_v55, %s13034_s25 }
0xd453   :  { %v8282_v46 = vpop.permute.xlu1 %8281 }
0xd454   :  { %12389 = vmatmul.mubr.msk.bf16.vlgmr.msra.gmra.mxu1 %vm49_vm1, %v8282_v46 }
0xd455   :  { %12401 = vmatpush3.bf16.msra.mxu1 %v15181_v63  ;;  %12404 = vmatprep.mubr.msk.bf16.mxu1 %vm13031_vm0, %v13030_v1 }
0xd456   :  { %12402 = vmatprep.subr.bf16.mxu1 %v13030_v1 }
0xd459   :  { %12403 = vmatpush3.bf16.msra.mxu1 %v15190_v5 }
0xd45a   :  { %12416 = vmatprep.subr.bf16.mxu1 %v13030_v1 }
0xd514   :  { %v8320_v32 = vpop.f32.mrf.mxu1 }
0xd515   :  { %v8321_v4 = vadd.f32 %v15250_v0, %v8320_v32 }
0xd516   :  { %v12390_v50 = vpop.f32.mrf.mxu1 }
0xd517   :  { %12920 = vtanh.f32 %v8321_v4 }
0xd518   :  { %v8323_v51 = vpop.f32.mrf.mxu1 }
0xd51a   :  { %v12391_v39 = vpop.f32.mrf.mxu1 }
0xd524   :  { %v12921_v41 = vpop.eup %12920 }
0xd525   :  { %v8327_v16 = vpack.c.bf16 %v12921_v41, %v12921_v41 }
0xd527   :  { %12397 = vmatmul.mubr.msk.bf16.vlgmr.msra.gmra.mxu0 %vm49_vm1, %v8327_v16 }
0xd528   :  { %12409 = vmatpush3.bf16.msra.mxu0 %v15199_v23  ;;  %12412 = vmatprep.mubr.msk.bf16.mxu0 %vm13031_vm0, %v13030_v1 }
0xd529   :  { %12410 = vmatprep.subr.bf16.mxu0 %v13030_v1 }
0xd52c   :  { %12411 = vmatpush3.bf16.msra.mxu0 %v15208_v19 }
0xd52d   :  { %12424 = vmatprep.subr.bf16.mxu0 %v13030_v1 }
0xd5e7   :  { %v8365_v44 = vpop.f32.mrf.mxu0 }
0xd5e8   :  { %v15318_v2 = vadd.f32 %v15264_v20, %v8365_v44 }
0xd5e9   :  { %v12398_v58 = vpop.f32.mrf.mxu0 }
0xd5ea   :  { %v8371_v35 = vmul.f32 %v15318_v2, %v15167_v47 }
0xd5eb   :  { %v8368_v38 = vpop.f32.mrf.mxu0 }
0xd5ec   :  { %8373 = vrot.lane.b32.xlu0 %v8371_v35, %s13035_s15 }
0xd5ed   :  { %v12399_v37 = vpop.f32.mrf.mxu0 }
0xd65e   :  { %v8374_v18 = vpop.permute.xlu0 %8373 }
0xd65f   :  { %v8376_v25 = vadd.f32 %v8374_v18, %v15274_v10 }
0xd661   :  { %v8377_v3 = vpack.c.bf16 %v8376_v25, %v8376_v25 }
0xd663   :  { %8379 = vrot.lane.b32.xlu1 %v8377_v3, %s13034_s25 }
0xd6d5   :  { %v8380_v21 = vpop.permute.xlu1 %8379 }
0xd6d6   :  { %12405 = vmatmul.mubr.msk.bf16.vlgmr.msra.gmra.mxu1 %vm49_vm1, %v8380_v21 }
0xd6d7   :  { %12417 = vmatpush3.bf16.msra.mxu1 %v15181_v63  ;;  %12420 = vmatprep.mubr.msk.bf16.mxu1 %vm13031_vm0, %v13030_v1 }
0xd6d8   :  { %12418 = vmatprep.subr.bf16.mxu1 %v13030_v1 }
0xd6db   :  { %12419 = vmatpush3.bf16.msra.mxu1 %v15190_v5 }
0xd6dc   :  { %12432 = vmatprep.subr.bf16.mxu1 %v13030_v1 }
0xd796   :  { %v8418_v36 = vpop.f32.mrf.mxu1 }
0xd797   :  { %v8419_v13 = vadd.f32 %v15250_v0, %v8418_v36 }
0xd798   :  { %v12406_v8 = vpop.f32.mrf.mxu1 }
0xd799   :  { %12922 = vtanh.f32 %v8419_v13 }
0xd79a   :  { %v8421_v53 = vpop.f32.mrf.mxu1 }
0xd79c   :  { %v12407_v29 = vpop.f32.mrf.mxu1 }
0xd7a6   :  { %v12923_v17 = vpop.eup %12922 }
0xd7a7   :  { %v8425_v31 = vpack.c.bf16 %v12923_v17, %v12923_v17 }
0xd7a9   :  { %12413 = vmatmul.mubr.msk.bf16.vlgmr.msra.gmra.mxu0 %vm49_vm1, %v8425_v31 }
0xd7aa   :  { %12425 = vmatpush3.bf16.msra.mxu0 %v15199_v23  ;;  %12428 = vmatprep.mubr.msk.bf16.mxu0 %vm13031_vm0, %v13030_v1 }
0xd7ab   :  { %12426 = vmatprep.subr.bf16.mxu0 %v13030_v1 }
0xd7ae   :  { %12427 = vmatpush3.bf16.msra.mxu0 %v15208_v19 }
0xd7af   :  { %12440 = vmatprep.subr.bf16.mxu0 %v13030_v1 }
0xd869   :  { %v8463_v42 = vpop.f32.mrf.mxu0 }
0xd86a   :  { %v8464_v57 = vadd.f32 %v15264_v20, %v8463_v42 }
0xd86b   :  { %v12414_v26 = vpop.f32.mrf.mxu0 }
0xd86c   :  { %v8469_v22 = vmul.f32 %v15164_v11, %v8464_v57  ;;  %v8568_v55 = vadd.f32 %v8464_v57, %v15318_v2 }
0xd86d   :  { %v8466_v48 = vpop.f32.mrf.mxu0 }
0xd86e   :  { %8471 = vrot.lane.b32.xlu0 %v8469_v22, %s13035_s15  ;;  %v8569_v50 = vmul.f32 2.0, %v8568_v55 }
0xd86f   :  { %v12415_v30 = vpop.f32.mrf.mxu0 }
0xd8e0   :  { %v8472_v28 = vpop.permute.xlu0 %8471 }
0xd8e1   :  { %v8474_v61 = vadd.f32 %v8472_v28, %v15274_v10 }
0xd8e3   :  { %v8475_v56 = vpack.c.bf16 %v8474_v61, %v8474_v61 }
0xd8e5   :  { %8477 = vrot.lane.b32.xlu1 %v8475_v56, %s13034_s25 }
0xd957   :  { %v8478_v34 = vpop.permute.xlu1 %8477 }
0xd958   :  { %12421 = vmatmul.mubr.msk.bf16.vlgmr.msra.gmra.mxu1 %vm49_vm1, %v8478_v34 }
0xd959   :  { %12433 = vmatpush3.bf16.msra.mxu1 %v15181_v63  ;;  %12436 = vmatprep.mubr.msk.bf16.mxu1 %vm13031_vm0, %v13030_v1 }
0xd95a   :  { %12434 = vmatprep.subr.bf16.mxu1 %v13030_v1 }
0xd95d   :  { %12435 = vmatpush3.bf16.msra.mxu1 %v15190_v5 }
0xd95e   :  { %12448 = vmatprep.subr.bf16.mxu1 %v13030_v1 }
0xda18   :  { %v8516_v12 = vpop.f32.mrf.mxu1 }
0xda19   :  { %v8517_v27 = vadd.f32 %v15250_v0, %v8516_v12 }
0xda1a   :  { %v12422_v14 = vpop.f32.mrf.mxu1 }
0xda1b   :  { %12924 = vtanh.f32 %v8517_v27 }
0xda1c   :  { %v8519_v59 = vpop.f32.mrf.mxu1 }
0xda1e   :  { %v12423_v15 = vpop.f32.mrf.mxu1 }
0xda28   :  { %v12925_v7 = vpop.eup %12924 }
0xda29   :  { %v8523_v62 = vpack.c.bf16 %v12925_v7, %v12925_v7 }
0xda2b   :  { %12429 = vmatmul.mubr.msk.bf16.vlgmr.msra.gmra.mxu0 %vm49_vm1, %v8523_v62 }
0xda2c   :  { %12441 = vmatpush3.bf16.msra.mxu0 %v15199_v23  ;;  %12444 = vmatprep.mubr.msk.bf16.mxu0 %vm13031_vm0, %v13030_v1 }
0xda2d   :  { %12442 = vmatprep.subr.bf16.mxu0 %v13030_v1 }
0xda30   :  { %12443 = vmatpush3.bf16.msra.mxu0 %v15208_v19 }
0xda31   :  { %12456 = vmatprep.subr.bf16.mxu0 %v13030_v1 }
0xdaeb   :  { %v8561_v46 = vpop.f32.mrf.mxu0 }
0xdaec   :  { %v8562_v32 = vadd.f32 %v15264_v20, %v8561_v46 }
0xdaed   :  { %v12430_v4 = vpop.f32.mrf.mxu0 }
0xdaee   :  { %v8567_v51 = vadd.f32 %v8562_v32, %v15295_v49 }
0xdaef   :  { %v8564_v39 = vpop.f32.mrf.mxu0 }
0xdaf0   :  { %v8570_v41 = vadd.f32 %v8569_v50, %v8567_v51 }
0xdaf1   :  { %v12431_v16 = vpop.f32.mrf.mxu0 }
0xdaf2   :  { %v8571_v44 = vmul.f32 %v8570_v41, %v15268_v45 }
0xdaf4   :  { %8573 = vrot.lane.b32.xlu0 %v8571_v44, %s13035_s15 }
0xdb66   :  { %v8574_v58 = vpop.permute.xlu0 %8573 }
0xdb67   :  { %v15366_v35 = vadd.f32 %v8574_v58, %v15274_v10 }
0xdb69   :  { %v8577_v2 = vpack.c.bf16 %v15366_v35, %v15366_v35 }
0xdb6b   :  { %8579 = vrot.lane.b32.xlu1 %v8577_v2, %s13034_s25 }
0xdbdd   :  { %v8580_v38 = vpop.permute.xlu1 %8579 }
0xdbde   :  { %12437 = vmatmul.mubr.msk.bf16.vlgmr.msra.gmra.mxu1 %vm49_vm1, %v8580_v38 }
0xdbdf   :  { %12449 = vmatpush3.bf16.msra.mxu1 %v15181_v63  ;;  %12452 = vmatprep.mubr.msk.bf16.mxu1 %vm13031_vm0, %v13030_v1 }
0xdbe0   :  { %12450 = vmatprep.subr.bf16.mxu1 %v13030_v1 }
0xdbe3   :  { %12451 = vmatpush3.bf16.msra.mxu1 %v15190_v5 }
0xdbe4   :  { %12464 = vmatprep.subr.bf16.mxu1 %v13030_v1 }
0xdc9e   :  { %v8618_v10 = vpop.f32.mrf.mxu1 }
0xdc9f   :  { %v8619_v49 = vadd.f32 %v15250_v0, %v8618_v10 }
0xdca0   :  { %v12438_v37 = vpop.f32.mrf.mxu1 }
0xdca1   :  { %12926 = vtanh.f32 %v8619_v49 }
0xdca2   :  { %v8621_v18 = vpop.f32.mrf.mxu1 }
0xdca4   :  { %v12439_v25 = vpop.f32.mrf.mxu1 }
0xdcae   :  { %v12927_v3 = vpop.eup %12926 }
0xdcaf   :  { %v8625_v21 = vpack.c.bf16 %v12927_v3, %v12927_v3 }
0xdcb1   :  { %12445 = vmatmul.mubr.msk.bf16.vlgmr.msra.gmra.mxu0 %vm49_vm1, %v8625_v21 }
0xdcb2   :  { %12457 = vmatpush3.bf16.msra.mxu0 %v15199_v23  ;;  %12460 = vmatprep.mubr.msk.bf16.mxu0 %vm13031_vm0, %v13030_v1 }
0xdcb3   :  { %12458 = vmatprep.subr.bf16.mxu0 %v13030_v1 }
0xdcb6   :  { %12459 = vmatpush3.bf16.msra.mxu0 %v15208_v19 }
0xdcb7   :  { %12472 = vmatprep.subr.bf16.mxu0 %v13030_v1 }
0xdd71   :  { %v8663_v36 = vpop.f32.mrf.mxu0 }
0xdd72   :  { %v15387_v13 = vadd.f32 %v15264_v20, %v8663_v36 }
0xdd73   :  { %v12446_v8 = vpop.f32.mrf.mxu0 }
0xdd74   :  { %v8669_v53 = vmul.f32 %v15387_v13, %v15167_v47 }
0xdd75   :  { %v8666_v29 = vpop.f32.mrf.mxu0 }
0xdd76   :  { %8671 = vrot.lane.b32.xlu0 %v8669_v53, %s13035_s15 }
0xdd77   :  { %v12447_v17 = vpop.f32.mrf.mxu0 }
0xdde8   :  { %v8672_v31 = vpop.permute.xlu0 %8671 }
0xdde9   :  { %v8674_v42 = vadd.f32 %v8672_v31, %v15366_v35 }
0xddeb   :  { %v8675_v57 = vpack.c.bf16 %v8674_v42, %v8674_v42 }
0xdded   :  { %8677 = vrot.lane.b32.xlu1 %v8675_v57, %s13034_s25 }
0xde5f   :  { %v8678_v26 = vpop.permute.xlu1 %8677 }
0xde60   :  { %12453 = vmatmul.mubr.msk.bf16.vlgmr.msra.gmra.mxu1 %vm49_vm1, %v8678_v26 }
0xde61   :  { %12465 = vmatpush3.bf16.msra.mxu1 %v15181_v63  ;;  %12468 = vmatprep.mubr.msk.bf16.mxu1 %vm13031_vm0, %v13030_v1 }
0xde62   :  { %12466 = vmatprep.subr.bf16.mxu1 %v13030_v1 }
0xde65   :  { %12467 = vmatpush3.bf16.msra.mxu1 %v15190_v5 }
0xde66   :  { %12480 = vmatprep.subr.bf16.mxu1 %v13030_v1 }
0xdf20   :  { %v8716_v22 = vpop.f32.mrf.mxu1 }
0xdf21   :  { %v8717_v48 = vadd.f32 %v15250_v0, %v8716_v22 }
0xdf22   :  { %v12454_v30 = vpop.f32.mrf.mxu1 }
0xdf23   :  { %12928 = vtanh.f32 %v8717_v48 }
0xdf24   :  { %v8719_v28 = vpop.f32.mrf.mxu1 }
0xdf26   :  { %v12455_v61 = vpop.f32.mrf.mxu1 }
0xdf30   :  { %v12929_v56 = vpop.eup %12928 }
0xdf31   :  { %v8723_v34 = vpack.c.bf16 %v12929_v56, %v12929_v56 }
0xdf33   :  { %12461 = vmatmul.mubr.msk.bf16.vlgmr.msra.gmra.mxu0 %vm49_vm1, %v8723_v34 }
0xdf34   :  { %12473 = vmatpush3.bf16.msra.mxu0 %v15199_v23  ;;  %12476 = vmatprep.mubr.msk.bf16.mxu0 %vm13031_vm0, %v13030_v1 }
0xdf35   :  { %12474 = vmatprep.subr.bf16.mxu0 %v13030_v1 }
0xdf38   :  { %12475 = vmatpush3.bf16.msra.mxu0 %v15208_v19 }
0xdf39   :  { %12488 = vmatprep.subr.bf16.mxu0 %v13030_v1 }
0xdff3   :  { %v8761_v12 = vpop.f32.mrf.mxu0 }
0xdff4   :  { %v15410_v27 = vadd.f32 %v15264_v20, %v8761_v12 }
0xdff5   :  { %v12462_v14 = vpop.f32.mrf.mxu0 }
0xdff6   :  { %v8767_v59 = vmul.f32 %v15410_v27, %v15167_v47 }
0xdff7   :  { %v8764_v15 = vpop.f32.mrf.mxu0 }
0xdff8   :  { %8769 = vrot.lane.b32.xlu0 %v8767_v59, %s13035_s15 }
0xdff9   :  { %v12463_v7 = vpop.f32.mrf.mxu0 }
0xe06a   :  { %v8770_v62 = vpop.permute.xlu0 %8769 }
0xe06b   :  { %v8772_v55 = vadd.f32 %v8770_v62, %v15366_v35 }
0xe06d   :  { %v8773_v46 = vpack.c.bf16 %v8772_v55, %v8772_v55 }
0xe06f   :  { %8775 = vrot.lane.b32.xlu1 %v8773_v46, %s13034_s25 }
0xe0e1   :  { %v8776_v32 = vpop.permute.xlu1 %8775 }
0xe0e2   :  { %12469 = vmatmul.mubr.msk.bf16.vlgmr.msra.gmra.mxu1 %vm49_vm1, %v8776_v32 }
0xe0e3   :  { %12481 = vmatpush3.bf16.msra.mxu1 %v15181_v63  ;;  %12484 = vmatprep.mubr.msk.bf16.mxu1 %vm13031_vm0, %v13030_v1 }
0xe0e4   :  { %12482 = vmatprep.subr.bf16.mxu1 %v13030_v1 }
0xe0e7   :  { %12483 = vmatpush3.bf16.msra.mxu1 %v15190_v5 }
0xe0e8   :  { %12496 = vmatprep.subr.bf16.mxu1 %v13030_v1 }
0xe1a2   :  { %v8814_v47 = vpop.f32.mrf.mxu1 }
0xe1a3   :  { %v8815_v4 = vadd.f32 %v15250_v0, %v8814_v47 }
0xe1a4   :  { %v12470_v50 = vpop.f32.mrf.mxu1 }
0xe1a5   :  { %12930 = vtanh.f32 %v8815_v4 }
0xe1a6   :  { %v8817_v51 = vpop.f32.mrf.mxu1 }
0xe1a8   :  { %v12471_v39 = vpop.f32.mrf.mxu1 }
0xe1b2   :  { %v12931_v41 = vpop.eup %12930 }
0xe1b3   :  { %v8821_v16 = vpack.c.bf16 %v12931_v41, %v12931_v41 }
0xe1b5   :  { %12477 = vmatmul.mubr.msk.bf16.vlgmr.msra.gmra.mxu0 %vm49_vm1, %v8821_v16 }
0xe1b6   :  { %12489 = vmatpush3.bf16.msra.mxu0 %v15199_v23  ;;  %12492 = vmatprep.mubr.msk.bf16.mxu0 %vm13031_vm0, %v13030_v1 }
0xe1b7   :  { %12490 = vmatprep.subr.bf16.mxu0 %v13030_v1 }
0xe1ba   :  { %12491 = vmatpush3.bf16.msra.mxu0 %v15208_v19 }
0xe1bb   :  { %12504 = vmatprep.subr.bf16.mxu0 %v13030_v1 }
0xe275   :  { %v8859_v44 = vpop.f32.mrf.mxu0 }
0xe276   :  { %v8860_v58 = vadd.f32 %v15264_v20, %v8859_v44 }
0xe277   :  { %v12478_v2 = vpop.f32.mrf.mxu0 }
0xe278   :  { %v8865_v38 = vmul.f32 %v15164_v11, %v8860_v58 }
0xe279   :  { %v8862_v10 = vpop.f32.mrf.mxu0 }
0xe27a   :  { %8867 = vrot.lane.b32.xlu0 %v8865_v38, %s13035_s15 }
0xe27b   :  { %v12479_v49 = vpop.f32.mrf.mxu0 }
0xe2ec   :  { %v8868_v37 = vpop.permute.xlu0 %8867 }
0xe2ed   :  { %v8870_v18 = vadd.f32 %v8868_v37, %v15366_v35 }
0xe2ef   :  { %v8871_v25 = vpack.c.bf16 %v8870_v18, %v8870_v18 }
0xe2f1   :  { %8873 = vrot.lane.b32.xlu1 %v8871_v25, %s13034_s25  ;;  %v15500_v25 = vld [vmem:[%s15809_s1 + $0xe] sm:$0x3] }
0xe363   :  { %v8874_v3 = vpop.permute.xlu1 %8873 }
0xe364   :  { %12485 = vmatmul.mubr.msk.bf16.vlgmr.msra.gmra.mxu1 %vm49_vm1, %v8874_v3  ;;  %v15503_v3 = vmul.f32 0.5, %v15500_v25 }
0xe365   :  { %12497 = vmatpush3.bf16.msra.mxu1 %v15092_v43  ;;  %12500 = vmatprep.mubr.msk.bf16.mxu1 %vm13031_vm0, %v13030_v1  ;;  %v8964_v43 = vadd.f32 %v8860_v58, %v15410_v27 }
0xe366   :  { %12498 = vmatprep.subr.bf16.mxu1 %v13030_v1 }
0xe367   :  { %v8965_v57 = vmul.f32 2.0, %v8964_v43 }
0xe369   :  { %12499 = vmatpush3.bf16.msra.mxu1 %v15101_v60 }
0xe36a   :  { %12512 = vmatprep.subr.bf16.mxu1 %v13030_v1 }
0xe424   :  { %v8912_v11 = vpop.f32.mrf.mxu1 }
0xe425   :  { %v8913_v21 = vadd.f32 %v15250_v0, %v8912_v11 }
0xe426   :  { %v12486_v36 = vpop.f32.mrf.mxu1 }
0xe427   :  { %12932 = vtanh.f32 %v8913_v21 }
0xe428   :  { %v8915_v8 = vpop.f32.mrf.mxu1 }
0xe42a   :  { %v12487_v53 = vpop.f32.mrf.mxu1 }
0xe434   :  { %v12933_v29 = vpop.eup %12932 }
0xe435   :  { %v8919_v17 = vpack.c.bf16 %v12933_v29, %v12933_v29 }
0xe437   :  { %12493 = vmatmul.mubr.msk.bf16.vlgmr.msra.gmra.mxu0 %vm49_vm1, %v8919_v17 }
0xe438   :  { %12505 = vmatpush3.bf16.msra.mxu0 %v15181_v63  ;;  %12508 = vmatprep.mubr.msk.bf16.mxu0 %vm13031_vm0, %v13030_v1 }
0xe439   :  { %12506 = vmatprep.subr.bf16.mxu0 %v13030_v1 }
0xe43c   :  { %12507 = vmatpush3.bf16.msra.mxu0 %v15190_v5 }
0xe43d   :  { %12520 = vmatprep.subr.bf16.mxu0 %v13030_v1 }
0xe4f7   :  { %v8957_v60 = vpop.f32.mrf.mxu0 }
0xe4f8   :  { %v8958_v31 = vadd.f32 %v15264_v20, %v8957_v60 }
0xe4f9   :  { %v12494_v42 = vpop.f32.mrf.mxu0 }
0xe4fa   :  { %v8963_v26 = vadd.f32 %v8958_v31, %v15387_v13 }
0xe4fb   :  { %v8960_v22 = vpop.f32.mrf.mxu0 }
0xe4fc   :  { %v8966_v48 = vadd.f32 %v8965_v57, %v8963_v26 }
0xe4fd   :  { %v12495_v30 = vpop.f32.mrf.mxu0 }
0xe4fe   :  { %v8967_v28 = vmul.f32 %v8966_v48, %v15268_v45  ;;  %v10468_v45 = vld [vmem:[%s15808_s0 + $0xe] sm:$0x3] }
0xe500   :  { %8969 = vrot.lane.b32.xlu0 %v8967_v28, %s13035_s15 }
0xe572   :  { %v8970_v61 = vpop.permute.xlu0 %8969 }
0xe573   :  { %v15458_v56 = vadd.f32 %v8970_v61, %v15366_v35 }
0xe575   :  { %v8981_v34 = vpack.c.bf16 %v15458_v56, %v15458_v56 }
0xe577   :  { %8983 = vrot.lane.b32.xlu1 %v8981_v34, %s13034_s25 }
0xe5e9   :  { %v8984_v12 = vpop.permute.xlu1 %8983 }
0xe5ea   :  { %12501 = vmatmul.mubr.msk.bf16.vlgmr.msra.gmra.mxu1 %vm49_vm1, %v8984_v12 }
0xe5eb   :  { %12513 = vmatpush3.bf16.msra.mxu1 %v15199_v23  ;;  %12516 = vmatprep.mubr.msk.bf16.mxu1 %vm13031_vm0, %v13030_v1 }
0xe5ec   :  { %12514 = vmatprep.subr.bf16.mxu1 %v13030_v1 }
0xe5ef   :  { %12515 = vmatpush3.bf16.msra.mxu1 %v15208_v19 }
0xe5f0   :  { %12528 = vmatprep.subr.bf16.mxu1 %v13030_v1 }
0xe6aa   :  { %v9022_v35 = vpop.f32.mrf.mxu1 }
0xe6ab   :  { %v9028_v13 = vadd.f32 %v10468_v45, %v9022_v35 }
0xe6ac   :  { %v12502_v27 = vpop.f32.mrf.mxu1 }
0xe6ad   :  { %12934 = vtanh.f32 %v9028_v13  ;;  %v10470_v7 = vmul.f32 -1.442695, %v9028_v13 }
0xe6ae   :  { %v9025_v14 = vpop.f32.mrf.mxu1 }
0xe6af   :  { %12936 = vpow2.f32 %v10470_v7 }
0xe6b0   :  { %v12503_v59 = vpop.f32.mrf.mxu1 }
0xe6ba   :  { %v12935_v15 = vpop.eup %12934 }
0xe6bb   :  { %9038 = vrot.lane.b32.xlu0 %v12935_v15, %s13033_s24 }
0xe6bc   :  { %v12937_v62 = vpop.eup %12936 }
0xe6bd   :  { %v9032_v55 = vadd.f32 1.0, %v12937_v62 }
0xe6bf   :  { %12938 = vrcp.f32 %v9032_v55 }
0xe6cc   :  { %v12939_v46 = vpop.eup %12938 }
0xe6cd   :  { %v9036_v4 = vmul.f32 %v12939_v46, %v15137_v9 }
0xe72d   :  { %v9039_v32 = vpop.permute.xlu0 %9038 }
0xe72e   :  { %v9041_v47 = vmul.f32 %v12939_v46, %v9039_v32 }
0xe730   :  { %9043 = vrot.lane.b32.xlu1 %v9041_v47, %s13034_s25 }
0xe7a2   :  { %v9044_v50 = vpop.permute.xlu1 %9043 }
0xe7a3   :  { %v9046_v51 = vadd.f32 %v9044_v50, %v9036_v4 }
0xe7a5   :  { %12940 = vtanh.f32 %v9046_v51 }
0xe7b2   :  { %v12941_v39 = vpop.eup %12940 }
0xe7b3   :  { %9049 = vrot.lane.b32.xlu0 %v12941_v39, %s13033_s24 }
0xe825   :  { %v9050_v41 = vpop.permute.xlu0 %9049 }
0xe826   :  { %v15477_v16 = vmul.f32 %v12939_v46, %v9050_v41 }
0xe828   :  { %v9057_v44 = vpack.c.bf16 %v15477_v16, %v15477_v16 }
0xe82a   :  { %9059 = vrot.lane.b32.xlu1 %v9057_v44, %s13034_s25 }
0xe89c   :  { %v9060_v58 = vpop.permute.xlu1 %9059 }
0xe89d   :  { %12509 = vmatmul.mubr.msk.bf16.vlgmr.msra.gmra.mxu0 %vm49_vm1, %v9060_v58 }
0xe89e   :  { %12521 = vmatpush3.bf16.msra.mxu0 %v15181_v63  ;;  %12524 = vmatprep.mubr.msk.bf16.mxu0 %vm13031_vm0, %v13030_v1 }
0xe89f   :  { %12522 = vmatprep.subr.bf16.mxu0 %v13030_v1 }
0xe8a2   :  { %12523 = vmatpush3.bf16.msra.mxu0 %v15190_v5 }
0xe8a3   :  { %12536 = vmatprep.subr.bf16.mxu0 %v13030_v1 }
0xe95d   :  { %v9098_v9 = vpop.f32.mrf.mxu0 }
0xe95e   :  { %v9099_v2 = vadd.f32 %v15250_v0, %v9098_v9 }
0xe95f   :  { %v12510_v38 = vpop.f32.mrf.mxu0 }
0xe960   :  { %12942 = vtanh.f32 %v9099_v2 }
0xe961   :  { %v9101_v10 = vpop.f32.mrf.mxu0 }
0xe963   :  { %v12511_v49 = vpop.f32.mrf.mxu0 }
0xe96d   :  { %v12943_v37 = vpop.eup %12942 }
0xe96e   :  { %v9105_v18 = vpack.c.bf16 %v12943_v37, %v12943_v37 }
0xe970   :  { %12517 = vmatmul.mubr.msk.bf16.vlgmr.msra.gmra.mxu1 %vm49_vm1, %v9105_v18 }
0xe971   :  { %12529 = vmatpush3.bf16.msra.mxu1 %v15199_v23  ;;  %12532 = vmatprep.mubr.msk.bf16.mxu1 %vm13031_vm0, %v13030_v1 }
0xe972   :  { %12530 = vmatprep.subr.bf16.mxu1 %v13030_v1 }
0xe975   :  { %12531 = vmatpush3.bf16.msra.mxu1 %v15208_v19 }
0xe976   :  { %12544 = vmatprep.subr.bf16.mxu1 %v13030_v1 }
0xea30   :  { %v9143_v11 = vpop.f32.mrf.mxu1 }
0xea31   :  { %v15506_v21 = vadd.f32 %v15264_v20, %v9143_v11 }
0xea32   :  { %v12518_v36 = vpop.f32.mrf.mxu1 }
0xea33   :  { %v9149_v8 = vmul.f32 %v15506_v21, %v15503_v3 }
0xea34   :  { %v9146_v53 = vpop.f32.mrf.mxu1 }
0xea35   :  { %9151 = vrot.lane.b32.xlu0 %v9149_v8, %s13035_s15 }
0xea36   :  { %v12519_v29 = vpop.f32.mrf.mxu1 }
0xeaa7   :  { %v9152_v17 = vpop.permute.xlu0 %9151 }
0xeaa8   :  { %v9154_v43 = vadd.f32 %v9152_v17, %v15477_v16 }
0xeaaa   :  { %v9155_v60 = vpack.c.bf16 %v9154_v43, %v9154_v43 }
0xeaac   :  { %9157 = vrot.lane.b32.xlu1 %v9155_v60, %s13034_s25  ;;  %v15574_v60 = vmul.f32 0.16666667, %v15500_v25 }
0xeb1e   :  { %v9158_v31 = vpop.permute.xlu1 %9157 }
0xeb1f   :  { %12525 = vmatmul.mubr.msk.bf16.vlgmr.msra.gmra.mxu0 %vm49_vm1, %v9158_v31 }
0xeb20   :  { %12537 = vmatpush3.bf16.msra.mxu0 %v15181_v63  ;;  %12540 = vmatprep.mubr.msk.bf16.mxu0 %vm13031_vm0, %v13030_v1 }
0xeb21   :  { %12538 = vmatprep.subr.bf16.mxu0 %v13030_v1 }
0xeb24   :  { %12539 = vmatpush3.bf16.msra.mxu0 %v15190_v5 }
0xeb25   :  { %12552 = vmatprep.subr.bf16.mxu0 %v13030_v1 }
0xebdf   :  { %v9196_v42 = vpop.f32.mrf.mxu0 }
0xebe0   :  { %v9197_v57 = vadd.f32 %v15250_v0, %v9196_v42 }
0xebe1   :  { %v12526_v26 = vpop.f32.mrf.mxu0 }
0xebe2   :  { %12944 = vtanh.f32 %v9197_v57 }
0xebe3   :  { %v9199_v22 = vpop.f32.mrf.mxu0 }
0xebe5   :  { %v12527_v48 = vpop.f32.mrf.mxu0 }
0xebef   :  { %v12945_v30 = vpop.eup %12944 }
0xebf0   :  { %v9203_v28 = vpack.c.bf16 %v12945_v30, %v12945_v30 }
0xebf2   :  { %12533 = vmatmul.mubr.msk.bf16.vlgmr.msra.gmra.mxu1 %vm49_vm1, %v9203_v28 }
0xebf3   :  { %12545 = vmatpush3.bf16.msra.mxu1 %v15199_v23  ;;  %12548 = vmatprep.mubr.msk.bf16.mxu1 %vm13031_vm0, %v13030_v1 }
0xebf4   :  { %12546 = vmatprep.subr.bf16.mxu1 %v13030_v1 }
0xebf7   :  { %12547 = vmatpush3.bf16.msra.mxu1 %v15208_v19 }
0xebf8   :  { %12560 = vmatprep.subr.bf16.mxu1 %v13030_v1 }
0xecb2   :  { %v9241_v61 = vpop.f32.mrf.mxu1 }
0xecb3   :  { %v15529_v34 = vadd.f32 %v15264_v20, %v9241_v61 }
0xecb4   :  { %v12534_v12 = vpop.f32.mrf.mxu1 }
0xecb5   :  { %v9247_v45 = vmul.f32 %v15529_v34, %v15503_v3 }
0xecb6   :  { %v9244_v35 = vpop.f32.mrf.mxu1 }
0xecb7   :  { %9249 = vrot.lane.b32.xlu0 %v9247_v45, %s13035_s15 }
0xecb8   :  { %v12535_v13 = vpop.f32.mrf.mxu1 }
0xed29   :  { %v9250_v27 = vpop.permute.xlu0 %9249 }
0xed2a   :  { %v9252_v14 = vadd.f32 %v9250_v27, %v15477_v16  ;;  %v15607_v27 = vld [vmem:[%s15811_s3 + $0x18] sm:$0xff]  }
0xed2c   :  { %v9253_v59 = vpack.c.bf16 %v9252_v14, %v9252_v14  ;;  %v15616_v14 = vld [vmem:[%s15811_s3 + $0x10] sm:$0xff]  }
0xed2e   :  { %9255 = vrot.lane.b32.xlu1 %v9253_v59, %s13034_s25 }
0xeda0   :  { %v9256_v15 = vpop.permute.xlu1 %9255 }
0xeda1   :  { %12541 = vmatmul.mubr.msk.bf16.vlgmr.msra.gmra.mxu0 %vm49_vm1, %v9256_v15 }
0xeda2   :  { %12553 = vmatpush3.bf16.msra.mxu0 %v15181_v63  ;;  %12556 = vmatprep.mubr.msk.bf16.mxu0 %vm13031_vm0, %v13030_v1 }
0xeda3   :  { %12554 = vmatprep.subr.bf16.mxu0 %v13030_v1 }
0xeda6   :  { %12555 = vmatpush3.bf16.msra.mxu0 %v15190_v5 }
0xeda7   :  { %12568 = vmatprep.subr.bf16.mxu0 %v13030_v1 }
0xee61   :  { %v9294_v7 = vpop.f32.mrf.mxu0 }
0xee62   :  { %v9295_v62 = vadd.f32 %v15250_v0, %v9294_v7 }
0xee63   :  { %v12542_v55 = vpop.f32.mrf.mxu0 }
0xee64   :  { %12946 = vtanh.f32 %v9295_v62 }
0xee65   :  { %v9297_v46 = vpop.f32.mrf.mxu0 }
0xee67   :  { %v12543_v32 = vpop.f32.mrf.mxu0 }
0xee71   :  { %v12947_v47 = vpop.eup %12946 }
0xee72   :  { %v9301_v4 = vpack.c.bf16 %v12947_v47, %v12947_v47 }
0xee74   :  { %12549 = vmatmul.mubr.msk.bf16.vlgmr.msra.gmra.mxu1 %vm49_vm1, %v9301_v4 }
0xee75   :  { %12561 = vmatpush3.bf16.msra.mxu1 %v15199_v23  ;;  %12564 = vmatprep.mubr.msk.bf16.mxu1 %vm13031_vm0, %v13030_v1 }
0xee76   :  { %12562 = vmatprep.subr.bf16.mxu1 %v13030_v1 }
0xee79   :  { %12563 = vmatpush3.bf16.msra.mxu1 %v15208_v19 }
0xee7a   :  { %12576 = vmatprep.subr.bf16.mxu1 %v13030_v1 }
0xef34   :  { %v9339_v50 = vpop.f32.mrf.mxu1 }
0xef35   :  { %v9340_v51 = vadd.f32 %v15264_v20, %v9339_v50 }
0xef36   :  { %v12550_v39 = vpop.f32.mrf.mxu1 }
0xef37   :  { %v9345_v41 = vmul.f32 %v15500_v25, %v9340_v51 }
0xef38   :  { %v9342_v44 = vpop.f32.mrf.mxu1 }
0xef39   :  { %9347 = vrot.lane.b32.xlu0 %v9345_v41, %s13035_s15 }
0xef3a   :  { %v12551_v58 = vpop.f32.mrf.mxu1 }
0xefab   :  { %v9348_v9 = vpop.permute.xlu0 %9347 }
0xefac   :  { %v9350_v2 = vadd.f32 %v9348_v9, %v15477_v16 }
0xefae   :  { %v9351_v38 = vpack.c.bf16 %v9350_v2, %v9350_v2 }
0xefb0   :  { %9353 = vrot.lane.b32.xlu1 %v9351_v38, %s13034_s25 }
0xf022   :  { %v9354_v10 = vpop.permute.xlu1 %9353 }
0xf023   :  { %12557 = vmatmul.mubr.msk.bf16.vlgmr.msra.gmra.mxu0 %vm49_vm1, %v9354_v10 }
0xf024   :  { %12569 = vmatpush3.bf16.msra.mxu0 %v15181_v63  ;;  %12572 = vmatprep.mubr.msk.bf16.mxu0 %vm13031_vm0, %v13030_v1  ;;  %v9444_v63 = vadd.f32 %v9340_v51, %v15529_v34 }
0xf025   :  { %12570 = vmatprep.subr.bf16.mxu0 %v13030_v1 }
0xf026   :  { %v9445_v43 = vmul.f32 2.0, %v9444_v63  ;;  %v15661_v63 = vld [vmem:[%s15812_s4] ss:$0 sm:$0xff] }
0xf028   :  { %12571 = vmatpush3.bf16.msra.mxu0 %v15190_v5 }
0xf029   :  { %12584 = vmatprep.subr.bf16.mxu0 %v13030_v1 }
0xf0e3   :  { %v9392_v49 = vpop.f32.mrf.mxu0 }
0xf0e4   :  { %v9393_v37 = vadd.f32 %v15250_v0, %v9392_v49 }
0xf0e5   :  { %v12558_v18 = vpop.f32.mrf.mxu0 }
0xf0e6   :  { %12948 = vtanh.f32 %v9393_v37 }
0xf0e7   :  { %v9395_v11 = vpop.f32.mrf.mxu0 }
0xf0e9   :  { %v12559_v36 = vpop.f32.mrf.mxu0 }
0xf0f3   :  { %v12949_v8 = vpop.eup %12948 }
0xf0f4   :  { %v9399_v53 = vpack.c.bf16 %v12949_v8, %v12949_v8 }
0xf0f6   :  { %12565 = vmatmul.mubr.msk.bf16.vlgmr.msra.gmra.mxu1 %vm49_vm1, %v9399_v53 }
0xf0f7   :  { %12577 = vmatpush3.bf16.msra.mxu1 %v15199_v23  ;;  %12580 = vmatprep.mubr.msk.bf16.mxu1 %vm13031_vm0, %v13030_v1 }
0xf0f8   :  { %12578 = vmatprep.subr.bf16.mxu1 %v13030_v1 }
0xf0fb   :  { %12579 = vmatpush3.bf16.msra.mxu1 %v15208_v19 }
0xf0fc   :  { %12592 = vmatprep.subr.bf16.mxu1 %v13030_v1 }
0xf1b6   :  { %v9437_v5 = vpop.f32.mrf.mxu1 }
0xf1b7   :  { %v9438_v29 = vadd.f32 %v15264_v20, %v9437_v5 }
0xf1b8   :  { %v12566_v17 = vpop.f32.mrf.mxu1 }
0xf1b9   :  { %v9443_v23 = vadd.f32 %v9438_v29, %v15506_v21  ;;  %v15589_v21 = vld [vmem:[%s15811_s3 + $0x8] sm:$0xff]  }
0xf1ba   :  { %v9440_v31 = vpop.f32.mrf.mxu1 }
0xf1bb   :  { %v9446_v42 = vadd.f32 %v9445_v43, %v9443_v23 }
0xf1bc   :  { %v12567_v57 = vpop.f32.mrf.mxu1 }
0xf1bd   :  { %v9447_v26 = vmul.f32 %v9446_v42, %v15574_v60  ;;  %v15674_v57 = vld [vmem:[%s15812_s4 + $0x1] ss:$0 sm:$0xff]  ;;  %s13036_s4 = smov [#allocation2]  }
0xf1bf   :  { %9449 = vrot.lane.b32.xlu0 %v9447_v26, %s13035_s15 }
0xf231   :  { %v9450_v19 = vpop.permute.xlu0 %9449 }
0xf232   :  { %v15580_v22 = vadd.f32 %v9450_v19, %v15477_v16  ;;  %v15598_v16 = vld [vmem:[%s15811_s3] sm:$0xff]  }
0xf234   :  { %v9453_v48 = vpack.c.bf16 %v15580_v22, %v15580_v22 }
0xf236   :  { %9455 = vrot.lane.b32.xlu1 %v9453_v48, %s13034_s25 }
0xf2a8   :  { %v9456_v30 = vpop.permute.xlu1 %9455 }
0xf2a9   :  { %12573 = vmatmul.mubr.msk.bf16.vlgmr.msra.gmra.mxu0 %vm49_vm1, %v9456_v30 }
0xf2aa   :  { %12585 = vmatpush3.bf16.msra.mxu0 %v15589_v21  ;;  %12588 = vmatprep.mubr.msk.bf16.mxu0 %vm13031_vm0, %v13030_v1 }
0xf2ab   :  { %12586 = vmatprep.subr.bf16.mxu0 %v13030_v1 }
0xf2ae   :  { %12587 = vmatpush3.bf16.msra.mxu0 %v15598_v16 }
0xf2af   :  { %12600 = vmatprep.subr.bf16.mxu0 %v13030_v1 }
0xf369   :  { %v9494_v28 = vpop.f32.mrf.mxu0 }
0xf36a   :  { %v9495_v61 = vadd.f32 %v15250_v0, %v9494_v28 }
0xf36b   :  { %v12574_v34 = vpop.f32.mrf.mxu0 }
0xf36c   :  { %12950 = vtanh.f32 %v9495_v61 }
0xf36d   :  { %v9497_v12 = vpop.f32.mrf.mxu0 }
0xf36f   :  { %v12575_v45 = vpop.f32.mrf.mxu0 }
0xf379   :  { %v12951_v35 = vpop.eup %12950 }
0xf37a   :  { %v9501_v13 = vpack.c.bf16 %v12951_v35, %v12951_v35 }
0xf37c   :  { %12581 = vmatmul.mubr.msk.bf16.vlgmr.msra.gmra.mxu1 %vm49_vm1, %v9501_v13 }
0xf37d   :  { %12593 = vmatpush3.bf16.msra.mxu1 %v15607_v27  ;;  %12596 = vmatprep.mubr.msk.bf16.mxu1 %vm13031_vm0, %v13030_v1 }
0xf37e   :  { %12594 = vmatprep.subr.bf16.mxu1 %v13030_v1 }
0xf381   :  { %12595 = vmatpush3.bf16.msra.mxu1 %v15616_v14 }
0xf382   :  { %12608 = vmatprep.subr.bf16.mxu1 %v13030_v1 }
0xf43c   :  { %v9539_v59 = vpop.f32.mrf.mxu1 }
0xf43d   :  { %v15621_v15 = vadd.f32 %v15264_v20, %v9539_v59 }
0xf43e   :  { %v12582_v7 = vpop.f32.mrf.mxu1 }
0xf43f   :  { %v9545_v62 = vmul.f32 %v15621_v15, %v15503_v3 }
0xf440   :  { %v9542_v55 = vpop.f32.mrf.mxu1 }
0xf441   :  { %9547 = vrot.lane.b32.xlu0 %v9545_v62, %s13035_s15 }
0xf442   :  { %v12583_v46 = vpop.f32.mrf.mxu1 }
0xf4b3   :  { %v9548_v32 = vpop.permute.xlu0 %9547 }
0xf4b4   :  { %v9550_v47 = vadd.f32 %v9548_v32, %v15580_v22 }
0xf4b6   :  { %v9551_v4 = vpack.c.bf16 %v9550_v47, %v9550_v47 }
0xf4b8   :  { %9553 = vrot.lane.b32.xlu1 %v9551_v4, %s13034_s25 }
0xf52a   :  { %v9554_v50 = vpop.permute.xlu1 %9553 }
0xf52b   :  { %12589 = vmatmul.mubr.msk.bf16.vlgmr.msra.gmra.mxu0 %vm49_vm1, %v9554_v50 }
0xf52c   :  { %12601 = vmatpush3.bf16.msra.mxu0 %v15589_v21  ;;  %12604 = vmatprep.mubr.msk.bf16.mxu0 %vm13031_vm0, %v13030_v1 }
0xf52d   :  { %12602 = vmatprep.subr.bf16.mxu0 %v13030_v1 }
0xf530   :  { %12603 = vmatpush3.bf16.msra.mxu0 %v15598_v16 }
0xf531   :  { %12616 = vmatprep.subr.bf16.mxu0 %v13030_v1 }
0xf5eb   :  { %v9592_v51 = vpop.f32.mrf.mxu0 }
0xf5ec   :  { %v9593_v39 = vadd.f32 %v15250_v0, %v9592_v51 }
0xf5ed   :  { %v12590_v41 = vpop.f32.mrf.mxu0 }
0xf5ee   :  { %12952 = vtanh.f32 %v9593_v39 }
0xf5ef   :  { %v9595_v44 = vpop.f32.mrf.mxu0 }
0xf5f1   :  { %v12591_v58 = vpop.f32.mrf.mxu0 }
0xf5fb   :  { %v12953_v9 = vpop.eup %12952 }
0xf5fc   :  { %v9599_v2 = vpack.c.bf16 %v12953_v9, %v12953_v9 }
0xf5fe   :  { %12597 = vmatmul.mubr.msk.bf16.vlgmr.msra.gmra.mxu1 %vm49_vm1, %v9599_v2 }
0xf5ff   :  { %12609 = vmatpush3.bf16.msra.mxu1 %v15607_v27  ;;  %12612 = vmatprep.mubr.msk.bf16.mxu1 %vm13031_vm0, %v13030_v1 }
0xf600   :  { %12610 = vmatprep.subr.bf16.mxu1 %v13030_v1 }
0xf603   :  { %12611 = vmatpush3.bf16.msra.mxu1 %v15616_v14 }
0xf604   :  { %12624 = vmatprep.subr.bf16.mxu1 %v13030_v1 }
0xf6be   :  { %v9637_v0 = vpop.f32.mrf.mxu1 }
0xf6bf   :  { %v15644_v38 = vadd.f32 %v15264_v20, %v9637_v0 }
0xf6c0   :  { %v12598_v10 = vpop.f32.mrf.mxu1 }
0xf6c1   :  { %v9643_v49 = vmul.f32 %v15644_v38, %v15503_v3 }
0xf6c2   :  { %v9640_v37 = vpop.f32.mrf.mxu1 }
0xf6c3   :  { %9645 = vrot.lane.b32.xlu0 %v9643_v49, %s13035_s15 }
0xf6c4   :  { %v12599_v18 = vpop.f32.mrf.mxu1 }
0xf735   :  { %v9646_v11 = vpop.permute.xlu0 %9645 }
0xf736   :  { %v9648_v36 = vadd.f32 %v9646_v11, %v15580_v22 }
0xf738   :  { %v9649_v8 = vpack.c.bf16 %v9648_v36, %v9648_v36 }
0xf73a   :  { %9651 = vrot.lane.b32.xlu1 %v9649_v8, %s13034_s25 }
0xf7ac   :  { %v9652_v53 = vpop.permute.xlu1 %9651 }
0xf7ad   :  { %12605 = vmatmul.mubr.msk.bf16.vlgmr.msra.gmra.mxu0 %vm49_vm1, %v9652_v53 }
0xf7ae   :  { %12617 = vmatpush3.bf16.msra.mxu0 %v15589_v21  ;;  %12620 = vmatprep.mubr.msk.bf16.mxu0 %vm13031_vm0, %v13030_v1 }
0xf7af   :  { %12618 = vmatprep.subr.bf16.mxu0 %v13030_v1 }
0xf7b2   :  { %12619 = vmatpush3.bf16.msra.mxu0 %v15598_v16 }
0xf7b3   :  { %12632 = vmatprep.subr.bf16.mxu0 %v13030_v1 }
0xf86d   :  { %v9690_v20 = vpop.f32.mrf.mxu0 }
0xf86e   :  { %v9691_v5 = vadd.f32 %v15661_v63, %v9690_v20 }
0xf86f   :  { %v12606_v29 = vpop.f32.mrf.mxu0 }
0xf870   :  { %12954 = vtanh.f32 %v9691_v5 }
0xf871   :  { %v9693_v17 = vpop.f32.mrf.mxu0 }
0xf873   :  { %v12607_v43 = vpop.f32.mrf.mxu0 }
0xf87d   :  { %v12955_v23 = vpop.eup %12954 }
0xf87e   :  { %v9697_v31 = vpack.c.bf16 %v12955_v23, %v12955_v23 }
0xf880   :  { %12613 = vmatmul.mubr.msk.bf16.vlgmr.msra.gmra.mxu1 %vm49_vm1, %v9697_v31 }
0xf881   :  { %12625 = vmatpush3.bf16.msra.mxu1 %v15607_v27  ;;  %12628 = vmatprep.mubr.msk.bf16.mxu1 %vm13031_vm0, %v13030_v1 }
0xf882   :  { %12626 = vmatprep.subr.bf16.mxu1 %v13030_v1 }
0xf885   :  { %12627 = vmatpush3.bf16.msra.mxu1 %v15616_v14 }
0xf886   :  { %12640 = vmatprep.subr.bf16.mxu1 %v13030_v1 }
0xf940   :  { %v9735_v42 = vpop.f32.mrf.mxu1 }
0xf941   :  { %v9736_v26 = vadd.f32 %v15674_v57, %v9735_v42 }
0xf942   :  { %v12614_v19 = vpop.f32.mrf.mxu1 }
0xf943   :  { %v9741_v48 = vmul.f32 %v15500_v25, %v9736_v26  ;;  %v9840_v32 = vadd.f32 %v9736_v26, %v15644_v38 }
0xf944   :  { %v9738_v30 = vpop.f32.mrf.mxu1 }
0xf945   :  { %9743 = vrot.lane.b32.xlu0 %v9741_v48, %s13035_s15  ;;  %v9841_v51 = vmul.f32 2.0, %v9840_v32 }
0xf946   :  { %v12615_v28 = vpop.f32.mrf.mxu1 }
0xf9b7   :  { %v9744_v61 = vpop.permute.xlu0 %9743 }
0xf9b8   :  { %v9746_v34 = vadd.f32 %v9744_v61, %v15580_v22 }
0xf9ba   :  { %v9747_v12 = vpack.c.bf16 %v9746_v34, %v9746_v34 }
0xf9bc   :  { %9749 = vrot.lane.b32.xlu1 %v9747_v12, %s13034_s25 }
0xfa2e   :  { %v9750_v45 = vpop.permute.xlu1 %9749 }
0xfa2f   :  { %12621 = vmatmul.mubr.msk.bf16.vlgmr.msra.gmra.mxu0 %vm49_vm1, %v9750_v45 }
0xfa30   :  { %12633 = vmatpush3.bf16.msra.mxu0 %v15589_v21  ;;  %12636 = vmatprep.mubr.msk.bf16.mxu0 %vm13031_vm0, %v13030_v1 }
0xfa31   :  { %12634 = vmatprep.subr.bf16.mxu0 %v13030_v1 }
0xfa34   :  { %12635 = vmatpush3.bf16.msra.mxu0 %v15598_v16 }
0xfa35   :  { %12648 = vmatprep.subr.bf16.mxu0 %v13030_v1 }
0xfaef   :  { %v9788_v35 = vpop.f32.mrf.mxu0 }
0xfaf0   :  { %v9789_v13 = vadd.f32 %v15661_v63, %v9788_v35 }
0xfaf1   :  { %v12622_v59 = vpop.f32.mrf.mxu0 }
0xfaf2   :  { %12956 = vtanh.f32 %v9789_v13 }
0xfaf3   :  { %v9791_v7 = vpop.f32.mrf.mxu0 }
0xfaf5   :  { %v12623_v62 = vpop.f32.mrf.mxu0 }
0xfaff   :  { %v12957_v55 = vpop.eup %12956 }
0xfb00   :  { %v9795_v46 = vpack.c.bf16 %v12957_v55, %v12957_v55 }
0xfb02   :  { %12629 = vmatmul.mubr.msk.bf16.vlgmr.msra.gmra.mxu1 %vm49_vm1, %v9795_v46 }
0xfb03   :  { %12641 = vmatpush3.bf16.msra.mxu1 %v15607_v27  ;;  %12644 = vmatprep.mubr.msk.bf16.mxu1 %vm13031_vm0, %v13030_v1 }
0xfb04   :  { %12642 = vmatprep.subr.bf16.mxu1 %v13030_v1 }
0xfb07   :  { %12643 = vmatpush3.bf16.msra.mxu1 %v15616_v14 }
0xfb08   :  { %12656 = vmatprep.subr.bf16.mxu1 %v13030_v1 }
0xfbc2   :  { %v9833_v47 = vpop.f32.mrf.mxu1 }
0xfbc3   :  { %v9834_v4 = vadd.f32 %v15674_v57, %v9833_v47 }
0xfbc4   :  { %v12630_v50 = vpop.f32.mrf.mxu1 }
0xfbc5   :  { %v9839_v39 = vadd.f32 %v9834_v4, %v15621_v15 }
0xfbc6   :  { %v9836_v41 = vpop.f32.mrf.mxu1 }
0xfbc7   :  { %v9842_v44 = vadd.f32 %v9841_v51, %v9839_v39 }
0xfbc8   :  { %v12631_v58 = vpop.f32.mrf.mxu1 }
0xfbc9   :  { %v9843_v9 = vmul.f32 %v9842_v44, %v15574_v60 }
0xfbcb   :  { %9845 = vrot.lane.b32.xlu0 %v9843_v9, %s13035_s15 }
0xfc3d   :  { %v9846_v2 = vpop.permute.xlu0 %9845 }
0xfc3e   :  { %v15702_v0 = vadd.f32 %v9846_v2, %v15580_v22 }
0xfc40   :  { %v9849_v38 = vpack.c.bf16 %v15702_v0, %v15702_v0 }
0xfc42   :  { %9851 = vrot.lane.b32.xlu1 %v9849_v38, %s13034_s25 }
0xfcb4   :  { %v9852_v10 = vpop.permute.xlu1 %9851 }
0xfcb5   :  { %12637 = vmatmul.mubr.msk.bf16.vlgmr.msra.gmra.mxu0 %vm49_vm1, %v9852_v10 }
0xfcb6   :  { %12649 = vmatpush3.bf16.msra.mxu0 %v15589_v21  ;;  %12652 = vmatprep.mubr.msk.bf16.mxu0 %vm13031_vm0, %v13030_v1 }
0xfcb7   :  { %12650 = vmatprep.subr.bf16.mxu0 %v13030_v1 }
0xfcba   :  { %12651 = vmatpush3.bf16.msra.mxu0 %v15598_v16 }
0xfcbb   :  { %12664 = vmatprep.subr.bf16.mxu0 %v13030_v1 }
0xfd75   :  { %v9890_v22 = vpop.f32.mrf.mxu0 }
0xfd76   :  { %v9891_v15 = vadd.f32 %v15661_v63, %v9890_v22 }
0xfd77   :  { %v12638_v49 = vpop.f32.mrf.mxu0 }
0xfd78   :  { %12958 = vtanh.f32 %v9891_v15 }
0xfd79   :  { %v9893_v37 = vpop.f32.mrf.mxu0 }
0xfd7b   :  { %v12639_v18 = vpop.f32.mrf.mxu0 }
0xfd85   :  { %v12959_v11 = vpop.eup %12958 }
0xfd86   :  { %v9897_v36 = vpack.c.bf16 %v12959_v11, %v12959_v11 }
0xfd88   :  { %12645 = vmatmul.mubr.msk.bf16.vlgmr.msra.gmra.mxu1 %vm49_vm1, %v9897_v36 }
0xfd89   :  { %12657 = vmatpush3.bf16.msra.mxu1 %v15607_v27  ;;  %12660 = vmatprep.mubr.msk.bf16.mxu1 %vm13031_vm0, %v13030_v1 }
0xfd8a   :  { %12658 = vmatprep.subr.bf16.mxu1 %v13030_v1 }
0xfd8d   :  { %12659 = vmatpush3.bf16.msra.mxu1 %v15616_v14 }
0xfd8e   :  { %12672 = vmatprep.subr.bf16.mxu1 %v13030_v1 }
0xfe48   :  { %v9935_v8 = vpop.f32.mrf.mxu1 }
0xfe49   :  { %v15723_v53 = vadd.f32 %v15674_v57, %v9935_v8 }
0xfe4a   :  { %v12646_v20 = vpop.f32.mrf.mxu1 }
0xfe4b   :  { %v9941_v5 = vmul.f32 %v15723_v53, %v15503_v3 }
0xfe4c   :  { %v9938_v29 = vpop.f32.mrf.mxu1 }
0xfe4d   :  { %9943 = vrot.lane.b32.xlu0 %v9941_v5, %s13035_s15 }
0xfe4e   :  { %v12647_v17 = vpop.f32.mrf.mxu1 }
0xfebf   :  { %v9944_v43 = vpop.permute.xlu0 %9943 }
0xfec0   :  { %v9946_v23 = vadd.f32 %v9944_v43, %v15702_v0 }
0xfec2   :  { %v9947_v31 = vpack.c.bf16 %v9946_v23, %v9946_v23 }
0xfec4   :  { %9949 = vrot.lane.b32.xlu1 %v9947_v31, %s13034_s25 }
0xff36   :  { %v9950_v42 = vpop.permute.xlu1 %9949 }
0xff37   :  { %12653 = vmatmul.mubr.msk.bf16.vlgmr.msra.gmra.mxu0 %vm49_vm1, %v9950_v42 }
0xff38   :  { %12665 = vmatpush3.bf16.msra.mxu0 %v15589_v21  ;;  %12668 = vmatprep.mubr.msk.bf16.mxu0 %vm13031_vm0, %v13030_v1 }
0xff39   :  { %12666 = vmatprep.subr.bf16.mxu0 %v13030_v1 }
0xff3c   :  { %12667 = vmatpush3.bf16.msra.mxu0 %v15598_v16 }
0xff3d   :  { %12680 = vmatprep.subr.bf16.mxu0 %v13030_v1 }
0xfff7   :  { %v9988_v26 = vpop.f32.mrf.mxu0 }
0xfff8   :  { %v9989_v19 = vadd.f32 %v15661_v63, %v9988_v26 }
0xfff9   :  { %v12654_v48 = vpop.f32.mrf.mxu0 }
0xfffa   :  { %12960 = vtanh.f32 %v9989_v19 }
0xfffb   :  { %v9991_v30 = vpop.f32.mrf.mxu0 }
0xfffd   :  { %v12655_v28 = vpop.f32.mrf.mxu0 }
0x10007   :  { %v12961_v61 = vpop.eup %12960 }
0x10008   :  { %v9995_v34 = vpack.c.bf16 %v12961_v61, %v12961_v61 }
0x1000a   :  { %12661 = vmatmul.mubr.msk.bf16.vlgmr.msra.gmra.mxu1 %vm49_vm1, %v9995_v34 }
0x1000b   :  { %12673 = vmatpush3.bf16.msra.mxu1 %v15607_v27  ;;  %12676 = vmatprep.mubr.msk.bf16.mxu1 %vm13031_vm0, %v13030_v1 }
0x1000c   :  { %12674 = vmatprep.subr.bf16.mxu1 %v13030_v1 }
0x1000f   :  { %12675 = vmatpush3.bf16.msra.mxu1 %v15616_v14 }
0x10010   :  { %12688 = vmatprep.subr.bf16.mxu1 %v13030_v1 }
0x100ca   :  { %v10033_v12 = vpop.f32.mrf.mxu1 }
0x100cb   :  { %v15746_v45 = vadd.f32 %v15674_v57, %v10033_v12 }
0x100cc   :  { %v12662_v35 = vpop.f32.mrf.mxu1 }
0x100cd   :  { %v10039_v13 = vmul.f32 %v15746_v45, %v15503_v3 }
0x100ce   :  { %v10036_v59 = vpop.f32.mrf.mxu1 }
0x100cf   :  { %10041 = vrot.lane.b32.xlu0 %v10039_v13, %s13035_s15 }
0x100d0   :  { %v12663_v7 = vpop.f32.mrf.mxu1 }
0x10141   :  { %v10042_v62 = vpop.permute.xlu0 %10041 }
0x10142   :  { %v10044_v55 = vadd.f32 %v10042_v62, %v15702_v0 }
0x10144   :  { %v10045_v46 = vpack.c.bf16 %v10044_v55, %v10044_v55 }
0x10146   :  { %10047 = vrot.lane.b32.xlu1 %v10045_v46, %s13034_s25 }
0x101b8   :  { %v10048_v32 = vpop.permute.xlu1 %10047 }
0x101b9   :  { %12669 = vmatmul.mubr.msk.bf16.vlgmr.msra.gmra.mxu0 %vm49_vm1, %v10048_v32 }
0x101ba   :  { %12681 = vmatpush3.bf16.msra.mxu0 %v15589_v21  ;;  %12684 = vmatprep.mubr.msk.bf16.mxu0 %vm13031_vm0, %v13030_v1 }
0x101bb   :  { %12682 = vmatprep.subr.bf16.mxu0 %v13030_v1 }
0x101be   :  { %12683 = vmatpush3.bf16.msra.mxu0 %v15598_v16 }
0x10279   :  { %v10086_v3 = vpop.f32.mrf.mxu0 }
0x1027a   :  { %v10087_v47 = vadd.f32 %v15661_v63, %v10086_v3 }
0x1027b   :  { %v12670_v4 = vpop.f32.mrf.mxu0 }
0x1027c   :  { %12962 = vtanh.f32 %v10087_v47 }
0x1027d   :  { %v10089_v50 = vpop.f32.mrf.mxu0 }
0x1027f   :  { %v12671_v51 = vpop.f32.mrf.mxu0 }
0x10289   :  { %v12963_v39 = vpop.eup %12962 }
0x1028a   :  { %v10093_v41 = vpack.c.bf16 %v12963_v39, %v12963_v39 }
0x1028c   :  { %12677 = vmatmul.mubr.msk.bf16.vlgmr.msra.gmra.mxu1 %vm49_vm1, %v10093_v41 }
0x1028d   :  { %12689 = vmatpush3.bf16.msra.mxu1 %v15607_v27  ;;  %12692 = vmatprep.mubr.msk.bf16.mxu1 %vm13031_vm0, %v13030_v1 }
0x1028e   :  { %12690 = vmatprep.subr.bf16.mxu1 %v13030_v1 }
0x10291   :  { %12691 = vmatpush3.bf16.msra.mxu1 %v15616_v14 }
0x1034c   :  { %v10131_v21 = vpop.f32.mrf.mxu1 }
0x1034d   :  { %v10132_v16 = vadd.f32 %v15674_v57, %v10131_v21 }
0x1034e   :  { %v12678_v44 = vpop.f32.mrf.mxu1 }
0x1034f   :  { %v10137_v58 = vmul.f32 %v15500_v25, %v10132_v16  ;;  %v10236_v11 = vadd.f32 %v10132_v16, %v15746_v45 }
0x10350   :  { %v10134_v9 = vpop.f32.mrf.mxu1 }
0x10351   :  { %10139 = vrot.lane.b32.xlu0 %v10137_v58, %s13035_s15  ;;  %v10237_v5 = vmul.f32 2.0, %v10236_v11 }
0x10352   :  { %v12679_v2 = vpop.f32.mrf.mxu1 }
0x103c3   :  { %v10140_v38 = vpop.permute.xlu0 %10139 }
0x103c4   :  { %v10142_v27 = vadd.f32 %v10140_v38, %v15702_v0 }
0x103c6   :  { %v10143_v10 = vpack.c.bf16 %v10142_v27, %v10142_v27 }
0x103c8   :  { %10145 = vrot.lane.b32.xlu1 %v10143_v10, %s13034_s25 }
0x103cc   :  { %1342 = vrot.lane.b32.xlu1 %v13424_v40, %s13034_s25 }
0x103d0   :  { %3886 = vrot.lane.b32.xlu1 %v14112_v54, %s13034_s25 }
0x103d4   :  { %6430 = vrot.lane.b32.xlu1 %v14780_v24, %s13034_s25 }
0x103d8   :  { %8974 = vrot.lane.b32.xlu1 %v15458_v56, %s13034_s25 }
0x1043a   :  { %v10146_v1 = vpop.permute.xlu1 %10145 }
0x1043b   :  { %12685 = vmatmul.mubr.msk.bf16.vlgmr.msra.gmra.mxu0 %vm49_vm1, %v10146_v1 }
0x1043e   :  { %v1343_v25 = vpop.permute.xlu1 %1342 }
0x1043f   :  { %1346 = vst.msk [vmem:[#allocation2] sm:$0x3] %vm1345_vm2, %v1343_v25 }
0x10442   :  { %v3887_v14 = vpop.permute.xlu1 %3886 }
0x10443   :  { %3890 = vst.msk [vmem:[#allocation2 + $0x4] sm:$0x3] %vm1345_vm2, %v3887_v14 }
0x10446   :  { %v6431_v40 = vpop.permute.xlu1 %6430 }
0x10447   :  { %6434 = vst.msk [vmem:[#allocation2 + $0x8] sm:$0x3] %vm1345_vm2, %v6431_v40 }
0x1044a   :  { %v8975_v54 = vpop.permute.xlu1 %8974 }
0x1044b   :  { %8978 = vst.msk [vmem:[#allocation2 + $0xc] sm:$0x3] %vm1345_vm2, %v8975_v54 }
0x104fb   :  { %v10184_v24 = vpop.f32.mrf.mxu0 }
0x104fc   :  { %v10185_v22 = vadd.f32 %v15661_v63, %v10184_v24 }
0x104fd   :  { %v12686_v56 = vpop.f32.mrf.mxu0 }
0x104fe   :  { %12964 = vtanh.f32 %v10185_v22 }
0x104ff   :  { %v10187_v15 = vpop.f32.mrf.mxu0 }
0x10501   :  { %v12687_v49 = vpop.f32.mrf.mxu0 }
0x1050b   :  { %v12965_v37 = vpop.eup %12964 }
0x1050c   :  { %v10191_v18 = vpack.c.bf16 %v12965_v37, %v12965_v37 }
0x1050e   :  { %12693 = vmatmul.mubr.msk.bf16.vlgmr.msra.gmra.mxu1 %vm49_vm1, %v10191_v18 }
0x105ce   :  { %v10229_v36 = vpop.f32.mrf.mxu1 }
0x105cf   :  { %v10230_v8 = vadd.f32 %v15674_v57, %v10229_v36 }
0x105d0   :  { %v12694_v20 = vpop.f32.mrf.mxu1 }
0x105d1   :  { %v10235_v29 = vadd.f32 %v10230_v8, %v15723_v53 }
0x105d2   :  { %v10232_v17 = vpop.f32.mrf.mxu1 }
0x105d3   :  { %v10238_v43 = vadd.f32 %v10237_v5, %v10235_v29 }
0x105d4   :  { %v12695_v63 = vpop.f32.mrf.mxu1 }
0x105d5   :  { %v10239_v23 = vmul.f32 %v10238_v43, %v15574_v60 }
0x105d7   :  { %10241 = vrot.lane.b32.xlu0 %v10239_v23, %s13035_s15  ;;  %s10256_s15 = sshll.u32 %s13036_s4, 4  ;;  %s10257_s15 = int_to_ptr.vmem [resolvable:$true] %s10256_s15 }
0x105d8   :  { %s13008_s11 = scalar_lea.vmem %s10257_s15, 256  ;;  %p13013_p1 = scmp.lt.s32.totalorder %s10257_s15, %s10257_s15 }
0x105d9   :  { %p13009_p0 = scmp.ne.s32.totalorder %s10257_s15, %s13008_s11  ;;  %p13014_p2 = scmp.lt.s32.totalorder %s13008_s11, %s13008_s11 }
0x105db   :  { %2614 = vrot.lane.b32.xlu0 %v13773_v6, %s13034_s25  ;;  %p13015_p3 = por %p13014_p2, %p13013_p1 }
0x105dd   :  { %p13016_p4 = pnand %p13015_p3, %p13009_p0 }
0x105df   :  { %5158 = vrot.lane.b32.xlu0 %v14461_v33, %s13034_s25 }
0x105e3   :  { %7702 = vrot.lane.b32.xlu0 %v15119_v52, %s13034_s25 }
0x10649   :  { %v10242_v57 = vpop.permute.xlu0 %10241 }
0x1064a   :  { %v10244_v31 = vadd.f32 %v10242_v57, %v15702_v0 }
0x1064c   :  { %10246 = vrot.lane.b32.xlu0 %v10244_v31, %s13034_s25 }
0x1064d   :  { %v2615_v53 = vpop.permute.xlu0 %2614 }
0x1064e   :  { %2618 = vst.msk [vmem:[#allocation2 + $0x2] sm:$0x3] %vm1345_vm2, %v2615_v53 }
0x10651   :  { %v5159_v60 = vpop.permute.xlu0 %5158 }
0x10652   :  { %5162 = vst.msk [vmem:[#allocation2 + $0x6] sm:$0x3] %vm1345_vm2, %v5159_v60 }
0x10655   :  { %v7703_v42 = vpop.permute.xlu0 %7702 }
0x10656   :  { %7706 = vst.msk [vmem:[#allocation2 + $0xa] sm:$0x3] %vm1345_vm2, %v7703_v42 }
0x106be   :  { %v10247_v6 = vpop.permute.xlu0 %10246 }
0x106bf   :  { %10250 = vst.msk [vmem:[#allocation2 + $0xe] sm:$0x3] %vm1345_vm2, %v10247_v6 }
0x106c0   :  { %13019 = shalt.err (!%p13016_p4)
}
0x106c1   :  { %s13037_s12 = smov 2  }
0x106c2   :  { %10262 = dma.vmem_to_hbm [thread:$0]  %s10257_s15, 256, %s15813_s5, [#allocation3], %s13034_s25, %s13034_s25, %s13037_s12  }
0x106c3   :  { %13028 = dma.done.wait [#allocation3], 256  }
0x106c4   :  { %13029 = vsyncadd [#allocation3], 4294967040 }
0x106c5   :  { %10266 = vsyncpa [#allocation3], 1 }

</bundles_post_ra>
